<compile_context>
chip_gen: v7x
topology: tpu7x:2x2x1
jax: 0.10.0
libtpu: 0.0.40
codegen_flags: <defaults>
</compile_context>

<pallas_src>
import functools

import jax
import jax.numpy as jnp
from jax.experimental import pallas as pl
from jax.experimental.pallas import tpu as pltpu

VMEM_LIMIT = 48 * 1024 * 1024   # stays inside v7x's 64 MiB per-core VMEM
ROW_TILE = 64                   # row-band cap for the conv grid
COUT_TILE = 256                 # matches v6e/v7x MXU width (v5e would prefer 128)


def _divisor_tile(total, cap, multiple=1):
    """Largest divisor of `total` that is <= cap and a multiple of `multiple`."""
    cap = min(cap, total)
    for t in range(cap, 0, -1):
        if total % t == 0 and t % multiple == 0:
            return t
    return total


# ------------------------------------------------------------------ fused conv kernel
def _conv_kernel(*refs, KH, KW, TH, W, pool, out_relu, input_relu, has_res):
    if has_res:
        x_ref, w_ref, b_ref, res_ref, o_ref, acc_ref = refs
    else:
        x_ref, w_ref, b_ref, o_ref, acc_ref = refs
        res_ref = None

    row0 = pl.program_id(2) * TH
    acc_ref[...] = jnp.zeros_like(acc_ref)

    for dh in range(KH):
        for dw in range(KW):
            # (TH, W, K) bf16 window; contract K on the MXU, accumulate in f32.
            win = x_ref[0, pl.ds(row0 + dh, TH), dw:dw + W, :]
            if input_relu:
                win = jnp.maximum(win, 0)
            acc_ref[...] += jax.lax.dot_general(
                win, w_ref[dh, dw], (((2,), (0,)), ((), ())),
                preferred_element_type=jnp.float32)

    acc = acc_ref[...] + b_ref[...]                      # (TH, W, TC) + (1, TC)
    if has_res:
        acc = acc + res_ref[0].astype(jnp.float32)
    if out_relu:
        acc = jnp.maximum(acc, 0.0)
    if pool:                                             # fused 2x2 maxpool
        acc = jnp.maximum(jnp.maximum(acc[0::2, 0::2, :], acc[0::2, 1::2, :]),
                          jnp.maximum(acc[1::2, 0::2, :], acc[1::2, 1::2, :]))
    o_ref[0] = acc.astype(o_ref.dtype)


def conv3x3(x, w, b, *, relu=False, input_relu=False, residual=None, pool=False):
    """Fused 3x3 / stride-1 / zero-pad-1 conv: bias [+input ReLU] [+residual] [+ReLU] [+2x2 maxpool].

    x: (N,H,W,Cin), w: (3,3,Cin,Cout), b: (Cout,). Returns (N,Ho,Wo,Cout) bf16.
    """
    N, H, W, cin = x.shape
    cout = w.shape[-1]
    assert not (pool and residual is not None)

    x = x.astype(jnp.bfloat16)
    w = w.astype(jnp.bfloat16)

    if pool and (H % 2 or W % 2):       # MaxPool2d(2,2) floor semantics
        H, W = (H // 2) * 2, (W // 2) * 2
        x = x[:, :H, :W, :]

    if cin < 8:
        # First VGG layer (cin=3): im2col to K=9*cin -> a single MXU matmul per tile.
        xp = jnp.pad(x, ((0, 0), (1, 1), (1, 1), (0, 0)))
        x_in = jnp.concatenate(
            [xp[:, dh:dh + H, dw:dw + W, :] for dh in range(3) for dw in range(3)],
            axis=-1)
        w_in = w.reshape(1, 1, 9 * cin, cout)
        KH = KW = 1
    else:
        x_in = jnp.pad(x, ((0, 0), (1, 1), (1, 1), (0, 0)))
        w_in = w
        KH = KW = 3

    K = w_in.shape[2]
    Hp, Wp = H + KH - 1, W + KW - 1

    TH = _divisor_tile(H, ROW_TILE, multiple=2 if pool else 1)
    TC = _divisor_tile(cout, COUT_TILE)
    nrow, ncol = H // TH, cout // TC
    Ho, Wo = (H // 2, W // 2) if pool else (H, W)
    THo = TH // 2 if pool else TH

    b2 = b.reshape(1, cout).astype(jnp.float32)

    in_specs = [
        # Input stays resident across the cout/row loops (block index changes only with n).
        pl.BlockSpec((1, Hp, Wp, K), lambda n, c, j: (n, 0, 0, 0)),
        pl.BlockSpec((KH, KW, K, TC), lambda n, c, j: (0, 0, 0, c)),
        pl.BlockSpec((1, TC), lambda n, c, j: (0, c)),
    ]
    operands = [x_in, w_in, b2]
    has_res = residual is not None
    if has_res:
        in_specs.append(pl.BlockSpec((1, THo, Wo, TC), lambda n, c, j: (n, j, 0, c)))
        operands.append(residual.astype(jnp.bfloat16))

    kernel = functools.partial(
        _conv_kernel, KH=KH, KW=KW, TH=TH, W=W, pool=pool,
        out_relu=relu, input_relu=input_relu, has_res=has_res)

    return pl.pallas_call(
        kernel,
        out_shape=jax.ShapeDtypeStruct((N, Ho, Wo, cout), jnp.bfloat16),
        grid=(N, ncol, nrow),
        in_specs=in_specs,
        out_specs=pl.BlockSpec((1, THo, Wo, TC), lambda n, c, j: (n, j, 0, c)),
        scratch_shapes=[pltpu.VMEM((TH, W, TC), jnp.float32)],
        compiler_params=pltpu.CompilerParams(
            dimension_semantics=("parallel", "parallel", "parallel"),
            vmem_limit_bytes=VMEM_LIMIT),
    )(*operands)


# ------------------------------------------------------ head conv + ReLU + bilinear (fused)
def make_bilinear_matrix(out_size, in_size):
    """Row-interpolation matrix matching PyTorch bilinear (align_corners=False)."""
    o = jnp.arange(out_size, dtype=jnp.float32)
    src = (o + 0.5) * (in_size / out_size) - 0.5
    src = jnp.clip(src, 0.0, float(in_size - 1))
    i0 = jnp.clip(jnp.floor(src).astype(jnp.int32), 0, in_size - 1)
    i1 = jnp.clip(i0 + 1, 0, in_size - 1)
    w1 = src - i0.astype(jnp.float32)
    w0 = 1.0 - w1
    m = jax.nn.one_hot(i0, in_size) * w0[:, None] + jax.nn.one_hot(i1, in_size) * w1[:, None]
    return m.astype(jnp.float32)                               # (out, in)


def _head_upsample_kernel(x_ref, w_ref, b_ref, wh_ref, wwt_ref, o_ref, *, H, W):
    acc = jnp.zeros((H, W), jnp.float32)
    for dh in range(3):
        for dw in range(3):
            win = x_ref[0, dh:dh + H, dw:dw + W, :]            # (H, W, 64) bf16
            acc = acc + jax.lax.dot_general(
                win, w_ref[dh, dw], (((2,), (0,)), ((), ())),  # contract channels -> (H, W)
                preferred_element_type=jnp.float32)
    d = jnp.maximum(acc + b_ref[0, 0], 0.0)                    # Conv(64->1) + ReLU, never stored
    t = jnp.dot(wh_ref[...], d, preferred_element_type=jnp.float32)          # (228, W)
    o_ref[0] = jnp.dot(t, wwt_ref[...], preferred_element_type=jnp.float32)  # (228, 304)


def head_upsample(x, w, b, out_h, out_w):
    """x: (N,H,W,64) -> fused Conv2d(64,1,3,pad=1) + ReLU + bilinear to (N,out_h,out_w)."""
    N, H, W, C = x.shape
    xp = jnp.pad(x.astype(jnp.bfloat16), ((0, 0), (1, 1), (1, 1), (0, 0)))
    wh = make_bilinear_matrix(out_h, H)                        # (out_h, H)
    wwt = make_bilinear_matrix(out_w, W).T                     # (W, out_w)
    kernel = functools.partial(_head_upsample_kernel, H=H, W=W)
    return pl.pallas_call(
        kernel,
        out_shape=jax.ShapeDtypeStruct((N, out_h, out_w), jnp.float32),
        grid=(N,),
        in_specs=[
            pl.BlockSpec((1, H + 2, W + 2, C), lambda n: (n, 0, 0, 0)),
            pl.BlockSpec((3, 3, C), lambda n: (0, 0, 0)),
            pl.BlockSpec((1, 1), lambda n: (0, 0)),
            pl.BlockSpec((out_h, H), lambda n: (0, 0)),
            pl.BlockSpec((W, out_w), lambda n: (0, 0)),
        ],
        out_specs=pl.BlockSpec((1, out_h, out_w), lambda n: (n, 0, 0)),
        compiler_params=pltpu.CompilerParams(
            dimension_semantics=("parallel",), vmem_limit_bytes=VMEM_LIMIT),
    )(xp, w.astype(jnp.bfloat16), b.astype(jnp.float32), wh, wwt)


# ----------------------------------------------------------------- FastUpProjection
def pixel_shuffle2(x):
    """Depth-to-space 2x (XLA glue on bf16): (N,H,W,4C) -> (N,2H,2W,C)."""
    N, H, W, C4 = x.shape
    C = C4 // 4
    x = x.reshape(N, H, W, 2, 2, C)
    x = jnp.transpose(x, (0, 1, 3, 2, 4, 5))
    return x.reshape(N, 2 * H, 2 * W, C)


def fast_up_projection(x, p):
    # TODO(synk): FastUpProjection source was not provided with the module; this implements
    # the canonical FCRN fast up-projection (Laina et al. 2016) with the interleaved
    # unpooling convs expressed as 3x3 convs producing 4*C channels + pixel-shuffle.
    uw, ub = p["up"]          # both branch convs fused along cout -> 8*C channels
    mw, mb = p["mid"]
    c4 = p["c4"]
    y = conv3x3(x, uw, ub, relu=False)                 # one read of x feeds both branches
    b1 = pixel_shuffle2(y[..., :c4])                   # unpool branch (its ReLU is folded below)
    b2 = pixel_shuffle2(y[..., c4:])                   # projection branch
    # mid conv on relu(b1), + b2 residual, then ReLU — all fused in one kernel.
    return conv3x3(b1, mw, mb, relu=True, input_relu=True, residual=b2)


# ----------------------------------------------------------------------- parameters
VGG19_CFG = [64, 64, 'M', 128, 128, 'M', 256, 256, 256, 256, 'M',
             512, 512, 512, 512, 'M', 512, 512, 512, 512, 'M']


def init_params(key):
    keys = iter(jax.random.split(key, 128))

    def conv_init(cin, cout, bias=True):
        std = (2.0 / (9 * cin)) ** 0.5
        w = jax.random.normal(next(keys), (3, 3, cin, cout), jnp.float32) * std
        if bias:
            b = jax.random.normal(next(keys), (cout,), jnp.float32) * 0.01
        else:
            b = jnp.zeros((cout,), jnp.float32)
        return w, b

    features = []
    cin = 3
    for v in VGG19_CFG:
        if v == 'M':
            features.append('M')
        else:
            w, b = conv_init(cin, v)
            features.append((w.astype(jnp.bfloat16), b))
            cin = v

    # extra Conv2d(512,512,3,bias=False) + BatchNorm2d(512) -> folded (eval mode)
    ew, _ = conv_init(512, 512, bias=False)
    kg, kb, km, kv = jax.random.split(next(keys), 4)
    gamma = 1.0 + 0.1 * jax.random.normal(kg, (512,), jnp.float32)
    beta = 0.1 * jax.random.normal(kb, (512,), jnp.float32)
    rmean = 0.1 * jax.random.normal(km, (512,), jnp.float32)
    rvar = 0.9 + 0.2 * jax.random.uniform(kv, (512,), jnp.float32)
    scale = gamma / jnp.sqrt(rvar + 1e-5)
    extra = ((ew * scale[None, None, None, :]).astype(jnp.bfloat16),
             beta - rmean * scale)

    fups = []
    c = 512
    for cout in (256, 128, 64):
        u1w, u1b = conv_init(c, 4 * cout)
        mw, mb = conv_init(cout, cout)
        u2w, u2b = conv_init(c, 4 * cout)
        fups.append({
            "up": (jnp.concatenate([u1w, u2w], axis=-1).astype(jnp.bfloat16),
                   jnp.concatenate([u1b, u2b], axis=-1)),
            "mid": (mw.astype(jnp.bfloat16), mb),
            "c4": 4 * cout,
        })
        c = cout

    hw, hb = conv_init(64, 1)
    head = (hw.reshape(3, 3, 64).astype(jnp.bfloat16), hb.reshape(1, 1))
    return dict(features=features, extra=extra, fups=fups, head=head)


# ----------------------------------------------------------------------- forward
def vgg19_forward(x_nchw, params):
    x = jnp.transpose(x_nchw, (0, 2, 3, 1)).astype(jnp.bfloat16)   # NCHW -> NHWC

    # VGG19 "features": conv+ReLU layers with each following maxpool fused into the conv.
    feats = params["features"]
    i = 0
    while i < len(feats):
        w, b = feats[i]
        pool = (i + 1 < len(feats)) and (feats[i + 1] == 'M')
        x = conv3x3(x, w, b, relu=True, pool=pool)
        i += 2 if pool else 1

    # Conv2d(512,512,3,bias=False) + BatchNorm2d(512), folded (inference semantics)
    ew, eb = params["extra"]
    x = conv3x3(x, ew, eb, relu=False)

    # FastUpProjection(512,256), (256,128), (128,64)
    for fp in params["fups"]:
        x = fast_up_projection(x, fp)

    # nn.Dropout2d() -> identity in eval mode.
    # TODO(synk): training-mode Dropout2d / BatchNorm batch statistics not implemented.

    # Conv2d(64,1,3,padding=1) + ReLU + Upsample((228,304), bilinear), fused into one kernel.
    hw, hb = params["head"]
    x = head_upsample(x, hw, hb, 228, 304)                          # (N, 228, 304)
    return x[:, None, :, :]                                         # NCHW: (N, 1, 228, 304)


# ----------------------------------------------------------------------- main
if __name__ == "__main__":
    key = jax.random.PRNGKey(0)
    kp, kx = jax.random.split(key)
    params = init_params(kp)

    # Small 3-channel NCHW input (spatial % 32 == 0 keeps the 5 VGG maxpools well-defined).
    x = jax.random.normal(kx, (2, 3, 64, 64), jnp.float32)

    out = vgg19_forward(x, params)
    out = jax.block_until_ready(out)

    assert out.shape == (2, 1, 228, 304), out.shape
    assert bool(jnp.all(jnp.isfinite(out)))
    print("KERNEL_OK")
</pallas_src>

<mosaic_0001>
module attributes {stable_mosaic.version = 11 : i64} {
  func.func @_conv_kernel(%arg0: i32, %arg1: i32, %arg2: i32, %arg3: memref<1x64x64x27xbf16, #tpu.memory_space<vmem>>, %arg4: memref<1x1x27x64xbf16, #tpu.memory_space<vmem>>, %arg5: memref<1x64xf32, #tpu.memory_space<vmem>>, %arg6: memref<1x64x64x64xbf16, #tpu.memory_space<vmem>>, %arg7: memref<64x64x64xf32, #tpu.memory_space<vmem>>) attributes {dimension_semantics = [#tpu.dimension_semantics<parallel>, #tpu.dimension_semantics<parallel>, #tpu.dimension_semantics<parallel>], iteration_bounds = array<i64: 2, 1, 1>, scalar_prefetch = 0 : i64, scratch_operands = 1 : i64, tpu.core_type = #tpu.core_type<tc>, window_params = [{transform_indices = @transform_0, window_bounds = array<i64: 1, 64, 64, 27>}, {transform_indices = @transform_1, window_bounds = array<i64: 1, 1, 27, 64>}, {transform_indices = @transform_2, window_bounds = array<i64: 1, 64>}, {transform_indices = @transform_3, window_bounds = array<i64: 1, 64, 64, 64>}]} {
    %c64_i32 = arith.constant 64 : i32
    %0 = arith.muli %arg2, %c64_i32 : i32
    %cst = arith.constant 0.000000e+00 : f32
    %1 = vector.broadcast %cst : f32 to vector<64x64x64xf32>
    %c0 = arith.constant 0 : index
    %c0_0 = arith.constant 0 : index
    %c0_1 = arith.constant 0 : index
    %2 = vector.load %arg7[%c0, %c0_0, %c0_1] : memref<64x64x64xf32, #tpu.memory_space<vmem>>, vector<64x64x64xf32>
    tpu.vector_store %arg7[%c0, %c0_0, %c0_1], %1 {strides = array<i32>} : memref<64x64x64xf32, #tpu.memory_space<vmem>>, vector<64x64x64xf32>,
    %c0_i32 = arith.constant 0 : i32
    %3 = arith.addi %0, %c0_i32 : i32
    %c0_2 = arith.constant 0 : index
    %4 = arith.index_cast %3 : i32 to index
    %c0_3 = arith.constant 0 : index
    %c0_4 = arith.constant 0 : index
    %5 = vector.load %arg3[%c0_2, %4, %c0_3, %c0_4] : memref<1x64x64x27xbf16, #tpu.memory_space<vmem>>, vector<1x64x64x27xbf16>
    %6 = vector.shape_cast %5 : vector<1x64x64x27xbf16> to vector<64x64x27xbf16>
    %c0_5 = arith.constant 0 : index
    %c0_6 = arith.constant 0 : index
    %c0_7 = arith.constant 0 : index
    %7 = vector.load %arg7[%c0_5, %c0_6, %c0_7] : memref<64x64x64xf32, #tpu.memory_space<vmem>>, vector<64x64x64xf32>
    %c0_8 = arith.constant 0 : index
    %c0_9 = arith.constant 0 : index
    %c0_10 = arith.constant 0 : index
    %c0_11 = arith.constant 0 : index
    %8 = vector.load %arg4[%c0_8, %c0_9, %c0_10, %c0_11] : memref<1x1x27x64xbf16, #tpu.memory_space<vmem>>, vector<1x1x27x64xbf16>
    %9 = vector.shape_cast %8 : vector<1x1x27x64xbf16> to vector<27x64xbf16>
    %cst_12 = arith.constant dense<0.000000e+00> : vector<64x64x64xf32>
    %10 = tpu.matmul %6, %9, %cst_12 {dimension_numbers = #tpu.dot_dimension_numbers<[2], [0], [0, 1], [1], [0, 0, 0, 1, 1, 1], [], []>} : vector<64x64x27xbf16>, vector<27x64xbf16>, vector<64x64x64xf32> -> vector<64x64x64xf32>
    %11 = arith.addf %7, %10 : vector<64x64x64xf32>
    %c0_13 = arith.constant 0 : index
    %c0_14 = arith.constant 0 : index
    %c0_15 = arith.constant 0 : index
    %12 = vector.load %arg7[%c0_13, %c0_14, %c0_15] : memref<64x64x64xf32, #tpu.memory_space<vmem>>, vector<64x64x64xf32>
    tpu.vector_store %arg7[%c0_13, %c0_14, %c0_15], %11 {strides = array<i32>} : memref<64x64x64xf32, #tpu.memory_space<vmem>>, vector<64x64x64xf32>,
    %c0_16 = arith.constant 0 : index
    %c0_17 = arith.constant 0 : index
    %c0_18 = arith.constant 0 : index
    %13 = vector.load %arg7[%c0_16, %c0_17, %c0_18] : memref<64x64x64xf32, #tpu.memory_space<vmem>>, vector<64x64x64xf32>
    %c0_19 = arith.constant 0 : index
    %c0_20 = arith.constant 0 : index
    %14 = vector.load %arg5[%c0_19, %c0_20] : memref<1x64xf32, #tpu.memory_space<vmem>>, vector<1x64xf32>
    %15 = vector.shape_cast %14 : vector<1x64xf32> to vector<1x1x64xf32>
    %16 = vector.broadcast %15 : vector<1x1x64xf32> to vector<64x64x64xf32>
    %17 = arith.addf %13, %16 : vector<64x64x64xf32>
    %cst_21 = arith.constant 0.000000e+00 : f32
    %18 = vector.broadcast %cst_21 : f32 to vector<64x64x64xf32>
    %19 = arith.maximumf %17, %18 : vector<64x64x64xf32>
    %20 = arith.truncf %19 : vector<64x64x64xf32> to vector<64x64x64xbf16>
    %c0_22 = arith.constant 0 : index
    %c0_23 = arith.constant 0 : index
    %c0_24 = arith.constant 0 : index
    %c0_25 = arith.constant 0 : index
    %21 = vector.load %arg6[%c0_22, %c0_23, %c0_24, %c0_25] : memref<1x64x64x64xbf16, #tpu.memory_space<vmem>>, vector<1x64x64x64xbf16>
    %22 = vector.shape_cast %21 : vector<1x64x64x64xbf16> to vector<64x64x64xbf16>
    %23 = vector.shape_cast %20 : vector<64x64x64xbf16> to vector<1x64x64x64xbf16>
    tpu.vector_store %arg6[%c0_22, %c0_23, %c0_24, %c0_25], %23 {strides = array<i32>} : memref<1x64x64x64xbf16, #tpu.memory_space<vmem>>, vector<1x64x64x64xbf16>,
    return
  }
  func.func @transform_0(%arg0: i32, %arg1: i32, %arg2: i32) -> (i32, i32, i32, i32) {
    %c0_i32 = arith.constant 0 : i32
    %c0_i32_0 = arith.constant 0 : i32
    %c0_i32_1 = arith.constant 0 : i32
    %c0_i32_2 = arith.constant 0 : i32
    return %arg0, %c0_i32, %c0_i32_0, %c0_i32_1 : i32, i32, i32, i32
  }
  func.func @transform_1(%arg0: i32, %arg1: i32, %arg2: i32) -> (i32, i32, i32, i32) {
    %c0_i32 = arith.constant 0 : i32
    %c0_i32_0 = arith.constant 0 : i32
    %c0_i32_1 = arith.constant 0 : i32
    %c0_i32_2 = arith.constant 0 : i32
    return %c0_i32, %c0_i32_0, %c0_i32_1, %arg1 : i32, i32, i32, i32
  }
  func.func @transform_2(%arg0: i32, %arg1: i32, %arg2: i32) -> (i32, i32) {
    %c0_i32 = arith.constant 0 : i32
    %c0_i32_0 = arith.constant 0 : i32
    return %c0_i32, %arg1 : i32, i32
  }
  func.func @transform_3(%arg0: i32, %arg1: i32, %arg2: i32) -> (i32, i32, i32, i32) {
    %c0_i32 = arith.constant 0 : i32
    %c0_i32_0 = arith.constant 0 : i32
    return %arg0, %arg2, %c0_i32, %arg1 : i32, i32, i32, i32
  }
}

</mosaic_0001>

<bundles_post_ra>
// kernel: tpu_custom_call.1
= control target key start
LH: loop header
LB: loop body
LE: loop exit
PB: predicated region body
PF: predicated region fallthrough
CT: control target
= control target key end

     0   :  { %8 = vsyncpa [#allocation4], 0  ;;  %s17706_s0 = inlined_call_operand.vmem [shape: bf16[2,64,64,27], index: 0, kind: input, shape index: {}]   ;;  %s17707_s1 = inlined_call_operand.vmem [shape: bf16[1,1,27,64], index: 1, kind: input, shape index: {}]   ;;  %s17708_s2 = inlined_call_operand.vmem [shape: f32[1,64], index: 2, kind: input, shape index: {}]   ;;  %s17709_s3 = inlined_call_operand.hbm [shape: bf16[2,64,64,64], index: 3, kind: output, shape index: {}]  }
   0x1   :  { %10 = vsyncpa [#allocation4 + $0x1], 0  ;;  %s13939_s12 = smov 0   ;;  %s13941_s13 = smov 0  }
   0x2   :  { %s13943_s14 = smov 0   ;;  %s13945_s15 = smov 0  }
   0x3   :  { %s13947_s16 = smov 0   ;;  %s13949_s17 = smov 0  }
   0x4 LB: > { %s11170_s18 = sadd.s32 4294967295, %s13912_s17   ;;  %s11171_s19 = sadd.s32 4294967294, %s13912_s17   ;;  %s13912_s17 = sphi %s13949_s17, %s16_s17   ;;  %s13908_s16 = sphi %s13947_s16, %s17716_s16   ;;  %s13904_s15 = sphi %s13945_s15, %s17715_s15   ;;  %s13900_s14 = sphi %s13943_s14, %s17714_s14   ;;  %s13896_s13 = sphi %s13941_s13, %s17713_s13   ;;  %s13892_s12 = sphi %s13939_s12, %s17712_s12  }
   0x5   : > { %s35_s20 = sadd.s32 1, %s13908_s16  ;;  %s124_s21 = sadd.s32 1, %s13900_s14 }
   0x6   : > { %p37_p0 = scmp.ge.s32.totalorder %s35_s20, 2  ;;  %p134_p1 = scmp.ne.s32.totalorder %s13900_s14, %s13896_s13 }
   0x7   : > { %p135_p2 = scmp.eq.s32.totalorder %s11170_s18, 1  ;;  %p140_p3 = scmp.ne.s32.totalorder %s13896_s13, %s13892_s12 }
   0x8   : > { %s17718_s20 = smov (%p37_p0, %s35_s20), 0  ;;  %p141_p5 = scmp.eq.s32.totalorder %s11171_s19, 1 }
   0x9   : > { %p13979_p4 = por %p135_p2, %p134_p1  ;;  %s117_s23 = ssub.s32 %s13908_s16, %s17718_s20 }
   0xa   : > { %p11176_p6 = scmp.ge.s32.totalorder %s13912_s17, 1  ;;  %p122_p7 = scmp.eq.s32.totalorder %s117_s23, 0 }
   0xb   : > { %p13986_p8 = por %p141_p5, %p140_p3  ;;  %p180_p9 = scmp.lt.s32.totalorder %s13912_s17, 3 }
   0xc   : > { %s13992_s25 = scalar_select %p122_p7, %s13900_s14, %s124_s21  }
   0xd   : > { %p181_p10 = pnand %p11176_p6, %p180_p9 }
   0xe   : > { %v13563_v0 = vld [vmem:[%s17707_s1] sm:$0xff] (!%p181_p10)   ;;  %vm3830_vm0 = vcmask (!%p181_p10), 1044480   ;;  %v13564_v1 = vld [vmem:[%s17707_s1 + $0x8] sm:$0x3f] (!%p181_p10)   ;;  %vm3831_vm1 = vcmask (!%p181_p10), 1045504   ;;  %p211_p11 = scmp.lt.s32.totalorder (!%p181_p10), %s13904_s15, 1 }
   0xf   : > { %184 = sbr.rel (%p181_p10) target bundleno = 925 (0x39d), region = 32  ;;  %12984 = vmatprep.subr.bf16.mxu0 (!%p181_p10), %v13563_v0  ;;  %13500 = vmatprep.subr.bf16.mxu1 (!%p181_p10), %v13563_v0  ;;  %v13914_v2 = vmov (!%p181_p10), 65535   ;;  %vm3061_vm2 = vcmask (!%p181_p10), 220160   ;;  %vm226_vm3 = vcmask (!%p181_p10), 523264   ;;  %v13915_v48 = vmov (!%p181_p10), 0.0   ;;  %s208_s8 = sand.u32 (!%p181_p10), 1, %s13896_s13  }
  0x10   : > { %12985 = vmatpush3.bf16.msra.mxu0 (!%p181_p10), %v13563_v0  ;;  %13502 = vmatpush3.bf16.msra.mxu1 (!%p181_p10), %v13563_v0  ;;  %v3832_v3 = vsel (!%p181_p10), %vm3830_vm0, 4294967295, %v13914_v2  ;;  %229 = vst.msk [vmem:[#allocation2 + $0x10] sm:$0xff] (!%p181_p10), %vm226_vm3, %v13915_v48  ;;  %227 = vst.msk [vmem:[#allocation2] sm:$0xff] (!%p181_p10), %vm226_vm3, %v13915_v48  ;;  %s15276_s11 = sshll.u32 (!%p181_p10), %s208_s8, 11  ;;  %vm10533_vm4 = vcmask (!%p181_p10), 519168   ;;  %s12725_s26 = sshll.u32 (!%p181_p10), %s13904_s15, 15 }
  0x11   : > { %v3833_v4 = vsel (!%p181_p10), %vm3831_vm1, %v3832_v3, 0  ;;  %228 = vst.msk [vmem:[#allocation2 + $0x8] sm:$0xff] (!%p181_p10), %vm226_vm3, %v13915_v48  ;;  %230 = vst.msk [vmem:[#allocation2 + $0x18] sm:$0xff] (!%p181_p10), %vm226_vm3, %v13915_v48  ;;  %s15302_s18 = scalar_lea.vmem (!%p181_p10), [#allocation3], %s15276_s11  ;;  %s17644_s29 = scalar_lea.hbm (!%p181_p10), %s17709_s3, %s12725_s26 }
  0x12   : > { %v3835_v5 = vand.u32 (!%p181_p10), %v13564_v1, %v3833_v4  ;;  %231 = vst.msk [vmem:[#allocation2 + $0x20] sm:$0xff] (!%p181_p10), %vm226_vm3, %v13915_v48  ;;  %232 = vst.msk [vmem:[#allocation2 + $0x28] sm:$0xff] (!%p181_p10), %vm226_vm3, %v13915_v48  ;;  %s11064_s27 = sshll.u32 (!%p181_p10), %s15302_s18, 4  ;;  %s13916_s5 = smov (!%p181_p10), [#allocation3]   ;;  %s17646_s27 = int_to_ptr.vmem [resolvable:$true] %s11064_s27 }
  0x13   : > { %233 = vst.msk [vmem:[#allocation2 + $0x30] sm:$0xff] (!%p181_p10), %vm226_vm3, %v13915_v48  ;;  %234 = vst.msk [vmem:[#allocation2 + $0x38] sm:$0xff] (!%p181_p10), %vm226_vm3, %v13915_v48  ;;  %s13838_s6 = sshll.u32 (!%p181_p10), %s13916_s5, 4  ;;  %s13839_s6 = int_to_ptr.vmem [resolvable:$false] %s13838_s6 }
  0x14   : > { %12986 = vmatprep.subr.bf16.mxu0 (!%p181_p10), %v3835_v5  ;;  %13501 = vmatprep.subr.bf16.mxu1 (!%p181_p10), %v3835_v5  ;;  %235 = vst.msk [vmem:[#allocation2 + $0x40] sm:$0xff] (!%p181_p10), %vm226_vm3, %v13915_v48  ;;  %236 = vst.msk [vmem:[#allocation2 + $0x48] sm:$0xff] (!%p181_p10), %vm226_vm3, %v13915_v48  ;;  %p13841_p1 = scmp.lt.s32.totalorder (!%p181_p10), %s17646_s27, %s13839_s6 }
  0x15   : > { %12987 = vmatpush3.bf16.msra.mxu0 (!%p181_p10), %v3835_v5  ;;  %13503 = vmatpush3.bf16.msra.mxu1 (!%p181_p10), %v3835_v5  ;;  %237 = vst.msk [vmem:[#allocation2 + $0x50] sm:$0xff] (!%p181_p10), %vm226_vm3, %v13915_v48  ;;  %238 = vst.msk [vmem:[#allocation2 + $0x58] sm:$0xff] (!%p181_p10), %vm226_vm3, %v13915_v48 }
  0x16   : > { %s212_s30 = scalar_select %p211_p11, %s13904_s15, 1  ;;  %239 = vst.msk [vmem:[#allocation2 + $0x60] sm:$0xff] %vm226_vm3, %v13915_v48  ;;  %240 = vst.msk [vmem:[#allocation2 + $0x68] sm:$0xff] %vm226_vm3, %v13915_v48 }
  0x17   : > { %241 = vst.msk [vmem:[#allocation2 + $0x70] sm:$0xff] %vm226_vm3, %v13915_v48  ;;  %242 = vst.msk [vmem:[#allocation2 + $0x78] sm:$0xff] %vm226_vm3, %v13915_v48 }
  0x18   : > { %s12212_s4 = sshll.u32 %s212_s30, 11  ;;  %243 = vst.msk [vmem:[#allocation2 + $0x80] sm:$0xff] %vm226_vm3, %v13915_v48  ;;  %244 = vst.msk [vmem:[#allocation2 + $0x88] sm:$0xff] %vm226_vm3, %v13915_v48  ;;  %s17660_s30 = scalar_lea.sflag [#allocation4], %s208_s8 }
  0x19   : > { %s14005_s7 = scalar_lea.vmem %s17706_s0, %s12212_s4  ;;  %245 = vst.msk [vmem:[#allocation2 + $0x90] sm:$0xff] %vm226_vm3, %v13915_v48  ;;  %246 = vst.msk [vmem:[#allocation2 + $0x98] sm:$0xff] %vm226_vm3, %v13915_v48  ;;  %s13834_s4 = scalar_lea.vmem %s17646_s27, 32768 }
  0x1a   : > { %v13565_v6 = vld [vmem:[%s14005_s7] sm:$0xff]   ;;  %v13567_v8 = vld [vmem:[%s14005_s7 + $0x8] sm:$0xff]   ;;  %v13569_v10 = vld [vmem:[%s14005_s7 + $0x10] sm:$0xff]   ;;  %247 = vst.msk [vmem:[#allocation2 + $0xa0] sm:$0xff] %vm226_vm3, %v13915_v48  ;;  %p13835_p12 = scmp.ne.s32.totalorder %s17646_s27, %s13834_s4 }
  0x1b   : > { %v13566_v7 = vld [vmem:[%s14005_s7 + $0x400] sm:$0xff]   ;;  %12988 = vmatprep.mubr.msk.bf16.mxu0 %vm3061_vm2, %v13565_v6  ;;  %v13568_v9 = vld [vmem:[%s14005_s7 + $0x408] sm:$0xff]   ;;  %v13570_v11 = vld [vmem:[%s14005_s7 + $0x410] sm:$0xff]   ;;  %248 = vst.msk [vmem:[#allocation2 + $0xa8] sm:$0xff] %vm226_vm3, %v13915_v48 }
  0x1c   : > { %13244 = vmatprep.mubr.msk.bf16.mxu1 %vm3061_vm2, %v13566_v7  ;;  %12989 = vmatmul.mubr.msk.bf16.vlgmr.msra.gmra.mrb[0].mxu0 %vm3061_vm2, %v13567_v8  ;;  %v13571_v12 = vld [vmem:[%s14005_s7 + $0x18] sm:$0xff]   ;;  %v13573_v14 = vld [vmem:[%s14005_s7 + $0x20] sm:$0xff]   ;;  %v13575_v16 = vld [vmem:[%s14005_s7 + $0x28] sm:$0xff]   ;;  %249 = vst.msk [vmem:[#allocation2 + $0xb0] sm:$0xff] %vm226_vm3, %v13915_v48  ;;  %p13836_p13 = pnand %p13835_p12, %p13979_p4 }
  0x1d   : > { %13245 = vmatmul.mubr.msk.bf16.vlgmr.msra.gmra.mrb[0].mxu1 %vm3061_vm2, %v13568_v9  ;;  %12992 = vmatprep.mubr.msk.bf16.mxu0 %vm3061_vm2, %v13569_v10  ;;  %v13572_v13 = vld [vmem:[%s14005_s7 + $0x418] sm:$0xff]   ;;  %v13574_v15 = vld [vmem:[%s14005_s7 + $0x420] sm:$0xff]   ;;  %v13576_v17 = vld [vmem:[%s14005_s7 + $0x428] sm:$0xff]   ;;  %250 = vst.msk [vmem:[#allocation2 + $0xb8] sm:$0xff] %vm226_vm3, %v13915_v48 }
  0x1e   : > { %13248 = vmatprep.mubr.msk.bf16.mxu1 %vm3061_vm2, %v13570_v11  ;;  %v13577_v18 = vld [vmem:[%s14005_s7 + $0x30] sm:$0xff]   ;;  %v13579_v20 = vld [vmem:[%s14005_s7 + $0x38] sm:$0xff]   ;;  %v13581_v22 = vld [vmem:[%s14005_s7 + $0x40] sm:$0xff]   ;;  %251 = vst.msk [vmem:[#allocation2 + $0xc0] sm:$0xff] %vm226_vm3, %v13915_v48  ;;  %p13837_p0 = pneg %p13836_p13 }
  0x1f   : > { %v13578_v19 = vld [vmem:[%s14005_s7 + $0x430] sm:$0xff]   ;;  %v13580_v21 = vld [vmem:[%s14005_s7 + $0x438] sm:$0xff]   ;;  %v13582_v23 = vld [vmem:[%s14005_s7 + $0x440] sm:$0xff]   ;;  %252 = vst.msk [vmem:[#allocation2 + $0xc8] sm:$0xff] %vm226_vm3, %v13915_v48 }
  0x20   : > { %v13583_v24 = vld [vmem:[%s14005_s7 + $0x48] sm:$0xff]   ;;  %v13585_v26 = vld [vmem:[%s14005_s7 + $0x50] sm:$0xff]   ;;  %v13587_v28 = vld [vmem:[%s14005_s7 + $0x58] sm:$0xff]   ;;  %253 = vst.msk [vmem:[#allocation2 + $0xd0] sm:$0xff] %vm226_vm3, %v13915_v48 }
  0x21   : > { %v13584_v25 = vld [vmem:[%s14005_s7 + $0x448] sm:$0xff]   ;;  %v13586_v27 = vld [vmem:[%s14005_s7 + $0x450] sm:$0xff]   ;;  %v13588_v29 = vld [vmem:[%s14005_s7 + $0x458] sm:$0xff]   ;;  %254 = vst.msk [vmem:[#allocation2 + $0xd8] sm:$0xff] %vm226_vm3, %v13915_v48 }
  0x22   : > { %v13589_v30 = vld [vmem:[%s14005_s7 + $0x60] sm:$0xff]   ;;  %v13591_v32 = vld [vmem:[%s14005_s7 + $0x68] sm:$0xff]   ;;  %v13593_v34 = vld [vmem:[%s14005_s7 + $0x70] sm:$0xff]   ;;  %255 = vst.msk [vmem:[#allocation2 + $0xe0] sm:$0xff] %vm226_vm3, %v13915_v48 }
  0x23   : > { %v13590_v31 = vld [vmem:[%s14005_s7 + $0x460] sm:$0xff]   ;;  %v13592_v33 = vld [vmem:[%s14005_s7 + $0x468] sm:$0xff]   ;;  %v13594_v35 = vld [vmem:[%s14005_s7 + $0x470] sm:$0xff]   ;;  %256 = vst.msk [vmem:[#allocation2 + $0xe8] sm:$0xff] %vm226_vm3, %v13915_v48 }
  0x24   : > { %12993 = vmatmul.mubr.msk.bf16.gmra.mrb[4].mxu0 %vm3061_vm2, %v13571_v12  ;;  %v13595_v36 = vld [vmem:[%s14005_s7 + $0x78] sm:$0xff]   ;;  %v13597_v38 = vld [vmem:[%s14005_s7 + $0x80] sm:$0xff]   ;;  %v13599_v40 = vld [vmem:[%s14005_s7 + $0x88] sm:$0xff]   ;;  %257 = vst.msk [vmem:[#allocation2 + $0xf0] sm:$0xff] %vm226_vm3, %v13915_v48 }
  0x25   : > { %13249 = vmatmul.mubr.msk.bf16.gmra.mrb[4].mxu1 %vm3061_vm2, %v13572_v13  ;;  %12996 = vmatprep.mubr.msk.bf16.mxu0 %vm3061_vm2, %v13573_v14  ;;  %v13596_v37 = vld [vmem:[%s14005_s7 + $0x478] sm:$0xff]   ;;  %v13598_v39 = vld [vmem:[%s14005_s7 + $0x480] sm:$0xff]   ;;  %v13600_v41 = vld [vmem:[%s14005_s7 + $0x488] sm:$0xff]   ;;  %258 = vst.msk [vmem:[#allocation2 + $0xf8] sm:$0xff] %vm226_vm3, %v13915_v48 }
  0x26   : > { %13252 = vmatprep.mubr.msk.bf16.mxu1 %vm3061_vm2, %v13574_v15  ;;  %v13601_v42 = vld [vmem:[%s14005_s7 + $0x90] sm:$0xff]   ;;  %v13603_v44 = vld [vmem:[%s14005_s7 + $0x98] sm:$0xff]   ;;  %v13605_v46 = vld [vmem:[%s14005_s7 + $0xa0] sm:$0xff]   ;;  %259 = vst.msk [vmem:[#allocation2 + $0x100] sm:$0xff] %vm226_vm3, %v13915_v48 }
  0x27   : > { %v13602_v43 = vld [vmem:[%s14005_s7 + $0x490] sm:$0xff]   ;;  %v13604_v45 = vld [vmem:[%s14005_s7 + $0x498] sm:$0xff]   ;;  %v13606_v47 = vld [vmem:[%s14005_s7 + $0x4a0] sm:$0xff]   ;;  %260 = vst.msk [vmem:[#allocation2 + $0x108] sm:$0xff] %vm226_vm3, %v13915_v48 }
  0x28   : > { %261 = vst.msk [vmem:[#allocation2 + $0x110] sm:$0xff] %vm226_vm3, %v13915_v48  ;;  %262 = vst.msk [vmem:[#allocation2 + $0x118] sm:$0xff] %vm226_vm3, %v13915_v48  ;;  %v13821_v49 = vld [vmem:[%s14005_s7 + $0xa8] sm:$0xff]   ;;  %v13823_v51 = vld [vmem:[%s14005_s7 + $0xb0] sm:$0xff]  }
  0x29   : > { %263 = vst.msk [vmem:[#allocation2 + $0x120] sm:$0xff] %vm226_vm3, %v13915_v48  ;;  %264 = vst.msk [vmem:[#allocation2 + $0x128] sm:$0xff] %vm226_vm3, %v13915_v48  ;;  %v13822_v50 = vld [vmem:[%s14005_s7 + $0x4a8] sm:$0xff]   ;;  %v13824_v52 = vld [vmem:[%s14005_s7 + $0x4b0] sm:$0xff]  }
  0x2a   : > { %265 = vst.msk [vmem:[#allocation2 + $0x130] sm:$0xff] %vm226_vm3, %v13915_v48  ;;  %266 = vst.msk [vmem:[#allocation2 + $0x138] sm:$0xff] %vm226_vm3, %v13915_v48  ;;  %v13611_v53 = vld [vmem:[%s14005_s7 + $0xb8] sm:$0xff]   ;;  %v13613_v55 = vld [vmem:[%s14005_s7 + $0xc0] sm:$0xff]  }
  0x2b   : > { %267 = vst.msk [vmem:[#allocation2 + $0x140] sm:$0xff] %vm226_vm3, %v13915_v48  ;;  %268 = vst.msk [vmem:[#allocation2 + $0x148] sm:$0xff] %vm226_vm3, %v13915_v48  ;;  %v13612_v54 = vld [vmem:[%s14005_s7 + $0x4b8] sm:$0xff]   ;;  %v13614_v56 = vld [vmem:[%s14005_s7 + $0x4c0] sm:$0xff]  }
  0x2c   : > { %12997 = vmatmul.mubr.msk.bf16.gmra.mrb[8].mxu0 %vm3061_vm2, %v13575_v16  ;;  %269 = vst.msk [vmem:[#allocation2 + $0x150] sm:$0xff] %vm226_vm3, %v13915_v48  ;;  %270 = vst.msk [vmem:[#allocation2 + $0x158] sm:$0xff] %vm226_vm3, %v13915_v48  ;;  %v13615_v57 = vld [vmem:[%s14005_s7 + $0xc8] sm:$0xff]   ;;  %v13617_v59 = vld [vmem:[%s14005_s7 + $0xd0] sm:$0xff]  }
  0x2d   : > { %13253 = vmatmul.mubr.msk.bf16.gmra.mrb[8].mxu1 %vm3061_vm2, %v13576_v17  ;;  %13000 = vmatprep.mubr.msk.bf16.mxu0 %vm3061_vm2, %v13577_v18  ;;  %271 = vst.msk [vmem:[#allocation2 + $0x160] sm:$0xff] %vm226_vm3, %v13915_v48  ;;  %272 = vst.msk [vmem:[#allocation2 + $0x168] sm:$0xff] %vm226_vm3, %v13915_v48  ;;  %v13616_v58 = vld [vmem:[%s14005_s7 + $0x4c8] sm:$0xff]   ;;  %v13618_v60 = vld [vmem:[%s14005_s7 + $0x4d0] sm:$0xff]  }
  0x2e   : > { %13256 = vmatprep.mubr.msk.bf16.mxu1 %vm3061_vm2, %v13578_v19  ;;  %273 = vst.msk [vmem:[#allocation2 + $0x170] sm:$0xff] %vm226_vm3, %v13915_v48  ;;  %274 = vst.msk [vmem:[#allocation2 + $0x178] sm:$0xff] %vm226_vm3, %v13915_v48  ;;  %v13619_v61 = vld [vmem:[%s14005_s7 + $0xd8] sm:$0xff]   ;;  %v13621_v63 = vld [vmem:[%s14005_s7 + $0xe0] sm:$0xff]  }
  0x2f   : > { %275 = vst.msk [vmem:[#allocation2 + $0x180] sm:$0xff] %vm226_vm3, %v13915_v48  ;;  %276 = vst.msk [vmem:[#allocation2 + $0x188] sm:$0xff] %vm226_vm3, %v13915_v48  ;;  %v13620_v62 = vld [vmem:[%s14005_s7 + $0x4d8] sm:$0xff]   ;;  %v13622_v0 = vld [vmem:[%s14005_s7 + $0x4e0] sm:$0xff]  }
  0x30   : > { %277 = vst.msk [vmem:[#allocation2 + $0x190] sm:$0xff] %vm226_vm3, %v13915_v48  ;;  %278 = vst.msk [vmem:[#allocation2 + $0x198] sm:$0xff] %vm226_vm3, %v13915_v48  ;;  %v13623_v1 = vld [vmem:[%s14005_s7 + $0xe8] sm:$0xff]   ;;  %v13625_v3 = vld [vmem:[%s14005_s7 + $0xf0] sm:$0xff]  }
  0x31   : > { %279 = vst.msk [vmem:[#allocation2 + $0x1a0] sm:$0xff] %vm226_vm3, %v13915_v48  ;;  %280 = vst.msk [vmem:[#allocation2 + $0x1a8] sm:$0xff] %vm226_vm3, %v13915_v48  ;;  %v13624_v2 = vld [vmem:[%s14005_s7 + $0x4e8] sm:$0xff]   ;;  %v13626_v4 = vld [vmem:[%s14005_s7 + $0x4f0] sm:$0xff]  }
  0x32   : > { %281 = vst.msk [vmem:[#allocation2 + $0x1b0] sm:$0xff] %vm226_vm3, %v13915_v48  ;;  %282 = vst.msk [vmem:[#allocation2 + $0x1b8] sm:$0xff] %vm226_vm3, %v13915_v48  ;;  %v13627_v5 = vld [vmem:[%s14005_s7 + $0xf8] sm:$0xff]   ;;  %v13629_v7 = vld [vmem:[%s14005_s7 + $0x100] sm:$0xff]  }
  0x33   : > { %283 = vst.msk [vmem:[#allocation2 + $0x1c0] sm:$0xff] %vm226_vm3, %v13915_v48  ;;  %284 = vst.msk [vmem:[#allocation2 + $0x1c8] sm:$0xff] %vm226_vm3, %v13915_v48  ;;  %v13628_v6 = vld [vmem:[%s14005_s7 + $0x4f8] sm:$0xff]   ;;  %v13630_v8 = vld [vmem:[%s14005_s7 + $0x500] sm:$0xff]  }
  0x34   : > { %13001 = vmatmul.mubr.msk.bf16.gmra.mrb[12].mxu0 %vm3061_vm2, %v13579_v20  ;;  %285 = vst.msk [vmem:[#allocation2 + $0x1d0] sm:$0xff] %vm226_vm3, %v13915_v48  ;;  %286 = vst.msk [vmem:[#allocation2 + $0x1d8] sm:$0xff] %vm226_vm3, %v13915_v48  ;;  %v13631_v9 = vld [vmem:[%s14005_s7 + $0x108] sm:$0xff]   ;;  %v13633_v11 = vld [vmem:[%s14005_s7 + $0x110] sm:$0xff]  }
  0x35   : > { %13257 = vmatmul.mubr.msk.bf16.gmra.mrb[12].mxu1 %vm3061_vm2, %v13580_v21  ;;  %13004 = vmatprep.mubr.msk.bf16.mxu0 %vm3061_vm2, %v13581_v22  ;;  %287 = vst.msk [vmem:[#allocation2 + $0x1e0] sm:$0xff] %vm226_vm3, %v13915_v48  ;;  %288 = vst.msk [vmem:[#allocation2 + $0x1e8] sm:$0xff] %vm226_vm3, %v13915_v48  ;;  %v13632_v10 = vld [vmem:[%s14005_s7 + $0x508] sm:$0xff]   ;;  %v13634_v12 = vld [vmem:[%s14005_s7 + $0x510] sm:$0xff]  }
  0x36   : > { %13260 = vmatprep.mubr.msk.bf16.mxu1 %vm3061_vm2, %v13582_v23  ;;  %289 = vst.msk [vmem:[#allocation2 + $0x1f0] sm:$0xff] %vm226_vm3, %v13915_v48  ;;  %290 = vst.msk [vmem:[#allocation2 + $0x1f8] sm:$0xff] %vm226_vm3, %v13915_v48  ;;  %v13635_v13 = vld [vmem:[%s14005_s7 + $0x118] sm:$0xff]   ;;  %v13637_v15 = vld [vmem:[%s14005_s7 + $0x120] sm:$0xff]  }
  0x37   : > { %291 = vst.msk [vmem:[#allocation2 + $0x200] sm:$0xff] %vm226_vm3, %v13915_v48  ;;  %292 = vst.msk [vmem:[#allocation2 + $0x208] sm:$0xff] %vm226_vm3, %v13915_v48  ;;  %v13636_v14 = vld [vmem:[%s14005_s7 + $0x518] sm:$0xff]   ;;  %v13638_v16 = vld [vmem:[%s14005_s7 + $0x520] sm:$0xff]  }
  0x38   : > { %293 = vst.msk [vmem:[#allocation2 + $0x210] sm:$0xff] %vm226_vm3, %v13915_v48  ;;  %294 = vst.msk [vmem:[#allocation2 + $0x218] sm:$0xff] %vm226_vm3, %v13915_v48  ;;  %v13639_v17 = vld [vmem:[%s14005_s7 + $0x128] sm:$0xff]   ;;  %v13641_v19 = vld [vmem:[%s14005_s7 + $0x130] sm:$0xff]  }
  0x39   : > { %295 = vst.msk [vmem:[#allocation2 + $0x220] sm:$0xff] %vm226_vm3, %v13915_v48  ;;  %296 = vst.msk [vmem:[#allocation2 + $0x228] sm:$0xff] %vm226_vm3, %v13915_v48  ;;  %v13640_v18 = vld [vmem:[%s14005_s7 + $0x528] sm:$0xff]   ;;  %v13642_v20 = vld [vmem:[%s14005_s7 + $0x530] sm:$0xff]  }
  0x3a   : > { %297 = vst.msk [vmem:[#allocation2 + $0x230] sm:$0xff] %vm226_vm3, %v13915_v48  ;;  %298 = vst.msk [vmem:[#allocation2 + $0x238] sm:$0xff] %vm226_vm3, %v13915_v48  ;;  %v13643_v21 = vld [vmem:[%s14005_s7 + $0x138] sm:$0xff]   ;;  %v13645_v23 = vld [vmem:[%s14005_s7 + $0x140] sm:$0xff]  }
  0x3b   : > { %299 = vst.msk [vmem:[#allocation2 + $0x240] sm:$0xff] %vm226_vm3, %v13915_v48  ;;  %300 = vst.msk [vmem:[#allocation2 + $0x248] sm:$0xff] %vm226_vm3, %v13915_v48  ;;  %v13644_v22 = vld [vmem:[%s14005_s7 + $0x538] sm:$0xff]  }
  0x3c   : > { %13005 = vmatmul.mubr.msk.bf16.gmra.mrb[16].mxu0 %vm3061_vm2, %v13583_v24  ;;  %301 = vst.msk [vmem:[#allocation2 + $0x250] sm:$0xff] %vm226_vm3, %v13915_v48  ;;  %302 = vst.msk [vmem:[#allocation2 + $0x258] sm:$0xff] %vm226_vm3, %v13915_v48  ;;  %v13646_v24 = vld [vmem:[%s14005_s7 + $0x540] sm:$0xff]  }
  0x3d   : > { %13261 = vmatmul.mubr.msk.bf16.gmra.mrb[16].mxu1 %vm3061_vm2, %v13584_v25  ;;  %13008 = vmatprep.mubr.msk.bf16.mxu0 %vm3061_vm2, %v13585_v26  ;;  %303 = vst.msk [vmem:[#allocation2 + $0x260] sm:$0xff] %vm226_vm3, %v13915_v48  ;;  %304 = vst.msk [vmem:[#allocation2 + $0x268] sm:$0xff] %vm226_vm3, %v13915_v48  ;;  %v13647_v25 = vld [vmem:[%s14005_s7 + $0x148] sm:$0xff]  }
  0x3e   : > { %13264 = vmatprep.mubr.msk.bf16.mxu1 %vm3061_vm2, %v13586_v27  ;;  %305 = vst.msk [vmem:[#allocation2 + $0x270] sm:$0xff] %vm226_vm3, %v13915_v48  ;;  %306 = vst.msk [vmem:[#allocation2 + $0x278] sm:$0xff] %vm226_vm3, %v13915_v48  ;;  %v13648_v26 = vld [vmem:[%s14005_s7 + $0x548] sm:$0xff]   ;;  %v13649_v27 = vld [vmem:[%s14005_s7 + $0x150] sm:$0xff]  }
  0x3f   : > { %307 = vst.msk [vmem:[#allocation2 + $0x280] sm:$0xff] %vm226_vm3, %v13915_v48  ;;  %308 = vst.msk [vmem:[#allocation2 + $0x288] sm:$0xff] %vm226_vm3, %v13915_v48 }
  0x40   : > { %309 = vst.msk [vmem:[#allocation2 + $0x290] sm:$0xff] %vm226_vm3, %v13915_v48  ;;  %310 = vst.msk [vmem:[#allocation2 + $0x298] sm:$0xff] %vm226_vm3, %v13915_v48 }
  0x41   : > { %311 = vst.msk [vmem:[#allocation2 + $0x2a0] sm:$0xff] %vm226_vm3, %v13915_v48  ;;  %312 = vst.msk [vmem:[#allocation2 + $0x2a8] sm:$0xff] %vm226_vm3, %v13915_v48 }
  0x42   : > { %313 = vst.msk [vmem:[#allocation2 + $0x2b0] sm:$0xff] %vm226_vm3, %v13915_v48  ;;  %314 = vst.msk [vmem:[#allocation2 + $0x2b8] sm:$0xff] %vm226_vm3, %v13915_v48 }
  0x43   : > { %315 = vst.msk [vmem:[#allocation2 + $0x2c0] sm:$0xff] %vm226_vm3, %v13915_v48  ;;  %316 = vst.msk [vmem:[#allocation2 + $0x2c8] sm:$0xff] %vm226_vm3, %v13915_v48 }
  0x44   : > { %13009 = vmatmul.mubr.msk.bf16.gmra.mrb[20].mxu0 %vm3061_vm2, %v13587_v28  ;;  %317 = vst.msk [vmem:[#allocation2 + $0x2d0] sm:$0xff] %vm226_vm3, %v13915_v48  ;;  %318 = vst.msk [vmem:[#allocation2 + $0x2d8] sm:$0xff] %vm226_vm3, %v13915_v48  ;;  %v13650_v28 = vld [vmem:[%s14005_s7 + $0x550] sm:$0xff]  }
  0x45   : > { %13265 = vmatmul.mubr.msk.bf16.gmra.mrb[20].mxu1 %vm3061_vm2, %v13588_v29  ;;  %13012 = vmatprep.mubr.msk.bf16.mxu0 %vm3061_vm2, %v13589_v30  ;;  %319 = vst.msk [vmem:[#allocation2 + $0x2e0] sm:$0xff] %vm226_vm3, %v13915_v48  ;;  %320 = vst.msk [vmem:[#allocation2 + $0x2e8] sm:$0xff] %vm226_vm3, %v13915_v48  ;;  %v13651_v29 = vld [vmem:[%s14005_s7 + $0x158] sm:$0xff]  }
  0x46   : > { %13268 = vmatprep.mubr.msk.bf16.mxu1 %vm3061_vm2, %v13590_v31  ;;  %321 = vst.msk [vmem:[#allocation2 + $0x2f0] sm:$0xff] %vm226_vm3, %v13915_v48  ;;  %322 = vst.msk [vmem:[#allocation2 + $0x2f8] sm:$0xff] %vm226_vm3, %v13915_v48  ;;  %v13652_v30 = vld [vmem:[%s14005_s7 + $0x558] sm:$0xff]   ;;  %v13653_v31 = vld [vmem:[%s14005_s7 + $0x160] sm:$0xff]  }
  0x47   : > { %323 = vst.msk [vmem:[#allocation2 + $0x300] sm:$0xff] %vm226_vm3, %v13915_v48  ;;  %324 = vst.msk [vmem:[#allocation2 + $0x308] sm:$0xff] %vm226_vm3, %v13915_v48 }
  0x48   : > { %325 = vst.msk [vmem:[#allocation2 + $0x310] sm:$0xff] %vm226_vm3, %v13915_v48  ;;  %326 = vst.msk [vmem:[#allocation2 + $0x318] sm:$0xff] %vm226_vm3, %v13915_v48 }
  0x49   : > { %327 = vst.msk [vmem:[#allocation2 + $0x320] sm:$0xff] %vm226_vm3, %v13915_v48  ;;  %328 = vst.msk [vmem:[#allocation2 + $0x328] sm:$0xff] %vm226_vm3, %v13915_v48 }
  0x4a   : > { %329 = vst.msk [vmem:[#allocation2 + $0x330] sm:$0xff] %vm226_vm3, %v13915_v48  ;;  %330 = vst.msk [vmem:[#allocation2 + $0x338] sm:$0xff] %vm226_vm3, %v13915_v48 }
  0x4b   : > { %331 = vst.msk [vmem:[#allocation2 + $0x340] sm:$0xff] %vm226_vm3, %v13915_v48  ;;  %332 = vst.msk [vmem:[#allocation2 + $0x348] sm:$0xff] %vm226_vm3, %v13915_v48 }
  0x4c   : > { %13013 = vmatmul.mubr.msk.bf16.gmra.mrb[24].mxu0 %vm3061_vm2, %v13591_v32  ;;  %333 = vst.msk [vmem:[#allocation2 + $0x350] sm:$0xff] %vm226_vm3, %v13915_v48  ;;  %334 = vst.msk [vmem:[#allocation2 + $0x358] sm:$0xff] %vm226_vm3, %v13915_v48  ;;  %v13654_v32 = vld [vmem:[%s14005_s7 + $0x560] sm:$0xff]  }
  0x4d   : > { %13269 = vmatmul.mubr.msk.bf16.gmra.mrb[24].mxu1 %vm3061_vm2, %v13592_v33  ;;  %13016 = vmatprep.mubr.msk.bf16.mxu0 %vm3061_vm2, %v13593_v34  ;;  %335 = vst.msk [vmem:[#allocation2 + $0x360] sm:$0xff] %vm226_vm3, %v13915_v48  ;;  %336 = vst.msk [vmem:[#allocation2 + $0x368] sm:$0xff] %vm226_vm3, %v13915_v48  ;;  %v13655_v33 = vld [vmem:[%s14005_s7 + $0x168] sm:$0xff]  }
  0x4e   : > { %13272 = vmatprep.mubr.msk.bf16.mxu1 %vm3061_vm2, %v13594_v35  ;;  %337 = vst.msk [vmem:[#allocation2 + $0x370] sm:$0xff] %vm226_vm3, %v13915_v48  ;;  %338 = vst.msk [vmem:[#allocation2 + $0x378] sm:$0xff] %vm226_vm3, %v13915_v48  ;;  %v13656_v34 = vld [vmem:[%s14005_s7 + $0x568] sm:$0xff]   ;;  %v13657_v35 = vld [vmem:[%s14005_s7 + $0x170] sm:$0xff]  }
  0x4f   : > { %339 = vst.msk [vmem:[#allocation2 + $0x380] sm:$0xff] %vm226_vm3, %v13915_v48  ;;  %340 = vst.msk [vmem:[#allocation2 + $0x388] sm:$0xff] %vm226_vm3, %v13915_v48 }
  0x50   : > { %341 = vst.msk [vmem:[#allocation2 + $0x390] sm:$0xff] %vm226_vm3, %v13915_v48  ;;  %342 = vst.msk [vmem:[#allocation2 + $0x398] sm:$0xff] %vm226_vm3, %v13915_v48 }
  0x51   : > { %343 = vst.msk [vmem:[#allocation2 + $0x3a0] sm:$0xff] %vm226_vm3, %v13915_v48  ;;  %344 = vst.msk [vmem:[#allocation2 + $0x3a8] sm:$0xff] %vm226_vm3, %v13915_v48 }
  0x52   : > { %345 = vst.msk [vmem:[#allocation2 + $0x3b0] sm:$0xff] %vm226_vm3, %v13915_v48  ;;  %346 = vst.msk [vmem:[#allocation2 + $0x3b8] sm:$0xff] %vm226_vm3, %v13915_v48 }
  0x53   : > { %347 = vst.msk [vmem:[#allocation2 + $0x3c0] sm:$0xff] %vm226_vm3, %v13915_v48  ;;  %348 = vst.msk [vmem:[#allocation2 + $0x3c8] sm:$0xff] %vm226_vm3, %v13915_v48 }
  0x54   : > { %13017 = vmatmul.mubr.msk.bf16.gmra.mrb[28].mxu0 %vm3061_vm2, %v13595_v36  ;;  %349 = vst.msk [vmem:[#allocation2 + $0x3d0] sm:$0xff] %vm226_vm3, %v13915_v48  ;;  %350 = vst.msk [vmem:[#allocation2 + $0x3d8] sm:$0xff] %vm226_vm3, %v13915_v48  ;;  %v13658_v36 = vld [vmem:[%s14005_s7 + $0x570] sm:$0xff]  }
  0x55   : > { %13273 = vmatmul.mubr.msk.bf16.gmra.mrb[28].mxu1 %vm3061_vm2, %v13596_v37  ;;  %13020 = vmatprep.mubr.msk.bf16.mxu0 %vm3061_vm2, %v13597_v38  ;;  %351 = vst.msk [vmem:[#allocation2 + $0x3e0] sm:$0xff] %vm226_vm3, %v13915_v48  ;;  %352 = vst.msk [vmem:[#allocation2 + $0x3e8] sm:$0xff] %vm226_vm3, %v13915_v48  ;;  %v13659_v37 = vld [vmem:[%s14005_s7 + $0x178] sm:$0xff]  }
  0x56   : > { %13276 = vmatprep.mubr.msk.bf16.mxu1 %vm3061_vm2, %v13598_v39  ;;  %353 = vst.msk [vmem:[#allocation2 + $0x3f0] sm:$0xff] %vm226_vm3, %v13915_v48  ;;  %354 = vst.msk [vmem:[#allocation2 + $0x3f8] sm:$0xff] %vm226_vm3, %v13915_v48  ;;  %v13660_v38 = vld [vmem:[%s14005_s7 + $0x578] sm:$0xff]   ;;  %v13661_v39 = vld [vmem:[%s14005_s7 + $0x180] sm:$0xff]  }
  0x57   : > { %355 = vst.msk [vmem:[#allocation2 + $0x400] sm:$0xff] %vm226_vm3, %v13915_v48  ;;  %356 = vst.msk [vmem:[#allocation2 + $0x408] sm:$0xff] %vm226_vm3, %v13915_v48 }
  0x58   : > { %357 = vst.msk [vmem:[#allocation2 + $0x410] sm:$0xff] %vm226_vm3, %v13915_v48  ;;  %358 = vst.msk [vmem:[#allocation2 + $0x418] sm:$0xff] %vm226_vm3, %v13915_v48 }
  0x59   : > { %359 = vst.msk [vmem:[#allocation2 + $0x420] sm:$0xff] %vm226_vm3, %v13915_v48  ;;  %360 = vst.msk [vmem:[#allocation2 + $0x428] sm:$0xff] %vm226_vm3, %v13915_v48 }
  0x5a   : > { %361 = vst.msk [vmem:[#allocation2 + $0x430] sm:$0xff] %vm226_vm3, %v13915_v48  ;;  %362 = vst.msk [vmem:[#allocation2 + $0x438] sm:$0xff] %vm226_vm3, %v13915_v48 }
  0x5b   : > { %363 = vst.msk [vmem:[#allocation2 + $0x440] sm:$0xff] %vm226_vm3, %v13915_v48  ;;  %364 = vst.msk [vmem:[#allocation2 + $0x448] sm:$0xff] %vm226_vm3, %v13915_v48 }
  0x5c   : > { %13021 = vmatmul.mubr.msk.bf16.gmra.mrb[32].mxu0 %vm3061_vm2, %v13599_v40  ;;  %365 = vst.msk [vmem:[#allocation2 + $0x450] sm:$0xff] %vm226_vm3, %v13915_v48  ;;  %366 = vst.msk [vmem:[#allocation2 + $0x458] sm:$0xff] %vm226_vm3, %v13915_v48  ;;  %v13662_v40 = vld [vmem:[%s14005_s7 + $0x580] sm:$0xff]  }
  0x5d   : > { %13277 = vmatmul.mubr.msk.bf16.gmra.mrb[32].mxu1 %vm3061_vm2, %v13600_v41  ;;  %13024 = vmatprep.mubr.msk.bf16.mxu0 %vm3061_vm2, %v13601_v42  ;;  %367 = vst.msk [vmem:[#allocation2 + $0x460] sm:$0xff] %vm226_vm3, %v13915_v48  ;;  %368 = vst.msk [vmem:[#allocation2 + $0x468] sm:$0xff] %vm226_vm3, %v13915_v48  ;;  %v13663_v41 = vld [vmem:[%s14005_s7 + $0x188] sm:$0xff]  }
  0x5e   : > { %13280 = vmatprep.mubr.msk.bf16.mxu1 %vm3061_vm2, %v13602_v43  ;;  %369 = vst.msk [vmem:[#allocation2 + $0x470] sm:$0xff] %vm226_vm3, %v13915_v48  ;;  %370 = vst.msk [vmem:[#allocation2 + $0x478] sm:$0xff] %vm226_vm3, %v13915_v48  ;;  %v13664_v42 = vld [vmem:[%s14005_s7 + $0x588] sm:$0xff]   ;;  %v13665_v43 = vld [vmem:[%s14005_s7 + $0x190] sm:$0xff]  }
  0x5f   : > { %371 = vst.msk [vmem:[#allocation2 + $0x480] sm:$0xff] %vm226_vm3, %v13915_v48  ;;  %372 = vst.msk [vmem:[#allocation2 + $0x488] sm:$0xff] %vm226_vm3, %v13915_v48 }
  0x60   : > { %373 = vst.msk [vmem:[#allocation2 + $0x490] sm:$0xff] %vm226_vm3, %v13915_v48  ;;  %374 = vst.msk [vmem:[#allocation2 + $0x498] sm:$0xff] %vm226_vm3, %v13915_v48 }
  0x61   : > { %375 = vst.msk [vmem:[#allocation2 + $0x4a0] sm:$0xff] %vm226_vm3, %v13915_v48  ;;  %376 = vst.msk [vmem:[#allocation2 + $0x4a8] sm:$0xff] %vm226_vm3, %v13915_v48 }
  0x62   : > { %377 = vst.msk [vmem:[#allocation2 + $0x4b0] sm:$0xff] %vm226_vm3, %v13915_v48  ;;  %378 = vst.msk [vmem:[#allocation2 + $0x4b8] sm:$0xff] %vm226_vm3, %v13915_v48 }
  0x63   : > { %379 = vst.msk [vmem:[#allocation2 + $0x4c0] sm:$0xff] %vm226_vm3, %v13915_v48  ;;  %380 = vst.msk [vmem:[#allocation2 + $0x4c8] sm:$0xff] %vm226_vm3, %v13915_v48 }
  0x64   : > { %13025 = vmatmul.mubr.msk.bf16.gmra.mrb[36].mxu0 %vm3061_vm2, %v13603_v44  ;;  %381 = vst.msk [vmem:[#allocation2 + $0x4d0] sm:$0xff] %vm226_vm3, %v13915_v48  ;;  %382 = vst.msk [vmem:[#allocation2 + $0x4d8] sm:$0xff] %vm226_vm3, %v13915_v48  ;;  %v13666_v44 = vld [vmem:[%s14005_s7 + $0x590] sm:$0xff]  }
  0x65   : > { %13281 = vmatmul.mubr.msk.bf16.gmra.mrb[36].mxu1 %vm3061_vm2, %v13604_v45  ;;  %13028 = vmatprep.mubr.msk.bf16.mxu0 %vm3061_vm2, %v13605_v46  ;;  %383 = vst.msk [vmem:[#allocation2 + $0x4e0] sm:$0xff] %vm226_vm3, %v13915_v48  ;;  %384 = vst.msk [vmem:[#allocation2 + $0x4e8] sm:$0xff] %vm226_vm3, %v13915_v48  ;;  %v13667_v45 = vld [vmem:[%s14005_s7 + $0x198] sm:$0xff]  }
  0x66   : > { %13284 = vmatprep.mubr.msk.bf16.mxu1 %vm3061_vm2, %v13606_v47  ;;  %385 = vst.msk [vmem:[#allocation2 + $0x4f0] sm:$0xff] %vm226_vm3, %v13915_v48  ;;  %386 = vst.msk [vmem:[#allocation2 + $0x4f8] sm:$0xff] %vm226_vm3, %v13915_v48  ;;  %v13668_v46 = vld [vmem:[%s14005_s7 + $0x598] sm:$0xff]   ;;  %v13669_v47 = vld [vmem:[%s14005_s7 + $0x1a0] sm:$0xff]  }
  0x67   : > { %387 = vst.msk [vmem:[#allocation2 + $0x500] sm:$0xff] %vm226_vm3, %v13915_v48  ;;  %388 = vst.msk [vmem:[#allocation2 + $0x508] sm:$0xff] %vm226_vm3, %v13915_v48 }
  0x68   : > { %389 = vst.msk [vmem:[#allocation2 + $0x510] sm:$0xff] %vm226_vm3, %v13915_v48  ;;  %390 = vst.msk [vmem:[#allocation2 + $0x518] sm:$0xff] %vm226_vm3, %v13915_v48 }
  0x69   : > { %391 = vst.msk [vmem:[#allocation2 + $0x520] sm:$0xff] %vm226_vm3, %v13915_v48  ;;  %392 = vst.msk [vmem:[#allocation2 + $0x528] sm:$0xff] %vm226_vm3, %v13915_v48 }
  0x6a   : > { %393 = vst.msk [vmem:[#allocation2 + $0x530] sm:$0xff] %vm226_vm3, %v13915_v48  ;;  %394 = vst.msk [vmem:[#allocation2 + $0x538] sm:$0xff] %vm226_vm3, %v13915_v48 }
  0x6b   : > { %395 = vst.msk [vmem:[#allocation2 + $0x540] sm:$0xff] %vm226_vm3, %v13915_v48  ;;  %396 = vst.msk [vmem:[#allocation2 + $0x548] sm:$0xff] %vm226_vm3, %v13915_v48 }
  0x6c   : > { %397 = vst.msk [vmem:[#allocation2 + $0x550] sm:$0xff] %vm226_vm3, %v13915_v48  ;;  %398 = vst.msk [vmem:[#allocation2 + $0x558] sm:$0xff] %vm226_vm3, %v13915_v48  ;;  %13029 = vmatmul.mubr.msk.bf16.gmra.mrb[40].mxu0 %vm3061_vm2, %v13821_v49  ;;  %v13671_v49 = vld [vmem:[%s14005_s7 + $0x1a8] sm:$0xff]  }
  0x6d   : > { %399 = vst.msk [vmem:[#allocation2 + $0x560] sm:$0xff] %vm226_vm3, %v13915_v48  ;;  %400 = vst.msk [vmem:[#allocation2 + $0x568] sm:$0xff] %vm226_vm3, %v13915_v48  ;;  %13285 = vmatmul.mubr.msk.bf16.gmra.mrb[40].mxu1 %vm3061_vm2, %v13822_v50  ;;  %13032 = vmatprep.mubr.msk.bf16.mxu0 %vm3061_vm2, %v13823_v51  ;;  %v13672_v50 = vld [vmem:[%s14005_s7 + $0x5a8] sm:$0xff]   ;;  %v13673_v51 = vld [vmem:[%s14005_s7 + $0x1b0] sm:$0xff]  }
  0x6e   : > { %401 = vst.msk [vmem:[#allocation2 + $0x570] sm:$0xff] %vm226_vm3, %v13915_v48  ;;  %402 = vst.msk [vmem:[#allocation2 + $0x578] sm:$0xff] %vm226_vm3, %v13915_v48  ;;  %13288 = vmatprep.mubr.msk.bf16.mxu1 %vm3061_vm2, %v13824_v52  ;;  %v13674_v52 = vld [vmem:[%s14005_s7 + $0x5b0] sm:$0xff]  }
  0x6f   : > { %403 = vst.msk [vmem:[#allocation2 + $0x580] sm:$0xff] %vm226_vm3, %v13915_v48  ;;  %404 = vst.msk [vmem:[#allocation2 + $0x588] sm:$0xff] %vm226_vm3, %v13915_v48 }
  0x70   : > { %405 = vst.msk [vmem:[#allocation2 + $0x590] sm:$0xff] %vm226_vm3, %v13915_v48  ;;  %406 = vst.msk [vmem:[#allocation2 + $0x598] sm:$0xff] %vm226_vm3, %v13915_v48 }
  0x71   : > { %407 = vst.msk [vmem:[#allocation2 + $0x5a0] sm:$0xff] %vm226_vm3, %v13915_v48  ;;  %408 = vst.msk [vmem:[#allocation2 + $0x5a8] sm:$0xff] %vm226_vm3, %v13915_v48 }
  0x72   : > { %409 = vst.msk [vmem:[#allocation2 + $0x5b0] sm:$0xff] %vm226_vm3, %v13915_v48  ;;  %410 = vst.msk [vmem:[#allocation2 + $0x5b8] sm:$0xff] %vm226_vm3, %v13915_v48 }
  0x73   : > { %411 = vst.msk [vmem:[#allocation2 + $0x5c0] sm:$0xff] %vm226_vm3, %v13915_v48  ;;  %412 = vst.msk [vmem:[#allocation2 + $0x5c8] sm:$0xff] %vm226_vm3, %v13915_v48 }
  0x74   : > { %413 = vst.msk [vmem:[#allocation2 + $0x5d0] sm:$0xff] %vm226_vm3, %v13915_v48  ;;  %414 = vst.msk [vmem:[#allocation2 + $0x5d8] sm:$0xff] %vm226_vm3, %v13915_v48  ;;  %13033 = vmatmul.mubr.msk.bf16.gmra.mrb[44].mxu0 %vm3061_vm2, %v13611_v53  ;;  %v1256_v53 = vld [vmem:[#allocation2 + $0x10] sm:$0xff] }
  0x75   : > { %415 = vst.msk [vmem:[#allocation2 + $0x5e0] sm:$0xff] %vm226_vm3, %v13915_v48  ;;  %416 = vst.msk [vmem:[#allocation2 + $0x5e8] sm:$0xff] %vm226_vm3, %v13915_v48  ;;  %13289 = vmatmul.mubr.msk.bf16.gmra.mrb[44].mxu1 %vm3061_vm2, %v13612_v54  ;;  %13036 = vmatprep.mubr.msk.bf16.mxu0 %vm3061_vm2, %v13613_v55  ;;  %v1254_v55 = vld [vmem:[#allocation2] sm:$0xff] }
  0x76   : > { %417 = vst.msk [vmem:[#allocation2 + $0x5f0] sm:$0xff] %vm226_vm3, %v13915_v48  ;;  %418 = vst.msk [vmem:[#allocation2 + $0x5f8] sm:$0xff] %vm226_vm3, %v13915_v48  ;;  %13292 = vmatprep.mubr.msk.bf16.mxu1 %vm3061_vm2, %v13614_v56 }
  0x77   : > { %419 = vst.msk [vmem:[#allocation2 + $0x600] sm:$0xff] %vm226_vm3, %v13915_v48  ;;  %420 = vst.msk [vmem:[#allocation2 + $0x608] sm:$0xff] %vm226_vm3, %v13915_v48 }
  0x78   : > { %421 = vst.msk [vmem:[#allocation2 + $0x610] sm:$0xff] %vm226_vm3, %v13915_v48  ;;  %422 = vst.msk [vmem:[#allocation2 + $0x618] sm:$0xff] %vm226_vm3, %v13915_v48 }
  0x79   : > { %423 = vst.msk [vmem:[#allocation2 + $0x620] sm:$0xff] %vm226_vm3, %v13915_v48  ;;  %424 = vst.msk [vmem:[#allocation2 + $0x628] sm:$0xff] %vm226_vm3, %v13915_v48 }
  0x7a   : > { %425 = vst.msk [vmem:[#allocation2 + $0x630] sm:$0xff] %vm226_vm3, %v13915_v48  ;;  %426 = vst.msk [vmem:[#allocation2 + $0x638] sm:$0xff] %vm226_vm3, %v13915_v48 }
  0x7b   : > { %427 = vst.msk [vmem:[#allocation2 + $0x640] sm:$0xff] %vm226_vm3, %v13915_v48  ;;  %428 = vst.msk [vmem:[#allocation2 + $0x648] sm:$0xff] %vm226_vm3, %v13915_v48 }
  0x7c   : > { %429 = vst.msk [vmem:[#allocation2 + $0x650] sm:$0xff] %vm226_vm3, %v13915_v48  ;;  %430 = vst.msk [vmem:[#allocation2 + $0x658] sm:$0xff] %vm226_vm3, %v13915_v48  ;;  %13037 = vmatmul.mubr.msk.bf16.gmra.mrb[48].mxu0 %vm3061_vm2, %v13615_v57  ;;  %v1257_v57 = vld [vmem:[#allocation2 + $0x18] sm:$0xff] }
  0x7d   : > { %431 = vst.msk [vmem:[#allocation2 + $0x660] sm:$0xff] %vm226_vm3, %v13915_v48  ;;  %432 = vst.msk [vmem:[#allocation2 + $0x668] sm:$0xff] %vm226_vm3, %v13915_v48  ;;  %13293 = vmatmul.mubr.msk.bf16.gmra.mrb[48].mxu1 %vm3061_vm2, %v13616_v58  ;;  %13040 = vmatprep.mubr.msk.bf16.mxu0 %vm3061_vm2, %v13617_v59 }
  0x7e   : > { %433 = vst.msk [vmem:[#allocation2 + $0x670] sm:$0xff] %vm226_vm3, %v13915_v48  ;;  %434 = vst.msk [vmem:[#allocation2 + $0x678] sm:$0xff] %vm226_vm3, %v13915_v48  ;;  %13296 = vmatprep.mubr.msk.bf16.mxu1 %vm3061_vm2, %v13618_v60  ;;  %v1255_v60 = vld [vmem:[#allocation2 + $0x8] sm:$0xff] }
  0x7f   : > { %435 = vst.msk [vmem:[#allocation2 + $0x680] sm:$0xff] %vm226_vm3, %v13915_v48  ;;  %436 = vst.msk [vmem:[#allocation2 + $0x688] sm:$0xff] %vm226_vm3, %v13915_v48 }
  0x80   : > { %437 = vst.msk [vmem:[#allocation2 + $0x690] sm:$0xff] %vm226_vm3, %v13915_v48  ;;  %438 = vst.msk [vmem:[#allocation2 + $0x698] sm:$0xff] %vm226_vm3, %v13915_v48 }
  0x81   : > { %439 = vst.msk [vmem:[#allocation2 + $0x6a0] sm:$0xff] %vm226_vm3, %v13915_v48  ;;  %440 = vst.msk [vmem:[#allocation2 + $0x6a8] sm:$0xff] %vm226_vm3, %v13915_v48 }
  0x82   : > { %441 = vst.msk [vmem:[#allocation2 + $0x6b0] sm:$0xff] %vm226_vm3, %v13915_v48  ;;  %442 = vst.msk [vmem:[#allocation2 + $0x6b8] sm:$0xff] %vm226_vm3, %v13915_v48 }
  0x83   : > { %443 = vst.msk [vmem:[#allocation2 + $0x6c0] sm:$0xff] %vm226_vm3, %v13915_v48  ;;  %444 = vst.msk [vmem:[#allocation2 + $0x6c8] sm:$0xff] %vm226_vm3, %v13915_v48 }
  0x84   : > { %445 = vst.msk [vmem:[#allocation2 + $0x6d0] sm:$0xff] %vm226_vm3, %v13915_v48  ;;  %446 = vst.msk [vmem:[#allocation2 + $0x6d8] sm:$0xff] %vm226_vm3, %v13915_v48  ;;  %13041 = vmatmul.mubr.msk.bf16.gmra.mrb[52].mxu0 %vm3061_vm2, %v13619_v61 }
  0x85   : > { %447 = vst.msk [vmem:[#allocation2 + $0x6e0] sm:$0xff] %vm226_vm3, %v13915_v48  ;;  %448 = vst.msk [vmem:[#allocation2 + $0x6e8] sm:$0xff] %vm226_vm3, %v13915_v48  ;;  %13297 = vmatmul.mubr.msk.bf16.gmra.mrb[52].mxu1 %vm3061_vm2, %v13620_v62  ;;  %13044 = vmatprep.mubr.msk.bf16.mxu0 %vm3061_vm2, %v13621_v63 }
  0x86   : > { %449 = vst.msk [vmem:[#allocation2 + $0x6f0] sm:$0xff] %vm226_vm3, %v13915_v48  ;;  %450 = vst.msk [vmem:[#allocation2 + $0x6f8] sm:$0xff] %vm226_vm3, %v13915_v48  ;;  %13300 = vmatprep.mubr.msk.bf16.mxu1 %vm3061_vm2, %v13622_v0 }
  0x87   : > { %451 = vst.msk [vmem:[#allocation2 + $0x700] sm:$0xff] %vm226_vm3, %v13915_v48  ;;  %452 = vst.msk [vmem:[#allocation2 + $0x708] sm:$0xff] %vm226_vm3, %v13915_v48 }
  0x88   : > { %453 = vst.msk [vmem:[#allocation2 + $0x710] sm:$0xff] %vm226_vm3, %v13915_v48  ;;  %454 = vst.msk [vmem:[#allocation2 + $0x718] sm:$0xff] %vm226_vm3, %v13915_v48 }
  0x89   : > { %455 = vst.msk [vmem:[#allocation2 + $0x720] sm:$0xff] %vm226_vm3, %v13915_v48  ;;  %456 = vst.msk [vmem:[#allocation2 + $0x728] sm:$0xff] %vm226_vm3, %v13915_v48 }
  0x8a   : > { %457 = vst.msk [vmem:[#allocation2 + $0x730] sm:$0xff] %vm226_vm3, %v13915_v48  ;;  %458 = vst.msk [vmem:[#allocation2 + $0x738] sm:$0xff] %vm226_vm3, %v13915_v48 }
  0x8b   : > { %459 = vst.msk [vmem:[#allocation2 + $0x740] sm:$0xff] %vm226_vm3, %v13915_v48  ;;  %460 = vst.msk [vmem:[#allocation2 + $0x748] sm:$0xff] %vm226_vm3, %v13915_v48 }
  0x8c   : > { %461 = vst.msk [vmem:[#allocation2 + $0x750] sm:$0xff] %vm226_vm3, %v13915_v48  ;;  %462 = vst.msk [vmem:[#allocation2 + $0x758] sm:$0xff] %vm226_vm3, %v13915_v48  ;;  %13045 = vmatmul.mubr.msk.bf16.gmra.mrb[56].mxu0 %vm3061_vm2, %v13623_v1  ;;  %v13675_v1 = vld [vmem:[%s14005_s7 + $0x1b8] sm:$0xff]  }
  0x8d   : > { %463 = vst.msk [vmem:[#allocation2 + $0x760] sm:$0xff] %vm226_vm3, %v13915_v48  ;;  %464 = vst.msk [vmem:[#allocation2 + $0x768] sm:$0xff] %vm226_vm3, %v13915_v48  ;;  %13301 = vmatmul.mubr.msk.bf16.gmra.mrb[56].mxu1 %vm3061_vm2, %v13624_v2  ;;  %13048 = vmatprep.mubr.msk.bf16.mxu0 %vm3061_vm2, %v13625_v3 }
  0x8e   : > { %465 = vst.msk [vmem:[#allocation2 + $0x770] sm:$0xff] %vm226_vm3, %v13915_v48  ;;  %466 = vst.msk [vmem:[#allocation2 + $0x778] sm:$0xff] %vm226_vm3, %v13915_v48  ;;  %13304 = vmatprep.mubr.msk.bf16.mxu1 %vm3061_vm2, %v13626_v4 }
  0x8f   : > { %467 = vst.msk [vmem:[#allocation2 + $0x780] sm:$0xff] %vm226_vm3, %v13915_v48  ;;  %468 = vst.msk [vmem:[#allocation2 + $0x788] sm:$0xff] %vm226_vm3, %v13915_v48 }
  0x90   : > { %469 = vst.msk [vmem:[#allocation2 + $0x790] sm:$0xff] %vm226_vm3, %v13915_v48  ;;  %470 = vst.msk [vmem:[#allocation2 + $0x798] sm:$0xff] %vm226_vm3, %v13915_v48 }
  0x91   : > { %471 = vst.msk [vmem:[#allocation2 + $0x7a0] sm:$0xff] %vm226_vm3, %v13915_v48  ;;  %472 = vst.msk [vmem:[#allocation2 + $0x7a8] sm:$0xff] %vm226_vm3, %v13915_v48 }
  0x92   : > { %473 = vst.msk [vmem:[#allocation2 + $0x7b0] sm:$0xff] %vm226_vm3, %v13915_v48  ;;  %474 = vst.msk [vmem:[#allocation2 + $0x7b8] sm:$0xff] %vm226_vm3, %v13915_v48 }
  0x93   : > { %475 = vst.msk [vmem:[#allocation2 + $0x7c0] sm:$0xff] %vm226_vm3, %v13915_v48  ;;  %476 = vst.msk [vmem:[#allocation2 + $0x7c8] sm:$0xff] %vm226_vm3, %v13915_v48 }
  0x94   : > { %477 = vst.msk [vmem:[#allocation2 + $0x7d0] sm:$0xff] %vm226_vm3, %v13915_v48  ;;  %478 = vst.msk [vmem:[#allocation2 + $0x7d8] sm:$0xff] %vm226_vm3, %v13915_v48  ;;  %13049 = vmatmul.mubr.msk.bf16.gmra.mrb[60].mxu0 %vm3061_vm2, %v13627_v5 }
  0x95   : > { %479 = vst.msk [vmem:[#allocation2 + $0x7e0] sm:$0xff] %vm226_vm3, %v13915_v48  ;;  %480 = vst.msk [vmem:[#allocation2 + $0x7e8] sm:$0xff] %vm226_vm3, %v13915_v48  ;;  %13305 = vmatmul.mubr.msk.bf16.gmra.mrb[60].mxu1 %vm3061_vm2, %v13628_v6  ;;  %13052 = vmatprep.mubr.msk.bf16.mxu0 %vm3061_vm2, %v13629_v7  ;;  %v13676_v6 = vld [vmem:[%s14005_s7 + $0x5b8] sm:$0xff]   ;;  %v13677_v7 = vld [vmem:[%s14005_s7 + $0x1c0] sm:$0xff]  }
  0x96   : > { %481 = vst.msk [vmem:[#allocation2 + $0x7f0] sm:$0xff] %vm226_vm3, %v13915_v48  ;;  %482 = vst.msk [vmem:[#allocation2 + $0x7f8] sm:$0xff] %vm226_vm3, %v13915_v48  ;;  %13308 = vmatprep.mubr.msk.bf16.mxu1 %vm3061_vm2, %v13630_v8 }
  0x97   : > { %483 = vst.msk [vmem:[#allocation2 + $0x800] sm:$0xff] %vm226_vm3, %v13915_v48  ;;  %484 = vst.msk [vmem:[#allocation2 + $0x808] sm:$0xff] %vm226_vm3, %v13915_v48 }
  0x98   : > { %485 = vst.msk [vmem:[#allocation2 + $0x810] sm:$0xff] %vm226_vm3, %v13915_v48  ;;  %486 = vst.msk [vmem:[#allocation2 + $0x818] sm:$0xff] %vm226_vm3, %v13915_v48 }
  0x99   : > { %487 = vst.msk [vmem:[#allocation2 + $0x820] sm:$0xff] %vm226_vm3, %v13915_v48  ;;  %488 = vst.msk [vmem:[#allocation2 + $0x828] sm:$0xff] %vm226_vm3, %v13915_v48 }
  0x9a   : > { %489 = vst.msk [vmem:[#allocation2 + $0x830] sm:$0xff] %vm226_vm3, %v13915_v48  ;;  %490 = vst.msk [vmem:[#allocation2 + $0x838] sm:$0xff] %vm226_vm3, %v13915_v48 }
  0x9b   : > { %491 = vst.msk [vmem:[#allocation2 + $0x840] sm:$0xff] %vm226_vm3, %v13915_v48  ;;  %492 = vst.msk [vmem:[#allocation2 + $0x848] sm:$0xff] %vm226_vm3, %v13915_v48 }
  0x9c   : > { %493 = vst.msk [vmem:[#allocation2 + $0x850] sm:$0xff] %vm226_vm3, %v13915_v48  ;;  %494 = vst.msk [vmem:[#allocation2 + $0x858] sm:$0xff] %vm226_vm3, %v13915_v48  ;;  %13053 = vmatmul.mubr.msk.bf16.gmra.mrb[64].mxu0 %vm3061_vm2, %v13631_v9 }
  0x9d   : > { %495 = vst.msk [vmem:[#allocation2 + $0x860] sm:$0xff] %vm226_vm3, %v13915_v48  ;;  %496 = vst.msk [vmem:[#allocation2 + $0x868] sm:$0xff] %vm226_vm3, %v13915_v48  ;;  %13309 = vmatmul.mubr.msk.bf16.gmra.mrb[64].mxu1 %vm3061_vm2, %v13632_v10  ;;  %13056 = vmatprep.mubr.msk.bf16.mxu0 %vm3061_vm2, %v13633_v11 }
  0x9e   : > { %497 = vst.msk [vmem:[#allocation2 + $0x870] sm:$0xff] %vm226_vm3, %v13915_v48  ;;  %498 = vst.msk [vmem:[#allocation2 + $0x878] sm:$0xff] %vm226_vm3, %v13915_v48  ;;  %13312 = vmatprep.mubr.msk.bf16.mxu1 %vm3061_vm2, %v13634_v12  ;;  %v1510_v56 = vld [vmem:[#allocation2 + $0x800] sm:$0xff]  ;;  %v1511_v0 = vld [vmem:[#allocation2 + $0x808] sm:$0xff] }
  0x9f   : > { %499 = vst.msk [vmem:[#allocation2 + $0x880] sm:$0xff] %vm226_vm3, %v13915_v48  ;;  %500 = vst.msk [vmem:[#allocation2 + $0x888] sm:$0xff] %vm226_vm3, %v13915_v48  ;;  %v1512_v54 = vld [vmem:[#allocation2 + $0x810] sm:$0xff]  ;;  %v1513_v58 = vld [vmem:[#allocation2 + $0x818] sm:$0xff] }
  0xa0   : > { %501 = vst.msk [vmem:[#allocation2 + $0x890] sm:$0xff] %vm226_vm3, %v13915_v48  ;;  %502 = vst.msk [vmem:[#allocation2 + $0x898] sm:$0xff] %vm226_vm3, %v13915_v48  ;;  %v13678_v12 = vld [vmem:[%s14005_s7 + $0x5c0] sm:$0xff]  }
  0xa1   : > { %503 = vst.msk [vmem:[#allocation2 + $0x8a0] sm:$0xff] %vm226_vm3, %v13915_v48  ;;  %504 = vst.msk [vmem:[#allocation2 + $0x8a8] sm:$0xff] %vm226_vm3, %v13915_v48 }
  0xa2   : > { %505 = vst.msk [vmem:[#allocation2 + $0x8b0] sm:$0xff] %vm226_vm3, %v13915_v48  ;;  %506 = vst.msk [vmem:[#allocation2 + $0x8b8] sm:$0xff] %vm226_vm3, %v13915_v48 }
  0xa3   : > { %507 = vst.msk [vmem:[#allocation2 + $0x8c0] sm:$0xff] %vm226_vm3, %v13915_v48  ;;  %508 = vst.msk [vmem:[#allocation2 + $0x8c8] sm:$0xff] %vm226_vm3, %v13915_v48 }
  0xa4   : > { %509 = vst.msk [vmem:[#allocation2 + $0x8d0] sm:$0xff] %vm226_vm3, %v13915_v48  ;;  %510 = vst.msk [vmem:[#allocation2 + $0x8d8] sm:$0xff] %vm226_vm3, %v13915_v48  ;;  %13057 = vmatmul.mubr.msk.bf16.gmra.mrb[68].mxu0 %vm3061_vm2, %v13635_v13 }
  0xa5   : > { %511 = vst.msk [vmem:[#allocation2 + $0x8e0] sm:$0xff] %vm226_vm3, %v13915_v48  ;;  %512 = vst.msk [vmem:[#allocation2 + $0x8e8] sm:$0xff] %vm226_vm3, %v13915_v48  ;;  %13313 = vmatmul.mubr.msk.bf16.gmra.mrb[68].mxu1 %vm3061_vm2, %v13636_v14  ;;  %13060 = vmatprep.mubr.msk.bf16.mxu0 %vm3061_vm2, %v13637_v15 }
  0xa6   : > { %513 = vst.msk [vmem:[#allocation2 + $0x8f0] sm:$0xff] %vm226_vm3, %v13915_v48  ;;  %514 = vst.msk [vmem:[#allocation2 + $0x8f8] sm:$0xff] %vm226_vm3, %v13915_v48  ;;  %13316 = vmatprep.mubr.msk.bf16.mxu1 %vm3061_vm2, %v13638_v16  ;;  %v1260_v16 = vld [vmem:[#allocation2 + $0x30] sm:$0xff] }
  0xa7   : > { %515 = vst.msk [vmem:[#allocation2 + $0x900] sm:$0xff] %vm226_vm3, %v13915_v48  ;;  %516 = vst.msk [vmem:[#allocation2 + $0x908] sm:$0xff] %vm226_vm3, %v13915_v48 }
  0xa8   : > { %517 = vst.msk [vmem:[#allocation2 + $0x910] sm:$0xff] %vm226_vm3, %v13915_v48  ;;  %518 = vst.msk [vmem:[#allocation2 + $0x918] sm:$0xff] %vm226_vm3, %v13915_v48 }
  0xa9   : > { %519 = vst.msk [vmem:[#allocation2 + $0x920] sm:$0xff] %vm226_vm3, %v13915_v48  ;;  %520 = vst.msk [vmem:[#allocation2 + $0x928] sm:$0xff] %vm226_vm3, %v13915_v48 }
  0xaa   : > { %521 = vst.msk [vmem:[#allocation2 + $0x930] sm:$0xff] %vm226_vm3, %v13915_v48  ;;  %522 = vst.msk [vmem:[#allocation2 + $0x938] sm:$0xff] %vm226_vm3, %v13915_v48 }
  0xab   : > { %523 = vst.msk [vmem:[#allocation2 + $0x940] sm:$0xff] %vm226_vm3, %v13915_v48  ;;  %524 = vst.msk [vmem:[#allocation2 + $0x948] sm:$0xff] %vm226_vm3, %v13915_v48 }
  0xac   : > { %525 = vst.msk [vmem:[#allocation2 + $0x950] sm:$0xff] %vm226_vm3, %v13915_v48  ;;  %526 = vst.msk [vmem:[#allocation2 + $0x958] sm:$0xff] %vm226_vm3, %v13915_v48  ;;  %13061 = vmatmul.mubr.msk.bf16.gmra.mrb[72].mxu0 %vm3061_vm2, %v13639_v17 }
  0xad   : > { %527 = vst.msk [vmem:[#allocation2 + $0x960] sm:$0xff] %vm226_vm3, %v13915_v48  ;;  %528 = vst.msk [vmem:[#allocation2 + $0x968] sm:$0xff] %vm226_vm3, %v13915_v48  ;;  %13317 = vmatmul.mubr.msk.bf16.gmra.mrb[72].mxu1 %vm3061_vm2, %v13640_v18  ;;  %13064 = vmatprep.mubr.msk.bf16.mxu0 %vm3061_vm2, %v13641_v19  ;;  %v1516_v18 = vld [vmem:[#allocation2 + $0x830] sm:$0xff]  ;;  %v1258_v19 = vld [vmem:[#allocation2 + $0x20] sm:$0xff] }
  0xae   : > { %529 = vst.msk [vmem:[#allocation2 + $0x970] sm:$0xff] %vm226_vm3, %v13915_v48  ;;  %530 = vst.msk [vmem:[#allocation2 + $0x978] sm:$0xff] %vm226_vm3, %v13915_v48  ;;  %13320 = vmatprep.mubr.msk.bf16.mxu1 %vm3061_vm2, %v13642_v20  ;;  %v15265_v20 = vld [vmem:[%s17708_s2] ss:$0 sm:$0xff] }
  0xaf   : > { %531 = vst.msk [vmem:[#allocation2 + $0x980] sm:$0xff] %vm226_vm3, %v13915_v48  ;;  %532 = vst.msk [vmem:[#allocation2 + $0x988] sm:$0xff] %vm226_vm3, %v13915_v48 }
  0xb0   : > { %533 = vst.msk [vmem:[#allocation2 + $0x990] sm:$0xff] %vm226_vm3, %v13915_v48  ;;  %534 = vst.msk [vmem:[#allocation2 + $0x998] sm:$0xff] %vm226_vm3, %v13915_v48 }
  0xb1   : > { %535 = vst.msk [vmem:[#allocation2 + $0x9a0] sm:$0xff] %vm226_vm3, %v13915_v48  ;;  %536 = vst.msk [vmem:[#allocation2 + $0x9a8] sm:$0xff] %vm226_vm3, %v13915_v48 }
  0xb2   : > { %537 = vst.msk [vmem:[#allocation2 + $0x9b0] sm:$0xff] %vm226_vm3, %v13915_v48  ;;  %538 = vst.msk [vmem:[#allocation2 + $0x9b8] sm:$0xff] %vm226_vm3, %v13915_v48 }
  0xb3   : > { %539 = vst.msk [vmem:[#allocation2 + $0x9c0] sm:$0xff] %vm226_vm3, %v13915_v48  ;;  %540 = vst.msk [vmem:[#allocation2 + $0x9c8] sm:$0xff] %vm226_vm3, %v13915_v48 }
  0xb4   : > { %541 = vst.msk [vmem:[#allocation2 + $0x9d0] sm:$0xff] %vm226_vm3, %v13915_v48  ;;  %542 = vst.msk [vmem:[#allocation2 + $0x9d8] sm:$0xff] %vm226_vm3, %v13915_v48  ;;  %13065 = vmatmul.mubr.msk.bf16.gmra.mrb[76].mxu0 %vm3061_vm2, %v13643_v21  ;;  %v1514_v21 = vld [vmem:[#allocation2 + $0x820] sm:$0xff] }
  0xb5   : > { %543 = vst.msk [vmem:[#allocation2 + $0x9e0] sm:$0xff] %vm226_vm3, %v13915_v48  ;;  %544 = vst.msk [vmem:[#allocation2 + $0x9e8] sm:$0xff] %vm226_vm3, %v13915_v48  ;;  %13321 = vmatmul.mubr.msk.bf16.gmra.mrb[76].mxu1 %vm3061_vm2, %v13644_v22  ;;  %13068 = vmatprep.mubr.msk.bf16.mxu0 %vm3061_vm2, %v13645_v23  ;;  %v1261_v22 = vld [vmem:[#allocation2 + $0x38] sm:$0xff] }
  0xb6   : > { %545 = vst.msk [vmem:[#allocation2 + $0x9f0] sm:$0xff] %vm226_vm3, %v13915_v48  ;;  %546 = vst.msk [vmem:[#allocation2 + $0x9f8] sm:$0xff] %vm226_vm3, %v13915_v48  ;;  %13324 = vmatprep.mubr.msk.bf16.mxu1 %vm3061_vm2, %v13646_v24  ;;  %v1517_v23 = vld [vmem:[#allocation2 + $0x838] sm:$0xff] }
  0xb7   : > { %547 = vst.msk [vmem:[#allocation2 + $0xa00] sm:$0xff] %vm226_vm3, %v13915_v48  ;;  %548 = vst.msk [vmem:[#allocation2 + $0xa08] sm:$0xff] %vm226_vm3, %v13915_v48 }
  0xb8   : > { %549 = vst.msk [vmem:[#allocation2 + $0xa10] sm:$0xff] %vm226_vm3, %v13915_v48  ;;  %550 = vst.msk [vmem:[#allocation2 + $0xa18] sm:$0xff] %vm226_vm3, %v13915_v48 }
  0xb9   : > { %551 = vst.msk [vmem:[#allocation2 + $0xa20] sm:$0xff] %vm226_vm3, %v13915_v48  ;;  %552 = vst.msk [vmem:[#allocation2 + $0xa28] sm:$0xff] %vm226_vm3, %v13915_v48 }
  0xba   : > { %553 = vst.msk [vmem:[#allocation2 + $0xa30] sm:$0xff] %vm226_vm3, %v13915_v48  ;;  %554 = vst.msk [vmem:[#allocation2 + $0xa38] sm:$0xff] %vm226_vm3, %v13915_v48 }
  0xbb   : > { %555 = vst.msk [vmem:[#allocation2 + $0xa40] sm:$0xff] %vm226_vm3, %v13915_v48  ;;  %556 = vst.msk [vmem:[#allocation2 + $0xa48] sm:$0xff] %vm226_vm3, %v13915_v48 }
  0xbc   : > { %557 = vst.msk [vmem:[#allocation2 + $0xa50] sm:$0xff] %vm226_vm3, %v13915_v48  ;;  %558 = vst.msk [vmem:[#allocation2 + $0xa58] sm:$0xff] %vm226_vm3, %v13915_v48  ;;  %13069 = vmatmul.mubr.msk.bf16.gmra.mrb[80].mxu0 %vm3061_vm2, %v13647_v25  ;;  %v1259_v25 = vld [vmem:[#allocation2 + $0x28] sm:$0xff] }
  0xbd   : > { %559 = vst.msk [vmem:[#allocation2 + $0xa60] sm:$0xff] %vm226_vm3, %v13915_v48  ;;  %560 = vst.msk [vmem:[#allocation2 + $0xa68] sm:$0xff] %vm226_vm3, %v13915_v48  ;;  %13325 = vmatmul.mubr.msk.bf16.gmra.mrb[80].mxu1 %vm3061_vm2, %v13648_v26  ;;  %13072 = vmatprep.mubr.msk.bf16.mxu0 %vm3061_vm2, %v13649_v27 }
  0xbe   : > { %561 = vst.msk [vmem:[#allocation2 + $0xa70] sm:$0xff] %vm226_vm3, %v13915_v48  ;;  %562 = vst.msk [vmem:[#allocation2 + $0xa78] sm:$0xff] %vm226_vm3, %v13915_v48  ;;  %13328 = vmatprep.mubr.msk.bf16.mxu1 %vm3061_vm2, %v13650_v28 }
  0xbf   : > { %563 = vst.msk [vmem:[#allocation2 + $0xa80] sm:$0xff] %vm226_vm3, %v13915_v48  ;;  %564 = vst.msk [vmem:[#allocation2 + $0xa88] sm:$0xff] %vm226_vm3, %v13915_v48 }
  0xc0   : > { %565 = vst.msk [vmem:[#allocation2 + $0xa90] sm:$0xff] %vm226_vm3, %v13915_v48  ;;  %566 = vst.msk [vmem:[#allocation2 + $0xa98] sm:$0xff] %vm226_vm3, %v13915_v48 }
  0xc1   : > { %567 = vst.msk [vmem:[#allocation2 + $0xaa0] sm:$0xff] %vm226_vm3, %v13915_v48  ;;  %568 = vst.msk [vmem:[#allocation2 + $0xaa8] sm:$0xff] %vm226_vm3, %v13915_v48 }
  0xc2   : > { %569 = vst.msk [vmem:[#allocation2 + $0xab0] sm:$0xff] %vm226_vm3, %v13915_v48  ;;  %570 = vst.msk [vmem:[#allocation2 + $0xab8] sm:$0xff] %vm226_vm3, %v13915_v48 }
  0xc3   : > { %571 = vst.msk [vmem:[#allocation2 + $0xac0] sm:$0xff] %vm226_vm3, %v13915_v48  ;;  %572 = vst.msk [vmem:[#allocation2 + $0xac8] sm:$0xff] %vm226_vm3, %v13915_v48 }
  0xc4   : > { %573 = vst.msk [vmem:[#allocation2 + $0xad0] sm:$0xff] %vm226_vm3, %v13915_v48  ;;  %574 = vst.msk [vmem:[#allocation2 + $0xad8] sm:$0xff] %vm226_vm3, %v13915_v48  ;;  %13073 = vmatmul.mubr.msk.bf16.gmra.mrb[84].mxu0 %vm3061_vm2, %v13651_v29  ;;  %v1515_v29 = vld [vmem:[#allocation2 + $0x828] sm:$0xff] }
  0xc5   : > { %575 = vst.msk [vmem:[#allocation2 + $0xae0] sm:$0xff] %vm226_vm3, %v13915_v48  ;;  %576 = vst.msk [vmem:[#allocation2 + $0xae8] sm:$0xff] %vm226_vm3, %v13915_v48  ;;  %13329 = vmatmul.mubr.msk.bf16.gmra.mrb[84].mxu1 %vm3061_vm2, %v13652_v30  ;;  %13076 = vmatprep.mubr.msk.bf16.mxu0 %vm3061_vm2, %v13653_v31  ;;  %v13679_v30 = vld [vmem:[%s14005_s7 + $0x1c8] sm:$0xff]  }
  0xc6   : > { %577 = vst.msk [vmem:[#allocation2 + $0xaf0] sm:$0xff] %vm226_vm3, %v13915_v48  ;;  %578 = vst.msk [vmem:[#allocation2 + $0xaf8] sm:$0xff] %vm226_vm3, %v13915_v48  ;;  %13332 = vmatprep.mubr.msk.bf16.mxu1 %vm3061_vm2, %v13654_v32 }
  0xc7   : > { %579 = vst.msk [vmem:[#allocation2 + $0xb00] sm:$0xff] %vm226_vm3, %v13915_v48  ;;  %580 = vst.msk [vmem:[#allocation2 + $0xb08] sm:$0xff] %vm226_vm3, %v13915_v48 }
  0xc8   : > { %581 = vst.msk [vmem:[#allocation2 + $0xb10] sm:$0xff] %vm226_vm3, %v13915_v48  ;;  %582 = vst.msk [vmem:[#allocation2 + $0xb18] sm:$0xff] %vm226_vm3, %v13915_v48 }
  0xc9   : > { %583 = vst.msk [vmem:[#allocation2 + $0xb20] sm:$0xff] %vm226_vm3, %v13915_v48  ;;  %584 = vst.msk [vmem:[#allocation2 + $0xb28] sm:$0xff] %vm226_vm3, %v13915_v48 }
  0xca   : > { %585 = vst.msk [vmem:[#allocation2 + $0xb30] sm:$0xff] %vm226_vm3, %v13915_v48  ;;  %586 = vst.msk [vmem:[#allocation2 + $0xb38] sm:$0xff] %vm226_vm3, %v13915_v48 }
  0xcb   : > { %587 = vst.msk [vmem:[#allocation2 + $0xb40] sm:$0xff] %vm226_vm3, %v13915_v48  ;;  %588 = vst.msk [vmem:[#allocation2 + $0xb48] sm:$0xff] %vm226_vm3, %v13915_v48 }
  0xcc   : > { %589 = vst.msk [vmem:[#allocation2 + $0xb50] sm:$0xff] %vm226_vm3, %v13915_v48  ;;  %590 = vst.msk [vmem:[#allocation2 + $0xb58] sm:$0xff] %vm226_vm3, %v13915_v48  ;;  %13077 = vmatmul.mubr.msk.bf16.gmra.mrb[88].mxu0 %vm3061_vm2, %v13655_v33 }
  0xcd   : > { %591 = vst.msk [vmem:[#allocation2 + $0xb60] sm:$0xff] %vm226_vm3, %v13915_v48  ;;  %592 = vst.msk [vmem:[#allocation2 + $0xb68] sm:$0xff] %vm226_vm3, %v13915_v48  ;;  %13333 = vmatmul.mubr.msk.bf16.gmra.mrb[88].mxu1 %vm3061_vm2, %v13656_v34  ;;  %13080 = vmatprep.mubr.msk.bf16.mxu0 %vm3061_vm2, %v13657_v35 }
  0xce   : > { %593 = vst.msk [vmem:[#allocation2 + $0xb70] sm:$0xff] %vm226_vm3, %v13915_v48  ;;  %594 = vst.msk [vmem:[#allocation2 + $0xb78] sm:$0xff] %vm226_vm3, %v13915_v48  ;;  %13336 = vmatprep.mubr.msk.bf16.mxu1 %vm3061_vm2, %v13658_v36  ;;  %v13680_v36 = vld [vmem:[%s14005_s7 + $0x5c8] sm:$0xff]  }
  0xcf   : > { %595 = vst.msk [vmem:[#allocation2 + $0xb80] sm:$0xff] %vm226_vm3, %v13915_v48  ;;  %596 = vst.msk [vmem:[#allocation2 + $0xb88] sm:$0xff] %vm226_vm3, %v13915_v48 }
  0xd0   : > { %597 = vst.msk [vmem:[#allocation2 + $0xb90] sm:$0xff] %vm226_vm3, %v13915_v48  ;;  %598 = vst.msk [vmem:[#allocation2 + $0xb98] sm:$0xff] %vm226_vm3, %v13915_v48 }
  0xd1   : > { %599 = vst.msk [vmem:[#allocation2 + $0xba0] sm:$0xff] %vm226_vm3, %v13915_v48  ;;  %600 = vst.msk [vmem:[#allocation2 + $0xba8] sm:$0xff] %vm226_vm3, %v13915_v48 }
  0xd2   : > { %601 = vst.msk [vmem:[#allocation2 + $0xbb0] sm:$0xff] %vm226_vm3, %v13915_v48  ;;  %602 = vst.msk [vmem:[#allocation2 + $0xbb8] sm:$0xff] %vm226_vm3, %v13915_v48 }
  0xd3   : > { %603 = vst.msk [vmem:[#allocation2 + $0xbc0] sm:$0xff] %vm226_vm3, %v13915_v48  ;;  %604 = vst.msk [vmem:[#allocation2 + $0xbc8] sm:$0xff] %vm226_vm3, %v13915_v48 }
  0xd4   : > { %605 = vst.msk [vmem:[#allocation2 + $0xbd0] sm:$0xff] %vm226_vm3, %v13915_v48  ;;  %606 = vst.msk [vmem:[#allocation2 + $0xbd8] sm:$0xff] %vm226_vm3, %v13915_v48  ;;  %13081 = vmatmul.mubr.msk.bf16.gmra.mrb[92].mxu0 %vm3061_vm2, %v13659_v37  ;;  %v13681_v37 = vld [vmem:[%s14005_s7 + $0x1d0] sm:$0xff]  }
  0xd5   : > { %607 = vst.msk [vmem:[#allocation2 + $0xbe0] sm:$0xff] %vm226_vm3, %v13915_v48  ;;  %608 = vst.msk [vmem:[#allocation2 + $0xbe8] sm:$0xff] %vm226_vm3, %v13915_v48  ;;  %13337 = vmatmul.mubr.msk.bf16.gmra.mrb[92].mxu1 %vm3061_vm2, %v13660_v38  ;;  %13084 = vmatprep.mubr.msk.bf16.mxu0 %vm3061_vm2, %v13661_v39 }
  0xd6   : > { %609 = vst.msk [vmem:[#allocation2 + $0xbf0] sm:$0xff] %vm226_vm3, %v13915_v48  ;;  %610 = vst.msk [vmem:[#allocation2 + $0xbf8] sm:$0xff] %vm226_vm3, %v13915_v48  ;;  %13340 = vmatprep.mubr.msk.bf16.mxu1 %vm3061_vm2, %v13662_v40 }
  0xd7   : > { %611 = vst.msk [vmem:[#allocation2 + $0xc00] sm:$0xff] %vm226_vm3, %v13915_v48  ;;  %612 = vst.msk [vmem:[#allocation2 + $0xc08] sm:$0xff] %vm226_vm3, %v13915_v48 }
  0xd8   : > { %613 = vst.msk [vmem:[#allocation2 + $0xc10] sm:$0xff] %vm226_vm3, %v13915_v48  ;;  %614 = vst.msk [vmem:[#allocation2 + $0xc18] sm:$0xff] %vm226_vm3, %v13915_v48 }
  0xd9   : > { %615 = vst.msk [vmem:[#allocation2 + $0xc20] sm:$0xff] %vm226_vm3, %v13915_v48  ;;  %616 = vst.msk [vmem:[#allocation2 + $0xc28] sm:$0xff] %vm226_vm3, %v13915_v48 }
  0xda   : > { %617 = vst.msk [vmem:[#allocation2 + $0xc30] sm:$0xff] %vm226_vm3, %v13915_v48  ;;  %618 = vst.msk [vmem:[#allocation2 + $0xc38] sm:$0xff] %vm226_vm3, %v13915_v48 }
  0xdb   : > { %619 = vst.msk [vmem:[#allocation2 + $0xc40] sm:$0xff] %vm226_vm3, %v13915_v48  ;;  %620 = vst.msk [vmem:[#allocation2 + $0xc48] sm:$0xff] %vm226_vm3, %v13915_v48 }
  0xdc   : > { %621 = vst.msk [vmem:[#allocation2 + $0xc50] sm:$0xff] %vm226_vm3, %v13915_v48  ;;  %622 = vst.msk [vmem:[#allocation2 + $0xc58] sm:$0xff] %vm226_vm3, %v13915_v48  ;;  %13085 = vmatmul.mubr.msk.bf16.gmra.mrb[96].mxu0 %vm3061_vm2, %v13663_v41 }
  0xdd   : > { %623 = vst.msk [vmem:[#allocation2 + $0xc60] sm:$0xff] %vm226_vm3, %v13915_v48  ;;  %624 = vst.msk [vmem:[#allocation2 + $0xc68] sm:$0xff] %vm226_vm3, %v13915_v48  ;;  %13341 = vmatmul.mubr.msk.bf16.gmra.mrb[96].mxu1 %vm3061_vm2, %v13664_v42  ;;  %13088 = vmatprep.mubr.msk.bf16.mxu0 %vm3061_vm2, %v13665_v43 }
  0xde   : > { %625 = vst.msk [vmem:[#allocation2 + $0xc70] sm:$0xff] %vm226_vm3, %v13915_v48  ;;  %626 = vst.msk [vmem:[#allocation2 + $0xc78] sm:$0xff] %vm226_vm3, %v13915_v48  ;;  %13344 = vmatprep.mubr.msk.bf16.mxu1 %vm3061_vm2, %v13666_v44 }
  0xdf   : > { %627 = vst.msk [vmem:[#allocation2 + $0xc80] sm:$0xff] %vm226_vm3, %v13915_v48  ;;  %628 = vst.msk [vmem:[#allocation2 + $0xc88] sm:$0xff] %vm226_vm3, %v13915_v48 }
  0xe0   : > { %629 = vst.msk [vmem:[#allocation2 + $0xc90] sm:$0xff] %vm226_vm3, %v13915_v48  ;;  %630 = vst.msk [vmem:[#allocation2 + $0xc98] sm:$0xff] %vm226_vm3, %v13915_v48 }
  0xe1   : > { %631 = vst.msk [vmem:[#allocation2 + $0xca0] sm:$0xff] %vm226_vm3, %v13915_v48  ;;  %632 = vst.msk [vmem:[#allocation2 + $0xca8] sm:$0xff] %vm226_vm3, %v13915_v48 }
  0xe2   : > { %633 = vst.msk [vmem:[#allocation2 + $0xcb0] sm:$0xff] %vm226_vm3, %v13915_v48  ;;  %634 = vst.msk [vmem:[#allocation2 + $0xcb8] sm:$0xff] %vm226_vm3, %v13915_v48 }
  0xe3   : > { %635 = vst.msk [vmem:[#allocation2 + $0xcc0] sm:$0xff] %vm226_vm3, %v13915_v48  ;;  %636 = vst.msk [vmem:[#allocation2 + $0xcc8] sm:$0xff] %vm226_vm3, %v13915_v48 }
  0xe4   : > { %637 = vst.msk [vmem:[#allocation2 + $0xcd0] sm:$0xff] %vm226_vm3, %v13915_v48  ;;  %638 = vst.msk [vmem:[#allocation2 + $0xcd8] sm:$0xff] %vm226_vm3, %v13915_v48  ;;  %13089 = vmatmul.mubr.msk.bf16.gmra.mrb[100].mxu0 %vm3061_vm2, %v13667_v45  ;;  %v13682_v45 = vld [vmem:[%s14005_s7 + $0x5d0] sm:$0xff]  }
  0xe5   : > { %639 = vst.msk [vmem:[#allocation2 + $0xce0] sm:$0xff] %vm226_vm3, %v13915_v48  ;;  %640 = vst.msk [vmem:[#allocation2 + $0xce8] sm:$0xff] %vm226_vm3, %v13915_v48  ;;  %13345 = vmatmul.mubr.msk.bf16.gmra.mrb[100].mxu1 %vm3061_vm2, %v13668_v46  ;;  %13092 = vmatprep.mubr.msk.bf16.mxu0 %vm3061_vm2, %v13669_v47 }
  0xe6   : > { %641 = vst.msk [vmem:[#allocation2 + $0xcf0] sm:$0xff] %vm226_vm3, %v13915_v48  ;;  %642 = vst.msk [vmem:[#allocation2 + $0xcf8] sm:$0xff] %vm226_vm3, %v13915_v48 }
  0xe7   : > { %643 = vst.msk [vmem:[#allocation2 + $0xd00] sm:$0xff] %vm226_vm3, %v13915_v48  ;;  %644 = vst.msk [vmem:[#allocation2 + $0xd08] sm:$0xff] %vm226_vm3, %v13915_v48 }
  0xe8   : > { %645 = vst.msk [vmem:[#allocation2 + $0xd10] sm:$0xff] %vm226_vm3, %v13915_v48  ;;  %646 = vst.msk [vmem:[#allocation2 + $0xd18] sm:$0xff] %vm226_vm3, %v13915_v48 }
  0xe9   : > { %647 = vst.msk [vmem:[#allocation2 + $0xd20] sm:$0xff] %vm226_vm3, %v13915_v48  ;;  %648 = vst.msk [vmem:[#allocation2 + $0xd28] sm:$0xff] %vm226_vm3, %v13915_v48 }
  0xea   : > { %649 = vst.msk [vmem:[#allocation2 + $0xd30] sm:$0xff] %vm226_vm3, %v13915_v48  ;;  %650 = vst.msk [vmem:[#allocation2 + $0xd38] sm:$0xff] %vm226_vm3, %v13915_v48 }
  0xeb   : > { %651 = vst.msk [vmem:[#allocation2 + $0xd40] sm:$0xff] %vm226_vm3, %v13915_v48  ;;  %652 = vst.msk [vmem:[#allocation2 + $0xd48] sm:$0xff] %vm226_vm3, %v13915_v48 }
  0xec   : > { %653 = vst.msk [vmem:[#allocation2 + $0xd50] sm:$0xff] %vm226_vm3, %v13915_v48  ;;  %654 = vst.msk [vmem:[#allocation2 + $0xd58] sm:$0xff] %vm226_vm3, %v13915_v48  ;;  %13093 = vmatmul.mubr.msk.bf16.gmra.mrb[104].mxu0 %vm3061_vm2, %v13671_v49 }
  0xed   : > { %655 = vst.msk [vmem:[#allocation2 + $0xd60] sm:$0xff] %vm226_vm3, %v13915_v48  ;;  %656 = vst.msk [vmem:[#allocation2 + $0xd68] sm:$0xff] %vm226_vm3, %v13915_v48  ;;  %13096 = vmatprep.mubr.msk.bf16.mxu0 %vm3061_vm2, %v13673_v51 }
  0xee   : > { %657 = vst.msk [vmem:[#allocation2 + $0xd70] sm:$0xff] %vm226_vm3, %v13915_v48  ;;  %658 = vst.msk [vmem:[#allocation2 + $0xd78] sm:$0xff] %vm226_vm3, %v13915_v48 }
  0xef   : > { %659 = vst.msk [vmem:[#allocation2 + $0xd80] sm:$0xff] %vm226_vm3, %v13915_v48  ;;  %660 = vst.msk [vmem:[#allocation2 + $0xd88] sm:$0xff] %vm226_vm3, %v13915_v48  ;;  %v12990_v59 = vpop.f32.mrb[0].mxu0 }
  0xf0   : > { %661 = vst.msk [vmem:[#allocation2 + $0xd90] sm:$0xff] %vm226_vm3, %v13915_v48  ;;  %662 = vst.msk [vmem:[#allocation2 + $0xd98] sm:$0xff] %vm226_vm3, %v13915_v48  ;;  %v5920_v61 = vadd.f32 %v12990_v59, %v1256_v53  ;;  %v13246_v62 = vpop.f32.mrb[0].mxu1  ;;  %v3871_v63 = vpop.f32.mrb[1].mxu0  ;;  %v1264_v59 = vld [vmem:[#allocation2 + $0x50] sm:$0xff] }
  0xf1   : > { %663 = vst.msk [vmem:[#allocation2 + $0xda0] sm:$0xff] %vm226_vm3, %v13915_v48  ;;  %664 = vst.msk [vmem:[#allocation2 + $0xda8] sm:$0xff] %vm226_vm3, %v13915_v48  ;;  %v6176_v2 = vadd.f32 %v13246_v62, %v1512_v54  ;;  %v5918_v3 = vadd.f32 %v3871_v63, %v1254_v55  ;;  %v4895_v4 = vpop.f32.mrb[1].mxu1  ;;  %v12991_v5 = vpop.f32.mrb[2].mxu0 }
  0xf2   : > { %665 = vst.msk [vmem:[#allocation2 + $0xdb0] sm:$0xff] %vm226_vm3, %v13915_v48  ;;  %666 = vst.msk [vmem:[#allocation2 + $0xdb8] sm:$0xff] %vm226_vm3, %v13915_v48  ;;  %v6174_v8 = vadd.f32 %v4895_v4, %v1510_v56  ;;  %v5921_v9 = vadd.f32 %v12991_v5, %v1257_v57  ;;  %v13247_v10 = vpop.f32.mrb[2].mxu1  ;;  %v3874_v11 = vpop.f32.mrb[3].mxu0 }
  0xf3   : > { %667 = vst.msk [vmem:[#allocation2 + $0xdc0] sm:$0xff] %vm226_vm3, %v13915_v48  ;;  %668 = vst.msk [vmem:[#allocation2 + $0xdc8] sm:$0xff] %vm226_vm3, %v13915_v48  ;;  %v6177_v13 = vadd.f32 %v13247_v10, %v1513_v58  ;;  %v5919_v14 = vadd.f32 %v3874_v11, %v1255_v60  ;;  %v4898_v15 = vpop.f32.mrb[3].mxu1 }
  0xf4   : > { %669 = vst.msk [vmem:[#allocation2 + $0xdd0] sm:$0xff] %vm226_vm3, %v13915_v48  ;;  %670 = vst.msk [vmem:[#allocation2 + $0xdd8] sm:$0xff] %vm226_vm3, %v13915_v48  ;;  %v6175_v17 = vadd.f32 %v4898_v15, %v1511_v0  ;;  %13097 = vmatmul.mubr.msk.bf16.gmra.mrb[108].mxu0 %vm3061_vm2, %v13675_v1  ;;  %v1520_v1 = vld [vmem:[#allocation2 + $0x850] sm:$0xff] }
  0xf5   : > { %671 = vst.msk [vmem:[#allocation2 + $0xde0] sm:$0xff] %vm226_vm3, %v13915_v48  ;;  %672 = vst.msk [vmem:[#allocation2 + $0xde8] sm:$0xff] %vm226_vm3, %v13915_v48  ;;  %13100 = vmatprep.mubr.msk.bf16.mxu0 %vm3061_vm2, %v13677_v7  ;;  %v1518_v7 = vld [vmem:[#allocation2 + $0x840] sm:$0xff] }
  0xf6   : > { %673 = vst.msk [vmem:[#allocation2 + $0xdf0] sm:$0xff] %vm226_vm3, %v13915_v48  ;;  %674 = vst.msk [vmem:[#allocation2 + $0xdf8] sm:$0xff] %vm226_vm3, %v13915_v48 }
  0xf7   : > { %675 = vst.msk [vmem:[#allocation2 + $0xe00] sm:$0xff] %vm226_vm3, %v13915_v48  ;;  %676 = vst.msk [vmem:[#allocation2 + $0xe08] sm:$0xff] %vm226_vm3, %v13915_v48  ;;  %v12994_v24 = vpop.f32.mrb[4].mxu0 }
  0xf8   : > { %677 = vst.msk [vmem:[#allocation2 + $0xe10] sm:$0xff] %vm226_vm3, %v13915_v48  ;;  %678 = vst.msk [vmem:[#allocation2 + $0xe18] sm:$0xff] %vm226_vm3, %v13915_v48  ;;  %v5924_v26 = vadd.f32 %v12994_v24, %v1260_v16  ;;  %v13250_v27 = vpop.f32.mrb[4].mxu1  ;;  %v3887_v28 = vpop.f32.mrb[5].mxu0  ;;  %v13683_v24 = vld [vmem:[%s14005_s7 + $0x1d8] sm:$0xff]  }
  0xf9   : > { %679 = vst.msk [vmem:[#allocation2 + $0xe20] sm:$0xff] %vm226_vm3, %v13915_v48  ;;  %680 = vst.msk [vmem:[#allocation2 + $0xe28] sm:$0xff] %vm226_vm3, %v13915_v48  ;;  %v6180_v32 = vadd.f32 %v13250_v27, %v1516_v18  ;;  %v5922_v33 = vadd.f32 %v3887_v28, %v1258_v19  ;;  %v4911_v34 = vpop.f32.mrb[5].mxu1  ;;  %v12995_v35 = vpop.f32.mrb[6].mxu0 }
  0xfa   : > { %681 = vst.msk [vmem:[#allocation2 + $0xe30] sm:$0xff] %vm226_vm3, %v13915_v48  ;;  %682 = vst.msk [vmem:[#allocation2 + $0xe38] sm:$0xff] %vm226_vm3, %v13915_v48  ;;  %v6178_v41 = vadd.f32 %v4911_v34, %v1514_v21  ;;  %v5925_v42 = vadd.f32 %v12995_v35, %v1261_v22  ;;  %v13251_v43 = vpop.f32.mrb[6].mxu1  ;;  %v3890_v44 = vpop.f32.mrb[7].mxu0  ;;  %v1263_v22 = vld [vmem:[#allocation2 + $0x48] sm:$0xff] }
  0xfb   : > { %683 = vst.msk [vmem:[#allocation2 + $0xe40] sm:$0xff] %vm226_vm3, %v13915_v48  ;;  %684 = vst.msk [vmem:[#allocation2 + $0xe48] sm:$0xff] %vm226_vm3, %v13915_v48  ;;  %v5923_v51 = vadd.f32 %v3890_v44, %v1259_v25 }
  0xfc   : > { %685 = vst.msk [vmem:[#allocation2 + $0xe50] sm:$0xff] %vm226_vm3, %v13915_v48  ;;  %686 = vst.msk [vmem:[#allocation2 + $0xe58] sm:$0xff] %vm226_vm3, %v13915_v48  ;;  %13101 = vmatmul.mubr.msk.bf16.gmra.mrb[112].mxu0 %vm3061_vm2, %v13679_v30 }
  0xfd   : > { %687 = vst.msk [vmem:[#allocation2 + $0xe60] sm:$0xff] %vm226_vm3, %v13915_v48  ;;  %688 = vst.msk [vmem:[#allocation2 + $0xe68] sm:$0xff] %vm226_vm3, %v13915_v48  ;;  %13104 = vmatprep.mubr.msk.bf16.mxu0 %vm3061_vm2, %v13681_v37 }
  0xfe   : > { %689 = vst.msk [vmem:[#allocation2 + $0xe70] sm:$0xff] %vm226_vm3, %v13915_v48  ;;  %690 = vst.msk [vmem:[#allocation2 + $0xe78] sm:$0xff] %vm226_vm3, %v13915_v48 }
  0xff   : > { %691 = vst.msk [vmem:[#allocation2 + $0xe80] sm:$0xff] %vm226_vm3, %v13915_v48  ;;  %692 = vst.msk [vmem:[#allocation2 + $0xe88] sm:$0xff] %vm226_vm3, %v13915_v48 }
 0x100   : > { %693 = vst.msk [vmem:[#allocation2 + $0xe90] sm:$0xff] %vm226_vm3, %v13915_v48  ;;  %694 = vst.msk [vmem:[#allocation2 + $0xe98] sm:$0xff] %vm226_vm3, %v13915_v48 }
 0x101   : > { %695 = vst.msk [vmem:[#allocation2 + $0xea0] sm:$0xff] %vm226_vm3, %v13915_v48  ;;  %696 = vst.msk [vmem:[#allocation2 + $0xea8] sm:$0xff] %vm226_vm3, %v13915_v48 }
 0x102   : > { %697 = vst.msk [vmem:[#allocation2 + $0xeb0] sm:$0xff] %vm226_vm3, %v13915_v48  ;;  %698 = vst.msk [vmem:[#allocation2 + $0xeb8] sm:$0xff] %vm226_vm3, %v13915_v48 }
 0x103   : > { %699 = vst.msk [vmem:[#allocation2 + $0xec0] sm:$0xff] %vm226_vm3, %v13915_v48  ;;  %700 = vst.msk [vmem:[#allocation2 + $0xec8] sm:$0xff] %vm226_vm3, %v13915_v48 }
 0x104   : > { %701 = vst.msk [vmem:[#allocation2 + $0xed0] sm:$0xff] %vm226_vm3, %v13915_v48  ;;  %702 = vst.msk [vmem:[#allocation2 + $0xed8] sm:$0xff] %vm226_vm3, %v13915_v48  ;;  %13105 = vmatmul.mubr.msk.bf16.gmra.mrb[116].mxu0 %vm3061_vm2, %v13683_v24 }
 0x105   : > { %703 = vst.msk [vmem:[#allocation2 + $0xee0] sm:$0xff] %vm226_vm3, %v13915_v48  ;;  %704 = vst.msk [vmem:[#allocation2 + $0xee8] sm:$0xff] %vm226_vm3, %v13915_v48 }
 0x106   : > { %705 = vst.msk [vmem:[#allocation2 + $0xef0] sm:$0xff] %vm226_vm3, %v13915_v48  ;;  %706 = vst.msk [vmem:[#allocation2 + $0xef8] sm:$0xff] %vm226_vm3, %v13915_v48 }
 0x107   : > { %707 = vst.msk [vmem:[#allocation2 + $0xf00] sm:$0xff] %vm226_vm3, %v13915_v48  ;;  %708 = vst.msk [vmem:[#allocation2 + $0xf08] sm:$0xff] %vm226_vm3, %v13915_v48 }
 0x108   : > { %709 = vst.msk [vmem:[#allocation2 + $0xf10] sm:$0xff] %vm226_vm3, %v13915_v48  ;;  %710 = vst.msk [vmem:[#allocation2 + $0xf18] sm:$0xff] %vm226_vm3, %v13915_v48 }
 0x109   : > { %711 = vst.msk [vmem:[#allocation2 + $0xf20] sm:$0xff] %vm226_vm3, %v13915_v48  ;;  %712 = vst.msk [vmem:[#allocation2 + $0xf28] sm:$0xff] %vm226_vm3, %v13915_v48 }
 0x10a   : > { %713 = vst.msk [vmem:[#allocation2 + $0xf30] sm:$0xff] %vm226_vm3, %v13915_v48  ;;  %714 = vst.msk [vmem:[#allocation2 + $0xf38] sm:$0xff] %vm226_vm3, %v13915_v48 }
 0x10b   : > { %715 = vst.msk [vmem:[#allocation2 + $0xf40] sm:$0xff] %vm226_vm3, %v13915_v48  ;;  %716 = vst.msk [vmem:[#allocation2 + $0xf48] sm:$0xff] %vm226_vm3, %v13915_v48 }
 0x10c   : > { %717 = vst.msk [vmem:[#allocation2 + $0xf50] sm:$0xff] %vm226_vm3, %v13915_v48  ;;  %718 = vst.msk [vmem:[#allocation2 + $0xf58] sm:$0xff] %vm226_vm3, %v13915_v48 }
 0x10d   : > { %719 = vst.msk [vmem:[#allocation2 + $0xf60] sm:$0xff] %vm226_vm3, %v13915_v48  ;;  %720 = vst.msk [vmem:[#allocation2 + $0xf68] sm:$0xff] %vm226_vm3, %v13915_v48 }
 0x10e   : > { %721 = vst.msk [vmem:[#allocation2 + $0xf70] sm:$0xff] %vm226_vm3, %v13915_v48  ;;  %722 = vst.msk [vmem:[#allocation2 + $0xf78] sm:$0xff] %vm226_vm3, %v13915_v48 }
 0x10f   : > { %723 = vst.msk [vmem:[#allocation2 + $0xf80] sm:$0xff] %vm226_vm3, %v13915_v48  ;;  %724 = vst.msk [vmem:[#allocation2 + $0xf88] sm:$0xff] %vm226_vm3, %v13915_v48 }
 0x110   : > { %725 = vst.msk [vmem:[#allocation2 + $0xf90] sm:$0xff] %vm226_vm3, %v13915_v48  ;;  %726 = vst.msk [vmem:[#allocation2 + $0xf98] sm:$0xff] %vm226_vm3, %v13915_v48 }
 0x111   : > { %727 = vst.msk [vmem:[#allocation2 + $0xfa0] sm:$0xff] %vm226_vm3, %v13915_v48  ;;  %728 = vst.msk [vmem:[#allocation2 + $0xfa8] sm:$0xff] %vm226_vm3, %v13915_v48 }
 0x112   : > { %729 = vst.msk [vmem:[#allocation2 + $0xfb0] sm:$0xff] %vm226_vm3, %v13915_v48  ;;  %730 = vst.msk [vmem:[#allocation2 + $0xfb8] sm:$0xff] %vm226_vm3, %v13915_v48 }
 0x113   : > { %731 = vst.msk [vmem:[#allocation2 + $0xfc0] sm:$0xff] %vm226_vm3, %v13915_v48  ;;  %732 = vst.msk [vmem:[#allocation2 + $0xfc8] sm:$0xff] %vm226_vm3, %v13915_v48 }
 0x114   : > { %733 = vst.msk [vmem:[#allocation2 + $0xfd0] sm:$0xff] %vm226_vm3, %v13915_v48  ;;  %734 = vst.msk [vmem:[#allocation2 + $0xfd8] sm:$0xff] %vm226_vm3, %v13915_v48 }
 0x115   : > { %735 = vst.msk [vmem:[#allocation2 + $0xfe0] sm:$0xff] %vm226_vm3, %v13915_v48  ;;  %736 = vst.msk [vmem:[#allocation2 + $0xfe8] sm:$0xff] %vm226_vm3, %v13915_v48 }
 0x116   : > { %737 = vst.msk [vmem:[#allocation2 + $0xff0] sm:$0xff] %vm226_vm3, %v13915_v48  ;;  %738 = vst.msk [vmem:[#allocation2 + $0xff8] sm:$0xff] %vm226_vm3, %v13915_v48  ;;  %v13670_v48 = vld [vmem:[%s14005_s7 + $0x5a0] sm:$0xff]  }
 0x117   : > { %13348 = vmatprep.mubr.msk.bf16.mxu1 %vm3061_vm2, %v13670_v48  ;;  %6432 = vst.msk [vmem:[#allocation2 + $0x10] sm:$0xff] %vm226_vm3, %v5920_v61  ;;  %6688 = vst.msk [vmem:[#allocation2 + $0x810] sm:$0xff] %vm226_vm3, %v6176_v2  ;;  %v1262_v2 = vld [vmem:[#allocation2 + $0x40] sm:$0xff] }
 0x118   : > { %13349 = vmatmul.mubr.msk.bf16.gmra.mrb[104].mxu1 %vm3061_vm2, %v13672_v50  ;;  %6430 = vst.msk [vmem:[#allocation2] sm:$0xff] %vm226_vm3, %v5918_v3  ;;  %6686 = vst.msk [vmem:[#allocation2 + $0x800] sm:$0xff] %vm226_vm3, %v6174_v8  ;;  %v6181_v50 = vadd.f32 %v13251_v43, %v1517_v23  ;;  %v1265_v8 = vld [vmem:[#allocation2 + $0x58] sm:$0xff]  ;;  %v1519_v23 = vld [vmem:[#allocation2 + $0x848] sm:$0xff] }
 0x119   : > { %13352 = vmatprep.mubr.msk.bf16.mxu1 %vm3061_vm2, %v13674_v52  ;;  %6433 = vst.msk [vmem:[#allocation2 + $0x18] sm:$0xff] %vm226_vm3, %v5921_v9  ;;  %6689 = vst.msk [vmem:[#allocation2 + $0x818] sm:$0xff] %vm226_vm3, %v6177_v13  ;;  %v4914_v52 = vpop.f32.mrb[7].mxu1  ;;  %v12998_v13 = vpop.f32.mrb[8].mxu0 }
 0x11a   : > { %6431 = vst.msk [vmem:[#allocation2 + $0x8] sm:$0xff] %vm226_vm3, %v5919_v14  ;;  %6687 = vst.msk [vmem:[#allocation2 + $0x808] sm:$0xff] %vm226_vm3, %v6175_v17  ;;  %v6179_v58 = vadd.f32 %v4914_v52, %v1515_v29  ;;  %v1521_v14 = vld [vmem:[#allocation2 + $0x858] sm:$0xff]  ;;  %v5928_v18 = vadd.f32 %v12998_v13, %v1264_v59  ;;  %v13254_v19 = vpop.f32.mrb[8].mxu1  ;;  %v3903_v21 = vpop.f32.mrb[9].mxu0 }
 0x11b   : > { %6436 = vst.msk [vmem:[#allocation2 + $0x30] sm:$0xff] %vm226_vm3, %v5924_v26  ;;  %6692 = vst.msk [vmem:[#allocation2 + $0x830] sm:$0xff] %vm226_vm3, %v6180_v32  ;;  %v6184_v28 = vadd.f32 %v13254_v19, %v1520_v1  ;;  %v5926_v29 = vadd.f32 %v3903_v21, %v1262_v2  ;;  %v4927_v30 = vpop.f32.mrb[9].mxu1  ;;  %v13684_v32 = vld [vmem:[%s14005_s7 + $0x5d8] sm:$0xff]  }
 0x11c   : > { %6434 = vst.msk [vmem:[#allocation2 + $0x20] sm:$0xff] %vm226_vm3, %v5922_v33  ;;  %6690 = vst.msk [vmem:[#allocation2 + $0x820] sm:$0xff] %vm226_vm3, %v6178_v41  ;;  %v13685_v33 = vld [vmem:[%s14005_s7 + $0x1e0] sm:$0xff]   ;;  %v1269_v1 = vld [vmem:[#allocation2 + $0x78] sm:$0xff] }
 0x11d   : > { %6437 = vst.msk [vmem:[#allocation2 + $0x38] sm:$0xff] %vm226_vm3, %v5925_v42  ;;  %6693 = vst.msk [vmem:[#allocation2 + $0x838] sm:$0xff] %vm226_vm3, %v6181_v50  ;;  %v13686_v42 = vld [vmem:[%s14005_s7 + $0x5e0] sm:$0xff]   ;;  %v1268_v50 = vld [vmem:[#allocation2 + $0x70] sm:$0xff]  ;;  %13108 = vmatprep.mubr.msk.bf16.mxu0 %vm3061_vm2, %v13685_v33 }
 0x11e   : > { %v6944_v31 = vld [vmem:[#allocation2 + $0x10] sm:$0xff]  ;;  %6435 = vst.msk [vmem:[#allocation2 + $0x28] sm:$0xff] %vm226_vm3, %v5923_v51  ;;  %6691 = vst.msk [vmem:[#allocation2 + $0x828] sm:$0xff] %vm226_vm3, %v6179_v58  ;;  %v1266_v58 = vld [vmem:[#allocation2 + $0x60] sm:$0xff] }
 0x11f   : > { %v7463_v38 = vadd.f32 %v15265_v20, %v6944_v31  ;;  %v7200_v39 = vld [vmem:[#allocation2 + $0x810] sm:$0xff]  ;;  %v6942_v40 = vld [vmem:[#allocation2] sm:$0xff]  ;;  %v12999_v31 = vpop.f32.mrb[10].mxu0  ;;  %6440 = vst.msk [vmem:[#allocation2 + $0x50] sm:$0xff] %vm226_vm3, %v5928_v18  ;;  %6696 = vst.msk [vmem:[#allocation2 + $0x850] sm:$0xff] %vm226_vm3, %v6184_v28 }
 0x120   : > { %13353 = vmatmul.mubr.msk.bf16.gmra.mrb[108].mxu1 %vm3061_vm2, %v13676_v6  ;;  %v7719_v46 = vadd.f32 %v15265_v20, %v7200_v39  ;;  %v7461_v47 = vadd.f32 %v15265_v20, %v6942_v40  ;;  %v7198_v48 = vld [vmem:[#allocation2 + $0x800] sm:$0xff]  ;;  %v6945_v49 = vld [vmem:[#allocation2 + $0x18] sm:$0xff]  ;;  %v5929_v39 = vadd.f32 %v12999_v31, %v1265_v8  ;;  %v13255_v40 = vpop.f32.mrb[10].mxu1  ;;  %v3906_v41 = vpop.f32.mrb[11].mxu0  ;;  %6438 = vst.msk [vmem:[#allocation2 + $0x40] sm:$0xff] %vm226_vm3, %v5926_v29  ;;  %v13687_v8 = vld [vmem:[%s14005_s7 + $0x1e8] sm:$0xff]  }
 0x121   : > { %13356 = vmatprep.mubr.msk.bf16.mxu1 %vm3061_vm2, %v13678_v12  ;;  %v7975_v53 = vmax.f32 %v7463_v38, 0.0  ;;  %v7717_v54 = vadd.f32 %v15265_v20, %v7198_v48  ;;  %v7464_v55 = vadd.f32 %v15265_v20, %v6945_v49  ;;  %v7201_v56 = vld [vmem:[#allocation2 + $0x818] sm:$0xff]  ;;  %v6943_v57 = vld [vmem:[#allocation2 + $0x8] sm:$0xff]  ;;  %v6182_v38 = vadd.f32 %v4927_v30, %v1518_v7  ;;  %v4930_v49 = vpop.f32.mrb[11].mxu1  ;;  %v13002_v13 = vpop.f32.mrb[12].mxu0  ;;  %v13690_v31 = vld [vmem:[%s14005_s7 + $0x5f0] sm:$0xff]   ;;  %13109 = vmatmul.mubr.msk.bf16.gmra.mrb[120].mxu0 %vm3061_vm2, %v13687_v8 }
 0x122   : > { %v8231_v60 = vmax.f32 %v7719_v46, 0.0  ;;  %v7973_v61 = vmax.f32 %v7461_v47, 0.0  ;;  %v7720_v62 = vadd.f32 %v15265_v20, %v7201_v56  ;;  %v7462_v63 = vadd.f32 %v15265_v20, %v6943_v57  ;;  %v7199_v0 = vld [vmem:[#allocation2 + $0x808] sm:$0xff]  ;;  %v6948_v27 = vld [vmem:[#allocation2 + $0x30] sm:$0xff]  ;;  %6441 = vst.msk [vmem:[#allocation2 + $0x58] sm:$0xff] %vm226_vm3, %v5929_v39  ;;  %v13258_v21 = vpop.f32.mrb[12].mxu1 }
 0x123   : > { %v12215_v3 = vpack.c.bf16 %v7975_v53, %v7975_v53  ;;  %v8229_v4 = vmax.f32 %v7717_v54, 0.0  ;;  %v7976_v5 = vmax.f32 %v7464_v55, 0.0  ;;  %v7718_v6 = vadd.f32 %v15265_v20, %v7199_v0  ;;  %v6946_v37 = vld [vmem:[#allocation2 + $0x20] sm:$0xff]  ;;  %6694 = vst.msk [vmem:[#allocation2 + $0x840] sm:$0xff] %vm226_vm3, %v6182_v38  ;;  %v1524_v57 = vld [vmem:[#allocation2 + $0x870] sm:$0xff]  ;;  %v1267_v7 = vld [vmem:[#allocation2 + $0x68] sm:$0xff] }
 0x124   : > { %v12471_v9 = vpack.c.bf16 %v8231_v60, %v8231_v60  ;;  %v12213_v10 = vpack.c.bf16 %v7973_v61, %v7973_v61  ;;  %v8232_v11 = vmax.f32 %v7720_v62, 0.0  ;;  %v7974_v12 = vmax.f32 %v7462_v63, 0.0  ;;  %v6949_v46 = vld [vmem:[#allocation2 + $0x38] sm:$0xff]  ;;  %v1522_v0 = vld [vmem:[#allocation2 + $0x860] sm:$0xff]  ;;  %v4943_v29 = vpop.f32.mrb[13].mxu1 }
 0x125   : > { %10536 = vst.msk [vmem:[%s15302_s18 + $0x8] sm:$0xf] %vm10533_vm4, %v12215_v3  ;;  %v12469_v15 = vpack.c.bf16 %v8229_v4, %v8229_v4  ;;  %v12216_v16 = vpack.c.bf16 %v7976_v5, %v7976_v5  ;;  %v8230_v17 = vmax.f32 %v7718_v6, 0.0  ;;  %v7467_v35 = vadd.f32 %v15265_v20, %v6948_v27  ;;  %v7205_v54 = vld [vmem:[#allocation2 + $0x838] sm:$0xff]  ;;  %v6947_v55 = vld [vmem:[#allocation2 + $0x28] sm:$0xff]  ;;  %v13259_v38 = vpop.f32.mrb[14].mxu1 }
 0x126   : > { %10792 = vst.msk [vmem:[%s15302_s18 + $0x408] sm:$0xf] %vm10533_vm4, %v12471_v9  ;;  %10534 = vst.msk [vmem:[%s15302_s18] sm:$0xf] %vm10533_vm4, %v12213_v10  ;;  %v12472_v25 = vpack.c.bf16 %v8232_v11, %v8232_v11  ;;  %v12214_v26 = vpack.c.bf16 %v7974_v12, %v7974_v12  ;;  %v7465_v44 = vadd.f32 %v15265_v20, %v6946_v37  ;;  %v7203_v63 = vld [vmem:[#allocation2 + $0x828] sm:$0xff]  ;;  %v1525_v6 = vld [vmem:[#allocation2 + $0x878] sm:$0xff] }
 0x127   : > { %10790 = vst.msk [vmem:[%s15302_s18 + $0x400] sm:$0xf] %vm10533_vm4, %v12469_v15  ;;  %10537 = vst.msk [vmem:[%s15302_s18 + $0xc] sm:$0xf] %vm10533_vm4, %v12216_v16  ;;  %v12470_v34 = vpack.c.bf16 %v8230_v17, %v8230_v17  ;;  %v6185_v47 = vadd.f32 %v13255_v40, %v1521_v14  ;;  %v5927_v48 = vadd.f32 %v3906_v41, %v1263_v22  ;;  %v7979_v51 = vmax.f32 %v7467_v35, 0.0  ;;  %v1523_v14 = vld [vmem:[#allocation2 + $0x868] sm:$0xff] }
 0x128   : > { %13357 = vmatmul.mubr.msk.bf16.gmra.mrb[112].mxu1 %vm3061_vm2, %v13680_v36  ;;  %v7204_v36 = vld [vmem:[#allocation2 + $0x830] sm:$0xff]  ;;  %10793 = vst.msk [vmem:[%s15302_s18 + $0x40c] sm:$0xf] %vm10533_vm4, %v12472_v25  ;;  %10535 = vst.msk [vmem:[%s15302_s18 + $0x4] sm:$0xf] %vm10533_vm4, %v12214_v26  ;;  %v7468_v53 = vadd.f32 %v15265_v20, %v6949_v46  ;;  %v6183_v56 = vadd.f32 %v4930_v49, %v1519_v23  ;;  %v7977_v60 = vmax.f32 %v7465_v44, 0.0 }
 0x129   : > { %13360 = vmatprep.mubr.msk.bf16.mxu1 %vm3061_vm2, %v13682_v45  ;;  %v7723_v43 = vadd.f32 %v15265_v20, %v7204_v36  ;;  %v7202_v45 = vld [vmem:[#allocation2 + $0x820] sm:$0xff]  ;;  %10791 = vst.msk [vmem:[%s15302_s18 + $0x404] sm:$0xf] %vm10533_vm4, %v12470_v34  ;;  %v7724_v61 = vadd.f32 %v15265_v20, %v7205_v54  ;;  %v7466_v62 = vadd.f32 %v15265_v20, %v6947_v55  ;;  %v13688_v15 = vld [vmem:[%s14005_s7 + $0x5e8] sm:$0xff]   ;;  %v3919_v22 = vpop.f32.mrb[13].mxu0  ;;  %v13689_v23 = vld [vmem:[%s14005_s7 + $0x1f0] sm:$0xff]  }
 0x12a   : > { %v7721_v52 = vadd.f32 %v15265_v20, %v7202_v45  ;;  %6697 = vst.msk [vmem:[#allocation2 + $0x858] sm:$0xff] %vm226_vm3, %v6185_v47  ;;  %6439 = vst.msk [vmem:[#allocation2 + $0x48] sm:$0xff] %vm226_vm3, %v5927_v48  ;;  %v12219_v2 = vpack.c.bf16 %v7979_v51, %v7979_v51  ;;  %v7980_v4 = vmax.f32 %v7468_v53, 0.0  ;;  %v7722_v5 = vadd.f32 %v15265_v20, %v7203_v63  ;;  %v6952_v26 = vld [vmem:[#allocation2 + $0x50] sm:$0xff]  ;;  %v13003_v30 = vpop.f32.mrb[14].mxu0  ;;  %v6950_v35 = vld [vmem:[#allocation2 + $0x40] sm:$0xff] }
 0x12b   : > { %v8235_v59 = vmax.f32 %v7723_v43, 0.0  ;;  %6695 = vst.msk [vmem:[#allocation2 + $0x848] sm:$0xff] %vm226_vm3, %v6183_v56  ;;  %v12217_v10 = vpack.c.bf16 %v7977_v60, %v7977_v60  ;;  %v8236_v11 = vmax.f32 %v7724_v61, 0.0  ;;  %v7978_v12 = vmax.f32 %v7466_v62, 0.0  ;;  %v7208_v34 = vld [vmem:[#allocation2 + $0x850] sm:$0xff]  ;;  %v3922_v39 = vpop.f32.mrb[15].mxu0  ;;  %13112 = vmatprep.mubr.msk.bf16.mxu0 %vm3061_vm2, %v13689_v23 }
 0x12c   : > { %v8233_v3 = vmax.f32 %v7721_v52, 0.0  ;;  %10540 = vst.msk [vmem:[%s15302_s18 + $0x18] sm:$0xf] %vm10533_vm4, %v12219_v2  ;;  %v12220_v17 = vpack.c.bf16 %v7980_v4, %v7980_v4  ;;  %v8234_v18 = vmax.f32 %v7722_v5, 0.0  ;;  %v5932_v19 = vadd.f32 %v13002_v13, %v1268_v50  ;;  %v6953_v43 = vld [vmem:[#allocation2 + $0x58] sm:$0xff]  ;;  %v4946_v46 = vpop.f32.mrb[15].mxu1 }
 0x12d   : > { %v12475_v9 = vpack.c.bf16 %v8235_v59, %v8235_v59  ;;  %10538 = vst.msk [vmem:[%s15302_s18 + $0x10] sm:$0xf] %vm10533_vm4, %v12217_v10  ;;  %v12476_v24 = vpack.c.bf16 %v8236_v11, %v8236_v11  ;;  %v12218_v25 = vpack.c.bf16 %v7978_v12, %v7978_v12  ;;  %v6188_v27 = vadd.f32 %v13258_v21, %v1524_v57  ;;  %v1272_v47 = vld [vmem:[#allocation2 + $0x90] sm:$0xff]  ;;  %v1270_v60 = vld [vmem:[#allocation2 + $0x80] sm:$0xff]  ;;  %v1273_v2 = vld [vmem:[#allocation2 + $0x98] sm:$0xff] }
 0x12e   : > { %v12473_v16 = vpack.c.bf16 %v8233_v3, %v8233_v3  ;;  %v5930_v28 = vadd.f32 %v3919_v22, %v1266_v58  ;;  %10541 = vst.msk [vmem:[%s15302_s18 + $0x1c] sm:$0xf] %vm10533_vm4, %v12220_v17  ;;  %v7471_v33 = vadd.f32 %v15265_v20, %v6952_v26  ;;  %v6186_v36 = vadd.f32 %v4943_v29, %v1522_v0  ;;  %v1528_v54 = vld [vmem:[#allocation2 + $0x890] sm:$0xff]  ;;  %v1526_v61 = vld [vmem:[#allocation2 + $0x880] sm:$0xff]  ;;  %v1529_v3 = vld [vmem:[#allocation2 + $0x898] sm:$0xff]  ;;  %v13262_v17 = vpop.f32.mrb[16].mxu1 }
 0x12f   : > { %10796 = vst.msk [vmem:[%s15302_s18 + $0x418] sm:$0xf] %vm10533_vm4, %v12475_v9  ;;  %v5933_v37 = vadd.f32 %v13003_v30, %v1269_v1  ;;  %10797 = vst.msk [vmem:[%s15302_s18 + $0x41c] sm:$0xf] %vm10533_vm4, %v12476_v24  ;;  %v7727_v40 = vadd.f32 %v15265_v20, %v7208_v34  ;;  %v7469_v41 = vadd.f32 %v15265_v20, %v6950_v35  ;;  %v1271_v4 = vld [vmem:[#allocation2 + $0x88] sm:$0xff]  ;;  %v13006_v9 = vpop.f32.mrb[16].mxu0 }
 0x130   : > { %13361 = vmatmul.mubr.msk.bf16.gmra.mrb[116].mxu1 %vm3061_vm2, %v13684_v32  ;;  %10794 = vst.msk [vmem:[%s15302_s18 + $0x410] sm:$0xf] %vm10533_vm4, %v12473_v16  ;;  %v12474_v32 = vpack.c.bf16 %v8234_v18, %v8234_v18  ;;  %10539 = vst.msk [vmem:[%s15302_s18 + $0x14] sm:$0xf] %vm10533_vm4, %v12218_v25  ;;  %v6189_v44 = vadd.f32 %v13259_v38, %v1525_v6  ;;  %v5931_v45 = vadd.f32 %v3922_v39, %v1267_v7  ;;  %v1527_v10 = vld [vmem:[#allocation2 + $0x888] sm:$0xff]  ;;  %v13691_v11 = vld [vmem:[%s14005_s7 + $0x1f8] sm:$0xff]  }
 0x131   : > { %13364 = vmatprep.mubr.msk.bf16.mxu1 %vm3061_vm2, %v13686_v42  ;;  %6444 = vst.msk [vmem:[#allocation2 + $0x70] sm:$0xff] %vm226_vm3, %v5932_v19  ;;  %v7206_v42 = vld [vmem:[#allocation2 + $0x840] sm:$0xff]  ;;  %6700 = vst.msk [vmem:[#allocation2 + $0x870] sm:$0xff] %vm226_vm3, %v6188_v27  ;;  %v7983_v48 = vmax.f32 %v7471_v33, 0.0  ;;  %v7472_v50 = vadd.f32 %v15265_v20, %v6953_v43  ;;  %v7209_v51 = vld [vmem:[#allocation2 + $0x858] sm:$0xff]  ;;  %v6187_v53 = vadd.f32 %v4946_v46, %v1523_v14  ;;  %v8239_v55 = vmax.f32 %v7727_v40, 0.0 }
 0x132   : > { %6442 = vst.msk [vmem:[#allocation2 + $0x60] sm:$0xff] %vm226_vm3, %v5930_v28  ;;  %v7725_v49 = vadd.f32 %v15265_v20, %v7206_v42  ;;  %v6951_v52 = vld [vmem:[#allocation2 + $0x48] sm:$0xff]  ;;  %6698 = vst.msk [vmem:[#allocation2 + $0x860] sm:$0xff] %vm226_vm3, %v6186_v36  ;;  %v7981_v56 = vmax.f32 %v7469_v41, 0.0  ;;  %v7728_v57 = vadd.f32 %v15265_v20, %v7209_v51  ;;  %v13692_v12 = vld [vmem:[%s14005_s7 + $0x5f8] sm:$0xff]   ;;  %v5936_v16 = vadd.f32 %v13006_v9, %v1272_v47  ;;  %v3935_v18 = vpop.f32.mrb[17].mxu0 }
 0x133   : > { %10795 = vst.msk [vmem:[%s15302_s18 + $0x414] sm:$0xf] %vm10533_vm4, %v12474_v32  ;;  %v7470_v58 = vadd.f32 %v15265_v20, %v6951_v52  ;;  %v7207_v59 = vld [vmem:[#allocation2 + $0x848] sm:$0xff]  ;;  %v12223_v62 = vpack.c.bf16 %v7983_v48, %v7983_v48  ;;  %v7984_v0 = vmax.f32 %v7472_v50, 0.0  ;;  %v12479_v5 = vpack.c.bf16 %v8239_v55, %v8239_v55  ;;  %v13693_v19 = vld [vmem:[%s14005_s7 + $0x200] sm:$0xff]   ;;  %v4959_v26 = vpop.f32.mrb[17].mxu1  ;;  %13113 = vmatmul.mubr.msk.bf16.gmra.mrb[124].mxu0 %vm3061_vm2, %v13691_v11 }
 0x134   : > { %6445 = vst.msk [vmem:[#allocation2 + $0x78] sm:$0xff] %vm226_vm3, %v5933_v37  ;;  %6701 = vst.msk [vmem:[#allocation2 + $0x878] sm:$0xff] %vm226_vm3, %v6189_v44  ;;  %v8237_v63 = vmax.f32 %v7725_v49, 0.0  ;;  %v7726_v1 = vadd.f32 %v15265_v20, %v7207_v59  ;;  %v12221_v6 = vpack.c.bf16 %v7981_v56, %v7981_v56  ;;  %v8240_v7 = vmax.f32 %v7728_v57, 0.0  ;;  %v13007_v27 = vpop.f32.mrb[18].mxu0  ;;  %v13694_v28 = vld [vmem:[%s14005_s7 + $0x600] sm:$0xff]   ;;  %13116 = vmatprep.mubr.msk.bf16.mxu0 %vm3061_vm2, %v13693_v19 }
 0x135   : > { %6443 = vst.msk [vmem:[#allocation2 + $0x68] sm:$0xff] %vm226_vm3, %v5931_v45  ;;  %6699 = vst.msk [vmem:[#allocation2 + $0x868] sm:$0xff] %vm226_vm3, %v6187_v53  ;;  %v7982_v8 = vmax.f32 %v7470_v58, 0.0  ;;  %v12224_v14 = vpack.c.bf16 %v7984_v0, %v7984_v0  ;;  %v6192_v24 = vadd.f32 %v13262_v17, %v1528_v54  ;;  %v5934_v25 = vadd.f32 %v3935_v18, %v1270_v60  ;;  %v13263_v35 = vpop.f32.mrb[18].mxu1  ;;  %v3938_v36 = vpop.f32.mrb[19].mxu0  ;;  %v1276_v44 = vld [vmem:[#allocation2 + $0xb0] sm:$0xff] }
 0x136   : > { %10544 = vst.msk [vmem:[%s15302_s18 + $0x28] sm:$0xf] %vm10533_vm4, %v12223_v62  ;;  %v12477_v13 = vpack.c.bf16 %v8237_v63, %v8237_v63  ;;  %10800 = vst.msk [vmem:[%s15302_s18 + $0x428] sm:$0xf] %vm10533_vm4, %v12479_v5  ;;  %v12480_v21 = vpack.c.bf16 %v8240_v7, %v8240_v7  ;;  %v6190_v33 = vadd.f32 %v4959_v26, %v1526_v61  ;;  %v4962_v43 = vpop.f32.mrb[19].mxu1  ;;  %v1532_v51 = vld [vmem:[#allocation2 + $0x8b0] sm:$0xff] }
 0x137   : > { %10542 = vst.msk [vmem:[%s15302_s18 + $0x20] sm:$0xf] %vm10533_vm4, %v12221_v6  ;;  %v12222_v22 = vpack.c.bf16 %v7982_v8, %v7982_v8  ;;  %10545 = vst.msk [vmem:[%s15302_s18 + $0x2c] sm:$0xf] %vm10533_vm4, %v12224_v14  ;;  %v5937_v34 = vadd.f32 %v13007_v27, %v1273_v2  ;;  %v6193_v41 = vadd.f32 %v13263_v35, %v1529_v3  ;;  %v1274_v52 = vld [vmem:[#allocation2 + $0xa0] sm:$0xff]  ;;  %v13010_v3 = vpop.f32.mrb[20].mxu0 }
 0x138   : > { %13365 = vmatmul.mubr.msk.bf16.gmra.mrb[120].mxu1 %vm3061_vm2, %v13688_v15  ;;  %v8238_v15 = vmax.f32 %v7726_v1, 0.0  ;;  %v6956_v23 = vld [vmem:[#allocation2 + $0x70] sm:$0xff]  ;;  %10798 = vst.msk [vmem:[%s15302_s18 + $0x420] sm:$0xf] %vm10533_vm4, %v12477_v13  ;;  %10801 = vst.msk [vmem:[%s15302_s18 + $0x42c] sm:$0xf] %vm10533_vm4, %v12480_v21  ;;  %v5935_v42 = vadd.f32 %v3938_v36, %v1271_v4  ;;  %v6191_v50 = vadd.f32 %v4962_v43, %v1527_v10 }
 0x139   : > { %13368 = vmatprep.mubr.msk.bf16.mxu1 %vm3061_vm2, %v13690_v31  ;;  %v7475_v30 = vadd.f32 %v15265_v20, %v6956_v23  ;;  %v7212_v31 = vld [vmem:[#allocation2 + $0x870] sm:$0xff]  ;;  %v6954_v32 = vld [vmem:[#allocation2 + $0x60] sm:$0xff]  ;;  %6448 = vst.msk [vmem:[#allocation2 + $0x90] sm:$0xff] %vm226_vm3, %v5936_v16  ;;  %6704 = vst.msk [vmem:[#allocation2 + $0x890] sm:$0xff] %vm226_vm3, %v6192_v24  ;;  %v5940_v10 = vadd.f32 %v13010_v3, %v1276_v44  ;;  %v13266_v11 = vpop.f32.mrb[20].mxu1 }
 0x13a   : > { %v12478_v29 = vpack.c.bf16 %v8238_v15, %v8238_v15  ;;  %10543 = vst.msk [vmem:[%s15302_s18 + $0x24] sm:$0xf] %vm10533_vm4, %v12222_v22  ;;  %v7731_v37 = vadd.f32 %v15265_v20, %v7212_v31  ;;  %v7473_v38 = vadd.f32 %v15265_v20, %v6954_v32  ;;  %v7210_v39 = vld [vmem:[#allocation2 + $0x860] sm:$0xff]  ;;  %v1277_v4 = vld [vmem:[#allocation2 + $0xb8] sm:$0xff]  ;;  %v1275_v6 = vld [vmem:[#allocation2 + $0xa8] sm:$0xff]  ;;  %v6196_v19 = vadd.f32 %v13266_v11, %v1532_v51  ;;  %v4975_v22 = vpop.f32.mrb[21].mxu1 }
 0x13b   : > { %v6957_v40 = vld [vmem:[#allocation2 + $0x78] sm:$0xff]  ;;  %6446 = vst.msk [vmem:[#allocation2 + $0x80] sm:$0xff] %vm226_vm3, %v5934_v25  ;;  %v7987_v45 = vmax.f32 %v7475_v30, 0.0  ;;  %v7729_v46 = vadd.f32 %v15265_v20, %v7210_v39  ;;  %6702 = vst.msk [vmem:[#allocation2 + $0x880] sm:$0xff] %vm226_vm3, %v6190_v33  ;;  %v1530_v58 = vld [vmem:[#allocation2 + $0x8a0] sm:$0xff]  ;;  %v13267_v32 = vpop.f32.mrb[22].mxu1 }
 0x13c   : > { %10799 = vst.msk [vmem:[%s15302_s18 + $0x424] sm:$0xf] %vm10533_vm4, %v12478_v29  ;;  %v7476_v47 = vadd.f32 %v15265_v20, %v6957_v40  ;;  %v7213_v48 = vld [vmem:[#allocation2 + $0x878] sm:$0xff]  ;;  %v6955_v49 = vld [vmem:[#allocation2 + $0x68] sm:$0xff]  ;;  %v8243_v53 = vmax.f32 %v7731_v37, 0.0  ;;  %v7985_v54 = vmax.f32 %v7473_v38, 0.0  ;;  %v6194_v30 = vadd.f32 %v4975_v22, %v1530_v58 }
 0x13d   : > { %6449 = vst.msk [vmem:[#allocation2 + $0x98] sm:$0xff] %vm226_vm3, %v5937_v34  ;;  %v7732_v55 = vadd.f32 %v15265_v20, %v7213_v48  ;;  %v7474_v56 = vadd.f32 %v15265_v20, %v6955_v49  ;;  %v7211_v57 = vld [vmem:[#allocation2 + $0x868] sm:$0xff]  ;;  %6705 = vst.msk [vmem:[#allocation2 + $0x898] sm:$0xff] %vm226_vm3, %v6193_v41  ;;  %v12227_v59 = vpack.c.bf16 %v7987_v45, %v7987_v45  ;;  %v8241_v60 = vmax.f32 %v7729_v46, 0.0  ;;  %v1533_v5 = vld [vmem:[#allocation2 + $0x8b8] sm:$0xff]  ;;  %v4978_v40 = vpop.f32.mrb[23].mxu1 }
 0x13e   : > { %6447 = vst.msk [vmem:[#allocation2 + $0x88] sm:$0xff] %vm226_vm3, %v5935_v42  ;;  %v7988_v61 = vmax.f32 %v7476_v47, 0.0  ;;  %v7730_v62 = vadd.f32 %v15265_v20, %v7211_v57  ;;  %6703 = vst.msk [vmem:[#allocation2 + $0x888] sm:$0xff] %vm226_vm3, %v6191_v50  ;;  %v12483_v63 = vpack.c.bf16 %v8243_v53, %v8243_v53  ;;  %v12225_v0 = vpack.c.bf16 %v7985_v54, %v7985_v54  ;;  %v1531_v13 = vld [vmem:[#allocation2 + $0x8a8] sm:$0xff]  ;;  %v13697_v24 = vld [vmem:[%s14005_s7 + $0x210] sm:$0xff]  }
 0x13f   : > { %v8244_v1 = vmax.f32 %v7732_v55, 0.0  ;;  %v7986_v2 = vmax.f32 %v7474_v56, 0.0  ;;  %10548 = vst.msk [vmem:[%s15302_s18 + $0x38] sm:$0xf] %vm10533_vm4, %v12227_v59  ;;  %v12481_v7 = vpack.c.bf16 %v8241_v60, %v8241_v60  ;;  %v13695_v14 = vld [vmem:[%s14005_s7 + $0x208] sm:$0xff]   ;;  %v13698_v25 = vld [vmem:[%s14005_s7 + $0x610] sm:$0xff]   ;;  %v6197_v38 = vadd.f32 %v13267_v32, %v1533_v5 }
 0x140   : > { %13369 = vmatmul.mubr.msk.bf16.gmra.mrb[124].mxu1 %vm3061_vm2, %v13692_v12  ;;  %v12228_v8 = vpack.c.bf16 %v7988_v61, %v7988_v61  ;;  %v8242_v9 = vmax.f32 %v7730_v62, 0.0  ;;  %v3951_v12 = vpop.f32.mrb[21].mxu0  ;;  %v13696_v15 = vld [vmem:[%s14005_s7 + $0x608] sm:$0xff]   ;;  %10804 = vst.msk [vmem:[%s15302_s18 + $0x438] sm:$0xf] %vm10533_vm4, %v12483_v63  ;;  %v6960_v18 = vld [vmem:[#allocation2 + $0x90] sm:$0xff]  ;;  %v6195_v47 = vadd.f32 %v4978_v40, %v1531_v13  ;;  %13117 = vmatmul.mubr.msk.bf16.gmra.mrb[128].mxu0 %vm3061_vm2, %v13695_v14 }
 0x141   : > { %13372 = vmatprep.mubr.msk.bf16.mxu1 %vm3061_vm2, %v13694_v28  ;;  %10546 = vst.msk [vmem:[%s15302_s18 + $0x30] sm:$0xf] %vm10533_vm4, %v12225_v0  ;;  %v12484_v16 = vpack.c.bf16 %v8244_v1, %v8244_v1  ;;  %v12226_v17 = vpack.c.bf16 %v7986_v2, %v7986_v2  ;;  %v5938_v21 = vadd.f32 %v3951_v12, %v1274_v52  ;;  %v13011_v23 = vpop.f32.mrb[22].mxu0  ;;  %10802 = vst.msk [vmem:[%s15302_s18 + $0x430] sm:$0xf] %vm10533_vm4, %v12481_v7  ;;  %v7216_v28 = vld [vmem:[#allocation2 + $0x890] sm:$0xff] }
 0x142   : > { %10549 = vst.msk [vmem:[%s15302_s18 + $0x3c] sm:$0xf] %vm10533_vm4, %v12228_v8  ;;  %v12482_v26 = vpack.c.bf16 %v8242_v9, %v8242_v9  ;;  %v7479_v27 = vadd.f32 %v15265_v20, %v6960_v18  ;;  %v6958_v29 = vld [vmem:[#allocation2 + $0x80] sm:$0xff]  ;;  %v5941_v31 = vadd.f32 %v13011_v23, %v1277_v4  ;;  %v3954_v33 = vpop.f32.mrb[23].mxu0  ;;  %v7735_v34 = vadd.f32 %v15265_v20, %v7216_v28  ;;  %v1280_v41 = vld [vmem:[#allocation2 + $0xd0] sm:$0xff]  ;;  %v1281_v56 = vld [vmem:[#allocation2 + $0xd8] sm:$0xff] }
 0x143   : > { %6452 = vst.msk [vmem:[#allocation2 + $0xb0] sm:$0xff] %vm226_vm3, %v5940_v10  ;;  %v7477_v35 = vadd.f32 %v15265_v20, %v6958_v29  ;;  %v7214_v36 = vld [vmem:[#allocation2 + $0x880] sm:$0xff]  ;;  %6708 = vst.msk [vmem:[#allocation2 + $0x8b0] sm:$0xff] %vm226_vm3, %v6196_v19  ;;  %v5939_v39 = vadd.f32 %v3954_v33, %v1275_v6  ;;  %v1536_v48 = vld [vmem:[#allocation2 + $0x8d0] sm:$0xff]  ;;  %13120 = vmatprep.mubr.msk.bf16.mxu0 %vm3061_vm2, %v13697_v24  ;;  %v13014_v3 = vpop.f32.mrb[24].mxu0  ;;  %v13270_v10 = vpop.f32.mrb[24].mxu1 }
 0x144   : > { %10805 = vst.msk [vmem:[%s15302_s18 + $0x43c] sm:$0xf] %vm10533_vm4, %v12484_v16  ;;  %10547 = vst.msk [vmem:[%s15302_s18 + $0x34] sm:$0xf] %vm10533_vm4, %v12226_v17  ;;  %v6961_v37 = vld [vmem:[#allocation2 + $0x98] sm:$0xff]  ;;  %v7991_v42 = vmax.f32 %v7479_v27, 0.0  ;;  %v7733_v43 = vadd.f32 %v15265_v20, %v7214_v36  ;;  %v5944_v9 = vadd.f32 %v13014_v3, %v1280_v41  ;;  %v6200_v16 = vadd.f32 %v13270_v10, %v1536_v48 }
 0x145   : > { %6450 = vst.msk [vmem:[#allocation2 + $0xa0] sm:$0xff] %vm226_vm3, %v5938_v21  ;;  %v7480_v44 = vadd.f32 %v15265_v20, %v6961_v37  ;;  %v7217_v45 = vld [vmem:[#allocation2 + $0x898] sm:$0xff]  ;;  %v6959_v46 = vld [vmem:[#allocation2 + $0x88] sm:$0xff]  ;;  %6706 = vst.msk [vmem:[#allocation2 + $0x8a0] sm:$0xff] %vm226_vm3, %v6194_v30  ;;  %v8247_v50 = vmax.f32 %v7735_v34, 0.0  ;;  %v7989_v51 = vmax.f32 %v7477_v35, 0.0 }
 0x146   : > { %10803 = vst.msk [vmem:[%s15302_s18 + $0x434] sm:$0xf] %vm10533_vm4, %v12482_v26  ;;  %v1278_v49 = vld [vmem:[#allocation2 + $0xc0] sm:$0xff]  ;;  %v7736_v52 = vadd.f32 %v15265_v20, %v7217_v45  ;;  %v7478_v53 = vadd.f32 %v15265_v20, %v6959_v46  ;;  %v7215_v54 = vld [vmem:[#allocation2 + $0x888] sm:$0xff]  ;;  %v12231_v57 = vpack.c.bf16 %v7991_v42, %v7991_v42  ;;  %v8245_v58 = vmax.f32 %v7733_v43, 0.0  ;;  %v1537_v61 = vld [vmem:[#allocation2 + $0x8d8] sm:$0xff] }
 0x147   : > { %6453 = vst.msk [vmem:[#allocation2 + $0xb8] sm:$0xff] %vm226_vm3, %v5941_v31  ;;  %6709 = vst.msk [vmem:[#allocation2 + $0x8b8] sm:$0xff] %vm226_vm3, %v6197_v38  ;;  %v1534_v55 = vld [vmem:[#allocation2 + $0x8c0] sm:$0xff]  ;;  %v7992_v59 = vmax.f32 %v7480_v44, 0.0  ;;  %v7734_v60 = vadd.f32 %v15265_v20, %v7215_v54  ;;  %v1279_v62 = vld [vmem:[#allocation2 + $0xc8] sm:$0xff]  ;;  %v12487_v63 = vpack.c.bf16 %v8247_v50, %v8247_v50  ;;  %v12229_v0 = vpack.c.bf16 %v7989_v51, %v7989_v51  ;;  %v3967_v11 = vpop.f32.mrb[25].mxu0 }
 0x148   : > { %6451 = vst.msk [vmem:[#allocation2 + $0xa8] sm:$0xff] %vm226_vm3, %v5939_v39  ;;  %13373 = vmatmul.mubr.msk.bf16.gmra.mrb[128].mxu1 %vm3061_vm2, %v13696_v15  ;;  %6707 = vst.msk [vmem:[#allocation2 + $0x8a8] sm:$0xff] %vm226_vm3, %v6195_v47  ;;  %v8248_v1 = vmax.f32 %v7736_v52, 0.0  ;;  %v7990_v2 = vmax.f32 %v7478_v53, 0.0  ;;  %v1535_v4 = vld [vmem:[#allocation2 + $0x8c8] sm:$0xff]  ;;  %v13699_v5 = vld [vmem:[%s14005_s7 + $0x218] sm:$0xff]   ;;  %v12485_v6 = vpack.c.bf16 %v8245_v58, %v8245_v58  ;;  %v5942_v17 = vadd.f32 %v3967_v11, %v1278_v49 }
 0x149   : > { %13376 = vmatprep.mubr.msk.bf16.mxu1 %vm3061_vm2, %v13698_v25  ;;  %10552 = vst.msk [vmem:[%s15302_s18 + $0x48] sm:$0xf] %vm10533_vm4, %v12231_v57  ;;  %v12232_v7 = vpack.c.bf16 %v7992_v59, %v7992_v59  ;;  %v8246_v8 = vmax.f32 %v7734_v60, 0.0  ;;  %v13700_v12 = vld [vmem:[%s14005_s7 + $0x618] sm:$0xff]   ;;  %10808 = vst.msk [vmem:[%s15302_s18 + $0x448] sm:$0xf] %vm10533_vm4, %v12487_v63  ;;  %13121 = vmatmul.mubr.msk.bf16.gmra.mrb[132].mxu0 %vm3061_vm2, %v13699_v5 }
 0x14a   : > { %10550 = vst.msk [vmem:[%s15302_s18 + $0x40] sm:$0xf] %vm10533_vm4, %v12229_v0  ;;  %v12488_v13 = vpack.c.bf16 %v8248_v1, %v8248_v1  ;;  %v12230_v14 = vpack.c.bf16 %v7990_v2, %v7990_v2  ;;  %v6964_v15 = vld [vmem:[#allocation2 + $0xb0] sm:$0xff]  ;;  %v4991_v18 = vpop.f32.mrb[25].mxu1  ;;  %v13015_v19 = vpop.f32.mrb[26].mxu0  ;;  %v13701_v21 = vld [vmem:[%s14005_s7 + $0x220] sm:$0xff]  }
 0x14b   : > { %10806 = vst.msk [vmem:[%s15302_s18 + $0x440] sm:$0xf] %vm10533_vm4, %v12485_v6  ;;  %10553 = vst.msk [vmem:[%s15302_s18 + $0x4c] sm:$0xf] %vm10533_vm4, %v12232_v7  ;;  %v12486_v22 = vpack.c.bf16 %v8246_v8, %v8246_v8  ;;  %v7483_v23 = vadd.f32 %v15265_v20, %v6964_v15  ;;  %v7220_v24 = vld [vmem:[#allocation2 + $0x8b0] sm:$0xff]  ;;  %v6198_v26 = vadd.f32 %v4991_v18, %v1534_v55  ;;  %v13271_v28 = vpop.f32.mrb[26].mxu1  ;;  %13124 = vmatprep.mubr.msk.bf16.mxu0 %vm3061_vm2, %v13701_v21 }
 0x14c   : > { %v6962_v25 = vld [vmem:[#allocation2 + $0xa0] sm:$0xff]  ;;  %6456 = vst.msk [vmem:[#allocation2 + $0xd0] sm:$0xff] %vm226_vm3, %v5944_v9  ;;  %v5945_v27 = vadd.f32 %v13015_v19, %v1281_v56  ;;  %v3970_v29 = vpop.f32.mrb[27].mxu0  ;;  %v7739_v31 = vadd.f32 %v15265_v20, %v7220_v24  ;;  %6712 = vst.msk [vmem:[#allocation2 + $0x8d0] sm:$0xff] %vm226_vm3, %v6200_v16  ;;  %v6201_v35 = vadd.f32 %v13271_v28, %v1537_v61  ;;  %v4994_v37 = vpop.f32.mrb[27].mxu1  ;;  %v1284_v38 = vld [vmem:[#allocation2 + $0xf0] sm:$0xff] }
 0x14d   : > { %v13702_v30 = vld [vmem:[%s14005_s7 + $0x620] sm:$0xff]   ;;  %10809 = vst.msk [vmem:[%s15302_s18 + $0x44c] sm:$0xf] %vm10533_vm4, %v12488_v13  ;;  %10551 = vst.msk [vmem:[%s15302_s18 + $0x44] sm:$0xf] %vm10533_vm4, %v12230_v14  ;;  %v7481_v32 = vadd.f32 %v15265_v20, %v6962_v25  ;;  %v5943_v36 = vadd.f32 %v3970_v29, %v1279_v62  ;;  %v7995_v39 = vmax.f32 %v7483_v23, 0.0  ;;  %v6199_v44 = vadd.f32 %v4994_v37, %v1535_v4 }
 0x14e   : > { %v7218_v33 = vld [vmem:[#allocation2 + $0x8a0] sm:$0xff]  ;;  %v6965_v34 = vld [vmem:[#allocation2 + $0xb8] sm:$0xff]  ;;  %6454 = vst.msk [vmem:[#allocation2 + $0xc0] sm:$0xff] %vm226_vm3, %v5942_v17  ;;  %6710 = vst.msk [vmem:[#allocation2 + $0x8c0] sm:$0xff] %vm226_vm3, %v6198_v26  ;;  %v8251_v47 = vmax.f32 %v7739_v31, 0.0  ;;  %v13018_v1 = vpop.f32.mrb[28].mxu0 }
 0x14f   : > { %10807 = vst.msk [vmem:[%s15302_s18 + $0x444] sm:$0xf] %vm10533_vm4, %v12486_v22  ;;  %v7737_v40 = vadd.f32 %v15265_v20, %v7218_v33  ;;  %v7484_v41 = vadd.f32 %v15265_v20, %v6965_v34  ;;  %v7221_v42 = vld [vmem:[#allocation2 + $0x8b8] sm:$0xff]  ;;  %v6963_v43 = vld [vmem:[#allocation2 + $0xa8] sm:$0xff]  ;;  %v1540_v45 = vld [vmem:[#allocation2 + $0x8f0] sm:$0xff]  ;;  %v7993_v48 = vmax.f32 %v7481_v32, 0.0  ;;  %v12235_v54 = vpack.c.bf16 %v7995_v39, %v7995_v39 }
 0x150   : > { %6457 = vst.msk [vmem:[#allocation2 + $0xd8] sm:$0xff] %vm226_vm3, %v5945_v27  ;;  %v1282_v46 = vld [vmem:[#allocation2 + $0xe0] sm:$0xff]  ;;  %v7740_v49 = vadd.f32 %v15265_v20, %v7221_v42  ;;  %v7482_v50 = vadd.f32 %v15265_v20, %v6963_v43  ;;  %v7219_v51 = vld [vmem:[#allocation2 + $0x8a8] sm:$0xff]  ;;  %6713 = vst.msk [vmem:[#allocation2 + $0x8d8] sm:$0xff] %vm226_vm3, %v6201_v35  ;;  %13377 = vmatmul.mubr.msk.bf16.gmra.mrb[132].mxu1 %vm3061_vm2, %v13700_v12  ;;  %v12491_v61 = vpack.c.bf16 %v8251_v47, %v8251_v47  ;;  %v13274_v7 = vpop.f32.mrb[28].mxu1  ;;  %v3983_v8 = vpop.f32.mrb[29].mxu0 }
 0x151   : > { %6455 = vst.msk [vmem:[#allocation2 + $0xc8] sm:$0xff] %vm226_vm3, %v5943_v36  ;;  %v1538_v52 = vld [vmem:[#allocation2 + $0x8e0] sm:$0xff]  ;;  %v1285_v53 = vld [vmem:[#allocation2 + $0xf8] sm:$0xff]  ;;  %v8249_v55 = vmax.f32 %v7737_v40, 0.0  ;;  %v7996_v56 = vmax.f32 %v7484_v41, 0.0  ;;  %v7738_v57 = vadd.f32 %v15265_v20, %v7219_v51  ;;  %6711 = vst.msk [vmem:[#allocation2 + $0x8c8] sm:$0xff] %vm226_vm3, %v6199_v44  ;;  %13380 = vmatprep.mubr.msk.bf16.mxu1 %vm3061_vm2, %v13702_v30  ;;  %v12233_v62 = vpack.c.bf16 %v7993_v48, %v7993_v48 }
 0x152   : > { %v1541_v58 = vld [vmem:[#allocation2 + $0x8f8] sm:$0xff]  ;;  %v1283_v59 = vld [vmem:[#allocation2 + $0xe8] sm:$0xff]  ;;  %v8252_v63 = vmax.f32 %v7740_v49, 0.0  ;;  %v7994_v0 = vmax.f32 %v7482_v50, 0.0  ;;  %10556 = vst.msk [vmem:[%s15302_s18 + $0x58] sm:$0xf] %vm10533_vm4, %v12235_v54  ;;  %v5948_v6 = vadd.f32 %v13018_v1, %v1284_v38  ;;  %v6204_v13 = vadd.f32 %v13274_v7, %v1540_v45 }
 0x153   : > { %v13703_v60 = vld [vmem:[%s14005_s7 + $0x228] sm:$0xff]   ;;  %v12489_v20 = vpack.c.bf16 %v8249_v55, %v8249_v55  ;;  %v12236_v4 = vpack.c.bf16 %v7996_v56, %v7996_v56  ;;  %v8250_v5 = vmax.f32 %v7738_v57, 0.0  ;;  %v13705_v9 = vld [vmem:[%s14005_s7 + $0x230] sm:$0xff]   ;;  %10812 = vst.msk [vmem:[%s15302_s18 + $0x458] sm:$0xf] %vm10533_vm4, %v12491_v61  ;;  %v5946_v14 = vadd.f32 %v3983_v8, %v1282_v46  ;;  %v5007_v15 = vpop.f32.mrb[29].mxu1 }
 0x154   : > { %v1539_v2 = vld [vmem:[#allocation2 + $0x8e8] sm:$0xff]  ;;  %10554 = vst.msk [vmem:[%s15302_s18 + $0x50] sm:$0xf] %vm10533_vm4, %v12233_v62  ;;  %v12492_v10 = vpack.c.bf16 %v8252_v63, %v8252_v63  ;;  %v12234_v11 = vpack.c.bf16 %v7994_v0, %v7994_v0  ;;  %v6968_v12 = vld [vmem:[#allocation2 + $0xd0] sm:$0xff]  ;;  %v13019_v16 = vpop.f32.mrb[30].mxu0  ;;  %v6202_v24 = vadd.f32 %v5007_v15, %v1538_v52  ;;  %v13275_v26 = vpop.f32.mrb[30].mxu1  ;;  %13125 = vmatmul.mubr.msk.bf16.gmra.mrb[136].mxu0 %vm3061_vm2, %v13703_v60 }
 0x155   : > { %v13704_v3 = vld [vmem:[%s14005_s7 + $0x628] sm:$0xff]   ;;  %v13706_v17 = vld [vmem:[%s14005_s7 + $0x630] sm:$0xff]   ;;  %10810 = vst.msk [vmem:[%s15302_s18 + $0x450] sm:$0xf] %vm10533_vm4, %v12489_v20  ;;  %10557 = vst.msk [vmem:[%s15302_s18 + $0x5c] sm:$0xf] %vm10533_vm4, %v12236_v4  ;;  %v12490_v18 = vpack.c.bf16 %v8250_v5, %v8250_v5  ;;  %v5949_v25 = vadd.f32 %v13019_v16, %v1285_v53  ;;  %v6205_v32 = vadd.f32 %v13275_v26, %v1541_v58  ;;  %13128 = vmatprep.mubr.msk.bf16.mxu0 %vm3061_vm2, %v13705_v9 }
 0x156   : > { %v15521_v19 = vld [vmem:[%s17708_s2] ss:$0 sm:$0xff]  ;;  %v7224_v22 = vld [vmem:[#allocation2 + $0x8d0] sm:$0xff]  ;;  %6460 = vst.msk [vmem:[#allocation2 + $0xf0] sm:$0xff] %vm226_vm3, %v5948_v6  ;;  %v3986_v27 = vpop.f32.mrb[31].mxu0  ;;  %6716 = vst.msk [vmem:[#allocation2 + $0x8f0] sm:$0xff] %vm226_vm3, %v6204_v13 }
 0x157   : > { %v7487_v21 = vadd.f32 %v15521_v19, %v6968_v12  ;;  %v6966_v23 = vld [vmem:[#allocation2 + $0xc0] sm:$0xff]  ;;  %10813 = vst.msk [vmem:[%s15302_s18 + $0x45c] sm:$0xf] %vm10533_vm4, %v12492_v10  ;;  %10555 = vst.msk [vmem:[%s15302_s18 + $0x54] sm:$0xf] %vm10533_vm4, %v12234_v11  ;;  %v7743_v28 = vadd.f32 %v15521_v19, %v7224_v22  ;;  %v6969_v31 = vld [vmem:[#allocation2 + $0xd8] sm:$0xff]  ;;  %v5947_v33 = vadd.f32 %v3986_v27, %v1283_v59 }
 0x158   : > { %v7485_v29 = vadd.f32 %v15521_v19, %v6966_v23  ;;  %v7222_v30 = vld [vmem:[#allocation2 + $0x8c0] sm:$0xff]  ;;  %6458 = vst.msk [vmem:[#allocation2 + $0xe0] sm:$0xff] %vm226_vm3, %v5946_v14  ;;  %v5010_v34 = vpop.f32.mrb[31].mxu1  ;;  %v1288_v35 = vld [vmem:[#allocation2 + $0x110] sm:$0xff]  ;;  %v7488_v38 = vadd.f32 %v15521_v19, %v6969_v31  ;;  %v7225_v39 = vld [vmem:[#allocation2 + $0x8d8] sm:$0xff]  ;;  %13381 = vmatmul.mubr.msk.bf16.gmra.mrb[136].mxu1 %vm3061_vm2, %v13704_v3  ;;  %v13022_v59 = vpop.f32.mrb[32].mxu0 }
 0x159   : > { %10811 = vst.msk [vmem:[%s15302_s18 + $0x454] sm:$0xf] %vm10533_vm4, %v12490_v18  ;;  %v7999_v36 = vmax.f32 %v7487_v21, 0.0  ;;  %v7741_v37 = vadd.f32 %v15521_v19, %v7222_v30  ;;  %v6967_v40 = vld [vmem:[#allocation2 + $0xc8] sm:$0xff]  ;;  %v6203_v41 = vadd.f32 %v5010_v34, %v1539_v2  ;;  %v8255_v42 = vmax.f32 %v7743_v28, 0.0  ;;  %v1544_v47 = vld [vmem:[#allocation2 + $0x910] sm:$0xff]  ;;  %13384 = vmatprep.mubr.msk.bf16.mxu1 %vm3061_vm2, %v13706_v17 }
 0x15a   : > { %6714 = vst.msk [vmem:[#allocation2 + $0x8e0] sm:$0xff] %vm226_vm3, %v6202_v24  ;;  %6461 = vst.msk [vmem:[#allocation2 + $0xf8] sm:$0xff] %vm226_vm3, %v5949_v25  ;;  %v7997_v43 = vmax.f32 %v7485_v29, 0.0  ;;  %v7744_v44 = vadd.f32 %v15521_v19, %v7225_v39  ;;  %v7486_v45 = vadd.f32 %v15521_v19, %v6967_v40  ;;  %v7223_v46 = vld [vmem:[#allocation2 + $0x8c8] sm:$0xff]  ;;  %v8000_v50 = vmax.f32 %v7488_v38, 0.0  ;;  %v1286_v52 = vld [vmem:[#allocation2 + $0x100] sm:$0xff] }
 0x15b   : > { %6717 = vst.msk [vmem:[#allocation2 + $0x8f8] sm:$0xff] %vm226_vm3, %v6205_v32  ;;  %6459 = vst.msk [vmem:[#allocation2 + $0xe8] sm:$0xff] %vm226_vm3, %v5947_v33  ;;  %v12239_v48 = vpack.c.bf16 %v7999_v36, %v7999_v36  ;;  %v8253_v49 = vmax.f32 %v7741_v37, 0.0  ;;  %v7742_v51 = vadd.f32 %v15521_v19, %v7223_v46  ;;  %v1542_v53 = vld [vmem:[#allocation2 + $0x900] sm:$0xff]  ;;  %v1289_v54 = vld [vmem:[#allocation2 + $0x118] sm:$0xff]  ;;  %v12495_v55 = vpack.c.bf16 %v8255_v42, %v8255_v42  ;;  %v13278_v3 = vpop.f32.mrb[32].mxu1 }
 0x15c   : > { %6715 = vst.msk [vmem:[#allocation2 + $0x8e8] sm:$0xff] %vm226_vm3, %v6203_v41  ;;  %v12237_v56 = vpack.c.bf16 %v7997_v43, %v7997_v43  ;;  %v8256_v57 = vmax.f32 %v7744_v44, 0.0  ;;  %v7998_v58 = vmax.f32 %v7486_v45, 0.0  ;;  %v1545_v60 = vld [vmem:[#allocation2 + $0x918] sm:$0xff]  ;;  %v1287_v61 = vld [vmem:[#allocation2 + $0x108] sm:$0xff]  ;;  %v12240_v0 = vpack.c.bf16 %v8000_v50, %v8000_v50  ;;  %v3999_v20 = vpop.f32.mrb[33].mxu0 }
 0x15d   : > { %v1543_v62 = vld [vmem:[#allocation2 + $0x908] sm:$0xff]  ;;  %10560 = vst.msk [vmem:[%s15302_s18 + $0x68] sm:$0xf] %vm10533_vm4, %v12239_v48  ;;  %v12493_v63 = vpack.c.bf16 %v8253_v49, %v8253_v49  ;;  %v8254_v1 = vmax.f32 %v7742_v51, 0.0  ;;  %v5952_v2 = vadd.f32 %v13022_v59, %v1288_v35  ;;  %v13707_v4 = vld [vmem:[%s14005_s7 + $0x238] sm:$0xff]   ;;  %v13709_v6 = vld [vmem:[%s14005_s7 + $0x240] sm:$0xff]   ;;  %v6208_v10 = vadd.f32 %v13278_v3, %v1544_v47 }
 0x15e   : > { %v13708_v5 = vld [vmem:[%s14005_s7 + $0x638] sm:$0xff]   ;;  %10816 = vst.msk [vmem:[%s15302_s18 + $0x468] sm:$0xf] %vm10533_vm4, %v12495_v55  ;;  %10558 = vst.msk [vmem:[%s15302_s18 + $0x60] sm:$0xf] %vm10533_vm4, %v12237_v56  ;;  %v12496_v7 = vpack.c.bf16 %v8256_v57, %v8256_v57  ;;  %v12238_v8 = vpack.c.bf16 %v7998_v58, %v7998_v58  ;;  %v6972_v9 = vld [vmem:[#allocation2 + $0xf0] sm:$0xff]  ;;  %v5950_v11 = vadd.f32 %v3999_v20, %v1286_v52  ;;  %13129 = vmatmul.mubr.msk.bf16.gmra.mrb[140].mxu0 %vm3061_vm2, %v13707_v4 }
 0x15f   : > { %v5023_v12 = vpop.f32.mrb[33].mxu1  ;;  %v13023_v13 = vpop.f32.mrb[34].mxu0  ;;  %v13710_v14 = vld [vmem:[%s14005_s7 + $0x640] sm:$0xff]   ;;  %10814 = vst.msk [vmem:[%s15302_s18 + $0x460] sm:$0xf] %vm10533_vm4, %v12493_v63  ;;  %v12494_v15 = vpack.c.bf16 %v8254_v1, %v8254_v1  ;;  %v7491_v16 = vadd.f32 %v15521_v19, %v6972_v9  ;;  %v7228_v17 = vld [vmem:[#allocation2 + $0x8f0] sm:$0xff]  ;;  %13132 = vmatprep.mubr.msk.bf16.mxu0 %vm3061_vm2, %v13709_v6 }
 0x160   : > { %10561 = vst.msk [vmem:[%s15302_s18 + $0x6c] sm:$0xf] %vm10533_vm4, %v12240_v0  ;;  %v6970_v18 = vld [vmem:[#allocation2 + $0xe0] sm:$0xff]  ;;  %v6206_v21 = vadd.f32 %v5023_v12, %v1542_v53  ;;  %v5953_v22 = vadd.f32 %v13023_v13, %v1289_v54  ;;  %v13279_v23 = vpop.f32.mrb[34].mxu1  ;;  %v4002_v24 = vpop.f32.mrb[35].mxu0  ;;  %v7747_v25 = vadd.f32 %v15521_v19, %v7228_v17  ;;  %v1292_v32 = vld [vmem:[#allocation2 + $0x130] sm:$0xff]  ;;  %13385 = vmatmul.mubr.msk.bf16.gmra.mrb[140].mxu1 %vm3061_vm2, %v13708_v5 }
 0x161   : > { %6464 = vst.msk [vmem:[#allocation2 + $0x110] sm:$0xff] %vm226_vm3, %v5952_v2  ;;  %v7489_v26 = vadd.f32 %v15521_v19, %v6970_v18  ;;  %v7226_v27 = vld [vmem:[#allocation2 + $0x8e0] sm:$0xff]  ;;  %v6973_v28 = vld [vmem:[#allocation2 + $0xf8] sm:$0xff]  ;;  %6720 = vst.msk [vmem:[#allocation2 + $0x910] sm:$0xff] %vm226_vm3, %v6208_v10  ;;  %v6209_v29 = vadd.f32 %v13279_v23, %v1545_v60  ;;  %v5951_v30 = vadd.f32 %v4002_v24, %v1287_v61  ;;  %v5026_v31 = vpop.f32.mrb[35].mxu1  ;;  %v8003_v33 = vmax.f32 %v7491_v16, 0.0 }
 0x162   : > { %10817 = vst.msk [vmem:[%s15302_s18 + $0x46c] sm:$0xf] %vm10533_vm4, %v12496_v7  ;;  %10559 = vst.msk [vmem:[%s15302_s18 + $0x64] sm:$0xf] %vm10533_vm4, %v12238_v8  ;;  %v7745_v34 = vadd.f32 %v15521_v19, %v7226_v27  ;;  %v7492_v35 = vadd.f32 %v15521_v19, %v6973_v28  ;;  %v7229_v36 = vld [vmem:[#allocation2 + $0x8f8] sm:$0xff]  ;;  %v6971_v37 = vld [vmem:[#allocation2 + $0xe8] sm:$0xff]  ;;  %v6207_v38 = vadd.f32 %v5026_v31, %v1543_v62  ;;  %13388 = vmatprep.mubr.msk.bf16.mxu1 %vm3061_vm2, %v13710_v14 }
 0x163   : > { %6462 = vst.msk [vmem:[#allocation2 + $0x100] sm:$0xff] %vm226_vm3, %v5950_v11  ;;  %6718 = vst.msk [vmem:[#allocation2 + $0x900] sm:$0xff] %vm226_vm3, %v6206_v21  ;;  %v1548_v39 = vld [vmem:[#allocation2 + $0x930] sm:$0xff]  ;;  %v1290_v40 = vld [vmem:[#allocation2 + $0x120] sm:$0xff]  ;;  %v8259_v41 = vmax.f32 %v7747_v25, 0.0  ;;  %v8001_v42 = vmax.f32 %v7489_v26, 0.0  ;;  %v7748_v43 = vadd.f32 %v15521_v19, %v7229_v36  ;;  %v7490_v44 = vadd.f32 %v15521_v19, %v6971_v37 }
 0x164   : > { %10815 = vst.msk [vmem:[%s15302_s18 + $0x464] sm:$0xf] %vm10533_vm4, %v12494_v15  ;;  %v7227_v45 = vld [vmem:[#allocation2 + $0x8e8] sm:$0xff]  ;;  %v1546_v46 = vld [vmem:[#allocation2 + $0x920] sm:$0xff]  ;;  %v1293_v47 = vld [vmem:[#allocation2 + $0x138] sm:$0xff]  ;;  %v12243_v48 = vpack.c.bf16 %v8003_v33, %v8003_v33  ;;  %v8257_v49 = vmax.f32 %v7745_v34, 0.0 }
 0x165   : > { %6465 = vst.msk [vmem:[#allocation2 + $0x118] sm:$0xff] %vm226_vm3, %v5953_v22  ;;  %6721 = vst.msk [vmem:[#allocation2 + $0x918] sm:$0xff] %vm226_vm3, %v6209_v29  ;;  %v8004_v50 = vmax.f32 %v7492_v35, 0.0  ;;  %v7746_v51 = vadd.f32 %v15521_v19, %v7227_v45  ;;  %v12499_v52 = vpack.c.bf16 %v8259_v41, %v8259_v41  ;;  %v12241_v53 = vpack.c.bf16 %v8001_v42, %v8001_v42  ;;  %v13026_v56 = vpop.f32.mrb[36].mxu0  ;;  %v1549_v57 = vld [vmem:[#allocation2 + $0x938] sm:$0xff]  ;;  %v13282_v62 = vpop.f32.mrb[36].mxu1 }
 0x166   : > { %6463 = vst.msk [vmem:[#allocation2 + $0x108] sm:$0xff] %vm226_vm3, %v5951_v30  ;;  %6719 = vst.msk [vmem:[#allocation2 + $0x908] sm:$0xff] %vm226_vm3, %v6207_v38  ;;  %v8260_v54 = vmax.f32 %v7748_v43, 0.0  ;;  %v8002_v55 = vmax.f32 %v7490_v44, 0.0  ;;  %v12497_v58 = vpack.c.bf16 %v8257_v49, %v8257_v49  ;;  %v5956_v61 = vadd.f32 %v13026_v56, %v1292_v32  ;;  %v4015_v63 = vpop.f32.mrb[37].mxu0  ;;  %v1291_v0 = vld [vmem:[#allocation2 + $0x128] sm:$0xff] }
 0x167   : > { %10564 = vst.msk [vmem:[%s15302_s18 + $0x78] sm:$0xf] %vm10533_vm4, %v12243_v48  ;;  %v12244_v59 = vpack.c.bf16 %v8004_v50, %v8004_v50  ;;  %v8258_v60 = vmax.f32 %v7746_v51, 0.0  ;;  %v1547_v1 = vld [vmem:[#allocation2 + $0x928] sm:$0xff]  ;;  %10820 = vst.msk [vmem:[%s15302_s18 + $0x478] sm:$0xf] %vm10533_vm4, %v12499_v52  ;;  %v6212_v5 = vadd.f32 %v13282_v62, %v1548_v39  ;;  %v5954_v6 = vadd.f32 %v4015_v63, %v1290_v40 }
 0x168   : > { %v13711_v2 = vld [vmem:[%s14005_s7 + $0x248] sm:$0xff]   ;;  %10562 = vst.msk [vmem:[%s15302_s18 + $0x70] sm:$0xf] %vm10533_vm4, %v12241_v53  ;;  %v12500_v3 = vpack.c.bf16 %v8260_v54, %v8260_v54  ;;  %v12242_v20 = vpack.c.bf16 %v8002_v55, %v8002_v55  ;;  %v6976_v4 = vld [vmem:[#allocation2 + $0x110] sm:$0xff]  ;;  %v5039_v7 = vpop.f32.mrb[37].mxu1  ;;  %v13027_v8 = vpop.f32.mrb[38].mxu0 }
 0x169   : > { %v13712_v9 = vld [vmem:[%s14005_s7 + $0x648] sm:$0xff]   ;;  %v13713_v10 = vld [vmem:[%s14005_s7 + $0x250] sm:$0xff]   ;;  %10818 = vst.msk [vmem:[%s15302_s18 + $0x470] sm:$0xf] %vm10533_vm4, %v12497_v58  ;;  %10565 = vst.msk [vmem:[%s15302_s18 + $0x7c] sm:$0xf] %vm10533_vm4, %v12244_v59  ;;  %v12498_v11 = vpack.c.bf16 %v8258_v60, %v8258_v60  ;;  %v7495_v12 = vadd.f32 %v15521_v19, %v6976_v4  ;;  %v6210_v15 = vadd.f32 %v5039_v7, %v1546_v46  ;;  %13133 = vmatmul.mubr.msk.bf16.gmra.mrb[144].mxu0 %vm3061_vm2, %v13711_v2 }
 0x16a   : > { %v7232_v13 = vld [vmem:[#allocation2 + $0x910] sm:$0xff]  ;;  %v6974_v14 = vld [vmem:[#allocation2 + $0x100] sm:$0xff]  ;;  %6468 = vst.msk [vmem:[#allocation2 + $0x130] sm:$0xff] %vm226_vm3, %v5956_v61  ;;  %v5957_v16 = vadd.f32 %v13027_v8, %v1293_v47  ;;  %v13283_v17 = vpop.f32.mrb[38].mxu1  ;;  %v4018_v18 = vpop.f32.mrb[39].mxu0  ;;  %6724 = vst.msk [vmem:[#allocation2 + $0x930] sm:$0xff] %vm226_vm3, %v6212_v5  ;;  %13389 = vmatmul.mubr.msk.bf16.gmra.mrb[144].mxu1 %vm3061_vm2, %v13712_v9  ;;  %13136 = vmatprep.mubr.msk.bf16.mxu0 %vm3061_vm2, %v13713_v10 }
 0x16b   : > { %v13714_v21 = vld [vmem:[%s14005_s7 + $0x650] sm:$0xff]   ;;  %10821 = vst.msk [vmem:[%s15302_s18 + $0x47c] sm:$0xf] %vm10533_vm4, %v12500_v3  ;;  %10563 = vst.msk [vmem:[%s15302_s18 + $0x74] sm:$0xf] %vm10533_vm4, %v12242_v20  ;;  %v7751_v22 = vadd.f32 %v15521_v19, %v7232_v13  ;;  %v7493_v23 = vadd.f32 %v15521_v19, %v6974_v14  ;;  %v7230_v24 = vld [vmem:[#allocation2 + $0x900] sm:$0xff]  ;;  %v6213_v26 = vadd.f32 %v13283_v17, %v1549_v57 }
 0x16c   : > { %v6977_v25 = vld [vmem:[#allocation2 + $0x118] sm:$0xff]  ;;  %6466 = vst.msk [vmem:[#allocation2 + $0x120] sm:$0xff] %vm226_vm3, %v5954_v6  ;;  %v5955_v27 = vadd.f32 %v4018_v18, %v1291_v0  ;;  %v5042_v28 = vpop.f32.mrb[39].mxu1  ;;  %v1296_v29 = vld [vmem:[#allocation2 + $0x150] sm:$0xff]  ;;  %v8007_v30 = vmax.f32 %v7495_v12, 0.0  ;;  %v7749_v31 = vadd.f32 %v15521_v19, %v7230_v24  ;;  %6722 = vst.msk [vmem:[#allocation2 + $0x920] sm:$0xff] %vm226_vm3, %v6210_v15  ;;  %13392 = vmatprep.mubr.msk.bf16.mxu1 %vm3061_vm2, %v13714_v21 }
 0x16d   : > { %10819 = vst.msk [vmem:[%s15302_s18 + $0x474] sm:$0xf] %vm10533_vm4, %v12498_v11  ;;  %v7496_v32 = vadd.f32 %v15521_v19, %v6977_v25  ;;  %v7233_v33 = vld [vmem:[#allocation2 + $0x918] sm:$0xff]  ;;  %v6975_v34 = vld [vmem:[#allocation2 + $0x108] sm:$0xff]  ;;  %v6211_v35 = vadd.f32 %v5042_v28, %v1547_v1  ;;  %v1552_v36 = vld [vmem:[#allocation2 + $0x950] sm:$0xff]  ;;  %v8263_v38 = vmax.f32 %v7751_v22, 0.0 }
 0x16e   : > { %6469 = vst.msk [vmem:[#allocation2 + $0x138] sm:$0xff] %vm226_vm3, %v5957_v16  ;;  %v1294_v37 = vld [vmem:[#allocation2 + $0x140] sm:$0xff]  ;;  %v8005_v39 = vmax.f32 %v7493_v23, 0.0  ;;  %v7752_v40 = vadd.f32 %v15521_v19, %v7233_v33  ;;  %v7494_v41 = vadd.f32 %v15521_v19, %v6975_v34  ;;  %v7231_v42 = vld [vmem:[#allocation2 + $0x908] sm:$0xff]  ;;  %6725 = vst.msk [vmem:[#allocation2 + $0x938] sm:$0xff] %vm226_vm3, %v6213_v26  ;;  %v12247_v45 = vpack.c.bf16 %v8007_v30, %v8007_v30  ;;  %v13030_v56 = vpop.f32.mrb[40].mxu0 }
 0x16f   : > { %6467 = vst.msk [vmem:[#allocation2 + $0x128] sm:$0xff] %vm226_vm3, %v5955_v27  ;;  %v1550_v43 = vld [vmem:[#allocation2 + $0x940] sm:$0xff]  ;;  %v1297_v44 = vld [vmem:[#allocation2 + $0x158] sm:$0xff]  ;;  %v8261_v46 = vmax.f32 %v7749_v31, 0.0  ;;  %v8008_v47 = vmax.f32 %v7496_v32, 0.0  ;;  %v7750_v48 = vadd.f32 %v15521_v19, %v7231_v42  ;;  %6723 = vst.msk [vmem:[#allocation2 + $0x928] sm:$0xff] %vm226_vm3, %v6211_v35  ;;  %v12503_v52 = vpack.c.bf16 %v8263_v38, %v8263_v38 }
 0x170   : > { %v1553_v49 = vld [vmem:[#allocation2 + $0x958] sm:$0xff]  ;;  %v1295_v50 = vld [vmem:[#allocation2 + $0x148] sm:$0xff]  ;;  %v12245_v53 = vpack.c.bf16 %v8005_v39, %v8005_v39  ;;  %v8264_v54 = vmax.f32 %v7752_v40, 0.0  ;;  %v8006_v55 = vmax.f32 %v7494_v41, 0.0  ;;  %10568 = vst.msk [vmem:[%s15302_s18 + $0x88] sm:$0xf] %vm10533_vm4, %v12247_v45  ;;  %v5960_v62 = vadd.f32 %v13030_v56, %v1296_v29 }
 0x171   : > { %v13715_v51 = vld [vmem:[%s14005_s7 + $0x258] sm:$0xff]   ;;  %v1551_v57 = vld [vmem:[#allocation2 + $0x948] sm:$0xff]  ;;  %v12501_v59 = vpack.c.bf16 %v8261_v46, %v8261_v46  ;;  %v12248_v60 = vpack.c.bf16 %v8008_v47, %v8008_v47  ;;  %v8262_v61 = vmax.f32 %v7750_v48, 0.0  ;;  %v13286_v63 = vpop.f32.mrb[40].mxu1  ;;  %v4031_v0 = vpop.f32.mrb[41].mxu0  ;;  %v13717_v1 = vld [vmem:[%s14005_s7 + $0x260] sm:$0xff]  }
 0x172   : > { %v13716_v58 = vld [vmem:[%s14005_s7 + $0x658] sm:$0xff]   ;;  %10824 = vst.msk [vmem:[%s15302_s18 + $0x488] sm:$0xf] %vm10533_vm4, %v12503_v52  ;;  %10566 = vst.msk [vmem:[%s15302_s18 + $0x80] sm:$0xf] %vm10533_vm4, %v12245_v53  ;;  %v12504_v2 = vpack.c.bf16 %v8264_v54, %v8264_v54  ;;  %v12246_v3 = vpack.c.bf16 %v8006_v55, %v8006_v55  ;;  %v6980_v20 = vld [vmem:[#allocation2 + $0x130] sm:$0xff]  ;;  %v6216_v4 = vadd.f32 %v13286_v63, %v1552_v36  ;;  %13137 = vmatmul.mubr.msk.bf16.gmra.mrb[148].mxu0 %vm3061_vm2, %v13715_v51 }
 0x173   : > { %v5958_v5 = vadd.f32 %v4031_v0, %v1294_v37  ;;  %v5055_v6 = vpop.f32.mrb[41].mxu1  ;;  %v13031_v7 = vpop.f32.mrb[42].mxu0  ;;  %v13718_v8 = vld [vmem:[%s14005_s7 + $0x660] sm:$0xff]   ;;  %10822 = vst.msk [vmem:[%s15302_s18 + $0x480] sm:$0xf] %vm10533_vm4, %v12501_v59  ;;  %v12502_v9 = vpack.c.bf16 %v8262_v61, %v8262_v61  ;;  %v7499_v10 = vadd.f32 %v15521_v19, %v6980_v20  ;;  %v7236_v11 = vld [vmem:[#allocation2 + $0x930] sm:$0xff]  ;;  %13393 = vmatmul.mubr.msk.bf16.gmra.mrb[148].mxu1 %vm3061_vm2, %v13716_v58 }
 0x174   : > { %10569 = vst.msk [vmem:[%s15302_s18 + $0x8c] sm:$0xf] %vm10533_vm4, %v12248_v60  ;;  %v6978_v12 = vld [vmem:[#allocation2 + $0x120] sm:$0xff]  ;;  %v6214_v13 = vadd.f32 %v5055_v6, %v1550_v43  ;;  %v5961_v14 = vadd.f32 %v13031_v7, %v1297_v44  ;;  %v13287_v15 = vpop.f32.mrb[42].mxu1  ;;  %v4034_v16 = vpop.f32.mrb[43].mxu0  ;;  %v7755_v17 = vadd.f32 %v15521_v19, %v7236_v11  ;;  %v1300_v26 = vld [vmem:[#allocation2 + $0x170] sm:$0xff]  ;;  %13140 = vmatprep.mubr.msk.bf16.mxu0 %vm3061_vm2, %v13717_v1 }
 0x175   : > { %6472 = vst.msk [vmem:[#allocation2 + $0x150] sm:$0xff] %vm226_vm3, %v5960_v62  ;;  %v7497_v18 = vadd.f32 %v15521_v19, %v6978_v12  ;;  %v7234_v21 = vld [vmem:[#allocation2 + $0x920] sm:$0xff]  ;;  %v6981_v22 = vld [vmem:[#allocation2 + $0x138] sm:$0xff]  ;;  %6728 = vst.msk [vmem:[#allocation2 + $0x950] sm:$0xff] %vm226_vm3, %v6216_v4  ;;  %v6217_v23 = vadd.f32 %v13287_v15, %v1553_v49  ;;  %v5959_v24 = vadd.f32 %v4034_v16, %v1295_v50  ;;  %v5058_v25 = vpop.f32.mrb[43].mxu1  ;;  %v8011_v27 = vmax.f32 %v7499_v10, 0.0 }
 0x176   : > { %10825 = vst.msk [vmem:[%s15302_s18 + $0x48c] sm:$0xf] %vm10533_vm4, %v12504_v2  ;;  %10567 = vst.msk [vmem:[%s15302_s18 + $0x84] sm:$0xf] %vm10533_vm4, %v12246_v3  ;;  %v7753_v28 = vadd.f32 %v15521_v19, %v7234_v21  ;;  %v7500_v29 = vadd.f32 %v15521_v19, %v6981_v22  ;;  %v7237_v30 = vld [vmem:[#allocation2 + $0x938] sm:$0xff]  ;;  %v6979_v31 = vld [vmem:[#allocation2 + $0x128] sm:$0xff]  ;;  %v6215_v32 = vadd.f32 %v5058_v25, %v1551_v57  ;;  %13396 = vmatprep.mubr.msk.bf16.mxu1 %vm3061_vm2, %v13718_v8 }
 0x177   : > { %6470 = vst.msk [vmem:[#allocation2 + $0x140] sm:$0xff] %vm226_vm3, %v5958_v5  ;;  %6726 = vst.msk [vmem:[#allocation2 + $0x940] sm:$0xff] %vm226_vm3, %v6214_v13  ;;  %v1556_v33 = vld [vmem:[#allocation2 + $0x970] sm:$0xff]  ;;  %v8267_v34 = vmax.f32 %v7755_v17, 0.0  ;;  %v8009_v35 = vmax.f32 %v7497_v18, 0.0  ;;  %v7756_v36 = vadd.f32 %v15521_v19, %v7237_v30  ;;  %v7498_v37 = vadd.f32 %v15521_v19, %v6979_v31  ;;  %v7235_v38 = vld [vmem:[#allocation2 + $0x928] sm:$0xff] }
 0x178   : > { %10823 = vst.msk [vmem:[%s15302_s18 + $0x484] sm:$0xf] %vm10533_vm4, %v12502_v9  ;;  %v1298_v39 = vld [vmem:[#allocation2 + $0x160] sm:$0xff]  ;;  %v12251_v41 = vpack.c.bf16 %v8011_v27, %v8011_v27  ;;  %v8265_v42 = vmax.f32 %v7753_v28, 0.0  ;;  %v8012_v43 = vmax.f32 %v7500_v29, 0.0  ;;  %v7754_v44 = vadd.f32 %v15521_v19, %v7235_v38  ;;  %v1301_v45 = vld [vmem:[#allocation2 + $0x178] sm:$0xff] }
 0x179   : > { %6473 = vst.msk [vmem:[#allocation2 + $0x158] sm:$0xff] %vm226_vm3, %v5961_v14  ;;  %6729 = vst.msk [vmem:[#allocation2 + $0x958] sm:$0xff] %vm226_vm3, %v6217_v23  ;;  %v1554_v40 = vld [vmem:[#allocation2 + $0x960] sm:$0xff]  ;;  %v1557_v46 = vld [vmem:[#allocation2 + $0x978] sm:$0xff]  ;;  %v12507_v48 = vpack.c.bf16 %v8267_v34, %v8267_v34  ;;  %v12249_v49 = vpack.c.bf16 %v8009_v35, %v8009_v35  ;;  %v8268_v50 = vmax.f32 %v7756_v36, 0.0  ;;  %v8010_v51 = vmax.f32 %v7498_v37, 0.0 }
 0x17a   : > { %6471 = vst.msk [vmem:[#allocation2 + $0x148] sm:$0xff] %vm226_vm3, %v5959_v24  ;;  %6727 = vst.msk [vmem:[#allocation2 + $0x948] sm:$0xff] %vm226_vm3, %v6215_v32  ;;  %v1299_v47 = vld [vmem:[#allocation2 + $0x168] sm:$0xff]  ;;  %v13034_v52 = vpop.f32.mrb[44].mxu0  ;;  %v12505_v56 = vpack.c.bf16 %v8265_v42, %v8265_v42  ;;  %v12252_v57 = vpack.c.bf16 %v8012_v43, %v8012_v43  ;;  %v8266_v58 = vmax.f32 %v7754_v44, 0.0  ;;  %v13290_v60 = vpop.f32.mrb[44].mxu1 }
 0x17b   : > { %v1555_v53 = vld [vmem:[#allocation2 + $0x968] sm:$0xff]  ;;  %10572 = vst.msk [vmem:[%s15302_s18 + $0x98] sm:$0xf] %vm10533_vm4, %v12251_v41  ;;  %v5964_v59 = vadd.f32 %v13034_v52, %v1300_v26  ;;  %v4047_v61 = vpop.f32.mrb[45].mxu0  ;;  %v13721_v62 = vld [vmem:[%s14005_s7 + $0x270] sm:$0xff]   ;;  %v12508_v63 = vpack.c.bf16 %v8268_v50, %v8268_v50  ;;  %v12250_v0 = vpack.c.bf16 %v8010_v51, %v8010_v51  ;;  %v6220_v2 = vadd.f32 %v13290_v60, %v1556_v33  ;;  %v5071_v20 = vpop.f32.mrb[45].mxu1 }
 0x17c   : > { %v13719_v54 = vld [vmem:[%s14005_s7 + $0x268] sm:$0xff]   ;;  %10828 = vst.msk [vmem:[%s15302_s18 + $0x498] sm:$0xf] %vm10533_vm4, %v12507_v48  ;;  %10570 = vst.msk [vmem:[%s15302_s18 + $0x90] sm:$0xf] %vm10533_vm4, %v12249_v49  ;;  %v6984_v1 = vld [vmem:[#allocation2 + $0x150] sm:$0xff]  ;;  %v5962_v3 = vadd.f32 %v4047_v61, %v1298_v39  ;;  %v12506_v6 = vpack.c.bf16 %v8266_v58, %v8266_v58  ;;  %v6218_v10 = vadd.f32 %v5071_v20, %v1554_v40 }
 0x17d   : > { %v13720_v55 = vld [vmem:[%s14005_s7 + $0x668] sm:$0xff]   ;;  %v13035_v4 = vpop.f32.mrb[46].mxu0  ;;  %v13722_v5 = vld [vmem:[%s14005_s7 + $0x670] sm:$0xff]   ;;  %10826 = vst.msk [vmem:[%s15302_s18 + $0x490] sm:$0xf] %vm10533_vm4, %v12505_v56  ;;  %v7503_v7 = vadd.f32 %v15521_v19, %v6984_v1  ;;  %v13291_v12 = vpop.f32.mrb[46].mxu1  ;;  %13141 = vmatmul.mubr.msk.bf16.gmra.mrb[152].mxu0 %vm3061_vm2, %v13719_v54 }
 0x17e   : > { %10573 = vst.msk [vmem:[%s15302_s18 + $0x9c] sm:$0xf] %vm10533_vm4, %v12252_v57  ;;  %v7240_v8 = vld [vmem:[#allocation2 + $0x950] sm:$0xff]  ;;  %v6982_v9 = vld [vmem:[#allocation2 + $0x140] sm:$0xff]  ;;  %v5965_v11 = vadd.f32 %v13035_v4, %v1301_v45  ;;  %v4050_v13 = vpop.f32.mrb[47].mxu0  ;;  %v6221_v18 = vadd.f32 %v13291_v12, %v1557_v46  ;;  %v5074_v22 = vpop.f32.mrb[47].mxu1  ;;  %13397 = vmatmul.mubr.msk.bf16.gmra.mrb[152].mxu1 %vm3061_vm2, %v13720_v55  ;;  %13144 = vmatprep.mubr.msk.bf16.mxu0 %vm3061_vm2, %v13721_v62 }
 0x17f   : > { %6476 = vst.msk [vmem:[#allocation2 + $0x170] sm:$0xff] %vm226_vm3, %v5964_v59  ;;  %v7759_v14 = vadd.f32 %v15521_v19, %v7240_v8  ;;  %v7501_v15 = vadd.f32 %v15521_v19, %v6982_v9  ;;  %v7238_v16 = vld [vmem:[#allocation2 + $0x940] sm:$0xff]  ;;  %6732 = vst.msk [vmem:[#allocation2 + $0x970] sm:$0xff] %vm226_vm3, %v6220_v2  ;;  %v5963_v21 = vadd.f32 %v4050_v13, %v1299_v47  ;;  %v1304_v23 = vld [vmem:[#allocation2 + $0x190] sm:$0xff]  ;;  %v8015_v24 = vmax.f32 %v7503_v7, 0.0  ;;  %v13038_v46 = vpop.f32.mrb[48].mxu0 }
 0x180   : > { %10829 = vst.msk [vmem:[%s15302_s18 + $0x49c] sm:$0xf] %vm10533_vm4, %v12508_v63  ;;  %10571 = vst.msk [vmem:[%s15302_s18 + $0x94] sm:$0xf] %vm10533_vm4, %v12250_v0  ;;  %v6985_v17 = vld [vmem:[#allocation2 + $0x158] sm:$0xff]  ;;  %v7757_v25 = vadd.f32 %v15521_v19, %v7238_v16  ;;  %v6219_v29 = vadd.f32 %v5074_v22, %v1555_v53  ;;  %v1560_v30 = vld [vmem:[#allocation2 + $0x990] sm:$0xff]  ;;  %13400 = vmatprep.mubr.msk.bf16.mxu1 %vm3061_vm2, %v13722_v5  ;;  %v5968_v53 = vadd.f32 %v13038_v46, %v1304_v23 }
 0x181   : > { %6474 = vst.msk [vmem:[#allocation2 + $0x160] sm:$0xff] %vm226_vm3, %v5962_v3  ;;  %v7504_v26 = vadd.f32 %v15521_v19, %v6985_v17  ;;  %v7241_v27 = vld [vmem:[#allocation2 + $0x958] sm:$0xff]  ;;  %v6983_v28 = vld [vmem:[#allocation2 + $0x148] sm:$0xff]  ;;  %6730 = vst.msk [vmem:[#allocation2 + $0x960] sm:$0xff] %vm226_vm3, %v6218_v10  ;;  %v8271_v32 = vmax.f32 %v7759_v14, 0.0  ;;  %v8013_v33 = vmax.f32 %v7501_v15, 0.0  ;;  %v12255_v38 = vpack.c.bf16 %v8015_v24, %v8015_v24 }
 0x182   : > { %10827 = vst.msk [vmem:[%s15302_s18 + $0x494] sm:$0xf] %vm10533_vm4, %v12506_v6  ;;  %v1302_v31 = vld [vmem:[#allocation2 + $0x180] sm:$0xff]  ;;  %v7760_v34 = vadd.f32 %v15521_v19, %v7241_v27  ;;  %v7502_v35 = vadd.f32 %v15521_v19, %v6983_v28  ;;  %v7239_v36 = vld [vmem:[#allocation2 + $0x948] sm:$0xff]  ;;  %v8269_v39 = vmax.f32 %v7757_v25, 0.0  ;;  %v1305_v47 = vld [vmem:[#allocation2 + $0x198] sm:$0xff] }
 0x183   : > { %6477 = vst.msk [vmem:[#allocation2 + $0x178] sm:$0xff] %vm226_vm3, %v5965_v11  ;;  %6733 = vst.msk [vmem:[#allocation2 + $0x978] sm:$0xff] %vm226_vm3, %v6221_v18  ;;  %v1558_v37 = vld [vmem:[#allocation2 + $0x980] sm:$0xff]  ;;  %v8016_v40 = vmax.f32 %v7504_v26, 0.0  ;;  %v7758_v41 = vadd.f32 %v15521_v19, %v7239_v36  ;;  %v12511_v42 = vpack.c.bf16 %v8271_v32, %v8271_v32  ;;  %v12253_v43 = vpack.c.bf16 %v8013_v33, %v8013_v33  ;;  %v1561_v48 = vld [vmem:[#allocation2 + $0x998] sm:$0xff]  ;;  %v13294_v54 = vpop.f32.mrb[48].mxu1 }
 0x184   : > { %6475 = vst.msk [vmem:[#allocation2 + $0x168] sm:$0xff] %vm226_vm3, %v5963_v21  ;;  %6731 = vst.msk [vmem:[#allocation2 + $0x968] sm:$0xff] %vm226_vm3, %v6219_v29  ;;  %v8272_v44 = vmax.f32 %v7760_v34, 0.0  ;;  %v8014_v45 = vmax.f32 %v7502_v35, 0.0  ;;  %v1303_v49 = vld [vmem:[#allocation2 + $0x188] sm:$0xff]  ;;  %v12509_v50 = vpack.c.bf16 %v8269_v39, %v8269_v39  ;;  %v4063_v55 = vpop.f32.mrb[49].mxu0  ;;  %v6224_v62 = vadd.f32 %v13294_v54, %v1560_v30 }
 0x185   : > { %10576 = vst.msk [vmem:[%s15302_s18 + $0xa8] sm:$0xf] %vm10533_vm4, %v12255_v38  ;;  %v12256_v51 = vpack.c.bf16 %v8016_v40, %v8016_v40  ;;  %v8270_v52 = vmax.f32 %v7758_v41, 0.0  ;;  %v1559_v56 = vld [vmem:[#allocation2 + $0x988] sm:$0xff]  ;;  %v13723_v57 = vld [vmem:[%s14005_s7 + $0x278] sm:$0xff]   ;;  %v5966_v63 = vadd.f32 %v4063_v55, %v1302_v31  ;;  %v5087_v0 = vpop.f32.mrb[49].mxu1 }
 0x186   : > { %v13724_v58 = vld [vmem:[%s14005_s7 + $0x678] sm:$0xff]   ;;  %10832 = vst.msk [vmem:[%s15302_s18 + $0x4a8] sm:$0xf] %vm10533_vm4, %v12511_v42  ;;  %10574 = vst.msk [vmem:[%s15302_s18 + $0xa0] sm:$0xf] %vm10533_vm4, %v12253_v43  ;;  %v12512_v59 = vpack.c.bf16 %v8272_v44, %v8272_v44  ;;  %v12254_v60 = vpack.c.bf16 %v8014_v45, %v8014_v45  ;;  %v6988_v61 = vld [vmem:[#allocation2 + $0x170] sm:$0xff]  ;;  %v6222_v7 = vadd.f32 %v5087_v0, %v1558_v37  ;;  %13145 = vmatmul.mubr.msk.bf16.gmra.mrb[156].mxu0 %vm3061_vm2, %v13723_v57 }
 0x187   : > { %v13039_v1 = vpop.f32.mrb[50].mxu0  ;;  %v13725_v2 = vld [vmem:[%s14005_s7 + $0x280] sm:$0xff]   ;;  %10830 = vst.msk [vmem:[%s15302_s18 + $0x4a0] sm:$0xf] %vm10533_vm4, %v12509_v50  ;;  %10577 = vst.msk [vmem:[%s15302_s18 + $0xac] sm:$0xf] %vm10533_vm4, %v12256_v51  ;;  %v12510_v20 = vpack.c.bf16 %v8270_v52, %v8270_v52  ;;  %v7507_v4 = vadd.f32 %v15521_v19, %v6988_v61  ;;  %13401 = vmatmul.mubr.msk.bf16.gmra.mrb[156].mxu1 %vm3061_vm2, %v13724_v58 }
 0x188   : > { %v13726_v3 = vld [vmem:[%s14005_s7 + $0x680] sm:$0xff]   ;;  %v7244_v5 = vld [vmem:[#allocation2 + $0x970] sm:$0xff]  ;;  %6480 = vst.msk [vmem:[#allocation2 + $0x190] sm:$0xff] %vm226_vm3, %v5968_v53  ;;  %v5969_v8 = vadd.f32 %v13039_v1, %v1305_v47  ;;  %v13295_v9 = vpop.f32.mrb[50].mxu1  ;;  %v4066_v10 = vpop.f32.mrb[51].mxu0  ;;  %6736 = vst.msk [vmem:[#allocation2 + $0x990] sm:$0xff] %vm226_vm3, %v6224_v62  ;;  %13148 = vmatprep.mubr.msk.bf16.mxu0 %vm3061_vm2, %v13725_v2 }
 0x189   : > { %v6986_v6 = vld [vmem:[#allocation2 + $0x160] sm:$0xff]  ;;  %10833 = vst.msk [vmem:[%s15302_s18 + $0x4ac] sm:$0xf] %vm10533_vm4, %v12512_v59  ;;  %10575 = vst.msk [vmem:[%s15302_s18 + $0xa4] sm:$0xf] %vm10533_vm4, %v12254_v60  ;;  %v7763_v11 = vadd.f32 %v15521_v19, %v7244_v5  ;;  %v6225_v15 = vadd.f32 %v13295_v9, %v1561_v48  ;;  %v5967_v16 = vadd.f32 %v4066_v10, %v1303_v49  ;;  %v5090_v17 = vpop.f32.mrb[51].mxu1  ;;  %13404 = vmatprep.mubr.msk.bf16.mxu1 %vm3061_vm2, %v13726_v3 }
 0x18a   : > { %v7505_v12 = vadd.f32 %v15521_v19, %v6986_v6  ;;  %v7242_v13 = vld [vmem:[#allocation2 + $0x960] sm:$0xff]  ;;  %v6989_v14 = vld [vmem:[#allocation2 + $0x178] sm:$0xff]  ;;  %6478 = vst.msk [vmem:[#allocation2 + $0x180] sm:$0xff] %vm226_vm3, %v5966_v63  ;;  %v1308_v18 = vld [vmem:[#allocation2 + $0x1b0] sm:$0xff]  ;;  %v8019_v21 = vmax.f32 %v7507_v4, 0.0  ;;  %v6223_v26 = vadd.f32 %v5090_v17, %v1559_v56  ;;  %v13042_v46 = vpop.f32.mrb[52].mxu0 }
 0x18b   : > { %10831 = vst.msk [vmem:[%s15302_s18 + $0x4a4] sm:$0xf] %vm10533_vm4, %v12510_v20  ;;  %v7761_v22 = vadd.f32 %v15521_v19, %v7242_v13  ;;  %v7508_v23 = vadd.f32 %v15521_v19, %v6989_v14  ;;  %v7245_v24 = vld [vmem:[#allocation2 + $0x978] sm:$0xff]  ;;  %v6987_v25 = vld [vmem:[#allocation2 + $0x168] sm:$0xff]  ;;  %v1564_v27 = vld [vmem:[#allocation2 + $0x9b0] sm:$0xff]  ;;  %v8275_v29 = vmax.f32 %v7763_v11, 0.0  ;;  %v5972_v51 = vadd.f32 %v13042_v46, %v1308_v18 }
 0x18c   : > { %6734 = vst.msk [vmem:[#allocation2 + $0x980] sm:$0xff] %vm226_vm3, %v6222_v7  ;;  %6481 = vst.msk [vmem:[#allocation2 + $0x198] sm:$0xff] %vm226_vm3, %v5969_v8  ;;  %v1306_v28 = vld [vmem:[#allocation2 + $0x1a0] sm:$0xff]  ;;  %v8017_v30 = vmax.f32 %v7505_v12, 0.0  ;;  %v7764_v31 = vadd.f32 %v15521_v19, %v7245_v24  ;;  %v7506_v32 = vadd.f32 %v15521_v19, %v6987_v25  ;;  %v7243_v33 = vld [vmem:[#allocation2 + $0x968] sm:$0xff]  ;;  %v12259_v36 = vpack.c.bf16 %v8019_v21, %v8019_v21  ;;  %v13298_v52 = vpop.f32.mrb[52].mxu1 }
 0x18d   : > { %6737 = vst.msk [vmem:[#allocation2 + $0x998] sm:$0xff] %vm226_vm3, %v6225_v15  ;;  %6479 = vst.msk [vmem:[#allocation2 + $0x188] sm:$0xff] %vm226_vm3, %v5967_v16  ;;  %v1562_v34 = vld [vmem:[#allocation2 + $0x9a0] sm:$0xff]  ;;  %v1309_v35 = vld [vmem:[#allocation2 + $0x1b8] sm:$0xff]  ;;  %v8273_v37 = vmax.f32 %v7761_v22, 0.0  ;;  %v8020_v38 = vmax.f32 %v7508_v23, 0.0  ;;  %v7762_v39 = vadd.f32 %v15521_v19, %v7243_v33  ;;  %v12515_v42 = vpack.c.bf16 %v8275_v29, %v8275_v29 }
 0x18e   : > { %6735 = vst.msk [vmem:[#allocation2 + $0x988] sm:$0xff] %vm226_vm3, %v6223_v26  ;;  %v1565_v40 = vld [vmem:[#allocation2 + $0x9b8] sm:$0xff]  ;;  %v1307_v41 = vld [vmem:[#allocation2 + $0x1a8] sm:$0xff]  ;;  %v12257_v43 = vpack.c.bf16 %v8017_v30, %v8017_v30  ;;  %v8276_v44 = vmax.f32 %v7764_v31, 0.0  ;;  %v8018_v45 = vmax.f32 %v7506_v32, 0.0  ;;  %v4079_v53 = vpop.f32.mrb[53].mxu0  ;;  %v6228_v58 = vadd.f32 %v13298_v52, %v1564_v27 }
 0x18f   : > { %v1563_v47 = vld [vmem:[#allocation2 + $0x9a8] sm:$0xff]  ;;  %10580 = vst.msk [vmem:[%s15302_s18 + $0xb8] sm:$0xf] %vm10533_vm4, %v12259_v36  ;;  %v12513_v49 = vpack.c.bf16 %v8273_v37, %v8273_v37  ;;  %v12260_v19 = vpack.c.bf16 %v8020_v38, %v8020_v38  ;;  %v8274_v50 = vmax.f32 %v7762_v39, 0.0  ;;  %10836 = vst.msk [vmem:[%s15302_s18 + $0x4b8] sm:$0xf] %vm10533_vm4, %v12515_v42  ;;  %v5970_v59 = vadd.f32 %v4079_v53, %v1306_v28 }
 0x190   : > { %v13727_v48 = vld [vmem:[%s14005_s7 + $0x288] sm:$0xff]   ;;  %10578 = vst.msk [vmem:[%s15302_s18 + $0xb0] sm:$0xf] %vm10533_vm4, %v12257_v43  ;;  %v12516_v55 = vpack.c.bf16 %v8276_v44, %v8276_v44  ;;  %v12258_v56 = vpack.c.bf16 %v8018_v45, %v8018_v45  ;;  %v6992_v57 = vld [vmem:[#allocation2 + $0x190] sm:$0xff]  ;;  %v5103_v60 = vpop.f32.mrb[53].mxu1  ;;  %v13043_v61 = vpop.f32.mrb[54].mxu0 }
 0x191   : > { %v13728_v54 = vld [vmem:[%s14005_s7 + $0x688] sm:$0xff]   ;;  %v13729_v62 = vld [vmem:[%s14005_s7 + $0x290] sm:$0xff]   ;;  %10834 = vst.msk [vmem:[%s15302_s18 + $0x4b0] sm:$0xf] %vm10533_vm4, %v12513_v49  ;;  %10581 = vst.msk [vmem:[%s15302_s18 + $0xbc] sm:$0xf] %vm10533_vm4, %v12260_v19  ;;  %v12514_v63 = vpack.c.bf16 %v8274_v50, %v8274_v50  ;;  %v6226_v20 = vadd.f32 %v5103_v60, %v1562_v34  ;;  %v5973_v4 = vadd.f32 %v13043_v61, %v1309_v35  ;;  %13149 = vmatmul.mubr.msk.bf16.gmra.mrb[160].mxu0 %vm3061_vm2, %v13727_v48 }
 0x192   : > { %v15765_v0 = vld [vmem:[%s17708_s2] ss:$0 sm:$0xff]  ;;  %v7248_v2 = vld [vmem:[#allocation2 + $0x990] sm:$0xff]  ;;  %6484 = vst.msk [vmem:[#allocation2 + $0x1b0] sm:$0xff] %vm226_vm3, %v5972_v51  ;;  %v13299_v5 = vpop.f32.mrb[54].mxu1  ;;  %v4082_v6 = vpop.f32.mrb[55].mxu0  ;;  %13405 = vmatmul.mubr.msk.bf16.gmra.mrb[160].mxu1 %vm3061_vm2, %v13728_v54  ;;  %13152 = vmatprep.mubr.msk.bf16.mxu0 %vm3061_vm2, %v13729_v62 }
 0x193   : > { %v7511_v1 = vadd.f32 %v15765_v0, %v6992_v57  ;;  %v6990_v3 = vld [vmem:[#allocation2 + $0x180] sm:$0xff]  ;;  %v13730_v7 = vld [vmem:[%s14005_s7 + $0x690] sm:$0xff]   ;;  %10837 = vst.msk [vmem:[%s15302_s18 + $0x4bc] sm:$0xf] %vm10533_vm4, %v12516_v55  ;;  %10579 = vst.msk [vmem:[%s15302_s18 + $0xb4] sm:$0xf] %vm10533_vm4, %v12258_v56  ;;  %v7767_v8 = vadd.f32 %v15765_v0, %v7248_v2  ;;  %v6229_v12 = vadd.f32 %v13299_v5, %v1565_v40 }
 0x194   : > { %v7509_v9 = vadd.f32 %v15765_v0, %v6990_v3  ;;  %v7246_v10 = vld [vmem:[#allocation2 + $0x980] sm:$0xff]  ;;  %v6993_v11 = vld [vmem:[#allocation2 + $0x198] sm:$0xff]  ;;  %6740 = vst.msk [vmem:[#allocation2 + $0x9b0] sm:$0xff] %vm226_vm3, %v6228_v58  ;;  %6482 = vst.msk [vmem:[#allocation2 + $0x1a0] sm:$0xff] %vm226_vm3, %v5970_v59  ;;  %v5971_v13 = vadd.f32 %v4082_v6, %v1307_v41  ;;  %v5106_v14 = vpop.f32.mrb[55].mxu1  ;;  %13408 = vmatprep.mubr.msk.bf16.mxu1 %vm3061_vm2, %v13730_v7  ;;  %v13046_v44 = vpop.f32.mrb[56].mxu0 }
 0x195   : > { %v1312_v15 = vld [vmem:[#allocation2 + $0x1d0] sm:$0xff]  ;;  %10835 = vst.msk [vmem:[%s15302_s18 + $0x4b4] sm:$0xf] %vm10533_vm4, %v12514_v63  ;;  %v8023_v16 = vmax.f32 %v7511_v1, 0.0  ;;  %v7765_v17 = vadd.f32 %v15765_v0, %v7246_v10  ;;  %v7512_v18 = vadd.f32 %v15765_v0, %v6993_v11  ;;  %v7249_v21 = vld [vmem:[#allocation2 + $0x998] sm:$0xff]  ;;  %v6991_v22 = vld [vmem:[#allocation2 + $0x188] sm:$0xff]  ;;  %v6227_v23 = vadd.f32 %v5106_v14, %v1563_v47 }
 0x196   : > { %6738 = vst.msk [vmem:[#allocation2 + $0x9a0] sm:$0xff] %vm226_vm3, %v6226_v20  ;;  %6485 = vst.msk [vmem:[#allocation2 + $0x1b8] sm:$0xff] %vm226_vm3, %v5973_v4  ;;  %v1568_v24 = vld [vmem:[#allocation2 + $0x9d0] sm:$0xff]  ;;  %v1310_v25 = vld [vmem:[#allocation2 + $0x1c0] sm:$0xff]  ;;  %v8279_v26 = vmax.f32 %v7767_v8, 0.0  ;;  %v8021_v27 = vmax.f32 %v7509_v9, 0.0  ;;  %v7768_v28 = vadd.f32 %v15765_v0, %v7249_v21  ;;  %v7510_v29 = vadd.f32 %v15765_v0, %v6991_v22 }
 0x197   : > { %v7247_v30 = vld [vmem:[#allocation2 + $0x988] sm:$0xff]  ;;  %6741 = vst.msk [vmem:[#allocation2 + $0x9b8] sm:$0xff] %vm226_vm3, %v6229_v12  ;;  %6483 = vst.msk [vmem:[#allocation2 + $0x1a8] sm:$0xff] %vm226_vm3, %v5971_v13  ;;  %v1566_v31 = vld [vmem:[#allocation2 + $0x9c0] sm:$0xff]  ;;  %v12263_v33 = vpack.c.bf16 %v8023_v16, %v8023_v16  ;;  %v8277_v34 = vmax.f32 %v7765_v17, 0.0  ;;  %v8024_v35 = vmax.f32 %v7512_v18, 0.0  ;;  %v5976_v19 = vadd.f32 %v13046_v44, %v1312_v15 }
 0x198   : > { %v1313_v32 = vld [vmem:[#allocation2 + $0x1d8] sm:$0xff]  ;;  %v7766_v36 = vadd.f32 %v15765_v0, %v7247_v30  ;;  %6739 = vst.msk [vmem:[#allocation2 + $0x9a8] sm:$0xff] %vm226_vm3, %v6227_v23  ;;  %v1311_v38 = vld [vmem:[#allocation2 + $0x1c8] sm:$0xff]  ;;  %v12519_v40 = vpack.c.bf16 %v8279_v26, %v8279_v26  ;;  %v12261_v41 = vpack.c.bf16 %v8021_v27, %v8021_v27  ;;  %v8280_v42 = vmax.f32 %v7768_v28, 0.0  ;;  %v13302_v50 = vpop.f32.mrb[56].mxu1  ;;  %v4095_v51 = vpop.f32.mrb[57].mxu0 }
 0x199   : > { %v1569_v37 = vld [vmem:[#allocation2 + $0x9d8] sm:$0xff]  ;;  %v8022_v43 = vmax.f32 %v7510_v29, 0.0  ;;  %v1567_v45 = vld [vmem:[#allocation2 + $0x9c8] sm:$0xff]  ;;  %10584 = vst.msk [vmem:[%s15302_s18 + $0xc8] sm:$0xf] %vm10533_vm4, %v12263_v33  ;;  %v12517_v47 = vpack.c.bf16 %v8277_v34, %v8277_v34  ;;  %v12264_v48 = vpack.c.bf16 %v8024_v35, %v8024_v35  ;;  %v13733_v52 = vld [vmem:[%s14005_s7 + $0x2a0] sm:$0xff]   ;;  %v6232_v56 = vadd.f32 %v13302_v50, %v1568_v24 }
 0x19a   : > { %v13731_v39 = vld [vmem:[%s14005_s7 + $0x298] sm:$0xff]   ;;  %v8278_v49 = vmax.f32 %v7766_v36, 0.0  ;;  %10840 = vst.msk [vmem:[%s15302_s18 + $0x4c8] sm:$0xf] %vm10533_vm4, %v12519_v40  ;;  %10582 = vst.msk [vmem:[%s15302_s18 + $0xc0] sm:$0xf] %vm10533_vm4, %v12261_v41  ;;  %v12520_v53 = vpack.c.bf16 %v8280_v42, %v8280_v42  ;;  %v5974_v57 = vadd.f32 %v4095_v51, %v1310_v25 }
 0x19b   : > { %v13732_v46 = vld [vmem:[%s14005_s7 + $0x698] sm:$0xff]   ;;  %v12262_v54 = vpack.c.bf16 %v8022_v43, %v8022_v43  ;;  %v6996_v55 = vld [vmem:[#allocation2 + $0x1b0] sm:$0xff]  ;;  %v5119_v58 = vpop.f32.mrb[57].mxu1  ;;  %v13047_v59 = vpop.f32.mrb[58].mxu0  ;;  %v13734_v60 = vld [vmem:[%s14005_s7 + $0x6a0] sm:$0xff]   ;;  %6488 = vst.msk [vmem:[#allocation2 + $0x1d0] sm:$0xff] %vm226_vm3, %v5976_v19  ;;  %13153 = vmatmul.mubr.msk.bf16.gmra.mrb[164].mxu0 %vm3061_vm2, %v13731_v39 }
 0x19c   : > { %10838 = vst.msk [vmem:[%s15302_s18 + $0x4c0] sm:$0xf] %vm10533_vm4, %v12517_v47  ;;  %10585 = vst.msk [vmem:[%s15302_s18 + $0xcc] sm:$0xf] %vm10533_vm4, %v12264_v48  ;;  %v12518_v61 = vpack.c.bf16 %v8278_v49, %v8278_v49  ;;  %v7515_v62 = vadd.f32 %v15765_v0, %v6996_v55  ;;  %v7252_v63 = vld [vmem:[#allocation2 + $0x9b0] sm:$0xff]  ;;  %v6994_v1 = vld [vmem:[#allocation2 + $0x1a0] sm:$0xff]  ;;  %v6230_v2 = vadd.f32 %v5119_v58, %v1566_v31  ;;  %13409 = vmatmul.mubr.msk.bf16.gmra.mrb[164].mxu1 %vm3061_vm2, %v13732_v46 }
 0x19d   : > { %v5977_v3 = vadd.f32 %v13047_v59, %v1313_v32  ;;  %v13303_v20 = vpop.f32.mrb[58].mxu1  ;;  %v4098_v4 = vpop.f32.mrb[59].mxu0  ;;  %10841 = vst.msk [vmem:[%s15302_s18 + $0x4cc] sm:$0xf] %vm10533_vm4, %v12520_v53  ;;  %10583 = vst.msk [vmem:[%s15302_s18 + $0xc4] sm:$0xf] %vm10533_vm4, %v12262_v54  ;;  %v7771_v5 = vadd.f32 %v15765_v0, %v7252_v63  ;;  %v7513_v6 = vadd.f32 %v15765_v0, %v6994_v1  ;;  %13156 = vmatprep.mubr.msk.bf16.mxu0 %vm3061_vm2, %v13733_v52 }
 0x19e   : > { %v7250_v7 = vld [vmem:[#allocation2 + $0x9a0] sm:$0xff]  ;;  %v6997_v8 = vld [vmem:[#allocation2 + $0x1b8] sm:$0xff]  ;;  %6744 = vst.msk [vmem:[#allocation2 + $0x9d0] sm:$0xff] %vm226_vm3, %v6232_v56  ;;  %6486 = vst.msk [vmem:[#allocation2 + $0x1c0] sm:$0xff] %vm226_vm3, %v5974_v57  ;;  %v6233_v9 = vadd.f32 %v13303_v20, %v1569_v37  ;;  %v5975_v10 = vadd.f32 %v4098_v4, %v1311_v38  ;;  %v5122_v11 = vpop.f32.mrb[59].mxu1  ;;  %v8027_v13 = vmax.f32 %v7515_v62, 0.0  ;;  %13412 = vmatprep.mubr.msk.bf16.mxu1 %vm3061_vm2, %v13734_v60 }
 0x19f   : > { %v1316_v12 = vld [vmem:[#allocation2 + $0x1f0] sm:$0xff]  ;;  %10839 = vst.msk [vmem:[%s15302_s18 + $0x4c4] sm:$0xf] %vm10533_vm4, %v12518_v61  ;;  %v7769_v14 = vadd.f32 %v15765_v0, %v7250_v7  ;;  %v7516_v15 = vadd.f32 %v15765_v0, %v6997_v8  ;;  %v7253_v16 = vld [vmem:[#allocation2 + $0x9b8] sm:$0xff]  ;;  %v6995_v17 = vld [vmem:[#allocation2 + $0x1a8] sm:$0xff]  ;;  %v6231_v18 = vadd.f32 %v5122_v11, %v1567_v45  ;;  %v8283_v21 = vmax.f32 %v7771_v5, 0.0 }
 0x1a0   : > { %6742 = vst.msk [vmem:[#allocation2 + $0x9c0] sm:$0xff] %vm226_vm3, %v6230_v2  ;;  %6489 = vst.msk [vmem:[#allocation2 + $0x1d8] sm:$0xff] %vm226_vm3, %v5977_v3  ;;  %v8025_v22 = vmax.f32 %v7513_v6, 0.0  ;;  %v7772_v23 = vadd.f32 %v15765_v0, %v7253_v16  ;;  %v7514_v24 = vadd.f32 %v15765_v0, %v6995_v17  ;;  %v7251_v25 = vld [vmem:[#allocation2 + $0x9a8] sm:$0xff]  ;;  %v1572_v26 = vld [vmem:[#allocation2 + $0x9f0] sm:$0xff]  ;;  %v12267_v27 = vpack.c.bf16 %v8027_v13, %v8027_v13  ;;  %v13050_v38 = vpop.f32.mrb[60].mxu0 }
 0x1a1   : > { %6745 = vst.msk [vmem:[#allocation2 + $0x9d8] sm:$0xff] %vm226_vm3, %v6233_v9  ;;  %6487 = vst.msk [vmem:[#allocation2 + $0x1c8] sm:$0xff] %vm226_vm3, %v5975_v10  ;;  %v8281_v28 = vmax.f32 %v7769_v14, 0.0  ;;  %v8028_v29 = vmax.f32 %v7516_v15, 0.0  ;;  %v7770_v30 = vadd.f32 %v15765_v0, %v7251_v25  ;;  %v1314_v31 = vld [vmem:[#allocation2 + $0x1e0] sm:$0xff]  ;;  %v1317_v33 = vld [vmem:[#allocation2 + $0x1f8] sm:$0xff]  ;;  %v12523_v34 = vpack.c.bf16 %v8283_v21, %v8283_v21 }
 0x1a2   : > { %6743 = vst.msk [vmem:[#allocation2 + $0x9c8] sm:$0xff] %vm226_vm3, %v6231_v18  ;;  %v1570_v32 = vld [vmem:[#allocation2 + $0x9e0] sm:$0xff]  ;;  %v12265_v35 = vpack.c.bf16 %v8025_v22, %v8025_v22  ;;  %v8284_v36 = vmax.f32 %v7772_v23, 0.0  ;;  %v8026_v37 = vmax.f32 %v7514_v24, 0.0  ;;  %v1573_v39 = vld [vmem:[#allocation2 + $0x9f8] sm:$0xff]  ;;  %v1315_v40 = vld [vmem:[#allocation2 + $0x1e8] sm:$0xff]  ;;  %v5980_v45 = vadd.f32 %v13050_v38, %v1316_v12 }
 0x1a3   : > { %v1571_v41 = vld [vmem:[#allocation2 + $0x9e8] sm:$0xff]  ;;  %10588 = vst.msk [vmem:[%s15302_s18 + $0xd8] sm:$0xf] %vm10533_vm4, %v12267_v27  ;;  %v12521_v42 = vpack.c.bf16 %v8281_v28, %v8281_v28  ;;  %v12268_v43 = vpack.c.bf16 %v8028_v29, %v8028_v29  ;;  %v8282_v44 = vmax.f32 %v7770_v30, 0.0  ;;  %v13306_v46 = vpop.f32.mrb[60].mxu1  ;;  %v4111_v47 = vpop.f32.mrb[61].mxu0 }
 0x1a4   : > { %v13735_v48 = vld [vmem:[%s14005_s7 + $0x2a8] sm:$0xff]   ;;  %v13737_v19 = vld [vmem:[%s14005_s7 + $0x2b0] sm:$0xff]   ;;  %10844 = vst.msk [vmem:[%s15302_s18 + $0x4d8] sm:$0xf] %vm10533_vm4, %v12523_v34  ;;  %10586 = vst.msk [vmem:[%s15302_s18 + $0xd0] sm:$0xf] %vm10533_vm4, %v12265_v35  ;;  %v12524_v50 = vpack.c.bf16 %v8284_v36, %v8284_v36  ;;  %v12266_v51 = vpack.c.bf16 %v8026_v37, %v8026_v37  ;;  %v6236_v53 = vadd.f32 %v13306_v46, %v1572_v26 }
 0x1a5   : > { %v13736_v49 = vld [vmem:[%s14005_s7 + $0x6a8] sm:$0xff]   ;;  %v7000_v52 = vld [vmem:[#allocation2 + $0x1d0] sm:$0xff]  ;;  %v5978_v54 = vadd.f32 %v4111_v47, %v1314_v31  ;;  %v5135_v55 = vpop.f32.mrb[61].mxu1  ;;  %v13051_v56 = vpop.f32.mrb[62].mxu0  ;;  %10842 = vst.msk [vmem:[%s15302_s18 + $0x4d0] sm:$0xf] %vm10533_vm4, %v12521_v42  ;;  %v12522_v58 = vpack.c.bf16 %v8282_v44, %v8282_v44  ;;  %13157 = vmatmul.mubr.msk.bf16.gmra.mrb[168].mxu0 %vm3061_vm2, %v13735_v48 }
 0x1a6   : > { %v13738_v57 = vld [vmem:[%s14005_s7 + $0x6b0] sm:$0xff]   ;;  %10589 = vst.msk [vmem:[%s15302_s18 + $0xdc] sm:$0xf] %vm10533_vm4, %v12268_v43  ;;  %v7519_v59 = vadd.f32 %v15765_v0, %v7000_v52  ;;  %v6998_v61 = vld [vmem:[#allocation2 + $0x1c0] sm:$0xff]  ;;  %v6234_v62 = vadd.f32 %v5135_v55, %v1570_v32  ;;  %v5981_v63 = vadd.f32 %v13051_v56, %v1317_v33  ;;  %v13307_v1 = vpop.f32.mrb[62].mxu1  ;;  %v4114_v2 = vpop.f32.mrb[63].mxu0  ;;  %13413 = vmatmul.mubr.msk.bf16.gmra.mrb[168].mxu1 %vm3061_vm2, %v13736_v49 }
 0x1a7   : > { %v7256_v60 = vld [vmem:[#allocation2 + $0x9d0] sm:$0xff]  ;;  %6492 = vst.msk [vmem:[#allocation2 + $0x1f0] sm:$0xff] %vm226_vm3, %v5980_v45  ;;  %v7517_v20 = vadd.f32 %v15765_v0, %v6998_v61  ;;  %v7254_v4 = vld [vmem:[#allocation2 + $0x9c0] sm:$0xff]  ;;  %v7001_v5 = vld [vmem:[#allocation2 + $0x1d8] sm:$0xff]  ;;  %v6237_v6 = vadd.f32 %v13307_v1, %v1573_v39  ;;  %v5979_v7 = vadd.f32 %v4114_v2, %v1315_v40  ;;  %v5138_v8 = vpop.f32.mrb[63].mxu1  ;;  %13160 = vmatprep.mubr.msk.bf16.mxu0 %vm3061_vm2, %v13737_v19  ;;  %v13054_v35 = vpop.f32.mrb[64].mxu0 }
 0x1a8   : > { %10845 = vst.msk [vmem:[%s15302_s18 + $0x4dc] sm:$0xf] %vm10533_vm4, %v12524_v50  ;;  %10587 = vst.msk [vmem:[%s15302_s18 + $0xd4] sm:$0xf] %vm10533_vm4, %v12266_v51  ;;  %v7775_v3 = vadd.f32 %v15765_v0, %v7256_v60  ;;  %v1320_v9 = vld [vmem:[#allocation2 + $0x210] sm:$0xff]  ;;  %v8031_v10 = vmax.f32 %v7519_v59, 0.0  ;;  %v7773_v11 = vadd.f32 %v15765_v0, %v7254_v4  ;;  %v7520_v12 = vadd.f32 %v15765_v0, %v7001_v5 }
 0x1a9   : > { %6748 = vst.msk [vmem:[#allocation2 + $0x9f0] sm:$0xff] %vm226_vm3, %v6236_v53  ;;  %6490 = vst.msk [vmem:[#allocation2 + $0x1e0] sm:$0xff] %vm226_vm3, %v5978_v54  ;;  %v7257_v13 = vld [vmem:[#allocation2 + $0x9d8] sm:$0xff]  ;;  %v6999_v14 = vld [vmem:[#allocation2 + $0x1c8] sm:$0xff]  ;;  %v6235_v15 = vadd.f32 %v5138_v8, %v1571_v41  ;;  %v8029_v21 = vmax.f32 %v7517_v20, 0.0  ;;  %13416 = vmatprep.mubr.msk.bf16.mxu1 %vm3061_vm2, %v13738_v57  ;;  %v5984_v40 = vadd.f32 %v13054_v35, %v1320_v9  ;;  %v13310_v41 = vpop.f32.mrb[64].mxu1 }
 0x1aa   : > { %10843 = vst.msk [vmem:[%s15302_s18 + $0x4d4] sm:$0xf] %vm10533_vm4, %v12522_v58  ;;  %v1576_v16 = vld [vmem:[#allocation2 + $0xa10] sm:$0xff]  ;;  %v1318_v17 = vld [vmem:[#allocation2 + $0x200] sm:$0xff]  ;;  %v8287_v18 = vmax.f32 %v7775_v3, 0.0  ;;  %v7776_v22 = vadd.f32 %v15765_v0, %v7257_v13  ;;  %v7518_v23 = vadd.f32 %v15765_v0, %v6999_v14  ;;  %v7255_v24 = vld [vmem:[#allocation2 + $0x9c8] sm:$0xff]  ;;  %v12271_v27 = vpack.c.bf16 %v8031_v10, %v8031_v10 }
 0x1ab   : > { %6746 = vst.msk [vmem:[#allocation2 + $0x9e0] sm:$0xff] %vm226_vm3, %v6234_v62  ;;  %6493 = vst.msk [vmem:[#allocation2 + $0x1f8] sm:$0xff] %vm226_vm3, %v5981_v63  ;;  %v1574_v25 = vld [vmem:[#allocation2 + $0xa00] sm:$0xff]  ;;  %v1321_v26 = vld [vmem:[#allocation2 + $0x218] sm:$0xff]  ;;  %v8285_v28 = vmax.f32 %v7773_v11, 0.0  ;;  %v8032_v29 = vmax.f32 %v7520_v12, 0.0  ;;  %v7774_v30 = vadd.f32 %v15765_v0, %v7255_v24  ;;  %v12269_v32 = vpack.c.bf16 %v8029_v21, %v8029_v21 }
 0x1ac   : > { %6749 = vst.msk [vmem:[#allocation2 + $0x9f8] sm:$0xff] %vm226_vm3, %v6237_v6  ;;  %6491 = vst.msk [vmem:[#allocation2 + $0x1e8] sm:$0xff] %vm226_vm3, %v5979_v7  ;;  %v12527_v31 = vpack.c.bf16 %v8287_v18, %v8287_v18  ;;  %v8288_v33 = vmax.f32 %v7776_v22, 0.0  ;;  %v8030_v34 = vmax.f32 %v7518_v23, 0.0  ;;  %v1577_v36 = vld [vmem:[#allocation2 + $0xa18] sm:$0xff]  ;;  %v4127_v42 = vpop.f32.mrb[65].mxu0  ;;  %v6240_v49 = vadd.f32 %v13310_v41, %v1576_v16 }
 0x1ad   : > { %6747 = vst.msk [vmem:[#allocation2 + $0x9e8] sm:$0xff] %vm226_vm3, %v6235_v15  ;;  %v12525_v37 = vpack.c.bf16 %v8285_v28, %v8285_v28  ;;  %v12272_v38 = vpack.c.bf16 %v8032_v29, %v8032_v29  ;;  %v8286_v39 = vmax.f32 %v7774_v30, 0.0  ;;  %v1319_v43 = vld [vmem:[#allocation2 + $0x208] sm:$0xff]  ;;  %v13739_v45 = vld [vmem:[%s14005_s7 + $0x2b8] sm:$0xff]   ;;  %v5982_v19 = vadd.f32 %v4127_v42, %v1318_v17  ;;  %v5151_v50 = vpop.f32.mrb[65].mxu1  ;;  %v13055_v51 = vpop.f32.mrb[66].mxu0 }
 0x1ae   : > { %10592 = vst.msk [vmem:[%s15302_s18 + $0xe8] sm:$0xf] %vm10533_vm4, %v12271_v27  ;;  %v1575_v44 = vld [vmem:[#allocation2 + $0xa08] sm:$0xff]  ;;  %10848 = vst.msk [vmem:[%s15302_s18 + $0x4e8] sm:$0xf] %vm10533_vm4, %v12527_v31  ;;  %v12528_v46 = vpack.c.bf16 %v8288_v33, %v8288_v33  ;;  %v12270_v47 = vpack.c.bf16 %v8030_v34, %v8030_v34  ;;  %v7004_v48 = vld [vmem:[#allocation2 + $0x1f0] sm:$0xff]  ;;  %v6238_v58 = vadd.f32 %v5151_v50, %v1574_v25  ;;  %13161 = vmatmul.mubr.msk.bf16.gmra.mrb[172].mxu0 %vm3061_vm2, %v13739_v45 }
 0x1af   : > { %10590 = vst.msk [vmem:[%s15302_s18 + $0xe0] sm:$0xf] %vm10533_vm4, %v12269_v32  ;;  %v13740_v52 = vld [vmem:[%s14005_s7 + $0x6b8] sm:$0xff]   ;;  %v13741_v53 = vld [vmem:[%s14005_s7 + $0x2c0] sm:$0xff]   ;;  %10846 = vst.msk [vmem:[%s15302_s18 + $0x4e0] sm:$0xf] %vm10533_vm4, %v12525_v37  ;;  %v12526_v54 = vpack.c.bf16 %v8286_v39, %v8286_v39  ;;  %v7523_v55 = vadd.f32 %v15765_v0, %v7004_v48  ;;  %v5985_v59 = vadd.f32 %v13055_v51, %v1321_v26 }
 0x1b0   : > { %10593 = vst.msk [vmem:[%s15302_s18 + $0xec] sm:$0xf] %vm10533_vm4, %v12272_v38  ;;  %v7260_v56 = vld [vmem:[#allocation2 + $0x9f0] sm:$0xff]  ;;  %v7002_v57 = vld [vmem:[#allocation2 + $0x1e0] sm:$0xff]  ;;  %v13311_v60 = vpop.f32.mrb[66].mxu1  ;;  %v4130_v61 = vpop.f32.mrb[67].mxu0  ;;  %13417 = vmatmul.mubr.msk.bf16.gmra.mrb[172].mxu1 %vm3061_vm2, %v13740_v52  ;;  %13164 = vmatprep.mubr.msk.bf16.mxu0 %vm3061_vm2, %v13741_v53 }
 0x1b1   : > { %6496 = vst.msk [vmem:[#allocation2 + $0x210] sm:$0xff] %vm226_vm3, %v5984_v40  ;;  %v13742_v62 = vld [vmem:[%s14005_s7 + $0x6c0] sm:$0xff]   ;;  %v7779_v63 = vadd.f32 %v15765_v0, %v7260_v56  ;;  %v7521_v1 = vadd.f32 %v15765_v0, %v7002_v57  ;;  %6752 = vst.msk [vmem:[#allocation2 + $0xa10] sm:$0xff] %vm226_vm3, %v6240_v49  ;;  %v6241_v20 = vadd.f32 %v13311_v60, %v1577_v36  ;;  %v5154_v5 = vpop.f32.mrb[67].mxu1  ;;  %v1324_v6 = vld [vmem:[#allocation2 + $0x230] sm:$0xff]  ;;  %v8035_v7 = vmax.f32 %v7523_v55, 0.0 }
 0x1b2   : > { %10849 = vst.msk [vmem:[%s15302_s18 + $0x4ec] sm:$0xf] %vm10533_vm4, %v12528_v46  ;;  %10591 = vst.msk [vmem:[%s15302_s18 + $0xe4] sm:$0xf] %vm10533_vm4, %v12270_v47  ;;  %v7258_v2 = vld [vmem:[#allocation2 + $0x9e0] sm:$0xff]  ;;  %v7005_v3 = vld [vmem:[#allocation2 + $0x1f8] sm:$0xff]  ;;  %v5983_v4 = vadd.f32 %v4130_v61, %v1319_v43  ;;  %v6239_v12 = vadd.f32 %v5154_v5, %v1575_v44  ;;  %13420 = vmatprep.mubr.msk.bf16.mxu1 %vm3061_vm2, %v13742_v62 }
 0x1b3   : > { %6494 = vst.msk [vmem:[#allocation2 + $0x200] sm:$0xff] %vm226_vm3, %v5982_v19  ;;  %v7777_v8 = vadd.f32 %v15765_v0, %v7258_v2  ;;  %v7524_v9 = vadd.f32 %v15765_v0, %v7005_v3  ;;  %v7261_v10 = vld [vmem:[#allocation2 + $0x9f8] sm:$0xff]  ;;  %v7003_v11 = vld [vmem:[#allocation2 + $0x1e8] sm:$0xff]  ;;  %6750 = vst.msk [vmem:[#allocation2 + $0xa00] sm:$0xff] %vm226_vm3, %v6238_v58  ;;  %v8291_v15 = vmax.f32 %v7779_v63, 0.0  ;;  %v8033_v16 = vmax.f32 %v7521_v1, 0.0 }
 0x1b4   : > { %10847 = vst.msk [vmem:[%s15302_s18 + $0x4e4] sm:$0xf] %vm10533_vm4, %v12526_v54  ;;  %v1580_v13 = vld [vmem:[#allocation2 + $0xa30] sm:$0xff]  ;;  %v1322_v14 = vld [vmem:[#allocation2 + $0x220] sm:$0xff]  ;;  %v7780_v17 = vadd.f32 %v15765_v0, %v7261_v10  ;;  %v7522_v18 = vadd.f32 %v15765_v0, %v7003_v11  ;;  %v7259_v21 = vld [vmem:[#allocation2 + $0x9e8] sm:$0xff]  ;;  %v12275_v24 = vpack.c.bf16 %v8035_v7, %v8035_v7  ;;  %v13058_v35 = vpop.f32.mrb[68].mxu0 }
 0x1b5   : > { %6497 = vst.msk [vmem:[#allocation2 + $0x218] sm:$0xff] %vm226_vm3, %v5985_v59  ;;  %6753 = vst.msk [vmem:[#allocation2 + $0xa18] sm:$0xff] %vm226_vm3, %v6241_v20  ;;  %v1578_v22 = vld [vmem:[#allocation2 + $0xa20] sm:$0xff]  ;;  %v1325_v23 = vld [vmem:[#allocation2 + $0x238] sm:$0xff]  ;;  %v8289_v25 = vmax.f32 %v7777_v8, 0.0  ;;  %v8036_v26 = vmax.f32 %v7524_v9, 0.0  ;;  %v7778_v27 = vadd.f32 %v15765_v0, %v7259_v21  ;;  %v12531_v31 = vpack.c.bf16 %v8291_v15, %v8291_v15 }
 0x1b6   : > { %6495 = vst.msk [vmem:[#allocation2 + $0x208] sm:$0xff] %vm226_vm3, %v5983_v4  ;;  %6751 = vst.msk [vmem:[#allocation2 + $0xa08] sm:$0xff] %vm226_vm3, %v6239_v12  ;;  %v1581_v28 = vld [vmem:[#allocation2 + $0xa38] sm:$0xff]  ;;  %v1323_v29 = vld [vmem:[#allocation2 + $0x228] sm:$0xff]  ;;  %v12273_v32 = vpack.c.bf16 %v8033_v16, %v8033_v16  ;;  %v8292_v33 = vmax.f32 %v7780_v17, 0.0  ;;  %v8034_v34 = vmax.f32 %v7522_v18, 0.0  ;;  %v5988_v41 = vadd.f32 %v13058_v35, %v1324_v6 }
 0x1b7   : > { %v13743_v30 = vld [vmem:[%s14005_s7 + $0x2c8] sm:$0xff]   ;;  %10596 = vst.msk [vmem:[%s15302_s18 + $0xf8] sm:$0xf] %vm10533_vm4, %v12275_v24  ;;  %v12529_v38 = vpack.c.bf16 %v8289_v25, %v8289_v25  ;;  %v12276_v39 = vpack.c.bf16 %v8036_v26, %v8036_v26  ;;  %v8290_v40 = vmax.f32 %v7778_v27, 0.0  ;;  %v13314_v42 = vpop.f32.mrb[68].mxu1  ;;  %v4143_v43 = vpop.f32.mrb[69].mxu0 }
 0x1b8   : > { %v1579_v36 = vld [vmem:[#allocation2 + $0xa28] sm:$0xff]  ;;  %v13745_v44 = vld [vmem:[%s14005_s7 + $0x2d0] sm:$0xff]   ;;  %10852 = vst.msk [vmem:[%s15302_s18 + $0x4f8] sm:$0xf] %vm10533_vm4, %v12531_v31  ;;  %10594 = vst.msk [vmem:[%s15302_s18 + $0xf0] sm:$0xf] %vm10533_vm4, %v12273_v32  ;;  %v12532_v45 = vpack.c.bf16 %v8292_v33, %v8292_v33  ;;  %v12274_v46 = vpack.c.bf16 %v8034_v34, %v8034_v34  ;;  %v6244_v48 = vadd.f32 %v13314_v42, %v1580_v13  ;;  %13165 = vmatmul.mubr.msk.bf16.gmra.mrb[176].mxu0 %vm3061_vm2, %v13743_v30 }
 0x1b9   : > { %v13744_v37 = vld [vmem:[%s14005_s7 + $0x6c8] sm:$0xff]   ;;  %v7008_v47 = vld [vmem:[#allocation2 + $0x210] sm:$0xff]  ;;  %v5986_v49 = vadd.f32 %v4143_v43, %v1322_v14  ;;  %v5167_v19 = vpop.f32.mrb[69].mxu1  ;;  %v13059_v50 = vpop.f32.mrb[70].mxu0  ;;  %10850 = vst.msk [vmem:[%s15302_s18 + $0x4f0] sm:$0xf] %vm10533_vm4, %v12529_v38  ;;  %v12530_v52 = vpack.c.bf16 %v8290_v40, %v8290_v40  ;;  %13168 = vmatprep.mubr.msk.bf16.mxu0 %vm3061_vm2, %v13745_v44 }
 0x1ba   : > { %v13746_v51 = vld [vmem:[%s14005_s7 + $0x6d0] sm:$0xff]   ;;  %10597 = vst.msk [vmem:[%s15302_s18 + $0xfc] sm:$0xf] %vm10533_vm4, %v12276_v39  ;;  %v7527_v53 = vadd.f32 %v15765_v0, %v7008_v47  ;;  %v7006_v55 = vld [vmem:[#allocation2 + $0x200] sm:$0xff]  ;;  %v6242_v56 = vadd.f32 %v5167_v19, %v1578_v22  ;;  %v5989_v57 = vadd.f32 %v13059_v50, %v1325_v23  ;;  %v13315_v58 = vpop.f32.mrb[70].mxu1  ;;  %v4146_v59 = vpop.f32.mrb[71].mxu0  ;;  %13421 = vmatmul.mubr.msk.bf16.gmra.mrb[176].mxu1 %vm3061_vm2, %v13744_v37 }
 0x1bb   : > { %v7264_v54 = vld [vmem:[#allocation2 + $0xa10] sm:$0xff]  ;;  %6500 = vst.msk [vmem:[#allocation2 + $0x230] sm:$0xff] %vm226_vm3, %v5988_v41  ;;  %v7525_v61 = vadd.f32 %v15765_v0, %v7006_v55  ;;  %v7262_v62 = vld [vmem:[#allocation2 + $0xa00] sm:$0xff]  ;;  %6756 = vst.msk [vmem:[#allocation2 + $0xa30] sm:$0xff] %vm226_vm3, %v6244_v48  ;;  %v6245_v1 = vadd.f32 %v13315_v58, %v1581_v28  ;;  %v5987_v2 = vadd.f32 %v4146_v59, %v1323_v29  ;;  %v5170_v3 = vpop.f32.mrb[71].mxu1  ;;  %13424 = vmatprep.mubr.msk.bf16.mxu1 %vm3061_vm2, %v13746_v51  ;;  %v13062_v31 = vpop.f32.mrb[72].mxu0 }
 0x1bc   : > { %10853 = vst.msk [vmem:[%s15302_s18 + $0x4fc] sm:$0xf] %vm10533_vm4, %v12532_v45  ;;  %10595 = vst.msk [vmem:[%s15302_s18 + $0xf4] sm:$0xf] %vm10533_vm4, %v12274_v46  ;;  %v7783_v60 = vadd.f32 %v15765_v0, %v7264_v54  ;;  %v7009_v63 = vld [vmem:[#allocation2 + $0x218] sm:$0xff]  ;;  %v1328_v20 = vld [vmem:[#allocation2 + $0x250] sm:$0xff]  ;;  %v7781_v5 = vadd.f32 %v15765_v0, %v7262_v62  ;;  %v6243_v9 = vadd.f32 %v5170_v3, %v1579_v36 }
 0x1bd   : > { %6498 = vst.msk [vmem:[#allocation2 + $0x220] sm:$0xff] %vm226_vm3, %v5986_v49  ;;  %v8039_v4 = vmax.f32 %v7527_v53, 0.0  ;;  %v7528_v6 = vadd.f32 %v15765_v0, %v7009_v63  ;;  %v7265_v7 = vld [vmem:[#allocation2 + $0xa18] sm:$0xff]  ;;  %v7007_v8 = vld [vmem:[#allocation2 + $0x208] sm:$0xff]  ;;  %6754 = vst.msk [vmem:[#allocation2 + $0xa20] sm:$0xff] %vm226_vm3, %v6242_v56  ;;  %v8037_v12 = vmax.f32 %v7525_v61, 0.0  ;;  %v5992_v38 = vadd.f32 %v13062_v31, %v1328_v20 }
 0x1be   : > { %10851 = vst.msk [vmem:[%s15302_s18 + $0x4f4] sm:$0xf] %vm10533_vm4, %v12530_v52  ;;  %v1584_v10 = vld [vmem:[#allocation2 + $0xa50] sm:$0xff]  ;;  %v8295_v11 = vmax.f32 %v7783_v60, 0.0  ;;  %v7784_v13 = vadd.f32 %v15765_v0, %v7265_v7  ;;  %v7526_v14 = vadd.f32 %v15765_v0, %v7007_v8  ;;  %v7263_v15 = vld [vmem:[#allocation2 + $0xa08] sm:$0xff]  ;;  %v1326_v16 = vld [vmem:[#allocation2 + $0x240] sm:$0xff] }
 0x1bf   : > { %6501 = vst.msk [vmem:[#allocation2 + $0x238] sm:$0xff] %vm226_vm3, %v5989_v57  ;;  %6757 = vst.msk [vmem:[#allocation2 + $0xa38] sm:$0xff] %vm226_vm3, %v6245_v1  ;;  %v1582_v17 = vld [vmem:[#allocation2 + $0xa40] sm:$0xff]  ;;  %v12279_v18 = vpack.c.bf16 %v8039_v4, %v8039_v4  ;;  %v8293_v21 = vmax.f32 %v7781_v5, 0.0  ;;  %v8040_v22 = vmax.f32 %v7528_v6, 0.0  ;;  %v7782_v23 = vadd.f32 %v15765_v0, %v7263_v15  ;;  %v1329_v24 = vld [vmem:[#allocation2 + $0x258] sm:$0xff] }
 0x1c0   : > { %6499 = vst.msk [vmem:[#allocation2 + $0x228] sm:$0xff] %vm226_vm3, %v5987_v2  ;;  %6755 = vst.msk [vmem:[#allocation2 + $0xa28] sm:$0xff] %vm226_vm3, %v6243_v9  ;;  %v1585_v25 = vld [vmem:[#allocation2 + $0xa58] sm:$0xff]  ;;  %v1327_v26 = vld [vmem:[#allocation2 + $0x248] sm:$0xff]  ;;  %v12535_v27 = vpack.c.bf16 %v8295_v11, %v8295_v11  ;;  %v12277_v28 = vpack.c.bf16 %v8037_v12, %v8037_v12  ;;  %v8296_v29 = vmax.f32 %v7784_v13, 0.0  ;;  %v8038_v30 = vmax.f32 %v7526_v14, 0.0 }
 0x1c1   : > { %v1583_v32 = vld [vmem:[#allocation2 + $0xa48] sm:$0xff]  ;;  %v13747_v33 = vld [vmem:[%s14005_s7 + $0x2d8] sm:$0xff]   ;;  %10600 = vst.msk [vmem:[%s15302_s18 + $0x108] sm:$0xf] %vm10533_vm4, %v12279_v18  ;;  %v12533_v35 = vpack.c.bf16 %v8293_v21, %v8293_v21  ;;  %v12280_v36 = vpack.c.bf16 %v8040_v22, %v8040_v22  ;;  %v8294_v37 = vmax.f32 %v7782_v23, 0.0  ;;  %v13318_v39 = vpop.f32.mrb[72].mxu1 }
 0x1c2   : > { %v13748_v34 = vld [vmem:[%s14005_s7 + $0x6d8] sm:$0xff]   ;;  %v4159_v40 = vpop.f32.mrb[73].mxu0  ;;  %v13749_v41 = vld [vmem:[%s14005_s7 + $0x2e0] sm:$0xff]   ;;  %10856 = vst.msk [vmem:[%s15302_s18 + $0x508] sm:$0xf] %vm10533_vm4, %v12535_v27  ;;  %v12536_v42 = vpack.c.bf16 %v8296_v29, %v8296_v29  ;;  %v12278_v43 = vpack.c.bf16 %v8038_v30, %v8038_v30  ;;  %v7012_v44 = vld [vmem:[#allocation2 + $0x230] sm:$0xff]  ;;  %v6248_v45 = vadd.f32 %v13318_v39, %v1584_v10  ;;  %13169 = vmatmul.mubr.msk.bf16.gmra.mrb[180].mxu0 %vm3061_vm2, %v13747_v33 }
 0x1c3   : > { %10598 = vst.msk [vmem:[%s15302_s18 + $0x100] sm:$0xf] %vm10533_vm4, %v12277_v28  ;;  %v5990_v46 = vadd.f32 %v4159_v40, %v1326_v16  ;;  %v5183_v47 = vpop.f32.mrb[73].mxu1  ;;  %v13063_v48 = vpop.f32.mrb[74].mxu0  ;;  %v13750_v49 = vld [vmem:[%s14005_s7 + $0x6e0] sm:$0xff]   ;;  %v12534_v19 = vpack.c.bf16 %v8294_v37, %v8294_v37  ;;  %v7531_v50 = vadd.f32 %v15765_v0, %v7012_v44  ;;  %v7268_v51 = vld [vmem:[#allocation2 + $0xa30] sm:$0xff]  ;;  %13425 = vmatmul.mubr.msk.bf16.gmra.mrb[180].mxu1 %vm3061_vm2, %v13748_v34 }
 0x1c4   : > { %10854 = vst.msk [vmem:[%s15302_s18 + $0x500] sm:$0xf] %vm10533_vm4, %v12533_v35  ;;  %10601 = vst.msk [vmem:[%s15302_s18 + $0x10c] sm:$0xf] %vm10533_vm4, %v12280_v36  ;;  %v7010_v52 = vld [vmem:[#allocation2 + $0x220] sm:$0xff]  ;;  %v6246_v53 = vadd.f32 %v5183_v47, %v1582_v17  ;;  %v5993_v54 = vadd.f32 %v13063_v48, %v1329_v24  ;;  %v13319_v55 = vpop.f32.mrb[74].mxu1  ;;  %v7787_v57 = vadd.f32 %v15765_v0, %v7268_v51  ;;  %13172 = vmatprep.mubr.msk.bf16.mxu0 %vm3061_vm2, %v13749_v41 }
 0x1c5   : > { %6504 = vst.msk [vmem:[#allocation2 + $0x250] sm:$0xff] %vm226_vm3, %v5992_v38  ;;  %v4162_v56 = vpop.f32.mrb[75].mxu0  ;;  %v7529_v58 = vadd.f32 %v15765_v0, %v7010_v52  ;;  %v7266_v59 = vld [vmem:[#allocation2 + $0xa20] sm:$0xff]  ;;  %6760 = vst.msk [vmem:[#allocation2 + $0xa50] sm:$0xff] %vm226_vm3, %v6248_v45  ;;  %v6249_v61 = vadd.f32 %v13319_v55, %v1585_v25  ;;  %v5186_v63 = vpop.f32.mrb[75].mxu1  ;;  %v1332_v1 = vld [vmem:[#allocation2 + $0x270] sm:$0xff]  ;;  %13428 = vmatprep.mubr.msk.bf16.mxu1 %vm3061_vm2, %v13750_v49 }
 0x1c6   : > { %10857 = vst.msk [vmem:[%s15302_s18 + $0x50c] sm:$0xf] %vm10533_vm4, %v12536_v42  ;;  %10599 = vst.msk [vmem:[%s15302_s18 + $0x104] sm:$0xf] %vm10533_vm4, %v12278_v43  ;;  %v7013_v60 = vld [vmem:[#allocation2 + $0x238] sm:$0xff]  ;;  %v5991_v62 = vadd.f32 %v4162_v56, %v1327_v26  ;;  %v8043_v2 = vmax.f32 %v7531_v50, 0.0  ;;  %v7785_v3 = vadd.f32 %v15765_v0, %v7266_v59  ;;  %v6247_v6 = vadd.f32 %v5186_v63, %v1583_v32 }
 0x1c7   : > { %6502 = vst.msk [vmem:[#allocation2 + $0x240] sm:$0xff] %vm226_vm3, %v5990_v46  ;;  %v7532_v20 = vadd.f32 %v15765_v0, %v7013_v60  ;;  %v7269_v4 = vld [vmem:[#allocation2 + $0xa38] sm:$0xff]  ;;  %v7011_v5 = vld [vmem:[#allocation2 + $0x228] sm:$0xff]  ;;  %6758 = vst.msk [vmem:[#allocation2 + $0xa40] sm:$0xff] %vm226_vm3, %v6246_v53  ;;  %v8299_v9 = vmax.f32 %v7787_v57, 0.0  ;;  %v8041_v10 = vmax.f32 %v7529_v58, 0.0 }
 0x1c8   : > { %10855 = vst.msk [vmem:[%s15302_s18 + $0x504] sm:$0xf] %vm10533_vm4, %v12534_v19  ;;  %v1588_v7 = vld [vmem:[#allocation2 + $0xa70] sm:$0xff]  ;;  %v1330_v8 = vld [vmem:[#allocation2 + $0x260] sm:$0xff]  ;;  %v7788_v11 = vadd.f32 %v15765_v0, %v7269_v4  ;;  %v7530_v12 = vadd.f32 %v15765_v0, %v7011_v5  ;;  %v7267_v13 = vld [vmem:[#allocation2 + $0xa28] sm:$0xff]  ;;  %v12283_v15 = vpack.c.bf16 %v8043_v2, %v8043_v2  ;;  %v8297_v16 = vmax.f32 %v7785_v3, 0.0 }
 0x1c9   : > { %6505 = vst.msk [vmem:[#allocation2 + $0x258] sm:$0xff] %vm226_vm3, %v5993_v54  ;;  %6761 = vst.msk [vmem:[#allocation2 + $0xa58] sm:$0xff] %vm226_vm3, %v6249_v61  ;;  %v1586_v14 = vld [vmem:[#allocation2 + $0xa60] sm:$0xff]  ;;  %v8044_v17 = vmax.f32 %v7532_v20, 0.0  ;;  %v7786_v18 = vadd.f32 %v15765_v0, %v7267_v13  ;;  %v12539_v21 = vpack.c.bf16 %v8299_v9, %v8299_v9  ;;  %v12281_v22 = vpack.c.bf16 %v8041_v10, %v8041_v10  ;;  %v13066_v25 = vpop.f32.mrb[76].mxu0  ;;  %v1333_v26 = vld [vmem:[#allocation2 + $0x278] sm:$0xff] }
 0x1ca   : > { %6503 = vst.msk [vmem:[#allocation2 + $0x248] sm:$0xff] %vm226_vm3, %v5991_v62  ;;  %6759 = vst.msk [vmem:[#allocation2 + $0xa48] sm:$0xff] %vm226_vm3, %v6247_v6  ;;  %v8300_v23 = vmax.f32 %v7788_v11, 0.0  ;;  %v8042_v24 = vmax.f32 %v7530_v12, 0.0  ;;  %v1589_v27 = vld [vmem:[#allocation2 + $0xa78] sm:$0xff]  ;;  %v1331_v28 = vld [vmem:[#allocation2 + $0x268] sm:$0xff]  ;;  %v12537_v29 = vpack.c.bf16 %v8297_v16, %v8297_v16  ;;  %v5996_v31 = vadd.f32 %v13066_v25, %v1332_v1 }
 0x1cb   : > { %10604 = vst.msk [vmem:[%s15302_s18 + $0x118] sm:$0xf] %vm10533_vm4, %v12283_v15  ;;  %v12284_v0 = vpack.c.bf16 %v8044_v17, %v8044_v17  ;;  %v8298_v30 = vmax.f32 %v7786_v18, 0.0  ;;  %v13322_v32 = vpop.f32.mrb[76].mxu1  ;;  %v4175_v33 = vpop.f32.mrb[77].mxu0  ;;  %v1587_v34 = vld [vmem:[#allocation2 + $0xa68] sm:$0xff] }
 0x1cc   : > { %v13751_v35 = vld [vmem:[%s14005_s7 + $0x2e8] sm:$0xff]   ;;  %10860 = vst.msk [vmem:[%s15302_s18 + $0x518] sm:$0xf] %vm10533_vm4, %v12539_v21  ;;  %10602 = vst.msk [vmem:[%s15302_s18 + $0x110] sm:$0xf] %vm10533_vm4, %v12281_v22  ;;  %v12540_v37 = vpack.c.bf16 %v8300_v23, %v8300_v23  ;;  %v12282_v38 = vpack.c.bf16 %v8042_v24, %v8042_v24  ;;  %v7016_v39 = vld [vmem:[#allocation2 + $0x250] sm:$0xff]  ;;  %v6252_v40 = vadd.f32 %v13322_v32, %v1588_v7 }
 0x1cd   : > { %v13752_v36 = vld [vmem:[%s14005_s7 + $0x6e8] sm:$0xff]   ;;  %v5994_v41 = vadd.f32 %v4175_v33, %v1330_v8  ;;  %v5199_v42 = vpop.f32.mrb[77].mxu1  ;;  %v13067_v43 = vpop.f32.mrb[78].mxu0  ;;  %v13753_v44 = vld [vmem:[%s14005_s7 + $0x2f0] sm:$0xff]   ;;  %10858 = vst.msk [vmem:[%s15302_s18 + $0x510] sm:$0xf] %vm10533_vm4, %v12537_v29  ;;  %v12538_v46 = vpack.c.bf16 %v8298_v30, %v8298_v30  ;;  %13173 = vmatmul.mubr.msk.bf16.gmra.mrb[184].mxu0 %vm3061_vm2, %v13751_v35 }
 0x1ce   : > { %v13754_v45 = vld [vmem:[%s14005_s7 + $0x6f0] sm:$0xff]   ;;  %10605 = vst.msk [vmem:[%s15302_s18 + $0x11c] sm:$0xf] %vm10533_vm4, %v12284_v0  ;;  %v16011_v47 = vld [vmem:[%s17708_s2] ss:$0 sm:$0xff]  ;;  %v6250_v50 = vadd.f32 %v5199_v42, %v1586_v14  ;;  %v5997_v51 = vadd.f32 %v13067_v43, %v1333_v26  ;;  %v13323_v52 = vpop.f32.mrb[78].mxu1  ;;  %13429 = vmatmul.mubr.msk.bf16.gmra.mrb[184].mxu1 %vm3061_vm2, %v13752_v36  ;;  %13176 = vmatprep.mubr.msk.bf16.mxu0 %vm3061_vm2, %v13753_v44 }
 0x1cf   : > { %v7535_v48 = vadd.f32 %v16011_v47, %v7016_v39  ;;  %v7272_v49 = vld [vmem:[#allocation2 + $0xa50] sm:$0xff]  ;;  %v7014_v19 = vld [vmem:[#allocation2 + $0x240] sm:$0xff]  ;;  %6508 = vst.msk [vmem:[#allocation2 + $0x270] sm:$0xff] %vm226_vm3, %v5996_v31  ;;  %v4178_v53 = vpop.f32.mrb[79].mxu0  ;;  %6764 = vst.msk [vmem:[#allocation2 + $0xa70] sm:$0xff] %vm226_vm3, %v6252_v40  ;;  %v6253_v58 = vadd.f32 %v13323_v52, %v1589_v27  ;;  %v5202_v60 = vpop.f32.mrb[79].mxu1  ;;  %13432 = vmatprep.mubr.msk.bf16.mxu1 %vm3061_vm2, %v13754_v45 }
 0x1d0   : > { %10861 = vst.msk [vmem:[%s15302_s18 + $0x51c] sm:$0xf] %vm10533_vm4, %v12540_v37  ;;  %10603 = vst.msk [vmem:[%s15302_s18 + $0x114] sm:$0xf] %vm10533_vm4, %v12282_v38  ;;  %v7791_v54 = vadd.f32 %v16011_v47, %v7272_v49  ;;  %v7533_v55 = vadd.f32 %v16011_v47, %v7014_v19  ;;  %v7270_v56 = vld [vmem:[#allocation2 + $0xa40] sm:$0xff]  ;;  %v7017_v57 = vld [vmem:[#allocation2 + $0x258] sm:$0xff]  ;;  %v5995_v59 = vadd.f32 %v4178_v53, %v1331_v28 }
 0x1d1   : > { %6506 = vst.msk [vmem:[#allocation2 + $0x260] sm:$0xff] %vm226_vm3, %v5994_v41  ;;  %v1336_v61 = vld [vmem:[#allocation2 + $0x290] sm:$0xff]  ;;  %v8047_v62 = vmax.f32 %v7535_v48, 0.0  ;;  %v7789_v63 = vadd.f32 %v16011_v47, %v7270_v56  ;;  %v7536_v1 = vadd.f32 %v16011_v47, %v7017_v57  ;;  %v7273_v2 = vld [vmem:[#allocation2 + $0xa58] sm:$0xff]  ;;  %v7015_v3 = vld [vmem:[#allocation2 + $0x248] sm:$0xff]  ;;  %v6251_v20 = vadd.f32 %v5202_v60, %v1587_v34  ;;  %v13070_v25 = vpop.f32.mrb[80].mxu0 }
 0x1d2   : > { %10859 = vst.msk [vmem:[%s15302_s18 + $0x514] sm:$0xf] %vm10533_vm4, %v12538_v46  ;;  %v1592_v4 = vld [vmem:[#allocation2 + $0xa90] sm:$0xff]  ;;  %v1334_v5 = vld [vmem:[#allocation2 + $0x280] sm:$0xff]  ;;  %v8303_v6 = vmax.f32 %v7791_v54, 0.0  ;;  %v8045_v7 = vmax.f32 %v7533_v55, 0.0  ;;  %v7792_v8 = vadd.f32 %v16011_v47, %v7273_v2  ;;  %v7534_v9 = vadd.f32 %v16011_v47, %v7015_v3 }
 0x1d3   : > { %6762 = vst.msk [vmem:[#allocation2 + $0xa60] sm:$0xff] %vm226_vm3, %v6250_v50  ;;  %6509 = vst.msk [vmem:[#allocation2 + $0x278] sm:$0xff] %vm226_vm3, %v5997_v51  ;;  %v7271_v10 = vld [vmem:[#allocation2 + $0xa48] sm:$0xff]  ;;  %v1590_v11 = vld [vmem:[#allocation2 + $0xa80] sm:$0xff]  ;;  %v12287_v13 = vpack.c.bf16 %v8047_v62, %v8047_v62  ;;  %v8301_v14 = vmax.f32 %v7789_v63, 0.0  ;;  %v8048_v15 = vmax.f32 %v7536_v1, 0.0  ;;  %v6000_v30 = vadd.f32 %v13070_v25, %v1336_v61 }
 0x1d4   : > { %6765 = vst.msk [vmem:[#allocation2 + $0xa78] sm:$0xff] %vm226_vm3, %v6253_v58  ;;  %6507 = vst.msk [vmem:[#allocation2 + $0x268] sm:$0xff] %vm226_vm3, %v5995_v59  ;;  %v1337_v12 = vld [vmem:[#allocation2 + $0x298] sm:$0xff]  ;;  %v7790_v16 = vadd.f32 %v16011_v47, %v7271_v10  ;;  %v1335_v18 = vld [vmem:[#allocation2 + $0x288] sm:$0xff]  ;;  %v12543_v21 = vpack.c.bf16 %v8303_v6, %v8303_v6  ;;  %v12285_v22 = vpack.c.bf16 %v8045_v7, %v8045_v7  ;;  %v8304_v23 = vmax.f32 %v7792_v8, 0.0  ;;  %v13326_v31 = vpop.f32.mrb[80].mxu1 }
 0x1d5   : > { %6763 = vst.msk [vmem:[#allocation2 + $0xa68] sm:$0xff] %vm226_vm3, %v6251_v20  ;;  %v1593_v17 = vld [vmem:[#allocation2 + $0xa98] sm:$0xff]  ;;  %v8046_v24 = vmax.f32 %v7534_v9, 0.0  ;;  %v1591_v26 = vld [vmem:[#allocation2 + $0xa88] sm:$0xff]  ;;  %v12541_v28 = vpack.c.bf16 %v8301_v14, %v8301_v14  ;;  %v12288_v29 = vpack.c.bf16 %v8048_v15, %v8048_v15  ;;  %v4191_v32 = vpop.f32.mrb[81].mxu0  ;;  %v6256_v37 = vadd.f32 %v13326_v31, %v1592_v4  ;;  %v5215_v39 = vpop.f32.mrb[81].mxu1 }
 0x1d6   : > { %v13755_v27 = vld [vmem:[%s14005_s7 + $0x2f8] sm:$0xff]   ;;  %10608 = vst.msk [vmem:[%s15302_s18 + $0x128] sm:$0xf] %vm10533_vm4, %v12287_v13  ;;  %v8302_v0 = vmax.f32 %v7790_v16, 0.0  ;;  %10864 = vst.msk [vmem:[%s15302_s18 + $0x528] sm:$0xf] %vm10533_vm4, %v12543_v21  ;;  %v12544_v34 = vpack.c.bf16 %v8304_v23, %v8304_v23  ;;  %v5998_v38 = vadd.f32 %v4191_v32, %v1334_v5  ;;  %v6254_v46 = vadd.f32 %v5215_v39, %v1590_v11 }
 0x1d7   : > { %v13756_v33 = vld [vmem:[%s14005_s7 + $0x6f8] sm:$0xff]   ;;  %10606 = vst.msk [vmem:[%s15302_s18 + $0x120] sm:$0xf] %vm10533_vm4, %v12285_v22  ;;  %v12286_v35 = vpack.c.bf16 %v8046_v24, %v8046_v24  ;;  %v7020_v36 = vld [vmem:[#allocation2 + $0x270] sm:$0xff]  ;;  %v13071_v40 = vpop.f32.mrb[82].mxu0  ;;  %v13757_v41 = vld [vmem:[%s14005_s7 + $0x300] sm:$0xff]   ;;  %13177 = vmatmul.mubr.msk.bf16.gmra.mrb[188].mxu0 %vm3061_vm2, %v13755_v27 }
 0x1d8   : > { %10862 = vst.msk [vmem:[%s15302_s18 + $0x520] sm:$0xf] %vm10533_vm4, %v12541_v28  ;;  %10609 = vst.msk [vmem:[%s15302_s18 + $0x12c] sm:$0xf] %vm10533_vm4, %v12288_v29  ;;  %v12542_v42 = vpack.c.bf16 %v8302_v0, %v8302_v0  ;;  %v7539_v43 = vadd.f32 %v16011_v47, %v7020_v36  ;;  %v7276_v44 = vld [vmem:[#allocation2 + $0xa70] sm:$0xff]  ;;  %v7018_v45 = vld [vmem:[#allocation2 + $0x260] sm:$0xff]  ;;  %v6001_v48 = vadd.f32 %v13071_v40, %v1337_v12  ;;  %13433 = vmatmul.mubr.msk.bf16.gmra.mrb[188].mxu1 %vm3061_vm2, %v13756_v33 }
 0x1d9   : > { %6512 = vst.msk [vmem:[#allocation2 + $0x290] sm:$0xff] %vm226_vm3, %v6000_v30  ;;  %v13327_v49 = vpop.f32.mrb[82].mxu1  ;;  %v4194_v19 = vpop.f32.mrb[83].mxu0  ;;  %v13758_v50 = vld [vmem:[%s14005_s7 + $0x700] sm:$0xff]   ;;  %v7795_v51 = vadd.f32 %v16011_v47, %v7276_v44  ;;  %v7537_v52 = vadd.f32 %v16011_v47, %v7018_v45  ;;  %6768 = vst.msk [vmem:[#allocation2 + $0xa90] sm:$0xff] %vm226_vm3, %v6256_v37  ;;  %v1340_v58 = vld [vmem:[#allocation2 + $0x2b0] sm:$0xff]  ;;  %13180 = vmatprep.mubr.msk.bf16.mxu0 %vm3061_vm2, %v13757_v41 }
 0x1da   : > { %10865 = vst.msk [vmem:[%s15302_s18 + $0x52c] sm:$0xf] %vm10533_vm4, %v12544_v34  ;;  %10607 = vst.msk [vmem:[%s15302_s18 + $0x124] sm:$0xf] %vm10533_vm4, %v12286_v35  ;;  %v7274_v53 = vld [vmem:[#allocation2 + $0xa60] sm:$0xff]  ;;  %v7021_v54 = vld [vmem:[#allocation2 + $0x278] sm:$0xff]  ;;  %v6257_v55 = vadd.f32 %v13327_v49, %v1593_v17  ;;  %v5999_v56 = vadd.f32 %v4194_v19, %v1335_v18  ;;  %13436 = vmatprep.mubr.msk.bf16.mxu1 %vm3061_vm2, %v13758_v50 }
 0x1db   : > { %6510 = vst.msk [vmem:[#allocation2 + $0x280] sm:$0xff] %vm226_vm3, %v5998_v38  ;;  %v5218_v57 = vpop.f32.mrb[83].mxu1  ;;  %v8051_v59 = vmax.f32 %v7539_v43, 0.0  ;;  %v7793_v60 = vadd.f32 %v16011_v47, %v7274_v53  ;;  %v7540_v61 = vadd.f32 %v16011_v47, %v7021_v54  ;;  %v7277_v62 = vld [vmem:[#allocation2 + $0xa78] sm:$0xff]  ;;  %v7019_v63 = vld [vmem:[#allocation2 + $0x268] sm:$0xff]  ;;  %6766 = vst.msk [vmem:[#allocation2 + $0xa80] sm:$0xff] %vm226_vm3, %v6254_v46 }
 0x1dc   : > { %10863 = vst.msk [vmem:[%s15302_s18 + $0x524] sm:$0xf] %vm10533_vm4, %v12542_v42  ;;  %v6255_v1 = vadd.f32 %v5218_v57, %v1591_v26  ;;  %v1596_v2 = vld [vmem:[#allocation2 + $0xab0] sm:$0xff]  ;;  %v1338_v3 = vld [vmem:[#allocation2 + $0x2a0] sm:$0xff]  ;;  %v8307_v20 = vmax.f32 %v7795_v51, 0.0  ;;  %v8049_v4 = vmax.f32 %v7537_v52, 0.0  ;;  %v7796_v5 = vadd.f32 %v16011_v47, %v7277_v62 }
 0x1dd   : > { %6513 = vst.msk [vmem:[#allocation2 + $0x298] sm:$0xff] %vm226_vm3, %v6001_v48  ;;  %v7538_v6 = vadd.f32 %v16011_v47, %v7019_v63  ;;  %v7275_v7 = vld [vmem:[#allocation2 + $0xa68] sm:$0xff]  ;;  %6769 = vst.msk [vmem:[#allocation2 + $0xa98] sm:$0xff] %vm226_vm3, %v6257_v55  ;;  %v1594_v8 = vld [vmem:[#allocation2 + $0xaa0] sm:$0xff]  ;;  %v12291_v10 = vpack.c.bf16 %v8051_v59, %v8051_v59  ;;  %v8305_v11 = vmax.f32 %v7793_v60, 0.0  ;;  %v8052_v12 = vmax.f32 %v7540_v61, 0.0 }
 0x1de   : > { %6511 = vst.msk [vmem:[#allocation2 + $0x288] sm:$0xff] %vm226_vm3, %v5999_v56  ;;  %v1341_v9 = vld [vmem:[#allocation2 + $0x2b8] sm:$0xff]  ;;  %v7794_v13 = vadd.f32 %v16011_v47, %v7275_v7  ;;  %6767 = vst.msk [vmem:[#allocation2 + $0xa88] sm:$0xff] %vm226_vm3, %v6255_v1  ;;  %v1339_v15 = vld [vmem:[#allocation2 + $0x2a8] sm:$0xff]  ;;  %v12547_v17 = vpack.c.bf16 %v8307_v20, %v8307_v20  ;;  %v12289_v18 = vpack.c.bf16 %v8049_v4, %v8049_v4  ;;  %v8308_v21 = vmax.f32 %v7796_v5, 0.0  ;;  %v13074_v23 = vpop.f32.mrb[84].mxu0 }
 0x1df   : > { %v1597_v14 = vld [vmem:[#allocation2 + $0xab8] sm:$0xff]  ;;  %v13759_v16 = vld [vmem:[%s14005_s7 + $0x308] sm:$0xff]   ;;  %v8050_v22 = vmax.f32 %v7538_v6, 0.0  ;;  %10612 = vst.msk [vmem:[%s15302_s18 + $0x138] sm:$0xf] %vm10533_vm4, %v12291_v10  ;;  %v12545_v26 = vpack.c.bf16 %v8305_v11, %v8305_v11  ;;  %v12292_v27 = vpack.c.bf16 %v8052_v12, %v8052_v12  ;;  %v6004_v29 = vadd.f32 %v13074_v23, %v1340_v58  ;;  %v13330_v0 = vpop.f32.mrb[84].mxu1 }
 0x1e0   : > { %v1595_v24 = vld [vmem:[#allocation2 + $0xaa8] sm:$0xff]  ;;  %v8306_v28 = vmax.f32 %v7794_v13, 0.0  ;;  %v4207_v30 = vpop.f32.mrb[85].mxu0  ;;  %v13761_v31 = vld [vmem:[%s14005_s7 + $0x310] sm:$0xff]   ;;  %10868 = vst.msk [vmem:[%s15302_s18 + $0x538] sm:$0xf] %vm10533_vm4, %v12547_v17  ;;  %v12548_v32 = vpack.c.bf16 %v8308_v21, %v8308_v21  ;;  %v6260_v35 = vadd.f32 %v13330_v0, %v1596_v2  ;;  %13181 = vmatmul.mubr.msk.bf16.gmra.mrb[192].mxu0 %vm3061_vm2, %v13759_v16 }
 0x1e1   : > { %v13760_v25 = vld [vmem:[%s14005_s7 + $0x708] sm:$0xff]   ;;  %10610 = vst.msk [vmem:[%s15302_s18 + $0x130] sm:$0xf] %vm10533_vm4, %v12289_v18  ;;  %v12290_v33 = vpack.c.bf16 %v8050_v22, %v8050_v22  ;;  %v7024_v34 = vld [vmem:[#allocation2 + $0x290] sm:$0xff]  ;;  %v6002_v36 = vadd.f32 %v4207_v30, %v1338_v3  ;;  %v5231_v37 = vpop.f32.mrb[85].mxu1  ;;  %v13075_v38 = vpop.f32.mrb[86].mxu0  ;;  %13184 = vmatprep.mubr.msk.bf16.mxu0 %vm3061_vm2, %v13761_v31 }
 0x1e2   : > { %v13762_v39 = vld [vmem:[%s14005_s7 + $0x710] sm:$0xff]   ;;  %10866 = vst.msk [vmem:[%s15302_s18 + $0x530] sm:$0xf] %vm10533_vm4, %v12545_v26  ;;  %10613 = vst.msk [vmem:[%s15302_s18 + $0x13c] sm:$0xf] %vm10533_vm4, %v12292_v27  ;;  %v12546_v40 = vpack.c.bf16 %v8306_v28, %v8306_v28  ;;  %v7543_v41 = vadd.f32 %v16011_v47, %v7024_v34  ;;  %v7022_v43 = vld [vmem:[#allocation2 + $0x280] sm:$0xff]  ;;  %v6258_v44 = vadd.f32 %v5231_v37, %v1594_v8  ;;  %13437 = vmatmul.mubr.msk.bf16.gmra.mrb[192].mxu1 %vm3061_vm2, %v13760_v25 }
 0x1e3   : > { %v7280_v42 = vld [vmem:[#allocation2 + $0xa90] sm:$0xff]  ;;  %6516 = vst.msk [vmem:[#allocation2 + $0x2b0] sm:$0xff] %vm226_vm3, %v6004_v29  ;;  %v6005_v45 = vadd.f32 %v13075_v38, %v1341_v9  ;;  %v13331_v46 = vpop.f32.mrb[86].mxu1  ;;  %v4210_v48 = vpop.f32.mrb[87].mxu0  ;;  %v7541_v19 = vadd.f32 %v16011_v47, %v7022_v43  ;;  %v7278_v50 = vld [vmem:[#allocation2 + $0xa80] sm:$0xff]  ;;  %6772 = vst.msk [vmem:[#allocation2 + $0xab0] sm:$0xff] %vm226_vm3, %v6260_v35  ;;  %13440 = vmatprep.mubr.msk.bf16.mxu1 %vm3061_vm2, %v13762_v39 }
 0x1e4   : > { %10869 = vst.msk [vmem:[%s15302_s18 + $0x53c] sm:$0xf] %vm10533_vm4, %v12548_v32  ;;  %10611 = vst.msk [vmem:[%s15302_s18 + $0x134] sm:$0xf] %vm10533_vm4, %v12290_v33  ;;  %v7799_v49 = vadd.f32 %v16011_v47, %v7280_v42  ;;  %v7025_v51 = vld [vmem:[#allocation2 + $0x298] sm:$0xff]  ;;  %v6261_v52 = vadd.f32 %v13331_v46, %v1597_v14  ;;  %v6003_v53 = vadd.f32 %v4210_v48, %v1339_v15  ;;  %v5234_v54 = vpop.f32.mrb[87].mxu1 }
 0x1e5   : > { %6514 = vst.msk [vmem:[#allocation2 + $0x2a0] sm:$0xff] %vm226_vm3, %v6002_v36  ;;  %v1344_v55 = vld [vmem:[#allocation2 + $0x2d0] sm:$0xff]  ;;  %v8055_v56 = vmax.f32 %v7543_v41, 0.0  ;;  %v7797_v57 = vadd.f32 %v16011_v47, %v7278_v50  ;;  %v7544_v58 = vadd.f32 %v16011_v47, %v7025_v51  ;;  %v7281_v59 = vld [vmem:[#allocation2 + $0xa98] sm:$0xff]  ;;  %v7023_v60 = vld [vmem:[#allocation2 + $0x288] sm:$0xff]  ;;  %v6259_v61 = vadd.f32 %v5234_v54, %v1595_v24  ;;  %v13078_v15 = vpop.f32.mrb[88].mxu0 }
 0x1e6   : > { %10867 = vst.msk [vmem:[%s15302_s18 + $0x534] sm:$0xf] %vm10533_vm4, %v12546_v40  ;;  %v8311_v62 = vmax.f32 %v7799_v49, 0.0  ;;  %v8053_v63 = vmax.f32 %v7541_v19, 0.0  ;;  %v7800_v1 = vadd.f32 %v16011_v47, %v7281_v59  ;;  %v7542_v2 = vadd.f32 %v16011_v47, %v7023_v60  ;;  %v7279_v3 = vld [vmem:[#allocation2 + $0xa88] sm:$0xff]  ;;  %v1600_v20 = vld [vmem:[#allocation2 + $0xad0] sm:$0xff] }
 0x1e7   : > { %6770 = vst.msk [vmem:[#allocation2 + $0xaa0] sm:$0xff] %vm226_vm3, %v6258_v44  ;;  %6517 = vst.msk [vmem:[#allocation2 + $0x2b8] sm:$0xff] %vm226_vm3, %v6005_v45  ;;  %v12295_v4 = vpack.c.bf16 %v8055_v56, %v8055_v56  ;;  %v8309_v5 = vmax.f32 %v7797_v57, 0.0  ;;  %v8056_v6 = vmax.f32 %v7544_v58, 0.0  ;;  %v7798_v7 = vadd.f32 %v16011_v47, %v7279_v3  ;;  %v1342_v8 = vld [vmem:[#allocation2 + $0x2c0] sm:$0xff]  ;;  %v1345_v10 = vld [vmem:[#allocation2 + $0x2d8] sm:$0xff] }
 0x1e8   : > { %6773 = vst.msk [vmem:[#allocation2 + $0xab8] sm:$0xff] %vm226_vm3, %v6261_v52  ;;  %6515 = vst.msk [vmem:[#allocation2 + $0x2a8] sm:$0xff] %vm226_vm3, %v6003_v53  ;;  %v1598_v9 = vld [vmem:[#allocation2 + $0xac0] sm:$0xff]  ;;  %v12551_v11 = vpack.c.bf16 %v8311_v62, %v8311_v62  ;;  %v12293_v12 = vpack.c.bf16 %v8053_v63, %v8053_v63  ;;  %v8312_v13 = vmax.f32 %v7800_v1, 0.0  ;;  %v8054_v14 = vmax.f32 %v7542_v2, 0.0  ;;  %v1601_v16 = vld [vmem:[#allocation2 + $0xad8] sm:$0xff] }
 0x1e9   : > { %6771 = vst.msk [vmem:[#allocation2 + $0xaa8] sm:$0xff] %vm226_vm3, %v6259_v61  ;;  %v1343_v17 = vld [vmem:[#allocation2 + $0x2c8] sm:$0xff]  ;;  %v12549_v21 = vpack.c.bf16 %v8309_v5, %v8309_v5  ;;  %v12296_v22 = vpack.c.bf16 %v8056_v6, %v8056_v6  ;;  %v8310_v23 = vmax.f32 %v7798_v7, 0.0  ;;  %v6008_v24 = vadd.f32 %v13078_v15, %v1344_v55  ;;  %v13334_v25 = vpop.f32.mrb[88].mxu1  ;;  %v4223_v26 = vpop.f32.mrb[89].mxu0  ;;  %v13763_v27 = vld [vmem:[%s14005_s7 + $0x318] sm:$0xff]  }
 0x1ea   : > { %v1599_v18 = vld [vmem:[#allocation2 + $0xac8] sm:$0xff]  ;;  %10616 = vst.msk [vmem:[%s15302_s18 + $0x148] sm:$0xf] %vm10533_vm4, %v12295_v4  ;;  %v13764_v28 = vld [vmem:[%s14005_s7 + $0x718] sm:$0xff]   ;;  %v13765_v29 = vld [vmem:[%s14005_s7 + $0x320] sm:$0xff]   ;;  %v12552_v0 = vpack.c.bf16 %v8312_v13, %v8312_v13  ;;  %v12294_v30 = vpack.c.bf16 %v8054_v14, %v8054_v14  ;;  %v6264_v32 = vadd.f32 %v13334_v25, %v1600_v20  ;;  %v6006_v33 = vadd.f32 %v4223_v26, %v1342_v8  ;;  %v5247_v34 = vpop.f32.mrb[89].mxu1 }
 0x1eb   : > { %10872 = vst.msk [vmem:[%s15302_s18 + $0x548] sm:$0xf] %vm10533_vm4, %v12551_v11  ;;  %10614 = vst.msk [vmem:[%s15302_s18 + $0x140] sm:$0xf] %vm10533_vm4, %v12293_v12  ;;  %v7028_v31 = vld [vmem:[#allocation2 + $0x2b0] sm:$0xff]  ;;  %v13079_v35 = vpop.f32.mrb[90].mxu0  ;;  %v12550_v37 = vpack.c.bf16 %v8310_v23, %v8310_v23  ;;  %v6262_v41 = vadd.f32 %v5247_v34, %v1598_v9  ;;  %13185 = vmatmul.mubr.msk.bf16.gmra.mrb[196].mxu0 %vm3061_vm2, %v13763_v27  ;;  %13441 = vmatmul.mubr.msk.bf16.gmra.mrb[196].mxu1 %vm3061_vm2, %v13764_v28 }
 0x1ec   : > { %v13766_v36 = vld [vmem:[%s14005_s7 + $0x720] sm:$0xff]   ;;  %10870 = vst.msk [vmem:[%s15302_s18 + $0x540] sm:$0xf] %vm10533_vm4, %v12549_v21  ;;  %10617 = vst.msk [vmem:[%s15302_s18 + $0x14c] sm:$0xf] %vm10533_vm4, %v12296_v22  ;;  %v7547_v38 = vadd.f32 %v16011_v47, %v7028_v31  ;;  %v7284_v39 = vld [vmem:[#allocation2 + $0xab0] sm:$0xff]  ;;  %v6009_v42 = vadd.f32 %v13079_v35, %v1345_v10  ;;  %13188 = vmatprep.mubr.msk.bf16.mxu0 %vm3061_vm2, %v13765_v29 }
 0x1ed   : > { %v7026_v40 = vld [vmem:[#allocation2 + $0x2a0] sm:$0xff]  ;;  %6520 = vst.msk [vmem:[#allocation2 + $0x2d0] sm:$0xff] %vm226_vm3, %v6008_v24  ;;  %v13335_v43 = vpop.f32.mrb[90].mxu1  ;;  %v4226_v44 = vpop.f32.mrb[91].mxu0  ;;  %v7803_v45 = vadd.f32 %v16011_v47, %v7284_v39  ;;  %6776 = vst.msk [vmem:[#allocation2 + $0xad0] sm:$0xff] %vm226_vm3, %v6264_v32  ;;  %v1348_v52 = vld [vmem:[#allocation2 + $0x2f0] sm:$0xff]  ;;  %13444 = vmatprep.mubr.msk.bf16.mxu1 %vm3061_vm2, %v13766_v36 }
 0x1ee   : > { %10873 = vst.msk [vmem:[%s15302_s18 + $0x54c] sm:$0xf] %vm10533_vm4, %v12552_v0  ;;  %10615 = vst.msk [vmem:[%s15302_s18 + $0x144] sm:$0xf] %vm10533_vm4, %v12294_v30  ;;  %v7545_v46 = vadd.f32 %v16011_v47, %v7026_v40  ;;  %v7282_v48 = vld [vmem:[#allocation2 + $0xaa0] sm:$0xff]  ;;  %v7029_v49 = vld [vmem:[#allocation2 + $0x2b8] sm:$0xff]  ;;  %v6265_v19 = vadd.f32 %v13335_v43, %v1601_v16  ;;  %v6007_v50 = vadd.f32 %v4226_v44, %v1343_v17 }
 0x1ef   : > { %6518 = vst.msk [vmem:[#allocation2 + $0x2c0] sm:$0xff] %vm226_vm3, %v6006_v33  ;;  %v5250_v51 = vpop.f32.mrb[91].mxu1  ;;  %v8059_v53 = vmax.f32 %v7547_v38, 0.0  ;;  %v7801_v54 = vadd.f32 %v16011_v47, %v7282_v48  ;;  %v7548_v55 = vadd.f32 %v16011_v47, %v7029_v49  ;;  %v7285_v56 = vld [vmem:[#allocation2 + $0xab8] sm:$0xff]  ;;  %v7027_v57 = vld [vmem:[#allocation2 + $0x2a8] sm:$0xff]  ;;  %6774 = vst.msk [vmem:[#allocation2 + $0xac0] sm:$0xff] %vm226_vm3, %v6262_v41 }
 0x1f0   : > { %10871 = vst.msk [vmem:[%s15302_s18 + $0x544] sm:$0xf] %vm10533_vm4, %v12550_v37  ;;  %v6263_v58 = vadd.f32 %v5250_v51, %v1599_v18  ;;  %v1604_v59 = vld [vmem:[#allocation2 + $0xaf0] sm:$0xff]  ;;  %v1346_v60 = vld [vmem:[#allocation2 + $0x2e0] sm:$0xff]  ;;  %v8315_v61 = vmax.f32 %v7803_v45, 0.0  ;;  %v8057_v62 = vmax.f32 %v7545_v46, 0.0  ;;  %v7804_v63 = vadd.f32 %v16011_v47, %v7285_v56 }
 0x1f1   : > { %6521 = vst.msk [vmem:[#allocation2 + $0x2d8] sm:$0xff] %vm226_vm3, %v6009_v42  ;;  %v7546_v1 = vadd.f32 %v16011_v47, %v7027_v57  ;;  %v7283_v2 = vld [vmem:[#allocation2 + $0xaa8] sm:$0xff]  ;;  %6777 = vst.msk [vmem:[#allocation2 + $0xad8] sm:$0xff] %vm226_vm3, %v6265_v19  ;;  %v1602_v3 = vld [vmem:[#allocation2 + $0xae0] sm:$0xff]  ;;  %v12299_v4 = vpack.c.bf16 %v8059_v53, %v8059_v53  ;;  %v8313_v5 = vmax.f32 %v7801_v54, 0.0  ;;  %v8060_v6 = vmax.f32 %v7548_v55, 0.0 }
 0x1f2   : > { %6519 = vst.msk [vmem:[#allocation2 + $0x2c8] sm:$0xff] %vm226_vm3, %v6007_v50  ;;  %v1349_v20 = vld [vmem:[#allocation2 + $0x2f8] sm:$0xff]  ;;  %v7802_v7 = vadd.f32 %v16011_v47, %v7283_v2  ;;  %6775 = vst.msk [vmem:[#allocation2 + $0xac8] sm:$0xff] %vm226_vm3, %v6263_v58  ;;  %v12555_v8 = vpack.c.bf16 %v8315_v61, %v8315_v61  ;;  %v12297_v9 = vpack.c.bf16 %v8057_v62, %v8057_v62  ;;  %v8316_v10 = vmax.f32 %v7804_v63, 0.0  ;;  %v13082_v12 = vpop.f32.mrb[92].mxu0  ;;  %v13338_v18 = vpop.f32.mrb[92].mxu1 }
 0x1f3   : > { %v8058_v11 = vmax.f32 %v7546_v1, 0.0  ;;  %v1605_v13 = vld [vmem:[#allocation2 + $0xaf8] sm:$0xff]  ;;  %10620 = vst.msk [vmem:[%s15302_s18 + $0x158] sm:$0xf] %vm10533_vm4, %v12299_v4  ;;  %v12553_v14 = vpack.c.bf16 %v8313_v5, %v8313_v5  ;;  %v12300_v15 = vpack.c.bf16 %v8060_v6, %v8060_v6  ;;  %v6012_v17 = vadd.f32 %v13082_v12, %v1348_v52  ;;  %v4239_v21 = vpop.f32.mrb[93].mxu0  ;;  %v1347_v22 = vld [vmem:[#allocation2 + $0x2e8] sm:$0xff] }
 0x1f4   : > { %v8314_v16 = vmax.f32 %v7802_v7, 0.0  ;;  %v1603_v23 = vld [vmem:[#allocation2 + $0xae8] sm:$0xff]  ;;  %10876 = vst.msk [vmem:[%s15302_s18 + $0x558] sm:$0xf] %vm10533_vm4, %v12555_v8  ;;  %10618 = vst.msk [vmem:[%s15302_s18 + $0x150] sm:$0xf] %vm10533_vm4, %v12297_v9  ;;  %v12556_v25 = vpack.c.bf16 %v8316_v10, %v8316_v10  ;;  %v6268_v28 = vadd.f32 %v13338_v18, %v1604_v59  ;;  %v6010_v29 = vadd.f32 %v4239_v21, %v1346_v60 }
 0x1f5   : > { %v13767_v24 = vld [vmem:[%s14005_s7 + $0x328] sm:$0xff]   ;;  %v12298_v26 = vpack.c.bf16 %v8058_v11, %v8058_v11  ;;  %v7032_v27 = vld [vmem:[#allocation2 + $0x2d0] sm:$0xff]  ;;  %v5263_v0 = vpop.f32.mrb[93].mxu1  ;;  %v13083_v30 = vpop.f32.mrb[94].mxu0  ;;  %10874 = vst.msk [vmem:[%s15302_s18 + $0x550] sm:$0xf] %vm10533_vm4, %v12553_v14 }
 0x1f6   : > { %v13768_v31 = vld [vmem:[%s14005_s7 + $0x728] sm:$0xff]   ;;  %v13769_v32 = vld [vmem:[%s14005_s7 + $0x330] sm:$0xff]   ;;  %10621 = vst.msk [vmem:[%s15302_s18 + $0x15c] sm:$0xf] %vm10533_vm4, %v12300_v15  ;;  %v12554_v33 = vpack.c.bf16 %v8314_v16, %v8314_v16  ;;  %v7551_v34 = vadd.f32 %v16011_v47, %v7032_v27  ;;  %v7030_v36 = vld [vmem:[#allocation2 + $0x2c0] sm:$0xff]  ;;  %v6266_v37 = vadd.f32 %v5263_v0, %v1602_v3  ;;  %v6013_v38 = vadd.f32 %v13083_v30, %v1349_v20  ;;  %v13339_v39 = vpop.f32.mrb[94].mxu1 }
 0x1f7   : > { %v7288_v35 = vld [vmem:[#allocation2 + $0xad0] sm:$0xff]  ;;  %6524 = vst.msk [vmem:[#allocation2 + $0x2f0] sm:$0xff] %vm226_vm3, %v6012_v17  ;;  %v4242_v40 = vpop.f32.mrb[95].mxu0  ;;  %v7549_v43 = vadd.f32 %v16011_v47, %v7030_v36  ;;  %v7286_v44 = vld [vmem:[#allocation2 + $0xac0] sm:$0xff]  ;;  %6780 = vst.msk [vmem:[#allocation2 + $0xaf0] sm:$0xff] %vm226_vm3, %v6268_v28  ;;  %v6269_v46 = vadd.f32 %v13339_v39, %v1605_v13  ;;  %v5266_v49 = vpop.f32.mrb[95].mxu1  ;;  %13189 = vmatmul.mubr.msk.bf16.gmra.mrb[200].mxu0 %vm3061_vm2, %v13767_v24  ;;  %13445 = vmatmul.mubr.msk.bf16.gmra.mrb[200].mxu1 %vm3061_vm2, %v13768_v31 }
 0x1f8   : > { %v13770_v41 = vld [vmem:[%s14005_s7 + $0x730] sm:$0xff]   ;;  %10877 = vst.msk [vmem:[%s15302_s18 + $0x55c] sm:$0xf] %vm10533_vm4, %v12556_v25  ;;  %10619 = vst.msk [vmem:[%s15302_s18 + $0x154] sm:$0xf] %vm10533_vm4, %v12298_v26  ;;  %v7807_v42 = vadd.f32 %v16011_v47, %v7288_v35  ;;  %v7033_v45 = vld [vmem:[#allocation2 + $0x2d8] sm:$0xff]  ;;  %v6011_v48 = vadd.f32 %v4242_v40, %v1347_v22  ;;  %v7805_v51 = vadd.f32 %v16011_v47, %v7286_v44  ;;  %13192 = vmatprep.mubr.msk.bf16.mxu0 %vm3061_vm2, %v13769_v32 }
 0x1f9   : > { %6522 = vst.msk [vmem:[#allocation2 + $0x2e0] sm:$0xff] %vm226_vm3, %v6010_v29  ;;  %v1352_v19 = vld [vmem:[#allocation2 + $0x310] sm:$0xff]  ;;  %v8063_v50 = vmax.f32 %v7551_v34, 0.0  ;;  %v7552_v52 = vadd.f32 %v16011_v47, %v7033_v45  ;;  %v7289_v53 = vld [vmem:[#allocation2 + $0xad8] sm:$0xff]  ;;  %v7031_v54 = vld [vmem:[#allocation2 + $0x2c8] sm:$0xff]  ;;  %v6267_v55 = vadd.f32 %v5266_v49, %v1603_v23  ;;  %v8061_v59 = vmax.f32 %v7549_v43, 0.0  ;;  %13448 = vmatprep.mubr.msk.bf16.mxu1 %vm3061_vm2, %v13770_v41 }
 0x1fa   : > { %10875 = vst.msk [vmem:[%s15302_s18 + $0x554] sm:$0xf] %vm10533_vm4, %v12554_v33  ;;  %v1608_v56 = vld [vmem:[#allocation2 + $0xb10] sm:$0xff]  ;;  %v1350_v57 = vld [vmem:[#allocation2 + $0x300] sm:$0xff]  ;;  %v8319_v58 = vmax.f32 %v7807_v42, 0.0  ;;  %v7808_v60 = vadd.f32 %v16011_v47, %v7289_v53  ;;  %v7550_v61 = vadd.f32 %v16011_v47, %v7031_v54  ;;  %v7287_v62 = vld [vmem:[#allocation2 + $0xac8] sm:$0xff] }
 0x1fb   : > { %6778 = vst.msk [vmem:[#allocation2 + $0xae0] sm:$0xff] %vm226_vm3, %v6266_v37  ;;  %6525 = vst.msk [vmem:[#allocation2 + $0x2f8] sm:$0xff] %vm226_vm3, %v6013_v38  ;;  %v1606_v63 = vld [vmem:[#allocation2 + $0xb00] sm:$0xff]  ;;  %v1353_v1 = vld [vmem:[#allocation2 + $0x318] sm:$0xff]  ;;  %v12303_v2 = vpack.c.bf16 %v8063_v50, %v8063_v50  ;;  %v8317_v3 = vmax.f32 %v7805_v51, 0.0  ;;  %v8064_v20 = vmax.f32 %v7552_v52, 0.0  ;;  %v7806_v4 = vadd.f32 %v16011_v47, %v7287_v62 }
 0x1fc   : > { %6781 = vst.msk [vmem:[#allocation2 + $0xaf8] sm:$0xff] %vm226_vm3, %v6269_v46  ;;  %6523 = vst.msk [vmem:[#allocation2 + $0x2e8] sm:$0xff] %vm226_vm3, %v6011_v48  ;;  %v1609_v5 = vld [vmem:[#allocation2 + $0xb18] sm:$0xff]  ;;  %v1351_v6 = vld [vmem:[#allocation2 + $0x308] sm:$0xff]  ;;  %v12559_v8 = vpack.c.bf16 %v8319_v58, %v8319_v58  ;;  %v12301_v9 = vpack.c.bf16 %v8061_v59, %v8061_v59  ;;  %v8320_v10 = vmax.f32 %v7808_v60, 0.0  ;;  %v8062_v11 = vmax.f32 %v7550_v61, 0.0 }
 0x1fd   : > { %6779 = vst.msk [vmem:[#allocation2 + $0xae8] sm:$0xff] %vm226_vm3, %v6267_v55  ;;  %v13771_v7 = vld [vmem:[%s14005_s7 + $0x338] sm:$0xff]   ;;  %v13086_v12 = vpop.f32.mrb[96].mxu0  ;;  %v1607_v13 = vld [vmem:[#allocation2 + $0xb08] sm:$0xff]  ;;  %v12557_v15 = vpack.c.bf16 %v8317_v3, %v8317_v3  ;;  %v12304_v16 = vpack.c.bf16 %v8064_v20, %v8064_v20  ;;  %v8318_v17 = vmax.f32 %v7806_v4, 0.0  ;;  %v13342_v21 = vpop.f32.mrb[96].mxu1 }
 0x1fe   : > { %v13772_v14 = vld [vmem:[%s14005_s7 + $0x738] sm:$0xff]   ;;  %10624 = vst.msk [vmem:[%s15302_s18 + $0x168] sm:$0xf] %vm10533_vm4, %v12303_v2  ;;  %v6016_v18 = vadd.f32 %v13086_v12, %v1352_v19  ;;  %v4255_v22 = vpop.f32.mrb[97].mxu0  ;;  %v13773_v23 = vld [vmem:[%s14005_s7 + $0x340] sm:$0xff]   ;;  %v12560_v24 = vpack.c.bf16 %v8320_v10, %v8320_v10  ;;  %v12302_v25 = vpack.c.bf16 %v8062_v11, %v8062_v11  ;;  %v7036_v26 = vld [vmem:[#allocation2 + $0x2f0] sm:$0xff]  ;;  %v6272_v27 = vadd.f32 %v13342_v21, %v1608_v56 }
 0x1ff   : > { %10880 = vst.msk [vmem:[%s15302_s18 + $0x568] sm:$0xf] %vm10533_vm4, %v12559_v8  ;;  %10622 = vst.msk [vmem:[%s15302_s18 + $0x160] sm:$0xf] %vm10533_vm4, %v12301_v9  ;;  %v6014_v28 = vadd.f32 %v4255_v22, %v1350_v57  ;;  %v5279_v29 = vpop.f32.mrb[97].mxu1  ;;  %v13087_v0 = vpop.f32.mrb[98].mxu0  ;;  %v12558_v31 = vpack.c.bf16 %v8318_v17, %v8318_v17  ;;  %v7555_v32 = vadd.f32 %v16011_v47, %v7036_v26  ;;  %13193 = vmatmul.mubr.msk.bf16.gmra.mrb[204].mxu0 %vm3061_vm2, %v13771_v7 }
 0x200   : > { %v13774_v30 = vld [vmem:[%s14005_s7 + $0x740] sm:$0xff]   ;;  %10878 = vst.msk [vmem:[%s15302_s18 + $0x560] sm:$0xf] %vm10533_vm4, %v12557_v15  ;;  %10625 = vst.msk [vmem:[%s15302_s18 + $0x16c] sm:$0xf] %vm10533_vm4, %v12304_v16  ;;  %v7292_v33 = vld [vmem:[#allocation2 + $0xaf0] sm:$0xff]  ;;  %v6270_v35 = vadd.f32 %v5279_v29, %v1606_v63  ;;  %v6017_v36 = vadd.f32 %v13087_v0, %v1353_v1  ;;  %13449 = vmatmul.mubr.msk.bf16.gmra.mrb[204].mxu1 %vm3061_vm2, %v13772_v14  ;;  %13196 = vmatprep.mubr.msk.bf16.mxu0 %vm3061_vm2, %v13773_v23 }
 0x201   : > { %v7034_v34 = vld [vmem:[#allocation2 + $0x2e0] sm:$0xff]  ;;  %6528 = vst.msk [vmem:[#allocation2 + $0x310] sm:$0xff] %vm226_vm3, %v6016_v18  ;;  %v13343_v37 = vpop.f32.mrb[98].mxu1  ;;  %v4258_v38 = vpop.f32.mrb[99].mxu0  ;;  %v7811_v39 = vadd.f32 %v16011_v47, %v7292_v33  ;;  %6784 = vst.msk [vmem:[#allocation2 + $0xb10] sm:$0xff] %vm226_vm3, %v6272_v27  ;;  %v1356_v46 = vld [vmem:[#allocation2 + $0x330] sm:$0xff]  ;;  %13452 = vmatprep.mubr.msk.bf16.mxu1 %vm3061_vm2, %v13774_v30 }
 0x202   : > { %10881 = vst.msk [vmem:[%s15302_s18 + $0x56c] sm:$0xf] %vm10533_vm4, %v12560_v24  ;;  %10623 = vst.msk [vmem:[%s15302_s18 + $0x164] sm:$0xf] %vm10533_vm4, %v12302_v25  ;;  %v7553_v40 = vadd.f32 %v16011_v47, %v7034_v34  ;;  %v7290_v41 = vld [vmem:[#allocation2 + $0xae0] sm:$0xff]  ;;  %v7037_v42 = vld [vmem:[#allocation2 + $0x2f8] sm:$0xff]  ;;  %v6273_v43 = vadd.f32 %v13343_v37, %v1609_v5  ;;  %v6015_v44 = vadd.f32 %v4258_v38, %v1351_v6 }
 0x203   : > { %6526 = vst.msk [vmem:[#allocation2 + $0x300] sm:$0xff] %vm226_vm3, %v6014_v28  ;;  %v5282_v45 = vpop.f32.mrb[99].mxu1  ;;  %v8067_v48 = vmax.f32 %v7555_v32, 0.0  ;;  %v7809_v49 = vadd.f32 %v16011_v47, %v7290_v41  ;;  %v7556_v19 = vadd.f32 %v16011_v47, %v7037_v42  ;;  %v7293_v50 = vld [vmem:[#allocation2 + $0xaf8] sm:$0xff]  ;;  %v7035_v51 = vld [vmem:[#allocation2 + $0x2e8] sm:$0xff]  ;;  %6782 = vst.msk [vmem:[#allocation2 + $0xb00] sm:$0xff] %vm226_vm3, %v6270_v35 }
 0x204   : > { %10879 = vst.msk [vmem:[%s15302_s18 + $0x564] sm:$0xf] %vm10533_vm4, %v12558_v31  ;;  %v6271_v52 = vadd.f32 %v5282_v45, %v1607_v13  ;;  %v1612_v53 = vld [vmem:[#allocation2 + $0xb30] sm:$0xff]  ;;  %v8323_v54 = vmax.f32 %v7811_v39, 0.0  ;;  %v8065_v55 = vmax.f32 %v7553_v40, 0.0  ;;  %v7812_v56 = vadd.f32 %v16011_v47, %v7293_v50  ;;  %v7291_v58 = vld [vmem:[#allocation2 + $0xae8] sm:$0xff] }
 0x205   : > { %6529 = vst.msk [vmem:[#allocation2 + $0x318] sm:$0xff] %vm226_vm3, %v6017_v36  ;;  %v7554_v57 = vadd.f32 %v16011_v47, %v7035_v51  ;;  %6785 = vst.msk [vmem:[#allocation2 + $0xb18] sm:$0xff] %vm226_vm3, %v6273_v43  ;;  %v1354_v59 = vld [vmem:[#allocation2 + $0x320] sm:$0xff]  ;;  %v12307_v61 = vpack.c.bf16 %v8067_v48, %v8067_v48  ;;  %v8321_v62 = vmax.f32 %v7809_v49, 0.0  ;;  %v8068_v63 = vmax.f32 %v7556_v19, 0.0  ;;  %v1357_v2 = vld [vmem:[#allocation2 + $0x338] sm:$0xff] }
 0x206   : > { %6527 = vst.msk [vmem:[#allocation2 + $0x308] sm:$0xff] %vm226_vm3, %v6015_v44  ;;  %v1610_v60 = vld [vmem:[#allocation2 + $0xb20] sm:$0xff]  ;;  %v7810_v1 = vadd.f32 %v16011_v47, %v7291_v58  ;;  %6783 = vst.msk [vmem:[#allocation2 + $0xb08] sm:$0xff] %vm226_vm3, %v6271_v52  ;;  %v1613_v3 = vld [vmem:[#allocation2 + $0xb38] sm:$0xff]  ;;  %v12563_v4 = vpack.c.bf16 %v8323_v54, %v8323_v54  ;;  %v12305_v5 = vpack.c.bf16 %v8065_v55, %v8065_v55  ;;  %v8324_v6 = vmax.f32 %v7812_v56, 0.0  ;;  %v13090_v8 = vpop.f32.mrb[100].mxu0 }
 0x207   : > { %v1355_v20 = vld [vmem:[#allocation2 + $0x328] sm:$0xff]  ;;  %v8066_v7 = vmax.f32 %v7554_v57, 0.0  ;;  %10628 = vst.msk [vmem:[%s15302_s18 + $0x178] sm:$0xf] %vm10533_vm4, %v12307_v61  ;;  %v12561_v47 = vpack.c.bf16 %v8321_v62, %v8321_v62  ;;  %v12308_v12 = vpack.c.bf16 %v8068_v63, %v8068_v63  ;;  %v6020_v14 = vadd.f32 %v13090_v8, %v1356_v46  ;;  %v13346_v15 = vpop.f32.mrb[100].mxu1  ;;  %v4271_v16 = vpop.f32.mrb[101].mxu0 }
 0x208   : > { %v1611_v9 = vld [vmem:[#allocation2 + $0xb28] sm:$0xff]  ;;  %v8322_v13 = vmax.f32 %v7810_v1, 0.0  ;;  %v13777_v17 = vld [vmem:[%s14005_s7 + $0x350] sm:$0xff]   ;;  %10884 = vst.msk [vmem:[%s15302_s18 + $0x578] sm:$0xf] %vm10533_vm4, %v12563_v4  ;;  %v12564_v18 = vpack.c.bf16 %v8324_v6, %v8324_v6  ;;  %v6276_v23 = vadd.f32 %v13346_v15, %v1612_v53  ;;  %v6018_v24 = vadd.f32 %v4271_v16, %v1354_v59  ;;  %v5295_v25 = vpop.f32.mrb[101].mxu1 }
 0x209   : > { %v13775_v10 = vld [vmem:[%s14005_s7 + $0x348] sm:$0xff]   ;;  %10626 = vst.msk [vmem:[%s15302_s18 + $0x170] sm:$0xf] %vm10533_vm4, %v12305_v5  ;;  %v12306_v21 = vpack.c.bf16 %v8066_v7, %v8066_v7  ;;  %v7040_v22 = vld [vmem:[#allocation2 + $0x310] sm:$0xff]  ;;  %v13091_v26 = vpop.f32.mrb[102].mxu0  ;;  %v6274_v32 = vadd.f32 %v5295_v25, %v1610_v60  ;;  %v13347_v34 = vpop.f32.mrb[102].mxu1 }
 0x20a   : > { %v13776_v11 = vld [vmem:[%s14005_s7 + $0x748] sm:$0xff]   ;;  %v13778_v27 = vld [vmem:[%s14005_s7 + $0x750] sm:$0xff]   ;;  %10882 = vst.msk [vmem:[%s15302_s18 + $0x570] sm:$0xf] %vm10533_vm4, %v12561_v47  ;;  %10629 = vst.msk [vmem:[%s15302_s18 + $0x17c] sm:$0xf] %vm10533_vm4, %v12308_v12  ;;  %v12562_v28 = vpack.c.bf16 %v8322_v13, %v8322_v13  ;;  %v6021_v33 = vadd.f32 %v13091_v26, %v1357_v2  ;;  %v6277_v40 = vadd.f32 %v13347_v34, %v1613_v3  ;;  %13197 = vmatmul.mubr.msk.bf16.gmra.mrb[208].mxu0 %vm3061_vm2, %v13775_v10 }
 0x20b   : > { %v16256_v29 = vld [vmem:[%s17708_s2] ss:$0 sm:$0xff]  ;;  %v7296_v30 = vld [vmem:[#allocation2 + $0xb10] sm:$0xff]  ;;  %6532 = vst.msk [vmem:[#allocation2 + $0x330] sm:$0xff] %vm226_vm3, %v6020_v14  ;;  %v4274_v35 = vpop.f32.mrb[103].mxu0  ;;  %6788 = vst.msk [vmem:[#allocation2 + $0xb30] sm:$0xff] %vm226_vm3, %v6276_v23  ;;  %13453 = vmatmul.mubr.msk.bf16.gmra.mrb[208].mxu1 %vm3061_vm2, %v13776_v11  ;;  %13200 = vmatprep.mubr.msk.bf16.mxu0 %vm3061_vm2, %v13777_v17 }
 0x20c   : > { %v7559_v0 = vadd.f32 %v16256_v29, %v7040_v22  ;;  %v7038_v31 = vld [vmem:[#allocation2 + $0x300] sm:$0xff]  ;;  %10885 = vst.msk [vmem:[%s15302_s18 + $0x57c] sm:$0xf] %vm10533_vm4, %v12564_v18  ;;  %10627 = vst.msk [vmem:[%s15302_s18 + $0x174] sm:$0xf] %vm10533_vm4, %v12306_v21  ;;  %v7815_v36 = vadd.f32 %v16256_v29, %v7296_v30  ;;  %v7041_v39 = vld [vmem:[#allocation2 + $0x318] sm:$0xff]  ;;  %v6019_v41 = vadd.f32 %v4274_v35, %v1355_v20  ;;  %13456 = vmatprep.mubr.msk.bf16.mxu1 %vm3061_vm2, %v13778_v27 }
 0x20d   : > { %v7557_v37 = vadd.f32 %v16256_v29, %v7038_v31  ;;  %v7294_v38 = vld [vmem:[#allocation2 + $0xb00] sm:$0xff]  ;;  %6530 = vst.msk [vmem:[#allocation2 + $0x320] sm:$0xff] %vm226_vm3, %v6018_v24  ;;  %v5298_v42 = vpop.f32.mrb[103].mxu1  ;;  %v1360_v43 = vld [vmem:[#allocation2 + $0x350] sm:$0xff]  ;;  %v7560_v46 = vadd.f32 %v16256_v29, %v7041_v39  ;;  %v7297_v48 = vld [vmem:[#allocation2 + $0xb18] sm:$0xff]  ;;  %v13094_v3 = vpop.f32.mrb[104].mxu0 }
 0x20e   : > { %10883 = vst.msk [vmem:[%s15302_s18 + $0x574] sm:$0xf] %vm10533_vm4, %v12562_v28  ;;  %v8071_v44 = vmax.f32 %v7559_v0, 0.0  ;;  %v7813_v45 = vadd.f32 %v16256_v29, %v7294_v38  ;;  %v7039_v49 = vld [vmem:[#allocation2 + $0x308] sm:$0xff]  ;;  %v6275_v19 = vadd.f32 %v5298_v42, %v1611_v9  ;;  %v1616_v50 = vld [vmem:[#allocation2 + $0xb50] sm:$0xff]  ;;  %v1358_v51 = vld [vmem:[#allocation2 + $0x340] sm:$0xff]  ;;  %v7816_v54 = vadd.f32 %v16256_v29, %v7297_v48 }
 0x20f   : > { %6786 = vst.msk [vmem:[#allocation2 + $0xb20] sm:$0xff] %vm226_vm3, %v6274_v32  ;;  %6533 = vst.msk [vmem:[#allocation2 + $0x338] sm:$0xff] %vm226_vm3, %v6021_v33  ;;  %v8327_v52 = vmax.f32 %v7815_v36, 0.0  ;;  %v8069_v53 = vmax.f32 %v7557_v37, 0.0  ;;  %v7558_v55 = vadd.f32 %v16256_v29, %v7039_v49  ;;  %v7295_v56 = vld [vmem:[#allocation2 + $0xb08] sm:$0xff]  ;;  %v1614_v57 = vld [vmem:[#allocation2 + $0xb40] sm:$0xff]  ;;  %v6024_v9 = vadd.f32 %v13094_v3, %v1360_v43 }
 0x210   : > { %6789 = vst.msk [vmem:[#allocation2 + $0xb38] sm:$0xff] %vm226_vm3, %v6277_v40  ;;  %6531 = vst.msk [vmem:[#allocation2 + $0x328] sm:$0xff] %vm226_vm3, %v6019_v41  ;;  %v12311_v58 = vpack.c.bf16 %v8071_v44, %v8071_v44  ;;  %v8325_v59 = vmax.f32 %v7813_v45, 0.0  ;;  %v8072_v60 = vmax.f32 %v7560_v46, 0.0  ;;  %v7814_v61 = vadd.f32 %v16256_v29, %v7295_v56  ;;  %v1361_v20 = vld [vmem:[#allocation2 + $0x358] sm:$0xff]  ;;  %v1359_v5 = vld [vmem:[#allocation2 + $0x348] sm:$0xff] }
 0x211   : > { %6787 = vst.msk [vmem:[#allocation2 + $0xb28] sm:$0xff] %vm226_vm3, %v6275_v19  ;;  %v12567_v62 = vpack.c.bf16 %v8327_v52, %v8327_v52  ;;  %v12309_v63 = vpack.c.bf16 %v8069_v53, %v8069_v53  ;;  %v8328_v1 = vmax.f32 %v7816_v54, 0.0  ;;  %v8070_v2 = vmax.f32 %v7558_v55, 0.0  ;;  %v1617_v4 = vld [vmem:[#allocation2 + $0xb58] sm:$0xff]  ;;  %v13350_v10 = vpop.f32.mrb[104].mxu1  ;;  %v4287_v11 = vpop.f32.mrb[105].mxu0 }
 0x212   : > { %10632 = vst.msk [vmem:[%s15302_s18 + $0x188] sm:$0xf] %vm10533_vm4, %v12311_v58  ;;  %v12565_v6 = vpack.c.bf16 %v8325_v59, %v8325_v59  ;;  %v12312_v7 = vpack.c.bf16 %v8072_v60, %v8072_v60  ;;  %v8326_v8 = vmax.f32 %v7814_v61, 0.0  ;;  %v1615_v47 = vld [vmem:[#allocation2 + $0xb48] sm:$0xff]  ;;  %v13779_v12 = vld [vmem:[%s14005_s7 + $0x358] sm:$0xff]   ;;  %v7044_v16 = vld [vmem:[#allocation2 + $0x330] sm:$0xff]  ;;  %v6280_v17 = vadd.f32 %v13350_v10, %v1616_v50 }
 0x213   : > { %v13780_v13 = vld [vmem:[%s14005_s7 + $0x758] sm:$0xff]   ;;  %10888 = vst.msk [vmem:[%s15302_s18 + $0x588] sm:$0xf] %vm10533_vm4, %v12567_v62  ;;  %10630 = vst.msk [vmem:[%s15302_s18 + $0x180] sm:$0xf] %vm10533_vm4, %v12309_v63  ;;  %v12568_v14 = vpack.c.bf16 %v8328_v1, %v8328_v1  ;;  %v12310_v15 = vpack.c.bf16 %v8070_v2, %v8070_v2  ;;  %v6022_v18 = vadd.f32 %v4287_v11, %v1358_v51  ;;  %v5311_v21 = vpop.f32.mrb[105].mxu1  ;;  %13201 = vmatmul.mubr.msk.bf16.gmra.mrb[212].mxu0 %vm3061_vm2, %v13779_v12 }
 0x214   : > { %v13095_v22 = vpop.f32.mrb[106].mxu0  ;;  %v13781_v23 = vld [vmem:[%s14005_s7 + $0x360] sm:$0xff]   ;;  %10886 = vst.msk [vmem:[%s15302_s18 + $0x580] sm:$0xf] %vm10533_vm4, %v12565_v6  ;;  %10633 = vst.msk [vmem:[%s15302_s18 + $0x18c] sm:$0xf] %vm10533_vm4, %v12312_v7  ;;  %v12566_v25 = vpack.c.bf16 %v8326_v8, %v8326_v8  ;;  %v7563_v26 = vadd.f32 %v16256_v29, %v7044_v16  ;;  %v6278_v0 = vadd.f32 %v5311_v21, %v1614_v57  ;;  %13457 = vmatmul.mubr.msk.bf16.gmra.mrb[212].mxu1 %vm3061_vm2, %v13780_v13 }
 0x215   : > { %v13782_v24 = vld [vmem:[%s14005_s7 + $0x760] sm:$0xff]   ;;  %v7300_v27 = vld [vmem:[#allocation2 + $0xb30] sm:$0xff]  ;;  %6536 = vst.msk [vmem:[#allocation2 + $0x350] sm:$0xff] %vm226_vm3, %v6024_v9  ;;  %v6025_v30 = vadd.f32 %v13095_v22, %v1361_v20  ;;  %v13351_v31 = vpop.f32.mrb[106].mxu1  ;;  %v4290_v32 = vpop.f32.mrb[107].mxu0  ;;  %6792 = vst.msk [vmem:[#allocation2 + $0xb50] sm:$0xff] %vm226_vm3, %v6280_v17  ;;  %13204 = vmatprep.mubr.msk.bf16.mxu0 %vm3061_vm2, %v13781_v23 }
 0x216   : > { %v7042_v28 = vld [vmem:[#allocation2 + $0x320] sm:$0xff]  ;;  %10889 = vst.msk [vmem:[%s15302_s18 + $0x58c] sm:$0xf] %vm10533_vm4, %v12568_v14  ;;  %10631 = vst.msk [vmem:[%s15302_s18 + $0x184] sm:$0xf] %vm10533_vm4, %v12310_v15  ;;  %v7819_v33 = vadd.f32 %v16256_v29, %v7300_v27  ;;  %v7045_v36 = vld [vmem:[#allocation2 + $0x338] sm:$0xff]  ;;  %v6281_v37 = vadd.f32 %v13351_v31, %v1617_v4  ;;  %v6023_v38 = vadd.f32 %v4290_v32, %v1359_v5  ;;  %13460 = vmatprep.mubr.msk.bf16.mxu1 %vm3061_vm2, %v13782_v24 }
 0x217   : > { %v7561_v34 = vadd.f32 %v16256_v29, %v7042_v28  ;;  %v7298_v35 = vld [vmem:[#allocation2 + $0xb20] sm:$0xff]  ;;  %6534 = vst.msk [vmem:[#allocation2 + $0x340] sm:$0xff] %vm226_vm3, %v6022_v18  ;;  %v5314_v39 = vpop.f32.mrb[107].mxu1  ;;  %v1364_v40 = vld [vmem:[#allocation2 + $0x370] sm:$0xff]  ;;  %v8075_v41 = vmax.f32 %v7563_v26, 0.0  ;;  %v7564_v43 = vadd.f32 %v16256_v29, %v7045_v36  ;;  %v7301_v44 = vld [vmem:[#allocation2 + $0xb38] sm:$0xff] }
 0x218   : > { %10887 = vst.msk [vmem:[%s15302_s18 + $0x584] sm:$0xf] %vm10533_vm4, %v12566_v25  ;;  %v7817_v42 = vadd.f32 %v16256_v29, %v7298_v35  ;;  %v7043_v45 = vld [vmem:[#allocation2 + $0x328] sm:$0xff]  ;;  %v6279_v46 = vadd.f32 %v5314_v39, %v1615_v47  ;;  %v1620_v48 = vld [vmem:[#allocation2 + $0xb70] sm:$0xff]  ;;  %v1362_v49 = vld [vmem:[#allocation2 + $0x360] sm:$0xff]  ;;  %v8331_v19 = vmax.f32 %v7819_v33, 0.0  ;;  %v7820_v51 = vadd.f32 %v16256_v29, %v7301_v44 }
 0x219   : > { %6790 = vst.msk [vmem:[#allocation2 + $0xb40] sm:$0xff] %vm226_vm3, %v6278_v0  ;;  %6537 = vst.msk [vmem:[#allocation2 + $0x358] sm:$0xff] %vm226_vm3, %v6025_v30  ;;  %v8073_v50 = vmax.f32 %v7561_v34, 0.0  ;;  %v7562_v52 = vadd.f32 %v16256_v29, %v7043_v45  ;;  %v7299_v53 = vld [vmem:[#allocation2 + $0xb28] sm:$0xff]  ;;  %v1618_v54 = vld [vmem:[#allocation2 + $0xb60] sm:$0xff]  ;;  %v12315_v56 = vpack.c.bf16 %v8075_v41, %v8075_v41  ;;  %v8076_v58 = vmax.f32 %v7564_v43, 0.0 }
 0x21a   : > { %6793 = vst.msk [vmem:[#allocation2 + $0xb58] sm:$0xff] %vm226_vm3, %v6281_v37  ;;  %6535 = vst.msk [vmem:[#allocation2 + $0x348] sm:$0xff] %vm226_vm3, %v6023_v38  ;;  %v1365_v55 = vld [vmem:[#allocation2 + $0x378] sm:$0xff]  ;;  %v8329_v57 = vmax.f32 %v7817_v42, 0.0  ;;  %v7818_v59 = vadd.f32 %v16256_v29, %v7299_v53  ;;  %v1363_v61 = vld [vmem:[#allocation2 + $0x368] sm:$0xff]  ;;  %v12571_v62 = vpack.c.bf16 %v8331_v19, %v8331_v19  ;;  %v8332_v1 = vmax.f32 %v7820_v51, 0.0 }
 0x21b   : > { %6791 = vst.msk [vmem:[#allocation2 + $0xb48] sm:$0xff] %vm226_vm3, %v6279_v46  ;;  %v1621_v60 = vld [vmem:[#allocation2 + $0xb78] sm:$0xff]  ;;  %v12313_v63 = vpack.c.bf16 %v8073_v50, %v8073_v50  ;;  %v8074_v2 = vmax.f32 %v7562_v52, 0.0  ;;  %v13098_v3 = vpop.f32.mrb[108].mxu0  ;;  %v1619_v20 = vld [vmem:[#allocation2 + $0xb68] sm:$0xff]  ;;  %v12316_v6 = vpack.c.bf16 %v8076_v58, %v8076_v58  ;;  %v13354_v9 = vpop.f32.mrb[108].mxu1 }
 0x21c   : > { %v13783_v4 = vld [vmem:[%s14005_s7 + $0x368] sm:$0xff]   ;;  %10636 = vst.msk [vmem:[%s15302_s18 + $0x198] sm:$0xf] %vm10533_vm4, %v12315_v56  ;;  %v12569_v5 = vpack.c.bf16 %v8329_v57, %v8329_v57  ;;  %v8330_v7 = vmax.f32 %v7818_v59, 0.0  ;;  %v6028_v8 = vadd.f32 %v13098_v3, %v1364_v40  ;;  %v4303_v10 = vpop.f32.mrb[109].mxu0  ;;  %v12572_v47 = vpack.c.bf16 %v8332_v1, %v8332_v1  ;;  %v7048_v13 = vld [vmem:[#allocation2 + $0x350] sm:$0xff] }
 0x21d   : > { %v13784_v11 = vld [vmem:[%s14005_s7 + $0x768] sm:$0xff]   ;;  %10892 = vst.msk [vmem:[%s15302_s18 + $0x598] sm:$0xf] %vm10533_vm4, %v12571_v62  ;;  %10634 = vst.msk [vmem:[%s15302_s18 + $0x190] sm:$0xf] %vm10533_vm4, %v12313_v63  ;;  %v12314_v12 = vpack.c.bf16 %v8074_v2, %v8074_v2  ;;  %v6284_v14 = vadd.f32 %v13354_v9, %v1620_v48  ;;  %v6026_v15 = vadd.f32 %v4303_v10, %v1362_v49  ;;  %v5327_v16 = vpop.f32.mrb[109].mxu1  ;;  %13205 = vmatmul.mubr.msk.bf16.gmra.mrb[216].mxu0 %vm3061_vm2, %v13783_v4 }
 0x21e   : > { %v13099_v17 = vpop.f32.mrb[110].mxu0  ;;  %v13785_v18 = vld [vmem:[%s14005_s7 + $0x370] sm:$0xff]   ;;  %10890 = vst.msk [vmem:[%s15302_s18 + $0x590] sm:$0xf] %vm10533_vm4, %v12569_v5  ;;  %10637 = vst.msk [vmem:[%s15302_s18 + $0x19c] sm:$0xf] %vm10533_vm4, %v12316_v6  ;;  %v12570_v21 = vpack.c.bf16 %v8330_v7, %v8330_v7  ;;  %v7567_v22 = vadd.f32 %v16256_v29, %v7048_v13  ;;  %v6282_v25 = vadd.f32 %v5327_v16, %v1618_v54  ;;  %13461 = vmatmul.mubr.msk.bf16.gmra.mrb[216].mxu1 %vm3061_vm2, %v13784_v11 }
 0x21f   : > { %v7304_v23 = vld [vmem:[#allocation2 + $0xb50] sm:$0xff]  ;;  %v7046_v24 = vld [vmem:[#allocation2 + $0x340] sm:$0xff]  ;;  %6540 = vst.msk [vmem:[#allocation2 + $0x370] sm:$0xff] %vm226_vm3, %v6028_v8  ;;  %v6029_v26 = vadd.f32 %v13099_v17, %v1365_v55  ;;  %v13355_v27 = vpop.f32.mrb[110].mxu1  ;;  %v4306_v28 = vpop.f32.mrb[111].mxu0  ;;  %6796 = vst.msk [vmem:[#allocation2 + $0xb70] sm:$0xff] %vm226_vm3, %v6284_v14  ;;  %13208 = vmatprep.mubr.msk.bf16.mxu0 %vm3061_vm2, %v13785_v18 }
 0x220   : > { %v13786_v0 = vld [vmem:[%s14005_s7 + $0x770] sm:$0xff]   ;;  %10893 = vst.msk [vmem:[%s15302_s18 + $0x59c] sm:$0xf] %vm10533_vm4, %v12572_v47  ;;  %10635 = vst.msk [vmem:[%s15302_s18 + $0x194] sm:$0xf] %vm10533_vm4, %v12314_v12  ;;  %v7823_v30 = vadd.f32 %v16256_v29, %v7304_v23  ;;  %v7565_v31 = vadd.f32 %v16256_v29, %v7046_v24  ;;  %v7302_v32 = vld [vmem:[#allocation2 + $0xb40] sm:$0xff]  ;;  %v6285_v34 = vadd.f32 %v13355_v27, %v1621_v60 }
 0x221   : > { %v7049_v33 = vld [vmem:[#allocation2 + $0x358] sm:$0xff]  ;;  %6538 = vst.msk [vmem:[#allocation2 + $0x360] sm:$0xff] %vm226_vm3, %v6026_v15  ;;  %v6027_v35 = vadd.f32 %v4306_v28, %v1363_v61  ;;  %v5330_v36 = vpop.f32.mrb[111].mxu1  ;;  %v1368_v37 = vld [vmem:[#allocation2 + $0x390] sm:$0xff]  ;;  %v8079_v38 = vmax.f32 %v7567_v22, 0.0  ;;  %v7821_v39 = vadd.f32 %v16256_v29, %v7302_v32  ;;  %v7047_v42 = vld [vmem:[#allocation2 + $0x348] sm:$0xff]  ;;  %13464 = vmatprep.mubr.msk.bf16.mxu1 %vm3061_vm2, %v13786_v0 }
 0x222   : > { %10891 = vst.msk [vmem:[%s15302_s18 + $0x594] sm:$0xf] %vm10533_vm4, %v12570_v21  ;;  %v7568_v40 = vadd.f32 %v16256_v29, %v7049_v33  ;;  %v7305_v41 = vld [vmem:[#allocation2 + $0xb58] sm:$0xff]  ;;  %v6283_v43 = vadd.f32 %v5330_v36, %v1619_v20  ;;  %v1624_v44 = vld [vmem:[#allocation2 + $0xb90] sm:$0xff]  ;;  %v1366_v45 = vld [vmem:[#allocation2 + $0x380] sm:$0xff]  ;;  %v8335_v46 = vmax.f32 %v7823_v30, 0.0  ;;  %v7566_v19 = vadd.f32 %v16256_v29, %v7047_v42 }
 0x223   : > { %6794 = vst.msk [vmem:[#allocation2 + $0xb60] sm:$0xff] %vm226_vm3, %v6282_v25  ;;  %6541 = vst.msk [vmem:[#allocation2 + $0x378] sm:$0xff] %vm226_vm3, %v6029_v26  ;;  %v8077_v48 = vmax.f32 %v7565_v31, 0.0  ;;  %v7824_v49 = vadd.f32 %v16256_v29, %v7305_v41  ;;  %v7303_v50 = vld [vmem:[#allocation2 + $0xb48] sm:$0xff]  ;;  %v1622_v51 = vld [vmem:[#allocation2 + $0xb80] sm:$0xff]  ;;  %v12319_v53 = vpack.c.bf16 %v8079_v38, %v8079_v38  ;;  %v8333_v54 = vmax.f32 %v7821_v39, 0.0 }
 0x224   : > { %6797 = vst.msk [vmem:[#allocation2 + $0xb78] sm:$0xff] %vm226_vm3, %v6285_v34  ;;  %6539 = vst.msk [vmem:[#allocation2 + $0x368] sm:$0xff] %vm226_vm3, %v6027_v35  ;;  %v1369_v52 = vld [vmem:[#allocation2 + $0x398] sm:$0xff]  ;;  %v8080_v55 = vmax.f32 %v7568_v40, 0.0  ;;  %v7822_v56 = vadd.f32 %v16256_v29, %v7303_v50  ;;  %v1367_v58 = vld [vmem:[#allocation2 + $0x388] sm:$0xff]  ;;  %v12575_v60 = vpack.c.bf16 %v8335_v46, %v8335_v46  ;;  %v8078_v63 = vmax.f32 %v7566_v19, 0.0 }
 0x225   : > { %6795 = vst.msk [vmem:[#allocation2 + $0xb68] sm:$0xff] %vm226_vm3, %v6283_v43  ;;  %v1625_v57 = vld [vmem:[#allocation2 + $0xb98] sm:$0xff]  ;;  %v12317_v61 = vpack.c.bf16 %v8077_v48, %v8077_v48  ;;  %v8336_v62 = vmax.f32 %v7824_v49, 0.0  ;;  %v13102_v1 = vpop.f32.mrb[112].mxu0  ;;  %v1623_v2 = vld [vmem:[#allocation2 + $0xb88] sm:$0xff]  ;;  %v12573_v20 = vpack.c.bf16 %v8333_v54, %v8333_v54  ;;  %v13358_v7 = vpop.f32.mrb[112].mxu1 }
 0x226   : > { %v13787_v59 = vld [vmem:[%s14005_s7 + $0x378] sm:$0xff]   ;;  %10640 = vst.msk [vmem:[%s15302_s18 + $0x1a8] sm:$0xf] %vm10533_vm4, %v12319_v53  ;;  %v12320_v4 = vpack.c.bf16 %v8080_v55, %v8080_v55  ;;  %v8334_v5 = vmax.f32 %v7822_v56, 0.0  ;;  %v6032_v6 = vadd.f32 %v13102_v1, %v1368_v37  ;;  %v4319_v8 = vpop.f32.mrb[113].mxu0  ;;  %v13789_v9 = vld [vmem:[%s14005_s7 + $0x380] sm:$0xff]   ;;  %v12318_v11 = vpack.c.bf16 %v8078_v63, %v8078_v63 }
 0x227   : > { %v13788_v3 = vld [vmem:[%s14005_s7 + $0x778] sm:$0xff]   ;;  %10896 = vst.msk [vmem:[%s15302_s18 + $0x5a8] sm:$0xf] %vm10533_vm4, %v12575_v60  ;;  %10638 = vst.msk [vmem:[%s15302_s18 + $0x1a0] sm:$0xf] %vm10533_vm4, %v12317_v61  ;;  %v12576_v10 = vpack.c.bf16 %v8336_v62, %v8336_v62  ;;  %v7052_v47 = vld [vmem:[#allocation2 + $0x370] sm:$0xff]  ;;  %v6288_v12 = vadd.f32 %v13358_v7, %v1624_v44  ;;  %v6030_v13 = vadd.f32 %v4319_v8, %v1366_v45  ;;  %13209 = vmatmul.mubr.msk.bf16.gmra.mrb[220].mxu0 %vm3061_vm2, %v13787_v59 }
 0x228   : > { %v5343_v14 = vpop.f32.mrb[113].mxu1  ;;  %v13103_v15 = vpop.f32.mrb[114].mxu0  ;;  %v13790_v16 = vld [vmem:[%s14005_s7 + $0x780] sm:$0xff]   ;;  %10894 = vst.msk [vmem:[%s15302_s18 + $0x5a0] sm:$0xf] %vm10533_vm4, %v12573_v20  ;;  %v12574_v17 = vpack.c.bf16 %v8334_v5, %v8334_v5  ;;  %v7571_v18 = vadd.f32 %v16256_v29, %v7052_v47  ;;  %v7308_v21 = vld [vmem:[#allocation2 + $0xb70] sm:$0xff]  ;;  %13465 = vmatmul.mubr.msk.bf16.gmra.mrb[220].mxu1 %vm3061_vm2, %v13788_v3  ;;  %13212 = vmatprep.mubr.msk.bf16.mxu0 %vm3061_vm2, %v13789_v9 }
 0x229   : > { %10641 = vst.msk [vmem:[%s15302_s18 + $0x1ac] sm:$0xf] %vm10533_vm4, %v12320_v4  ;;  %v7050_v22 = vld [vmem:[#allocation2 + $0x360] sm:$0xff]  ;;  %v6286_v23 = vadd.f32 %v5343_v14, %v1622_v51  ;;  %v6033_v24 = vadd.f32 %v13103_v15, %v1369_v52  ;;  %v13359_v25 = vpop.f32.mrb[114].mxu1  ;;  %v4322_v26 = vpop.f32.mrb[115].mxu0  ;;  %v7827_v27 = vadd.f32 %v16256_v29, %v7308_v21  ;;  %v1372_v45 = vld [vmem:[#allocation2 + $0x3b0] sm:$0xff]  ;;  %13468 = vmatprep.mubr.msk.bf16.mxu1 %vm3061_vm2, %v13790_v16 }
 0x22a   : > { %6544 = vst.msk [vmem:[#allocation2 + $0x390] sm:$0xff] %vm226_vm3, %v6032_v6  ;;  %v7569_v28 = vadd.f32 %v16256_v29, %v7050_v22  ;;  %v7306_v0 = vld [vmem:[#allocation2 + $0xb60] sm:$0xff]  ;;  %v7053_v30 = vld [vmem:[#allocation2 + $0x378] sm:$0xff]  ;;  %6800 = vst.msk [vmem:[#allocation2 + $0xb90] sm:$0xff] %vm226_vm3, %v6288_v12  ;;  %v6289_v31 = vadd.f32 %v13359_v25, %v1625_v57  ;;  %v6031_v32 = vadd.f32 %v4322_v26, %v1367_v58  ;;  %v5346_v33 = vpop.f32.mrb[115].mxu1  ;;  %v8083_v34 = vmax.f32 %v7571_v18, 0.0 }
 0x22b   : > { %10897 = vst.msk [vmem:[%s15302_s18 + $0x5ac] sm:$0xf] %vm10533_vm4, %v12576_v10  ;;  %10639 = vst.msk [vmem:[%s15302_s18 + $0x1a4] sm:$0xf] %vm10533_vm4, %v12318_v11  ;;  %v7825_v35 = vadd.f32 %v16256_v29, %v7306_v0  ;;  %v7572_v36 = vadd.f32 %v16256_v29, %v7053_v30  ;;  %v7309_v37 = vld [vmem:[#allocation2 + $0xb78] sm:$0xff]  ;;  %v7051_v38 = vld [vmem:[#allocation2 + $0x368] sm:$0xff]  ;;  %v6287_v39 = vadd.f32 %v5346_v33, %v1623_v2 }
 0x22c   : > { %6542 = vst.msk [vmem:[#allocation2 + $0x380] sm:$0xff] %vm226_vm3, %v6030_v13  ;;  %6798 = vst.msk [vmem:[#allocation2 + $0xb80] sm:$0xff] %vm226_vm3, %v6286_v23  ;;  %v8339_v40 = vmax.f32 %v7827_v27, 0.0  ;;  %v8081_v41 = vmax.f32 %v7569_v28, 0.0  ;;  %v7828_v42 = vadd.f32 %v16256_v29, %v7309_v37  ;;  %v7570_v43 = vadd.f32 %v16256_v29, %v7051_v38  ;;  %v7307_v44 = vld [vmem:[#allocation2 + $0xb68] sm:$0xff]  ;;  %v1628_v50 = vld [vmem:[#allocation2 + $0xbb0] sm:$0xff] }
 0x22d   : > { %10895 = vst.msk [vmem:[%s15302_s18 + $0x5a4] sm:$0xf] %vm10533_vm4, %v12574_v17  ;;  %v12323_v46 = vpack.c.bf16 %v8083_v34, %v8083_v34  ;;  %v8337_v48 = vmax.f32 %v7825_v35, 0.0  ;;  %v8084_v49 = vmax.f32 %v7572_v36, 0.0  ;;  %v7826_v19 = vadd.f32 %v16256_v29, %v7307_v44  ;;  %v1370_v51 = vld [vmem:[#allocation2 + $0x3a0] sm:$0xff]  ;;  %v13106_v56 = vpop.f32.mrb[116].mxu0 }
 0x22e   : > { %6545 = vst.msk [vmem:[#allocation2 + $0x398] sm:$0xff] %vm226_vm3, %v6033_v24  ;;  %6801 = vst.msk [vmem:[#allocation2 + $0xb98] sm:$0xff] %vm226_vm3, %v6289_v31  ;;  %v12579_v52 = vpack.c.bf16 %v8339_v40, %v8339_v40  ;;  %v12321_v53 = vpack.c.bf16 %v8081_v41, %v8081_v41  ;;  %v8340_v54 = vmax.f32 %v7828_v42, 0.0  ;;  %v8082_v55 = vmax.f32 %v7570_v43, 0.0  ;;  %v1626_v57 = vld [vmem:[#allocation2 + $0xba0] sm:$0xff]  ;;  %v1373_v58 = vld [vmem:[#allocation2 + $0x3b8] sm:$0xff] }
 0x22f   : > { %6543 = vst.msk [vmem:[#allocation2 + $0x388] sm:$0xff] %vm226_vm3, %v6031_v32  ;;  %6799 = vst.msk [vmem:[#allocation2 + $0xb88] sm:$0xff] %vm226_vm3, %v6287_v39  ;;  %v1629_v59 = vld [vmem:[#allocation2 + $0xbb8] sm:$0xff]  ;;  %v12577_v60 = vpack.c.bf16 %v8337_v48, %v8337_v48  ;;  %v12324_v61 = vpack.c.bf16 %v8084_v49, %v8084_v49  ;;  %v8338_v62 = vmax.f32 %v7826_v19, 0.0  ;;  %v6036_v63 = vadd.f32 %v13106_v56, %v1372_v45  ;;  %v13362_v1 = vpop.f32.mrb[116].mxu1  ;;  %v4335_v2 = vpop.f32.mrb[117].mxu0 }
 0x230   : > { %10644 = vst.msk [vmem:[%s15302_s18 + $0x1b8] sm:$0xf] %vm10533_vm4, %v12323_v46  ;;  %v1371_v3 = vld [vmem:[#allocation2 + $0x3a8] sm:$0xff]  ;;  %10900 = vst.msk [vmem:[%s15302_s18 + $0x5b8] sm:$0xf] %vm10533_vm4, %v12579_v52  ;;  %v12580_v5 = vpack.c.bf16 %v8340_v54, %v8340_v54  ;;  %v12322_v6 = vpack.c.bf16 %v8082_v55, %v8082_v55  ;;  %v6292_v8 = vadd.f32 %v13362_v1, %v1628_v50  ;;  %v5359_v10 = vpop.f32.mrb[117].mxu1 }
 0x231   : > { %v1627_v20 = vld [vmem:[#allocation2 + $0xba8] sm:$0xff]  ;;  %10642 = vst.msk [vmem:[%s15302_s18 + $0x1b0] sm:$0xf] %vm10533_vm4, %v12321_v53  ;;  %v7056_v7 = vld [vmem:[#allocation2 + $0x390] sm:$0xff]  ;;  %v6034_v9 = vadd.f32 %v4335_v2, %v1370_v51  ;;  %v13107_v11 = vpop.f32.mrb[118].mxu0  ;;  %v12578_v13 = vpack.c.bf16 %v8338_v62, %v8338_v62  ;;  %v6290_v17 = vadd.f32 %v5359_v10, %v1626_v57  ;;  %v13363_v21 = vpop.f32.mrb[118].mxu1 }
 0x232   : > { %v13791_v4 = vld [vmem:[%s14005_s7 + $0x388] sm:$0xff]   ;;  %v13793_v12 = vld [vmem:[%s14005_s7 + $0x390] sm:$0xff]   ;;  %10898 = vst.msk [vmem:[%s15302_s18 + $0x5b0] sm:$0xf] %vm10533_vm4, %v12577_v60  ;;  %10645 = vst.msk [vmem:[%s15302_s18 + $0x1bc] sm:$0xf] %vm10533_vm4, %v12324_v61  ;;  %v7575_v14 = vadd.f32 %v16256_v29, %v7056_v7  ;;  %v6037_v18 = vadd.f32 %v13107_v11, %v1373_v58  ;;  %v6293_v28 = vadd.f32 %v13363_v21, %v1629_v59 }
 0x233   : > { %v13792_v47 = vld [vmem:[%s14005_s7 + $0x788] sm:$0xff]   ;;  %v7312_v15 = vld [vmem:[#allocation2 + $0xb90] sm:$0xff]  ;;  %v7054_v16 = vld [vmem:[#allocation2 + $0x380] sm:$0xff]  ;;  %6548 = vst.msk [vmem:[#allocation2 + $0x3b0] sm:$0xff] %vm226_vm3, %v6036_v63  ;;  %v4338_v22 = vpop.f32.mrb[119].mxu0  ;;  %v5362_v30 = vpop.f32.mrb[119].mxu1  ;;  %13213 = vmatmul.mubr.msk.bf16.gmra.mrb[224].mxu0 %vm3061_vm2, %v13791_v4 }
 0x234   : > { %v13794_v23 = vld [vmem:[%s14005_s7 + $0x790] sm:$0xff]   ;;  %10901 = vst.msk [vmem:[%s15302_s18 + $0x5bc] sm:$0xf] %vm10533_vm4, %v12580_v5  ;;  %10643 = vst.msk [vmem:[%s15302_s18 + $0x1b4] sm:$0xf] %vm10533_vm4, %v12322_v6  ;;  %v7831_v24 = vadd.f32 %v16256_v29, %v7312_v15  ;;  %v7573_v25 = vadd.f32 %v16256_v29, %v7054_v16  ;;  %v7310_v26 = vld [vmem:[#allocation2 + $0xb80] sm:$0xff]  ;;  %v6035_v0 = vadd.f32 %v4338_v22, %v1371_v3  ;;  %13469 = vmatmul.mubr.msk.bf16.gmra.mrb[224].mxu1 %vm3061_vm2, %v13792_v47 }
 0x235   : > { %v7057_v27 = vld [vmem:[#allocation2 + $0x398] sm:$0xff]  ;;  %6804 = vst.msk [vmem:[#allocation2 + $0xbb0] sm:$0xff] %vm226_vm3, %v6292_v8  ;;  %6546 = vst.msk [vmem:[#allocation2 + $0x3a0] sm:$0xff] %vm226_vm3, %v6034_v9  ;;  %v8087_v31 = vmax.f32 %v7575_v14, 0.0  ;;  %v7829_v32 = vadd.f32 %v16256_v29, %v7310_v26  ;;  %v6291_v36 = vadd.f32 %v5362_v30, %v1627_v20  ;;  %v1376_v42 = vld [vmem:[#allocation2 + $0x3d0] sm:$0xff]  ;;  %13216 = vmatprep.mubr.msk.bf16.mxu0 %vm3061_vm2, %v13793_v12  ;;  %13472 = vmatprep.mubr.msk.bf16.mxu1 %vm3061_vm2, %v13794_v23  ;;  %v13110_v53 = vpop.f32.mrb[120].mxu0 }
 0x236   : > { %10899 = vst.msk [vmem:[%s15302_s18 + $0x5b4] sm:$0xf] %vm10533_vm4, %v12578_v13  ;;  %v7576_v33 = vadd.f32 %v16256_v29, %v7057_v27  ;;  %v7313_v34 = vld [vmem:[#allocation2 + $0xb98] sm:$0xff]  ;;  %v7055_v35 = vld [vmem:[#allocation2 + $0x388] sm:$0xff]  ;;  %v8343_v37 = vmax.f32 %v7831_v24, 0.0  ;;  %v8085_v38 = vmax.f32 %v7573_v25, 0.0  ;;  %v6040_v60 = vadd.f32 %v13110_v53, %v1376_v42 }
 0x237   : > { %6802 = vst.msk [vmem:[#allocation2 + $0xba0] sm:$0xff] %vm226_vm3, %v6290_v17  ;;  %6549 = vst.msk [vmem:[#allocation2 + $0x3b8] sm:$0xff] %vm226_vm3, %v6037_v18  ;;  %v7832_v39 = vadd.f32 %v16256_v29, %v7313_v34  ;;  %v7574_v40 = vadd.f32 %v16256_v29, %v7055_v35  ;;  %v7311_v41 = vld [vmem:[#allocation2 + $0xb88] sm:$0xff]  ;;  %v12327_v43 = vpack.c.bf16 %v8087_v31, %v8087_v31  ;;  %v8341_v44 = vmax.f32 %v7829_v32, 0.0  ;;  %v1632_v48 = vld [vmem:[#allocation2 + $0xbd0] sm:$0xff]  ;;  %v13366_v61 = vpop.f32.mrb[120].mxu1 }
 0x238   : > { %6805 = vst.msk [vmem:[#allocation2 + $0xbb8] sm:$0xff] %vm226_vm3, %v6293_v28  ;;  %6547 = vst.msk [vmem:[#allocation2 + $0x3a8] sm:$0xff] %vm226_vm3, %v6035_v0  ;;  %v8088_v45 = vmax.f32 %v7576_v33, 0.0  ;;  %v7830_v46 = vadd.f32 %v16256_v29, %v7311_v41  ;;  %v1374_v49 = vld [vmem:[#allocation2 + $0x3c0] sm:$0xff]  ;;  %v12583_v19 = vpack.c.bf16 %v8343_v37, %v8343_v37  ;;  %v12325_v50 = vpack.c.bf16 %v8085_v38, %v8085_v38  ;;  %v1377_v55 = vld [vmem:[#allocation2 + $0x3d8] sm:$0xff]  ;;  %v4351_v62 = vpop.f32.mrb[121].mxu0 }
 0x239   : > { %6803 = vst.msk [vmem:[#allocation2 + $0xba8] sm:$0xff] %vm226_vm3, %v6291_v36  ;;  %v8344_v51 = vmax.f32 %v7832_v39, 0.0  ;;  %v8086_v52 = vmax.f32 %v7574_v40, 0.0  ;;  %v1630_v54 = vld [vmem:[#allocation2 + $0xbc0] sm:$0xff]  ;;  %v1633_v56 = vld [vmem:[#allocation2 + $0xbd8] sm:$0xff]  ;;  %v12581_v57 = vpack.c.bf16 %v8341_v44, %v8341_v44  ;;  %v1375_v63 = vld [vmem:[#allocation2 + $0x3c8] sm:$0xff]  ;;  %v6296_v5 = vadd.f32 %v13366_v61, %v1632_v48 }
 0x23a   : > { %10648 = vst.msk [vmem:[%s15302_s18 + $0x1c8] sm:$0xf] %vm10533_vm4, %v12327_v43  ;;  %v12328_v58 = vpack.c.bf16 %v8088_v45, %v8088_v45  ;;  %v8342_v59 = vmax.f32 %v7830_v46, 0.0  ;;  %v1631_v1 = vld [vmem:[#allocation2 + $0xbc8] sm:$0xff]  ;;  %v13795_v2 = vld [vmem:[%s14005_s7 + $0x398] sm:$0xff]   ;;  %v7060_v4 = vld [vmem:[#allocation2 + $0x3b0] sm:$0xff]  ;;  %v6038_v6 = vadd.f32 %v4351_v62, %v1374_v49 }
 0x23b   : > { %10904 = vst.msk [vmem:[%s15302_s18 + $0x5c8] sm:$0xf] %vm10533_vm4, %v12583_v19  ;;  %10646 = vst.msk [vmem:[%s15302_s18 + $0x1c0] sm:$0xf] %vm10533_vm4, %v12325_v50  ;;  %v12584_v3 = vpack.c.bf16 %v8344_v51, %v8344_v51  ;;  %v12326_v20 = vpack.c.bf16 %v8086_v52, %v8086_v52  ;;  %v5375_v7 = vpop.f32.mrb[121].mxu1  ;;  %v13111_v8 = vpop.f32.mrb[122].mxu0  ;;  %v7579_v47 = vadd.f32 %v16256_v29, %v7060_v4  ;;  %13217 = vmatmul.mubr.msk.bf16.gmra.mrb[228].mxu0 %vm3061_vm2, %v13795_v2 }
 0x23c   : > { %v13796_v9 = vld [vmem:[%s14005_s7 + $0x798] sm:$0xff]   ;;  %v13797_v10 = vld [vmem:[%s14005_s7 + $0x3a0] sm:$0xff]   ;;  %10902 = vst.msk [vmem:[%s15302_s18 + $0x5c0] sm:$0xf] %vm10533_vm4, %v12581_v57  ;;  %10649 = vst.msk [vmem:[%s15302_s18 + $0x1cc] sm:$0xf] %vm10533_vm4, %v12328_v58  ;;  %v12582_v11 = vpack.c.bf16 %v8342_v59, %v8342_v59  ;;  %v6294_v14 = vadd.f32 %v5375_v7, %v1630_v54  ;;  %v6041_v15 = vadd.f32 %v13111_v8, %v1377_v55 }
 0x23d   : > { %v7316_v12 = vld [vmem:[#allocation2 + $0xbb0] sm:$0xff]  ;;  %v7058_v13 = vld [vmem:[#allocation2 + $0x3a0] sm:$0xff]  ;;  %6552 = vst.msk [vmem:[#allocation2 + $0x3d0] sm:$0xff] %vm226_vm3, %v6040_v60  ;;  %v13367_v16 = vpop.f32.mrb[122].mxu1  ;;  %v4354_v17 = vpop.f32.mrb[123].mxu0  ;;  %6808 = vst.msk [vmem:[#allocation2 + $0xbd0] sm:$0xff] %vm226_vm3, %v6296_v5  ;;  %13473 = vmatmul.mubr.msk.bf16.gmra.mrb[228].mxu1 %vm3061_vm2, %v13796_v9  ;;  %13220 = vmatprep.mubr.msk.bf16.mxu0 %vm3061_vm2, %v13797_v10 }
 0x23e   : > { %v13798_v18 = vld [vmem:[%s14005_s7 + $0x7a0] sm:$0xff]   ;;  %10905 = vst.msk [vmem:[%s15302_s18 + $0x5cc] sm:$0xf] %vm10533_vm4, %v12584_v3  ;;  %10647 = vst.msk [vmem:[%s15302_s18 + $0x1c4] sm:$0xf] %vm10533_vm4, %v12326_v20  ;;  %v7835_v21 = vadd.f32 %v16256_v29, %v7316_v12  ;;  %v7577_v22 = vadd.f32 %v16256_v29, %v7058_v13  ;;  %v7061_v24 = vld [vmem:[#allocation2 + $0x3b8] sm:$0xff]  ;;  %v6297_v25 = vadd.f32 %v13367_v16, %v1633_v56 }
 0x23f   : > { %v7314_v23 = vld [vmem:[#allocation2 + $0xba0] sm:$0xff]  ;;  %6550 = vst.msk [vmem:[#allocation2 + $0x3c0] sm:$0xff] %vm226_vm3, %v6038_v6  ;;  %v6039_v26 = vadd.f32 %v4354_v17, %v1375_v63  ;;  %v5378_v27 = vpop.f32.mrb[123].mxu1  ;;  %v8091_v28 = vmax.f32 %v7579_v47, 0.0  ;;  %v7580_v30 = vadd.f32 %v16256_v29, %v7061_v24  ;;  %v7317_v31 = vld [vmem:[#allocation2 + $0xbb8] sm:$0xff]  ;;  %v7059_v32 = vld [vmem:[#allocation2 + $0x3a8] sm:$0xff]  ;;  %13476 = vmatprep.mubr.msk.bf16.mxu1 %vm3061_vm2, %v13798_v18 }
 0x240   : > { %10903 = vst.msk [vmem:[%s15302_s18 + $0x5c4] sm:$0xf] %vm10533_vm4, %v12582_v11  ;;  %v7833_v0 = vadd.f32 %v16256_v29, %v7314_v23  ;;  %v6295_v33 = vadd.f32 %v5378_v27, %v1631_v1  ;;  %v8347_v34 = vmax.f32 %v7835_v21, 0.0  ;;  %v8089_v35 = vmax.f32 %v7577_v22, 0.0  ;;  %v7315_v38 = vld [vmem:[#allocation2 + $0xba8] sm:$0xff]  ;;  %v1380_v39 = vld [vmem:[#allocation2 + $0x3f0] sm:$0xff] }
 0x241   : > { %6806 = vst.msk [vmem:[#allocation2 + $0xbc0] sm:$0xff] %vm226_vm3, %v6294_v14  ;;  %6553 = vst.msk [vmem:[#allocation2 + $0x3d8] sm:$0xff] %vm226_vm3, %v6041_v15  ;;  %v7836_v36 = vadd.f32 %v16256_v29, %v7317_v31  ;;  %v7578_v37 = vadd.f32 %v16256_v29, %v7059_v32  ;;  %v12331_v40 = vpack.c.bf16 %v8091_v28, %v8091_v28  ;;  %v8092_v42 = vmax.f32 %v7580_v30, 0.0  ;;  %v1636_v44 = vld [vmem:[#allocation2 + $0xbf0] sm:$0xff]  ;;  %v1378_v45 = vld [vmem:[#allocation2 + $0x3e0] sm:$0xff]  ;;  %v13114_v50 = vpop.f32.mrb[124].mxu0 }
 0x242   : > { %6809 = vst.msk [vmem:[#allocation2 + $0xbd8] sm:$0xff] %vm226_vm3, %v6297_v25  ;;  %6551 = vst.msk [vmem:[#allocation2 + $0x3c8] sm:$0xff] %vm226_vm3, %v6039_v26  ;;  %v8345_v41 = vmax.f32 %v7833_v0, 0.0  ;;  %v7834_v43 = vadd.f32 %v16256_v29, %v7315_v38  ;;  %v12587_v46 = vpack.c.bf16 %v8347_v34, %v8347_v34  ;;  %v12329_v48 = vpack.c.bf16 %v8089_v35, %v8089_v35  ;;  %v1634_v51 = vld [vmem:[#allocation2 + $0xbe0] sm:$0xff]  ;;  %v1381_v52 = vld [vmem:[#allocation2 + $0x3f8] sm:$0xff]  ;;  %v13370_v58 = vpop.f32.mrb[124].mxu1 }
 0x243   : > { %6807 = vst.msk [vmem:[#allocation2 + $0xbc8] sm:$0xff] %vm226_vm3, %v6295_v33  ;;  %v8348_v49 = vmax.f32 %v7836_v36, 0.0  ;;  %v8090_v19 = vmax.f32 %v7578_v37, 0.0  ;;  %v1637_v53 = vld [vmem:[#allocation2 + $0xbf8] sm:$0xff]  ;;  %v12332_v55 = vpack.c.bf16 %v8092_v42, %v8092_v42  ;;  %v6044_v57 = vadd.f32 %v13114_v50, %v1380_v39  ;;  %v4367_v59 = vpop.f32.mrb[125].mxu0  ;;  %v1379_v60 = vld [vmem:[#allocation2 + $0x3e8] sm:$0xff] }
 0x244   : > { %10652 = vst.msk [vmem:[%s15302_s18 + $0x1d8] sm:$0xf] %vm10533_vm4, %v12331_v40  ;;  %v12585_v54 = vpack.c.bf16 %v8345_v41, %v8345_v41  ;;  %v8346_v56 = vmax.f32 %v7834_v43, 0.0  ;;  %v1635_v61 = vld [vmem:[#allocation2 + $0xbe8] sm:$0xff]  ;;  %10908 = vst.msk [vmem:[%s15302_s18 + $0x5d8] sm:$0xf] %vm10533_vm4, %v12587_v46  ;;  %v6300_v3 = vadd.f32 %v13370_v58, %v1636_v44  ;;  %v6042_v20 = vadd.f32 %v4367_v59, %v1378_v45 }
 0x245   : > { %v13799_v62 = vld [vmem:[%s14005_s7 + $0x3a8] sm:$0xff]   ;;  %10650 = vst.msk [vmem:[%s15302_s18 + $0x1d0] sm:$0xf] %vm10533_vm4, %v12329_v48  ;;  %v12588_v63 = vpack.c.bf16 %v8348_v49, %v8348_v49  ;;  %v12330_v1 = vpack.c.bf16 %v8090_v19, %v8090_v19  ;;  %v7064_v2 = vld [vmem:[#allocation2 + $0x3d0] sm:$0xff]  ;;  %v5391_v4 = vpop.f32.mrb[125].mxu1  ;;  %v13115_v5 = vpop.f32.mrb[126].mxu0 }
 0x246   : > { %v13800_v6 = vld [vmem:[%s14005_s7 + $0x7a8] sm:$0xff]   ;;  %v13801_v7 = vld [vmem:[%s14005_s7 + $0x3b0] sm:$0xff]   ;;  %10906 = vst.msk [vmem:[%s15302_s18 + $0x5d0] sm:$0xf] %vm10533_vm4, %v12585_v54  ;;  %10653 = vst.msk [vmem:[%s15302_s18 + $0x1dc] sm:$0xf] %vm10533_vm4, %v12332_v55  ;;  %v12586_v8 = vpack.c.bf16 %v8346_v56, %v8346_v56  ;;  %v7583_v9 = vadd.f32 %v16256_v29, %v7064_v2  ;;  %v6298_v47 = vadd.f32 %v5391_v4, %v1634_v51  ;;  %13221 = vmatmul.mubr.msk.bf16.gmra.mrb[232].mxu0 %vm3061_vm2, %v13799_v62 }
 0x247   : > { %v7320_v10 = vld [vmem:[#allocation2 + $0xbd0] sm:$0xff]  ;;  %v7062_v11 = vld [vmem:[#allocation2 + $0x3c0] sm:$0xff]  ;;  %6556 = vst.msk [vmem:[#allocation2 + $0x3f0] sm:$0xff] %vm226_vm3, %v6044_v57  ;;  %v6045_v12 = vadd.f32 %v13115_v5, %v1381_v52  ;;  %v13371_v13 = vpop.f32.mrb[126].mxu1  ;;  %v4370_v14 = vpop.f32.mrb[127].mxu0  ;;  %6812 = vst.msk [vmem:[#allocation2 + $0xbf0] sm:$0xff] %vm226_vm3, %v6300_v3  ;;  %13477 = vmatmul.mubr.msk.bf16.gmra.mrb[232].mxu1 %vm3061_vm2, %v13800_v6  ;;  %13224 = vmatprep.mubr.msk.bf16.mxu0 %vm3061_vm2, %v13801_v7 }
 0x248   : > { %v13802_v15 = vld [vmem:[%s14005_s7 + $0x7b0] sm:$0xff]   ;;  %10909 = vst.msk [vmem:[%s15302_s18 + $0x5dc] sm:$0xf] %vm10533_vm4, %v12588_v63  ;;  %10651 = vst.msk [vmem:[%s15302_s18 + $0x1d4] sm:$0xf] %vm10533_vm4, %v12330_v1  ;;  %v7318_v18 = vld [vmem:[#allocation2 + $0xbc0] sm:$0xff]  ;;  %v6301_v22 = vadd.f32 %v13371_v13, %v1637_v53  ;;  %v6043_v23 = vadd.f32 %v4370_v14, %v1379_v60 }
 0x249   : > { %v16507_v16 = vld [vmem:[%s17708_s2] ss:$0 sm:$0xff]  ;;  %v7065_v21 = vld [vmem:[#allocation2 + $0x3d8] sm:$0xff]  ;;  %6554 = vst.msk [vmem:[#allocation2 + $0x3e0] sm:$0xff] %vm226_vm3, %v6042_v20  ;;  %v5394_v24 = vpop.f32.mrb[127].mxu1  ;;  %v8095_v25 = vmax.f32 %v7583_v9, 0.0  ;;  %13480 = vmatprep.mubr.msk.bf16.mxu1 %vm3061_vm2, %v13802_v15 }
 0x24a   : > { %v7839_v29 = vadd.f32 %v16507_v16, %v7320_v10  ;;  %v7581_v17 = vadd.f32 %v16507_v16, %v7062_v11  ;;  %10907 = vst.msk [vmem:[%s15302_s18 + $0x5d4] sm:$0xf] %vm10533_vm4, %v12586_v8  ;;  %v7837_v26 = vadd.f32 %v16507_v16, %v7318_v18  ;;  %v7584_v27 = vadd.f32 %v16507_v16, %v7065_v21  ;;  %v7321_v28 = vld [vmem:[#allocation2 + $0xbd8] sm:$0xff]  ;;  %v7063_v0 = vld [vmem:[#allocation2 + $0x3c8] sm:$0xff]  ;;  %v1384_v36 = vld [vmem:[#allocation2 + $0x410] sm:$0xff]  ;;  %v13118_v48 = vpop.f32.mrb[128].mxu0 }
 0x24b   : > { %6810 = vst.msk [vmem:[#allocation2 + $0xbe0] sm:$0xff] %vm226_vm3, %v6298_v47  ;;  %6557 = vst.msk [vmem:[#allocation2 + $0x3f8] sm:$0xff] %vm226_vm3, %v6045_v12  ;;  %v6299_v30 = vadd.f32 %v5394_v24, %v1635_v61  ;;  %v7840_v33 = vadd.f32 %v16507_v16, %v7321_v28  ;;  %v7582_v34 = vadd.f32 %v16507_v16, %v7063_v0  ;;  %v7319_v35 = vld [vmem:[#allocation2 + $0xbc8] sm:$0xff]  ;;  %v1640_v41 = vld [vmem:[#allocation2 + $0xc10] sm:$0xff]  ;;  %v13374_v55 = vpop.f32.mrb[128].mxu1  ;;  %v4383_v56 = vpop.f32.mrb[129].mxu0 }
 0x24c   : > { %v8351_v31 = vmax.f32 %v7839_v29, 0.0  ;;  %v8093_v32 = vmax.f32 %v7581_v17, 0.0  ;;  %6813 = vst.msk [vmem:[#allocation2 + $0xbf8] sm:$0xff] %vm226_vm3, %v6301_v22  ;;  %6555 = vst.msk [vmem:[#allocation2 + $0x3e8] sm:$0xff] %vm226_vm3, %v6043_v23  ;;  %v12335_v37 = vpack.c.bf16 %v8095_v25, %v8095_v25  ;;  %v8349_v38 = vmax.f32 %v7837_v26, 0.0  ;;  %v1382_v42 = vld [vmem:[#allocation2 + $0x400] sm:$0xff] }
 0x24d   : > { %v8096_v39 = vmax.f32 %v7584_v27, 0.0  ;;  %v7838_v40 = vadd.f32 %v16507_v16, %v7319_v35  ;;  %6811 = vst.msk [vmem:[#allocation2 + $0xbe8] sm:$0xff] %vm226_vm3, %v6299_v30  ;;  %v8352_v45 = vmax.f32 %v7840_v33, 0.0  ;;  %v8094_v46 = vmax.f32 %v7582_v34, 0.0  ;;  %v1638_v49 = vld [vmem:[#allocation2 + $0xc00] sm:$0xff]  ;;  %v1385_v19 = vld [vmem:[#allocation2 + $0x418] sm:$0xff] }
 0x24e   : > { %v12591_v43 = vpack.c.bf16 %v8351_v31, %v8351_v31  ;;  %v12333_v44 = vpack.c.bf16 %v8093_v32, %v8093_v32  ;;  %v1641_v50 = vld [vmem:[#allocation2 + $0xc18] sm:$0xff]  ;;  %10656 = vst.msk [vmem:[%s15302_s18 + $0x1e8] sm:$0xf] %vm10533_vm4, %v12335_v37  ;;  %v12589_v51 = vpack.c.bf16 %v8349_v38, %v8349_v38  ;;  %v6048_v54 = vadd.f32 %v13118_v48, %v1384_v36  ;;  %v1383_v57 = vld [vmem:[#allocation2 + $0x408] sm:$0xff]  ;;  %v7068_v62 = vld [vmem:[#allocation2 + $0x3f0] sm:$0xff]  ;;  %v5407_v2 = vpop.f32.mrb[129].mxu1 }
 0x24f   : > { %v12336_v52 = vpack.c.bf16 %v8096_v39, %v8096_v39  ;;  %v8350_v53 = vmax.f32 %v7838_v40, 0.0  ;;  %v1639_v58 = vld [vmem:[#allocation2 + $0xc08] sm:$0xff]  ;;  %v13803_v59 = vld [vmem:[%s14005_s7 + $0x3b8] sm:$0xff]   ;;  %v12592_v60 = vpack.c.bf16 %v8352_v45, %v8352_v45  ;;  %v12334_v61 = vpack.c.bf16 %v8094_v46, %v8094_v46  ;;  %v13119_v3 = vpop.f32.mrb[130].mxu0  ;;  %v13805_v4 = vld [vmem:[%s14005_s7 + $0x3c0] sm:$0xff]   ;;  %v13375_v11 = vpop.f32.mrb[130].mxu1 }
 0x250   : > { %10912 = vst.msk [vmem:[%s15302_s18 + $0x5e8] sm:$0xf] %vm10533_vm4, %v12591_v43  ;;  %10654 = vst.msk [vmem:[%s15302_s18 + $0x1e0] sm:$0xf] %vm10533_vm4, %v12333_v44  ;;  %v6304_v63 = vadd.f32 %v13374_v55, %v1640_v41  ;;  %v6046_v1 = vadd.f32 %v4383_v56, %v1382_v42  ;;  %v13804_v20 = vld [vmem:[%s14005_s7 + $0x7b8] sm:$0xff]   ;;  %v7587_v6 = vadd.f32 %v16507_v16, %v7068_v62  ;;  %v7324_v7 = vld [vmem:[#allocation2 + $0xbf0] sm:$0xff]  ;;  %13225 = vmatmul.mubr.msk.bf16.gmra.mrb[236].mxu0 %vm3061_vm2, %v13803_v59 }
 0x251   : > { %10910 = vst.msk [vmem:[%s15302_s18 + $0x5e0] sm:$0xf] %vm10533_vm4, %v12589_v51  ;;  %10657 = vst.msk [vmem:[%s15302_s18 + $0x1ec] sm:$0xf] %vm10533_vm4, %v12336_v52  ;;  %v12590_v5 = vpack.c.bf16 %v8350_v53, %v8350_v53  ;;  %v7066_v8 = vld [vmem:[#allocation2 + $0x3e0] sm:$0xff]  ;;  %v6302_v9 = vadd.f32 %v5407_v2, %v1638_v49  ;;  %v6049_v10 = vadd.f32 %v13119_v3, %v1385_v19  ;;  %v4386_v47 = vpop.f32.mrb[131].mxu0  ;;  %13481 = vmatmul.mubr.msk.bf16.gmra.mrb[236].mxu1 %vm3061_vm2, %v13804_v20 }
 0x252   : > { %6560 = vst.msk [vmem:[#allocation2 + $0x410] sm:$0xff] %vm226_vm3, %v6048_v54  ;;  %v13806_v12 = vld [vmem:[%s14005_s7 + $0x7c0] sm:$0xff]   ;;  %v7843_v13 = vadd.f32 %v16507_v16, %v7324_v7  ;;  %v7585_v14 = vadd.f32 %v16507_v16, %v7066_v8  ;;  %v7069_v29 = vld [vmem:[#allocation2 + $0x3f8] sm:$0xff]  ;;  %6816 = vst.msk [vmem:[#allocation2 + $0xc10] sm:$0xff] %vm226_vm3, %v6304_v63  ;;  %v6305_v17 = vadd.f32 %v13375_v11, %v1641_v50  ;;  %v5410_v21 = vpop.f32.mrb[131].mxu1  ;;  %v8099_v22 = vmax.f32 %v7587_v6, 0.0 }
 0x253   : > { %10913 = vst.msk [vmem:[%s15302_s18 + $0x5ec] sm:$0xf] %vm10533_vm4, %v12592_v60  ;;  %10655 = vst.msk [vmem:[%s15302_s18 + $0x1e4] sm:$0xf] %vm10533_vm4, %v12334_v61  ;;  %v7322_v15 = vld [vmem:[#allocation2 + $0xbe0] sm:$0xff]  ;;  %v6047_v18 = vadd.f32 %v4386_v47, %v1383_v57  ;;  %v7588_v24 = vadd.f32 %v16507_v16, %v7069_v29  ;;  %v7325_v25 = vld [vmem:[#allocation2 + $0xbf8] sm:$0xff]  ;;  %v6303_v27 = vadd.f32 %v5410_v21, %v1639_v58  ;;  %13228 = vmatprep.mubr.msk.bf16.mxu0 %vm3061_vm2, %v13805_v4 }
 0x254   : > { %6558 = vst.msk [vmem:[#allocation2 + $0x400] sm:$0xff] %vm226_vm3, %v6046_v1  ;;  %v7841_v23 = vadd.f32 %v16507_v16, %v7322_v15  ;;  %v7067_v26 = vld [vmem:[#allocation2 + $0x3e8] sm:$0xff]  ;;  %6814 = vst.msk [vmem:[#allocation2 + $0xc00] sm:$0xff] %vm226_vm3, %v6302_v9  ;;  %v8355_v28 = vmax.f32 %v7843_v13, 0.0  ;;  %v8097_v0 = vmax.f32 %v7585_v14, 0.0  ;;  %v7844_v30 = vadd.f32 %v16507_v16, %v7325_v25  ;;  %v1388_v33 = vld [vmem:[#allocation2 + $0x430] sm:$0xff]  ;;  %13484 = vmatprep.mubr.msk.bf16.mxu1 %vm3061_vm2, %v13806_v12 }
 0x255   : > { %10911 = vst.msk [vmem:[%s15302_s18 + $0x5e4] sm:$0xf] %vm10533_vm4, %v12590_v5  ;;  %v7586_v31 = vadd.f32 %v16507_v16, %v7067_v26  ;;  %v7323_v32 = vld [vmem:[#allocation2 + $0xbe8] sm:$0xff]  ;;  %v12339_v34 = vpack.c.bf16 %v8099_v22, %v8099_v22  ;;  %v8100_v36 = vmax.f32 %v7588_v24, 0.0  ;;  %v1644_v38 = vld [vmem:[#allocation2 + $0xc30] sm:$0xff]  ;;  %v1386_v39 = vld [vmem:[#allocation2 + $0x420] sm:$0xff] }
 0x256   : > { %6561 = vst.msk [vmem:[#allocation2 + $0x418] sm:$0xff] %vm226_vm3, %v6049_v10  ;;  %6817 = vst.msk [vmem:[#allocation2 + $0xc18] sm:$0xff] %vm226_vm3, %v6305_v17  ;;  %v8353_v35 = vmax.f32 %v7841_v23, 0.0  ;;  %v7842_v37 = vadd.f32 %v16507_v16, %v7323_v32  ;;  %v12595_v40 = vpack.c.bf16 %v8355_v28, %v8355_v28  ;;  %v12337_v41 = vpack.c.bf16 %v8097_v0, %v8097_v0  ;;  %v13122_v44 = vpop.f32.mrb[132].mxu0  ;;  %v1642_v45 = vld [vmem:[#allocation2 + $0xc20] sm:$0xff]  ;;  %v1389_v46 = vld [vmem:[#allocation2 + $0x438] sm:$0xff] }
 0x257   : > { %6559 = vst.msk [vmem:[#allocation2 + $0x408] sm:$0xff] %vm226_vm3, %v6047_v18  ;;  %6815 = vst.msk [vmem:[#allocation2 + $0xc08] sm:$0xff] %vm226_vm3, %v6303_v27  ;;  %v8356_v42 = vmax.f32 %v7844_v30, 0.0  ;;  %v8098_v43 = vmax.f32 %v7586_v31, 0.0  ;;  %v1645_v48 = vld [vmem:[#allocation2 + $0xc38] sm:$0xff]  ;;  %v12340_v19 = vpack.c.bf16 %v8100_v36, %v8100_v36  ;;  %v6052_v51 = vadd.f32 %v13122_v44, %v1388_v33  ;;  %v13378_v52 = vpop.f32.mrb[132].mxu1 }
 0x258   : > { %10660 = vst.msk [vmem:[%s15302_s18 + $0x1f8] sm:$0xf] %vm10533_vm4, %v12339_v34  ;;  %v12593_v49 = vpack.c.bf16 %v8353_v35, %v8353_v35  ;;  %v8354_v50 = vmax.f32 %v7842_v37, 0.0  ;;  %v4399_v53 = vpop.f32.mrb[133].mxu0  ;;  %v1387_v54 = vld [vmem:[#allocation2 + $0x428] sm:$0xff]  ;;  %v6308_v60 = vadd.f32 %v13378_v52, %v1644_v38  ;;  %v5423_v62 = vpop.f32.mrb[133].mxu1 }
 0x259   : > { %v1643_v55 = vld [vmem:[#allocation2 + $0xc28] sm:$0xff]  ;;  %10916 = vst.msk [vmem:[%s15302_s18 + $0x5f8] sm:$0xf] %vm10533_vm4, %v12595_v40  ;;  %10658 = vst.msk [vmem:[%s15302_s18 + $0x1f0] sm:$0xf] %vm10533_vm4, %v12337_v41  ;;  %v12596_v57 = vpack.c.bf16 %v8356_v42, %v8356_v42  ;;  %v12338_v58 = vpack.c.bf16 %v8098_v43, %v8098_v43  ;;  %v7072_v59 = vld [vmem:[#allocation2 + $0x410] sm:$0xff]  ;;  %v6050_v61 = vadd.f32 %v4399_v53, %v1386_v39 }
 0x25a   : > { %v13807_v56 = vld [vmem:[%s14005_s7 + $0x3c8] sm:$0xff]   ;;  %v13123_v63 = vpop.f32.mrb[134].mxu0  ;;  %v13809_v2 = vld [vmem:[%s14005_s7 + $0x3d0] sm:$0xff]   ;;  %10914 = vst.msk [vmem:[%s15302_s18 + $0x5f0] sm:$0xf] %vm10533_vm4, %v12593_v49  ;;  %v12594_v3 = vpack.c.bf16 %v8354_v50, %v8354_v50  ;;  %v7591_v20 = vadd.f32 %v16507_v16, %v7072_v59  ;;  %v6306_v6 = vadd.f32 %v5423_v62, %v1642_v45  ;;  %v13379_v8 = vpop.f32.mrb[134].mxu1 }
 0x25b   : > { %v13808_v1 = vld [vmem:[%s14005_s7 + $0x7c8] sm:$0xff]   ;;  %10661 = vst.msk [vmem:[%s15302_s18 + $0x1fc] sm:$0xf] %vm10533_vm4, %v12340_v19  ;;  %v7328_v4 = vld [vmem:[#allocation2 + $0xc10] sm:$0xff]  ;;  %v7070_v5 = vld [vmem:[#allocation2 + $0x400] sm:$0xff]  ;;  %v6053_v7 = vadd.f32 %v13123_v63, %v1389_v46  ;;  %v4402_v9 = vpop.f32.mrb[135].mxu0  ;;  %v6309_v14 = vadd.f32 %v13379_v8, %v1645_v48  ;;  %13229 = vmatmul.mubr.msk.bf16.gmra.mrb[240].mxu0 %vm3061_vm2, %v13807_v56 }
 0x25c   : > { %6564 = vst.msk [vmem:[#allocation2 + $0x430] sm:$0xff] %vm226_vm3, %v6052_v51  ;;  %v13810_v10 = vld [vmem:[%s14005_s7 + $0x7d0] sm:$0xff]   ;;  %v7847_v11 = vadd.f32 %v16507_v16, %v7328_v4  ;;  %v7589_v47 = vadd.f32 %v16507_v16, %v7070_v5  ;;  %v7326_v12 = vld [vmem:[#allocation2 + $0xc00] sm:$0xff]  ;;  %6820 = vst.msk [vmem:[#allocation2 + $0xc30] sm:$0xff] %vm226_vm3, %v6308_v60  ;;  %v6051_v15 = vadd.f32 %v4402_v9, %v1387_v54  ;;  %v5426_v29 = vpop.f32.mrb[135].mxu1  ;;  %v8103_v17 = vmax.f32 %v7591_v20, 0.0 }
 0x25d   : > { %10917 = vst.msk [vmem:[%s15302_s18 + $0x5fc] sm:$0xf] %vm10533_vm4, %v12596_v57  ;;  %10659 = vst.msk [vmem:[%s15302_s18 + $0x1f4] sm:$0xf] %vm10533_vm4, %v12338_v58  ;;  %v7073_v13 = vld [vmem:[#allocation2 + $0x418] sm:$0xff]  ;;  %v7845_v18 = vadd.f32 %v16507_v16, %v7326_v12  ;;  %v6307_v24 = vadd.f32 %v5426_v29, %v1643_v55  ;;  %13485 = vmatmul.mubr.msk.bf16.gmra.mrb[240].mxu1 %vm3061_vm2, %v13808_v1  ;;  %v1392_v30 = vld [vmem:[#allocation2 + $0x450] sm:$0xff]  ;;  %13232 = vmatprep.mubr.msk.bf16.mxu0 %vm3061_vm2, %v13809_v2 }
 0x25e   : > { %6562 = vst.msk [vmem:[#allocation2 + $0x420] sm:$0xff] %vm226_vm3, %v6050_v61  ;;  %v7592_v21 = vadd.f32 %v16507_v16, %v7073_v13  ;;  %v7329_v22 = vld [vmem:[#allocation2 + $0xc18] sm:$0xff]  ;;  %v7071_v23 = vld [vmem:[#allocation2 + $0x408] sm:$0xff]  ;;  %6818 = vst.msk [vmem:[#allocation2 + $0xc20] sm:$0xff] %vm226_vm3, %v6306_v6  ;;  %v8359_v25 = vmax.f32 %v7847_v11, 0.0  ;;  %v8101_v26 = vmax.f32 %v7589_v47, 0.0  ;;  %v12343_v31 = vpack.c.bf16 %v8103_v17, %v8103_v17  ;;  %13488 = vmatprep.mubr.msk.bf16.mxu1 %vm3061_vm2, %v13810_v10 }
 0x25f   : > { %10915 = vst.msk [vmem:[%s15302_s18 + $0x5f4] sm:$0xf] %vm10533_vm4, %v12594_v3  ;;  %v7848_v27 = vadd.f32 %v16507_v16, %v7329_v22  ;;  %v7590_v28 = vadd.f32 %v16507_v16, %v7071_v23  ;;  %v7327_v0 = vld [vmem:[#allocation2 + $0xc08] sm:$0xff]  ;;  %v8357_v32 = vmax.f32 %v7845_v18, 0.0  ;;  %v1648_v35 = vld [vmem:[#allocation2 + $0xc50] sm:$0xff]  ;;  %v1390_v36 = vld [vmem:[#allocation2 + $0x440] sm:$0xff] }
 0x260   : > { %6565 = vst.msk [vmem:[#allocation2 + $0x438] sm:$0xff] %vm226_vm3, %v6053_v7  ;;  %6821 = vst.msk [vmem:[#allocation2 + $0xc38] sm:$0xff] %vm226_vm3, %v6309_v14  ;;  %v8104_v33 = vmax.f32 %v7592_v21, 0.0  ;;  %v7846_v34 = vadd.f32 %v16507_v16, %v7327_v0  ;;  %v12599_v37 = vpack.c.bf16 %v8359_v25, %v8359_v25  ;;  %v12341_v38 = vpack.c.bf16 %v8101_v26, %v8101_v26  ;;  %v13126_v41 = vpop.f32.mrb[136].mxu0  ;;  %v1646_v42 = vld [vmem:[#allocation2 + $0xc40] sm:$0xff]  ;;  %v1393_v43 = vld [vmem:[#allocation2 + $0x458] sm:$0xff] }
 0x261   : > { %6563 = vst.msk [vmem:[#allocation2 + $0x428] sm:$0xff] %vm226_vm3, %v6051_v15  ;;  %6819 = vst.msk [vmem:[#allocation2 + $0xc28] sm:$0xff] %vm226_vm3, %v6307_v24  ;;  %v8360_v39 = vmax.f32 %v7848_v27, 0.0  ;;  %v8102_v40 = vmax.f32 %v7590_v28, 0.0  ;;  %v1649_v44 = vld [vmem:[#allocation2 + $0xc58] sm:$0xff]  ;;  %v12597_v45 = vpack.c.bf16 %v8357_v32, %v8357_v32  ;;  %v6056_v49 = vadd.f32 %v13126_v41, %v1392_v30  ;;  %v13382_v19 = vpop.f32.mrb[136].mxu1 }
 0x262   : > { %10664 = vst.msk [vmem:[%s15302_s18 + $0x208] sm:$0xf] %vm10533_vm4, %v12343_v31  ;;  %v12344_v46 = vpack.c.bf16 %v8104_v33, %v8104_v33  ;;  %v8358_v48 = vmax.f32 %v7846_v34, 0.0  ;;  %v4415_v50 = vpop.f32.mrb[137].mxu0  ;;  %v1391_v51 = vld [vmem:[#allocation2 + $0x448] sm:$0xff]  ;;  %v13811_v53 = vld [vmem:[%s14005_s7 + $0x3d8] sm:$0xff]   ;;  %v6312_v57 = vadd.f32 %v13382_v19, %v1648_v35 }
 0x263   : > { %v1647_v52 = vld [vmem:[#allocation2 + $0xc48] sm:$0xff]  ;;  %10920 = vst.msk [vmem:[%s15302_s18 + $0x608] sm:$0xf] %vm10533_vm4, %v12599_v37  ;;  %10662 = vst.msk [vmem:[%s15302_s18 + $0x200] sm:$0xf] %vm10533_vm4, %v12341_v38  ;;  %v12600_v54 = vpack.c.bf16 %v8360_v39, %v8360_v39  ;;  %v12342_v55 = vpack.c.bf16 %v8102_v40, %v8102_v40  ;;  %v7076_v56 = vld [vmem:[#allocation2 + $0x430] sm:$0xff]  ;;  %v6054_v58 = vadd.f32 %v4415_v50, %v1390_v36  ;;  %13233 = vmatmul.mubr.msk.bf16.gmra.mrb[244].mxu0 %vm3061_vm2, %v13811_v53 }
 0x264   : > { %v5439_v59 = vpop.f32.mrb[137].mxu1  ;;  %v13127_v60 = vpop.f32.mrb[138].mxu0  ;;  %v13812_v61 = vld [vmem:[%s14005_s7 + $0x7d8] sm:$0xff]   ;;  %v13813_v62 = vld [vmem:[%s14005_s7 + $0x3e0] sm:$0xff]   ;;  %10918 = vst.msk [vmem:[%s15302_s18 + $0x600] sm:$0xf] %vm10533_vm4, %v12597_v45  ;;  %v12598_v63 = vpack.c.bf16 %v8358_v48, %v8358_v48  ;;  %v7595_v1 = vadd.f32 %v16507_v16, %v7076_v56 }
 0x265   : > { %10665 = vst.msk [vmem:[%s15302_s18 + $0x20c] sm:$0xf] %vm10533_vm4, %v12344_v46  ;;  %v7332_v2 = vld [vmem:[#allocation2 + $0xc30] sm:$0xff]  ;;  %v7074_v3 = vld [vmem:[#allocation2 + $0x420] sm:$0xff]  ;;  %v6310_v20 = vadd.f32 %v5439_v59, %v1646_v42  ;;  %v6057_v4 = vadd.f32 %v13127_v60, %v1393_v43  ;;  %v13383_v5 = vpop.f32.mrb[138].mxu1  ;;  %v4418_v6 = vpop.f32.mrb[139].mxu0  ;;  %13489 = vmatmul.mubr.msk.bf16.gmra.mrb[244].mxu1 %vm3061_vm2, %v13812_v61  ;;  %13236 = vmatprep.mubr.msk.bf16.mxu0 %vm3061_vm2, %v13813_v62 }
 0x266   : > { %6568 = vst.msk [vmem:[#allocation2 + $0x450] sm:$0xff] %vm226_vm3, %v6056_v49  ;;  %v13814_v7 = vld [vmem:[%s14005_s7 + $0x7e0] sm:$0xff]   ;;  %v7851_v8 = vadd.f32 %v16507_v16, %v7332_v2  ;;  %v7593_v9 = vadd.f32 %v16507_v16, %v7074_v3  ;;  %6824 = vst.msk [vmem:[#allocation2 + $0xc50] sm:$0xff] %vm226_vm3, %v6312_v57  ;;  %v6313_v47 = vadd.f32 %v13383_v5, %v1649_v44  ;;  %v5442_v13 = vpop.f32.mrb[139].mxu1  ;;  %v8107_v14 = vmax.f32 %v7595_v1, 0.0  ;;  %v1396_v27 = vld [vmem:[#allocation2 + $0x470] sm:$0xff] }
 0x267   : > { %10921 = vst.msk [vmem:[%s15302_s18 + $0x60c] sm:$0xf] %vm10533_vm4, %v12600_v54  ;;  %10663 = vst.msk [vmem:[%s15302_s18 + $0x204] sm:$0xf] %vm10533_vm4, %v12342_v55  ;;  %v7330_v10 = vld [vmem:[#allocation2 + $0xc20] sm:$0xff]  ;;  %v7077_v11 = vld [vmem:[#allocation2 + $0x438] sm:$0xff]  ;;  %v6055_v12 = vadd.f32 %v4418_v6, %v1391_v51  ;;  %v6311_v21 = vadd.f32 %v5442_v13, %v1647_v52  ;;  %13492 = vmatprep.mubr.msk.bf16.mxu1 %vm3061_vm2, %v13814_v7 }
 0x268   : > { %6566 = vst.msk [vmem:[#allocation2 + $0x440] sm:$0xff] %vm226_vm3, %v6054_v58  ;;  %v7849_v15 = vadd.f32 %v16507_v16, %v7330_v10  ;;  %v7596_v29 = vadd.f32 %v16507_v16, %v7077_v11  ;;  %v7333_v17 = vld [vmem:[#allocation2 + $0xc38] sm:$0xff]  ;;  %v7075_v18 = vld [vmem:[#allocation2 + $0x428] sm:$0xff]  ;;  %6822 = vst.msk [vmem:[#allocation2 + $0xc40] sm:$0xff] %vm226_vm3, %v6310_v20  ;;  %v8363_v22 = vmax.f32 %v7851_v8, 0.0  ;;  %v8105_v23 = vmax.f32 %v7593_v9, 0.0 }
 0x269   : > { %10919 = vst.msk [vmem:[%s15302_s18 + $0x604] sm:$0xf] %vm10533_vm4, %v12598_v63  ;;  %v7852_v24 = vadd.f32 %v16507_v16, %v7333_v17  ;;  %v7594_v25 = vadd.f32 %v16507_v16, %v7075_v18  ;;  %v7331_v26 = vld [vmem:[#allocation2 + $0xc28] sm:$0xff]  ;;  %v12347_v28 = vpack.c.bf16 %v8107_v14, %v8107_v14  ;;  %v1652_v32 = vld [vmem:[#allocation2 + $0xc70] sm:$0xff]  ;;  %v1394_v33 = vld [vmem:[#allocation2 + $0x460] sm:$0xff]  ;;  %v13130_v38 = vpop.f32.mrb[140].mxu0 }
 0x26a   : > { %6569 = vst.msk [vmem:[#allocation2 + $0x458] sm:$0xff] %vm226_vm3, %v6057_v4  ;;  %6825 = vst.msk [vmem:[#allocation2 + $0xc58] sm:$0xff] %vm226_vm3, %v6313_v47  ;;  %v8361_v0 = vmax.f32 %v7849_v15, 0.0  ;;  %v8108_v30 = vmax.f32 %v7596_v29, 0.0  ;;  %v7850_v31 = vadd.f32 %v16507_v16, %v7331_v26  ;;  %v12603_v34 = vpack.c.bf16 %v8363_v22, %v8363_v22  ;;  %v1650_v39 = vld [vmem:[#allocation2 + $0xc60] sm:$0xff]  ;;  %v1397_v40 = vld [vmem:[#allocation2 + $0x478] sm:$0xff] }
 0x26b   : > { %6567 = vst.msk [vmem:[#allocation2 + $0x448] sm:$0xff] %vm226_vm3, %v6055_v12  ;;  %6823 = vst.msk [vmem:[#allocation2 + $0xc48] sm:$0xff] %vm226_vm3, %v6311_v21  ;;  %v12345_v35 = vpack.c.bf16 %v8105_v23, %v8105_v23  ;;  %v8364_v36 = vmax.f32 %v7852_v24, 0.0  ;;  %v8106_v37 = vmax.f32 %v7594_v25, 0.0  ;;  %v1653_v41 = vld [vmem:[#allocation2 + $0xc78] sm:$0xff]  ;;  %v6060_v45 = vadd.f32 %v13130_v38, %v1396_v27  ;;  %v13386_v46 = vpop.f32.mrb[140].mxu1 }
 0x26c   : > { %10668 = vst.msk [vmem:[%s15302_s18 + $0x218] sm:$0xf] %vm10533_vm4, %v12347_v28  ;;  %v12601_v42 = vpack.c.bf16 %v8361_v0, %v8361_v0  ;;  %v12348_v43 = vpack.c.bf16 %v8108_v30, %v8108_v30  ;;  %v8362_v44 = vmax.f32 %v7850_v31, 0.0  ;;  %v4431_v48 = vpop.f32.mrb[141].mxu0  ;;  %v1395_v49 = vld [vmem:[#allocation2 + $0x468] sm:$0xff]  ;;  %v6316_v54 = vadd.f32 %v13386_v46, %v1652_v32  ;;  %v5455_v56 = vpop.f32.mrb[141].mxu1 }
 0x26d   : > { %v1651_v19 = vld [vmem:[#allocation2 + $0xc68] sm:$0xff]  ;;  %10924 = vst.msk [vmem:[%s15302_s18 + $0x618] sm:$0xf] %vm10533_vm4, %v12603_v34  ;;  %10666 = vst.msk [vmem:[%s15302_s18 + $0x210] sm:$0xf] %vm10533_vm4, %v12345_v35  ;;  %v12604_v51 = vpack.c.bf16 %v8364_v36, %v8364_v36  ;;  %v12346_v52 = vpack.c.bf16 %v8106_v37, %v8106_v37  ;;  %v7080_v53 = vld [vmem:[#allocation2 + $0x450] sm:$0xff]  ;;  %v6058_v55 = vadd.f32 %v4431_v48, %v1394_v33 }
 0x26e   : > { %v13815_v50 = vld [vmem:[%s14005_s7 + $0x3e8] sm:$0xff]   ;;  %v13131_v57 = vpop.f32.mrb[142].mxu0  ;;  %v13817_v59 = vld [vmem:[%s14005_s7 + $0x3f0] sm:$0xff]   ;;  %10922 = vst.msk [vmem:[%s15302_s18 + $0x610] sm:$0xf] %vm10533_vm4, %v12601_v42  ;;  %v12602_v60 = vpack.c.bf16 %v8362_v44, %v8362_v44  ;;  %v7599_v61 = vadd.f32 %v16507_v16, %v7080_v53  ;;  %v6314_v1 = vadd.f32 %v5455_v56, %v1650_v39  ;;  %v13387_v3 = vpop.f32.mrb[142].mxu1 }
 0x26f   : > { %v13816_v58 = vld [vmem:[%s14005_s7 + $0x7e8] sm:$0xff]   ;;  %10669 = vst.msk [vmem:[%s15302_s18 + $0x21c] sm:$0xf] %vm10533_vm4, %v12348_v43  ;;  %v7336_v62 = vld [vmem:[#allocation2 + $0xc50] sm:$0xff]  ;;  %v7078_v63 = vld [vmem:[#allocation2 + $0x440] sm:$0xff]  ;;  %v6061_v2 = vadd.f32 %v13131_v57, %v1397_v40  ;;  %v4434_v20 = vpop.f32.mrb[143].mxu0  ;;  %v6317_v9 = vadd.f32 %v13387_v3, %v1653_v41  ;;  %13237 = vmatmul.mubr.msk.bf16.gmra.mrb[248].mxu0 %vm3061_vm2, %v13815_v50 }
 0x270   : > { %6572 = vst.msk [vmem:[#allocation2 + $0x470] sm:$0xff] %vm226_vm3, %v6060_v45  ;;  %v13818_v4 = vld [vmem:[%s14005_s7 + $0x7f0] sm:$0xff]   ;;  %v7855_v5 = vadd.f32 %v16507_v16, %v7336_v62  ;;  %v7597_v6 = vadd.f32 %v16507_v16, %v7078_v63  ;;  %v7334_v7 = vld [vmem:[#allocation2 + $0xc40] sm:$0xff]  ;;  %6828 = vst.msk [vmem:[#allocation2 + $0xc70] sm:$0xff] %vm226_vm3, %v6316_v54  ;;  %v6059_v10 = vadd.f32 %v4434_v20, %v1395_v49  ;;  %v5458_v11 = vpop.f32.mrb[143].mxu1  ;;  %v8111_v47 = vmax.f32 %v7599_v61, 0.0 }
 0x271   : > { %10925 = vst.msk [vmem:[%s15302_s18 + $0x61c] sm:$0xf] %vm10533_vm4, %v12604_v51  ;;  %10667 = vst.msk [vmem:[%s15302_s18 + $0x214] sm:$0xf] %vm10533_vm4, %v12346_v52  ;;  %v7081_v8 = vld [vmem:[#allocation2 + $0x458] sm:$0xff]  ;;  %v7853_v12 = vadd.f32 %v16507_v16, %v7334_v7  ;;  %v6315_v29 = vadd.f32 %v5458_v11, %v1651_v19  ;;  %13493 = vmatmul.mubr.msk.bf16.gmra.mrb[248].mxu1 %vm3061_vm2, %v13816_v58  ;;  %v1400_v24 = vld [vmem:[#allocation2 + $0x490] sm:$0xff]  ;;  %13240 = vmatprep.mubr.msk.bf16.mxu0 %vm3061_vm2, %v13817_v59 }
 0x272   : > { %6570 = vst.msk [vmem:[#allocation2 + $0x460] sm:$0xff] %vm226_vm3, %v6058_v55  ;;  %v7600_v13 = vadd.f32 %v16507_v16, %v7081_v8  ;;  %v7337_v14 = vld [vmem:[#allocation2 + $0xc58] sm:$0xff]  ;;  %v7079_v15 = vld [vmem:[#allocation2 + $0x448] sm:$0xff]  ;;  %6826 = vst.msk [vmem:[#allocation2 + $0xc60] sm:$0xff] %vm226_vm3, %v6314_v1  ;;  %v8367_v17 = vmax.f32 %v7855_v5, 0.0  ;;  %v8109_v18 = vmax.f32 %v7597_v6, 0.0  ;;  %v12351_v25 = vpack.c.bf16 %v8111_v47, %v8111_v47  ;;  %13496 = vmatprep.mubr.msk.bf16.mxu1 %vm3061_vm2, %v13818_v4 }
 0x273   : > { %10923 = vst.msk [vmem:[%s15302_s18 + $0x614] sm:$0xf] %vm10533_vm4, %v12602_v60  ;;  %v7856_v21 = vadd.f32 %v16507_v16, %v7337_v14  ;;  %v7598_v22 = vadd.f32 %v16507_v16, %v7079_v15  ;;  %v7335_v23 = vld [vmem:[#allocation2 + $0xc48] sm:$0xff]  ;;  %v8365_v26 = vmax.f32 %v7853_v12, 0.0  ;;  %v1656_v0 = vld [vmem:[#allocation2 + $0xc90] sm:$0xff]  ;;  %v1398_v30 = vld [vmem:[#allocation2 + $0x480] sm:$0xff] }
 0x274   : > { %6573 = vst.msk [vmem:[#allocation2 + $0x478] sm:$0xff] %vm226_vm3, %v6061_v2  ;;  %6829 = vst.msk [vmem:[#allocation2 + $0xc78] sm:$0xff] %vm226_vm3, %v6317_v9  ;;  %v8112_v27 = vmax.f32 %v7600_v13, 0.0  ;;  %v7854_v28 = vadd.f32 %v16507_v16, %v7335_v23  ;;  %v12607_v31 = vpack.c.bf16 %v8367_v17, %v8367_v17  ;;  %v12349_v32 = vpack.c.bf16 %v8109_v18, %v8109_v18  ;;  %v13134_v35 = vpop.f32.mrb[144].mxu0  ;;  %v1654_v36 = vld [vmem:[#allocation2 + $0xc80] sm:$0xff]  ;;  %v1401_v37 = vld [vmem:[#allocation2 + $0x498] sm:$0xff] }
 0x275   : > { %6571 = vst.msk [vmem:[#allocation2 + $0x468] sm:$0xff] %vm226_vm3, %v6059_v10  ;;  %6827 = vst.msk [vmem:[#allocation2 + $0xc68] sm:$0xff] %vm226_vm3, %v6315_v29  ;;  %v8368_v33 = vmax.f32 %v7856_v21, 0.0  ;;  %v8110_v34 = vmax.f32 %v7598_v22, 0.0  ;;  %v12605_v38 = vpack.c.bf16 %v8365_v26, %v8365_v26  ;;  %v6064_v41 = vadd.f32 %v13134_v35, %v1400_v24  ;;  %v13390_v42 = vpop.f32.mrb[144].mxu1  ;;  %v4447_v43 = vpop.f32.mrb[145].mxu0 }
 0x276   : > { %10672 = vst.msk [vmem:[%s15302_s18 + $0x228] sm:$0xf] %vm10533_vm4, %v12351_v25  ;;  %v12352_v39 = vpack.c.bf16 %v8112_v27, %v8112_v27  ;;  %v8366_v40 = vmax.f32 %v7854_v28, 0.0  ;;  %v1657_v44 = vld [vmem:[#allocation2 + $0xc98] sm:$0xff]  ;;  %v1399_v45 = vld [vmem:[#allocation2 + $0x488] sm:$0xff]  ;;  %v6320_v50 = vadd.f32 %v13390_v42, %v1656_v0  ;;  %v6062_v51 = vadd.f32 %v4447_v43, %v1398_v30  ;;  %v5471_v52 = vpop.f32.mrb[145].mxu1 }
 0x277   : > { %v13819_v46 = vld [vmem:[%s14005_s7 + $0x3f8] sm:$0xff]   ;;  %10928 = vst.msk [vmem:[%s15302_s18 + $0x628] sm:$0xf] %vm10533_vm4, %v12607_v31  ;;  %10670 = vst.msk [vmem:[%s15302_s18 + $0x220] sm:$0xf] %vm10533_vm4, %v12349_v32  ;;  %v12608_v48 = vpack.c.bf16 %v8368_v33, %v8368_v33  ;;  %v12350_v49 = vpack.c.bf16 %v8110_v34, %v8110_v34  ;;  %v7084_v19 = vld [vmem:[#allocation2 + $0x470] sm:$0xff]  ;;  %v6318_v60 = vadd.f32 %v5471_v52, %v1654_v36 }
 0x278   : > { %v13135_v53 = vpop.f32.mrb[146].mxu0  ;;  %v1655_v54 = vld [vmem:[#allocation2 + $0xc88] sm:$0xff]  ;;  %v13820_v55 = vld [vmem:[%s14005_s7 + $0x7f8] sm:$0xff]   ;;  %10926 = vst.msk [vmem:[%s15302_s18 + $0x620] sm:$0xf] %vm10533_vm4, %v12605_v38  ;;  %v12606_v56 = vpack.c.bf16 %v8366_v40, %v8366_v40  ;;  %v7603_v57 = vadd.f32 %v16507_v16, %v7084_v19  ;;  %v7340_v58 = vld [vmem:[#allocation2 + $0xc70] sm:$0xff]  ;;  %13241 = vmatmul.mubr.msk.bf16.gmra.mrb[252].mxu0 %vm3061_vm2, %v13819_v46 }
 0x279   : > { %10673 = vst.msk [vmem:[%s15302_s18 + $0x22c] sm:$0xf] %vm10533_vm4, %v12352_v39  ;;  %v7082_v59 = vld [vmem:[#allocation2 + $0x460] sm:$0xff]  ;;  %v6065_v61 = vadd.f32 %v13135_v53, %v1401_v37  ;;  %v13391_v62 = vpop.f32.mrb[146].mxu1  ;;  %v4450_v63 = vpop.f32.mrb[147].mxu0  ;;  %v7859_v1 = vadd.f32 %v16507_v16, %v7340_v58  ;;  %13497 = vmatmul.mubr.msk.bf16.gmra.mrb[252].mxu1 %vm3061_vm2, %v13820_v55  ;;  %v1404_v17 = vld [vmem:[#allocation2 + $0x4b0] sm:$0xff] }
 0x27a   : > { %6576 = vst.msk [vmem:[#allocation2 + $0x490] sm:$0xff] %vm226_vm3, %v6064_v41  ;;  %v7601_v2 = vadd.f32 %v16507_v16, %v7082_v59  ;;  %v7338_v3 = vld [vmem:[#allocation2 + $0xc60] sm:$0xff]  ;;  %6832 = vst.msk [vmem:[#allocation2 + $0xc90] sm:$0xff] %vm226_vm3, %v6320_v50  ;;  %v6321_v4 = vadd.f32 %v13391_v62, %v1657_v44  ;;  %v6063_v5 = vadd.f32 %v4450_v63, %v1399_v45  ;;  %v5474_v6 = vpop.f32.mrb[147].mxu1  ;;  %v8115_v7 = vmax.f32 %v7603_v57, 0.0  ;;  %v1660_v24 = vld [vmem:[#allocation2 + $0xcb0] sm:$0xff] }
 0x27b   : > { %10929 = vst.msk [vmem:[%s15302_s18 + $0x62c] sm:$0xf] %vm10533_vm4, %v12608_v48  ;;  %10671 = vst.msk [vmem:[%s15302_s18 + $0x224] sm:$0xf] %vm10533_vm4, %v12350_v49  ;;  %v7085_v20 = vld [vmem:[#allocation2 + $0x478] sm:$0xff]  ;;  %v7857_v8 = vadd.f32 %v16507_v16, %v7338_v3  ;;  %v6319_v47 = vadd.f32 %v5474_v6, %v1655_v54  ;;  %v8371_v12 = vmax.f32 %v7859_v1, 0.0 }
 0x27c   : > { %6574 = vst.msk [vmem:[#allocation2 + $0x480] sm:$0xff] %vm226_vm3, %v6062_v51  ;;  %v7604_v9 = vadd.f32 %v16507_v16, %v7085_v20  ;;  %v7341_v10 = vld [vmem:[#allocation2 + $0xc78] sm:$0xff]  ;;  %v7083_v11 = vld [vmem:[#allocation2 + $0x468] sm:$0xff]  ;;  %6830 = vst.msk [vmem:[#allocation2 + $0xc80] sm:$0xff] %vm226_vm3, %v6318_v60  ;;  %v8113_v13 = vmax.f32 %v7601_v2, 0.0  ;;  %v12355_v18 = vpack.c.bf16 %v8115_v7, %v8115_v7  ;;  %v13138_v30 = vpop.f32.mrb[148].mxu0 }
 0x27d   : > { %10927 = vst.msk [vmem:[%s15302_s18 + $0x624] sm:$0xf] %vm10533_vm4, %v12606_v56  ;;  %v7860_v14 = vadd.f32 %v16507_v16, %v7341_v10  ;;  %v7602_v15 = vadd.f32 %v16507_v16, %v7083_v11  ;;  %v7339_v29 = vld [vmem:[#allocation2 + $0xc68] sm:$0xff]  ;;  %v8369_v21 = vmax.f32 %v7857_v8, 0.0  ;;  %v1402_v25 = vld [vmem:[#allocation2 + $0x4a0] sm:$0xff]  ;;  %v12611_v26 = vpack.c.bf16 %v8371_v12, %v8371_v12  ;;  %v1405_v32 = vld [vmem:[#allocation2 + $0x4b8] sm:$0xff] }
 0x27e   : > { %6577 = vst.msk [vmem:[#allocation2 + $0x498] sm:$0xff] %vm226_vm3, %v6065_v61  ;;  %6833 = vst.msk [vmem:[#allocation2 + $0xc98] sm:$0xff] %vm226_vm3, %v6321_v4  ;;  %v8116_v22 = vmax.f32 %v7604_v9, 0.0  ;;  %v7858_v23 = vadd.f32 %v16507_v16, %v7339_v29  ;;  %v12353_v27 = vpack.c.bf16 %v8113_v13, %v8113_v13  ;;  %v1658_v31 = vld [vmem:[#allocation2 + $0xca0] sm:$0xff]  ;;  %v6068_v36 = vadd.f32 %v13138_v30, %v1404_v17  ;;  %v13394_v37 = vpop.f32.mrb[148].mxu1  ;;  %v4463_v38 = vpop.f32.mrb[149].mxu0 }
 0x27f   : > { %6575 = vst.msk [vmem:[#allocation2 + $0x488] sm:$0xff] %vm226_vm3, %v6063_v5  ;;  %6831 = vst.msk [vmem:[#allocation2 + $0xc88] sm:$0xff] %vm226_vm3, %v6319_v47  ;;  %v8372_v28 = vmax.f32 %v7860_v14, 0.0  ;;  %v8114_v0 = vmax.f32 %v7602_v15, 0.0  ;;  %v12609_v33 = vpack.c.bf16 %v8369_v21, %v8369_v21  ;;  %v1661_v39 = vld [vmem:[#allocation2 + $0xcb8] sm:$0xff]  ;;  %v1403_v40 = vld [vmem:[#allocation2 + $0x4a8] sm:$0xff]  ;;  %v6324_v44 = vadd.f32 %v13394_v37, %v1660_v24 }
 0x280   : > { %10676 = vst.msk [vmem:[%s15302_s18 + $0x238] sm:$0xf] %vm10533_vm4, %v12355_v18  ;;  %v12356_v34 = vpack.c.bf16 %v8116_v22, %v8116_v22  ;;  %v8370_v35 = vmax.f32 %v7858_v23, 0.0  ;;  %10932 = vst.msk [vmem:[%s15302_s18 + $0x638] sm:$0xf] %vm10533_vm4, %v12611_v26  ;;  %v6066_v45 = vadd.f32 %v4463_v38, %v1402_v25  ;;  %v5487_v46 = vpop.f32.mrb[149].mxu1 }
 0x281   : > { %10674 = vst.msk [vmem:[%s15302_s18 + $0x230] sm:$0xf] %vm10533_vm4, %v12353_v27  ;;  %v12612_v41 = vpack.c.bf16 %v8372_v28, %v8372_v28  ;;  %v12354_v42 = vpack.c.bf16 %v8114_v0, %v8114_v0  ;;  %v7088_v43 = vld [vmem:[#allocation2 + $0x490] sm:$0xff]  ;;  %v13139_v48 = vpop.f32.mrb[150].mxu0  ;;  %v1659_v49 = vld [vmem:[#allocation2 + $0xca8] sm:$0xff]  ;;  %v6322_v53 = vadd.f32 %v5487_v46, %v1658_v31  ;;  %v13395_v55 = vpop.f32.mrb[150].mxu1 }
 0x282   : > { %10930 = vst.msk [vmem:[%s15302_s18 + $0x630] sm:$0xf] %vm10533_vm4, %v12609_v33  ;;  %10677 = vst.msk [vmem:[%s15302_s18 + $0x23c] sm:$0xf] %vm10533_vm4, %v12356_v34  ;;  %v12610_v19 = vpack.c.bf16 %v8370_v35, %v8370_v35  ;;  %v7607_v50 = vadd.f32 %v16507_v16, %v7088_v43  ;;  %v7344_v51 = vld [vmem:[#allocation2 + $0xc90] sm:$0xff]  ;;  %v6069_v54 = vadd.f32 %v13139_v48, %v1405_v32  ;;  %v4466_v56 = vpop.f32.mrb[151].mxu0 }
 0x283   : > { %v7086_v52 = vld [vmem:[#allocation2 + $0x480] sm:$0xff]  ;;  %6580 = vst.msk [vmem:[#allocation2 + $0x4b0] sm:$0xff] %vm226_vm3, %v6068_v36  ;;  %v7863_v57 = vadd.f32 %v16507_v16, %v7344_v51  ;;  %6836 = vst.msk [vmem:[#allocation2 + $0xcb0] sm:$0xff] %vm226_vm3, %v6324_v44  ;;  %v6325_v61 = vadd.f32 %v13395_v55, %v1661_v39  ;;  %v6067_v62 = vadd.f32 %v4466_v56, %v1403_v40  ;;  %v5490_v63 = vpop.f32.mrb[151].mxu1  ;;  %v1408_v11 = vld [vmem:[#allocation2 + $0x4d0] sm:$0xff]  ;;  %v13142_v23 = vpop.f32.mrb[152].mxu0 }
 0x284   : > { %10933 = vst.msk [vmem:[%s15302_s18 + $0x63c] sm:$0xf] %vm10533_vm4, %v12612_v41  ;;  %10675 = vst.msk [vmem:[%s15302_s18 + $0x234] sm:$0xf] %vm10533_vm4, %v12354_v42  ;;  %v7605_v58 = vadd.f32 %v16507_v16, %v7086_v52  ;;  %v7342_v59 = vld [vmem:[#allocation2 + $0xc80] sm:$0xff]  ;;  %v8119_v1 = vmax.f32 %v7607_v50, 0.0  ;;  %v6323_v5 = vadd.f32 %v5490_v63, %v1659_v49 }
 0x285   : > { %v7089_v60 = vld [vmem:[#allocation2 + $0x498] sm:$0xff]  ;;  %6578 = vst.msk [vmem:[#allocation2 + $0x4a0] sm:$0xff] %vm226_vm3, %v6066_v45  ;;  %v7861_v2 = vadd.f32 %v16507_v16, %v7342_v59  ;;  %6834 = vst.msk [vmem:[#allocation2 + $0xca0] sm:$0xff] %vm226_vm3, %v6322_v53  ;;  %v8375_v6 = vmax.f32 %v7863_v57, 0.0  ;;  %v1664_v15 = vld [vmem:[#allocation2 + $0xcd0] sm:$0xff]  ;;  %v13398_v0 = vpop.f32.mrb[152].mxu1 }
 0x286   : > { %10931 = vst.msk [vmem:[%s15302_s18 + $0x634] sm:$0xf] %vm10533_vm4, %v12610_v19  ;;  %v7608_v3 = vadd.f32 %v16507_v16, %v7089_v60  ;;  %v7345_v20 = vld [vmem:[#allocation2 + $0xc98] sm:$0xff]  ;;  %v7087_v4 = vld [vmem:[#allocation2 + $0x488] sm:$0xff]  ;;  %v8117_v7 = vmax.f32 %v7605_v58, 0.0  ;;  %v12359_v47 = vpack.c.bf16 %v8119_v1, %v8119_v1  ;;  %v1406_v29 = vld [vmem:[#allocation2 + $0x4c0] sm:$0xff]  ;;  %v6328_v36 = vadd.f32 %v13398_v0, %v1664_v15 }
 0x287   : > { %6581 = vst.msk [vmem:[#allocation2 + $0x4b8] sm:$0xff] %vm226_vm3, %v6069_v54  ;;  %v7864_v8 = vadd.f32 %v16507_v16, %v7345_v20  ;;  %v7606_v9 = vadd.f32 %v16507_v16, %v7087_v4  ;;  %v7343_v10 = vld [vmem:[#allocation2 + $0xc88] sm:$0xff]  ;;  %6837 = vst.msk [vmem:[#allocation2 + $0xcb8] sm:$0xff] %vm226_vm3, %v6325_v61  ;;  %v8373_v12 = vmax.f32 %v7861_v2, 0.0  ;;  %v12615_v17 = vpack.c.bf16 %v8375_v6, %v8375_v6  ;;  %v1662_v24 = vld [vmem:[#allocation2 + $0xcc0] sm:$0xff]  ;;  %v4479_v30 = vpop.f32.mrb[153].mxu0 }
 0x288   : > { %6579 = vst.msk [vmem:[#allocation2 + $0x4a8] sm:$0xff] %vm226_vm3, %v6067_v62  ;;  %v8120_v13 = vmax.f32 %v7608_v3, 0.0  ;;  %v7862_v14 = vadd.f32 %v16507_v16, %v7343_v10  ;;  %6835 = vst.msk [vmem:[#allocation2 + $0xca8] sm:$0xff] %vm226_vm3, %v6323_v5  ;;  %v12357_v18 = vpack.c.bf16 %v8117_v7, %v8117_v7  ;;  %v1409_v25 = vld [vmem:[#allocation2 + $0x4d8] sm:$0xff]  ;;  %v6072_v16 = vadd.f32 %v13142_v23, %v1408_v11  ;;  %v1407_v32 = vld [vmem:[#allocation2 + $0x4c8] sm:$0xff]  ;;  %v5503_v38 = vpop.f32.mrb[153].mxu1 }
 0x289   : > { %v8376_v21 = vmax.f32 %v7864_v8, 0.0  ;;  %v8118_v22 = vmax.f32 %v7606_v9, 0.0  ;;  %10680 = vst.msk [vmem:[%s15302_s18 + $0x248] sm:$0xf] %vm10533_vm4, %v12359_v47  ;;  %v12613_v26 = vpack.c.bf16 %v8373_v12, %v8373_v12  ;;  %v1665_v31 = vld [vmem:[#allocation2 + $0xcd8] sm:$0xff]  ;;  %v6070_v37 = vadd.f32 %v4479_v30, %v1406_v29  ;;  %v13143_v39 = vpop.f32.mrb[154].mxu0 }
 0x28a   : > { %v12360_v27 = vpack.c.bf16 %v8120_v13, %v8120_v13  ;;  %v8374_v28 = vmax.f32 %v7862_v14, 0.0  ;;  %10936 = vst.msk [vmem:[%s15302_s18 + $0x648] sm:$0xf] %vm10533_vm4, %v12615_v17  ;;  %10678 = vst.msk [vmem:[%s15302_s18 + $0x240] sm:$0xf] %vm10533_vm4, %v12357_v18  ;;  %v7092_v35 = vld [vmem:[#allocation2 + $0x4b0] sm:$0xff]  ;;  %v6326_v46 = vadd.f32 %v5503_v38, %v1662_v24  ;;  %v6073_v48 = vadd.f32 %v13143_v39, %v1409_v25 }
 0x28b   : > { %v12616_v33 = vpack.c.bf16 %v8376_v21, %v8376_v21  ;;  %v12358_v34 = vpack.c.bf16 %v8118_v22, %v8118_v22  ;;  %v1663_v40 = vld [vmem:[#allocation2 + $0xcc8] sm:$0xff]  ;;  %10934 = vst.msk [vmem:[%s15302_s18 + $0x640] sm:$0xf] %vm10533_vm4, %v12613_v26  ;;  %v16770_v42 = vld [vmem:[%s17708_s2] ss:$0 sm:$0xff]  ;;  %v7348_v44 = vld [vmem:[#allocation2 + $0xcb0] sm:$0xff] }
 0x28c   : > { %10681 = vst.msk [vmem:[%s15302_s18 + $0x24c] sm:$0xf] %vm10533_vm4, %v12360_v27  ;;  %v12614_v41 = vpack.c.bf16 %v8374_v28, %v8374_v28  ;;  %v7611_v43 = vadd.f32 %v16770_v42, %v7092_v35  ;;  %v7090_v45 = vld [vmem:[#allocation2 + $0x4a0] sm:$0xff]  ;;  %v13399_v49 = vpop.f32.mrb[154].mxu1  ;;  %v4482_v19 = vpop.f32.mrb[155].mxu0  ;;  %v7867_v50 = vadd.f32 %v16770_v42, %v7348_v44  ;;  %v1412_v4 = vld [vmem:[#allocation2 + $0x4f0] sm:$0xff] }
 0x28d   : > { %6584 = vst.msk [vmem:[#allocation2 + $0x4d0] sm:$0xff] %vm226_vm3, %v6072_v16  ;;  %v7609_v51 = vadd.f32 %v16770_v42, %v7090_v45  ;;  %v7346_v52 = vld [vmem:[#allocation2 + $0xca0] sm:$0xff]  ;;  %6840 = vst.msk [vmem:[#allocation2 + $0xcd0] sm:$0xff] %vm226_vm3, %v6328_v36  ;;  %v6329_v54 = vadd.f32 %v13399_v49, %v1665_v31  ;;  %v6071_v55 = vadd.f32 %v4482_v19, %v1407_v32  ;;  %v5506_v56 = vpop.f32.mrb[155].mxu1  ;;  %v1668_v9 = vld [vmem:[#allocation2 + $0xcf0] sm:$0xff]  ;;  %v13146_v14 = vpop.f32.mrb[156].mxu0 }
 0x28e   : > { %10937 = vst.msk [vmem:[%s15302_s18 + $0x64c] sm:$0xf] %vm10533_vm4, %v12616_v33  ;;  %10679 = vst.msk [vmem:[%s15302_s18 + $0x244] sm:$0xf] %vm10533_vm4, %v12358_v34  ;;  %v7093_v53 = vld [vmem:[#allocation2 + $0x4b8] sm:$0xff]  ;;  %v8123_v57 = vmax.f32 %v7611_v43, 0.0  ;;  %v7865_v58 = vadd.f32 %v16770_v42, %v7346_v52  ;;  %v6327_v62 = vadd.f32 %v5506_v56, %v1663_v40  ;;  %v6076_v22 = vadd.f32 %v13146_v14, %v1412_v4 }
 0x28f   : > { %6582 = vst.msk [vmem:[#allocation2 + $0x4c0] sm:$0xff] %vm226_vm3, %v6070_v37  ;;  %v7612_v59 = vadd.f32 %v16770_v42, %v7093_v53  ;;  %v7349_v60 = vld [vmem:[#allocation2 + $0xcb8] sm:$0xff]  ;;  %v7091_v61 = vld [vmem:[#allocation2 + $0x4a8] sm:$0xff]  ;;  %6838 = vst.msk [vmem:[#allocation2 + $0xcc0] sm:$0xff] %vm226_vm3, %v6326_v46  ;;  %v8379_v63 = vmax.f32 %v7867_v50, 0.0  ;;  %v8121_v1 = vmax.f32 %v7609_v51, 0.0 }
 0x290   : > { %10935 = vst.msk [vmem:[%s15302_s18 + $0x644] sm:$0xf] %vm10533_vm4, %v12614_v41  ;;  %v7868_v2 = vadd.f32 %v16770_v42, %v7349_v60  ;;  %v7610_v3 = vadd.f32 %v16770_v42, %v7091_v61  ;;  %v7347_v20 = vld [vmem:[#allocation2 + $0xca8] sm:$0xff]  ;;  %v12363_v5 = vpack.c.bf16 %v8123_v57, %v8123_v57  ;;  %v8377_v6 = vmax.f32 %v7865_v58, 0.0  ;;  %v1410_v10 = vld [vmem:[#allocation2 + $0x4e0] sm:$0xff]  ;;  %v1413_v29 = vld [vmem:[#allocation2 + $0x4f8] sm:$0xff] }
 0x291   : > { %6585 = vst.msk [vmem:[#allocation2 + $0x4d8] sm:$0xff] %vm226_vm3, %v6073_v48  ;;  %6841 = vst.msk [vmem:[#allocation2 + $0xcd8] sm:$0xff] %vm226_vm3, %v6329_v54  ;;  %v8124_v7 = vmax.f32 %v7612_v59, 0.0  ;;  %v7866_v8 = vadd.f32 %v16770_v42, %v7347_v20  ;;  %v12619_v11 = vpack.c.bf16 %v8379_v63, %v8379_v63  ;;  %v12361_v47 = vpack.c.bf16 %v8121_v1, %v8121_v1  ;;  %v1666_v15 = vld [vmem:[#allocation2 + $0xce0] sm:$0xff]  ;;  %v13402_v23 = vpop.f32.mrb[156].mxu1  ;;  %v4495_v24 = vpop.f32.mrb[157].mxu0 }
 0x292   : > { %6583 = vst.msk [vmem:[#allocation2 + $0x4c8] sm:$0xff] %vm226_vm3, %v6071_v55  ;;  %6839 = vst.msk [vmem:[#allocation2 + $0xcc8] sm:$0xff] %vm226_vm3, %v6327_v62  ;;  %v8380_v12 = vmax.f32 %v7868_v2, 0.0  ;;  %v8122_v13 = vmax.f32 %v7610_v3, 0.0  ;;  %v12617_v17 = vpack.c.bf16 %v8377_v6, %v8377_v6  ;;  %v1669_v25 = vld [vmem:[#allocation2 + $0xcf8] sm:$0xff]  ;;  %v1411_v26 = vld [vmem:[#allocation2 + $0x4e8] sm:$0xff]  ;;  %v6332_v0 = vadd.f32 %v13402_v23, %v1668_v9 }
 0x293   : > { %10684 = vst.msk [vmem:[%s15302_s18 + $0x258] sm:$0xf] %vm10533_vm4, %v12363_v5  ;;  %v12364_v18 = vpack.c.bf16 %v8124_v7, %v8124_v7  ;;  %v8378_v21 = vmax.f32 %v7866_v8, 0.0  ;;  %10940 = vst.msk [vmem:[%s15302_s18 + $0x658] sm:$0xf] %vm10533_vm4, %v12619_v11  ;;  %v6074_v30 = vadd.f32 %v4495_v24, %v1410_v10  ;;  %v5519_v31 = vpop.f32.mrb[157].mxu1 }
 0x294   : > { %10682 = vst.msk [vmem:[%s15302_s18 + $0x250] sm:$0xf] %vm10533_vm4, %v12361_v47  ;;  %v12620_v27 = vpack.c.bf16 %v8380_v12, %v8380_v12  ;;  %v12362_v28 = vpack.c.bf16 %v8122_v13, %v8122_v13  ;;  %v7096_v16 = vld [vmem:[#allocation2 + $0x4d0] sm:$0xff]  ;;  %v13147_v32 = vpop.f32.mrb[158].mxu0  ;;  %v1667_v33 = vld [vmem:[#allocation2 + $0xce8] sm:$0xff]  ;;  %v6330_v38 = vadd.f32 %v5519_v31, %v1666_v15  ;;  %v13403_v40 = vpop.f32.mrb[158].mxu1 }
 0x295   : > { %10938 = vst.msk [vmem:[%s15302_s18 + $0x650] sm:$0xf] %vm10533_vm4, %v12617_v17  ;;  %10685 = vst.msk [vmem:[%s15302_s18 + $0x25c] sm:$0xf] %vm10533_vm4, %v12364_v18  ;;  %v12618_v34 = vpack.c.bf16 %v8378_v21, %v8378_v21  ;;  %v7615_v35 = vadd.f32 %v16770_v42, %v7096_v16  ;;  %v7352_v36 = vld [vmem:[#allocation2 + $0xcd0] sm:$0xff]  ;;  %v6077_v39 = vadd.f32 %v13147_v32, %v1413_v29  ;;  %v4498_v41 = vpop.f32.mrb[159].mxu0 }
 0x296   : > { %v7094_v37 = vld [vmem:[#allocation2 + $0x4c0] sm:$0xff]  ;;  %6588 = vst.msk [vmem:[#allocation2 + $0x4f0] sm:$0xff] %vm226_vm3, %v6076_v22  ;;  %v7871_v43 = vadd.f32 %v16770_v42, %v7352_v36  ;;  %6844 = vst.msk [vmem:[#allocation2 + $0xcf0] sm:$0xff] %vm226_vm3, %v6332_v0  ;;  %v6333_v48 = vadd.f32 %v13403_v40, %v1669_v25  ;;  %v6075_v49 = vadd.f32 %v4498_v41, %v1411_v26  ;;  %v5522_v19 = vpop.f32.mrb[159].mxu1  ;;  %v1416_v61 = vld [vmem:[#allocation2 + $0x510] sm:$0xff]  ;;  %v13150_v8 = vpop.f32.mrb[160].mxu0 }
 0x297   : > { %10941 = vst.msk [vmem:[%s15302_s18 + $0x65c] sm:$0xf] %vm10533_vm4, %v12620_v27  ;;  %10683 = vst.msk [vmem:[%s15302_s18 + $0x254] sm:$0xf] %vm10533_vm4, %v12362_v28  ;;  %v7613_v44 = vadd.f32 %v16770_v42, %v7094_v37  ;;  %v7350_v45 = vld [vmem:[#allocation2 + $0xcc0] sm:$0xff]  ;;  %v8127_v50 = vmax.f32 %v7615_v35, 0.0  ;;  %v6331_v55 = vadd.f32 %v5522_v19, %v1667_v33  ;;  %v6080_v13 = vadd.f32 %v13150_v8, %v1416_v61 }
 0x298   : > { %v7097_v46 = vld [vmem:[#allocation2 + $0x4d8] sm:$0xff]  ;;  %6586 = vst.msk [vmem:[#allocation2 + $0x4e0] sm:$0xff] %vm226_vm3, %v6074_v30  ;;  %v7869_v51 = vadd.f32 %v16770_v42, %v7350_v45  ;;  %6842 = vst.msk [vmem:[#allocation2 + $0xce0] sm:$0xff] %vm226_vm3, %v6330_v38  ;;  %v8383_v56 = vmax.f32 %v7871_v43, 0.0  ;;  %v1672_v3 = vld [vmem:[#allocation2 + $0xd10] sm:$0xff]  ;;  %v13406_v14 = vpop.f32.mrb[160].mxu1 }
 0x299   : > { %10939 = vst.msk [vmem:[%s15302_s18 + $0x654] sm:$0xf] %vm10533_vm4, %v12618_v34  ;;  %v7616_v52 = vadd.f32 %v16770_v42, %v7097_v46  ;;  %v7353_v53 = vld [vmem:[#allocation2 + $0xcd8] sm:$0xff]  ;;  %v7095_v54 = vld [vmem:[#allocation2 + $0x4c8] sm:$0xff]  ;;  %v8125_v57 = vmax.f32 %v7613_v44, 0.0  ;;  %v12367_v62 = vpack.c.bf16 %v8127_v50, %v8127_v50  ;;  %v1414_v20 = vld [vmem:[#allocation2 + $0x500] sm:$0xff]  ;;  %v6336_v23 = vadd.f32 %v13406_v14, %v1672_v3 }
 0x29a   : > { %6589 = vst.msk [vmem:[#allocation2 + $0x4f8] sm:$0xff] %vm226_vm3, %v6077_v39  ;;  %v7872_v58 = vadd.f32 %v16770_v42, %v7353_v53  ;;  %v7614_v59 = vadd.f32 %v16770_v42, %v7095_v54  ;;  %v7351_v60 = vld [vmem:[#allocation2 + $0xcc8] sm:$0xff]  ;;  %6845 = vst.msk [vmem:[#allocation2 + $0xcf8] sm:$0xff] %vm226_vm3, %v6333_v48  ;;  %v8381_v63 = vmax.f32 %v7869_v51, 0.0  ;;  %v12623_v4 = vpack.c.bf16 %v8383_v56, %v8383_v56  ;;  %v1670_v9 = vld [vmem:[#allocation2 + $0xd00] sm:$0xff]  ;;  %v4511_v15 = vpop.f32.mrb[161].mxu0 }
 0x29b   : > { %6587 = vst.msk [vmem:[#allocation2 + $0x4e8] sm:$0xff] %vm226_vm3, %v6075_v49  ;;  %v8128_v1 = vmax.f32 %v7616_v52, 0.0  ;;  %v7870_v2 = vadd.f32 %v16770_v42, %v7351_v60  ;;  %6843 = vst.msk [vmem:[#allocation2 + $0xce8] sm:$0xff] %vm226_vm3, %v6331_v55  ;;  %v12365_v5 = vpack.c.bf16 %v8125_v57, %v8125_v57  ;;  %v1417_v10 = vld [vmem:[#allocation2 + $0x518] sm:$0xff]  ;;  %v1415_v17 = vld [vmem:[#allocation2 + $0x508] sm:$0xff]  ;;  %v6078_v24 = vadd.f32 %v4511_v15, %v1414_v20  ;;  %v5535_v25 = vpop.f32.mrb[161].mxu1 }
 0x29c   : > { %v8384_v6 = vmax.f32 %v7872_v58, 0.0  ;;  %v8126_v7 = vmax.f32 %v7614_v59, 0.0  ;;  %10688 = vst.msk [vmem:[%s15302_s18 + $0x268] sm:$0xf] %vm10533_vm4, %v12367_v62  ;;  %v12621_v11 = vpack.c.bf16 %v8381_v63, %v8381_v63  ;;  %v1673_v29 = vld [vmem:[#allocation2 + $0xd18] sm:$0xff]  ;;  %v13151_v26 = vpop.f32.mrb[162].mxu0  ;;  %v6334_v31 = vadd.f32 %v5535_v25, %v1670_v9 }
 0x29d   : > { %v12368_v47 = vpack.c.bf16 %v8128_v1, %v8128_v1  ;;  %v8382_v12 = vmax.f32 %v7870_v2, 0.0  ;;  %10944 = vst.msk [vmem:[%s15302_s18 + $0x668] sm:$0xf] %vm10533_vm4, %v12623_v4  ;;  %10686 = vst.msk [vmem:[%s15302_s18 + $0x260] sm:$0xf] %vm10533_vm4, %v12365_v5  ;;  %v7100_v22 = vld [vmem:[#allocation2 + $0x4f0] sm:$0xff]  ;;  %v6081_v32 = vadd.f32 %v13151_v26, %v1417_v10 }
 0x29e   : > { %v12624_v18 = vpack.c.bf16 %v8384_v6, %v8384_v6  ;;  %v12366_v21 = vpack.c.bf16 %v8126_v7, %v8126_v7  ;;  %v1671_v27 = vld [vmem:[#allocation2 + $0xd08] sm:$0xff]  ;;  %10942 = vst.msk [vmem:[%s15302_s18 + $0x660] sm:$0xf] %vm10533_vm4, %v12621_v11  ;;  %v7619_v16 = vadd.f32 %v16770_v42, %v7100_v22  ;;  %v7356_v0 = vld [vmem:[#allocation2 + $0xcf0] sm:$0xff]  ;;  %v13407_v33 = vpop.f32.mrb[162].mxu1  ;;  %v4514_v34 = vpop.f32.mrb[163].mxu0 }
 0x29f   : > { %10689 = vst.msk [vmem:[%s15302_s18 + $0x26c] sm:$0xf] %vm10533_vm4, %v12368_v47  ;;  %v12622_v28 = vpack.c.bf16 %v8382_v12, %v8382_v12  ;;  %v7098_v30 = vld [vmem:[#allocation2 + $0x4e0] sm:$0xff]  ;;  %v7875_v35 = vadd.f32 %v16770_v42, %v7356_v0  ;;  %v6337_v39 = vadd.f32 %v13407_v33, %v1673_v29  ;;  %v6079_v40 = vadd.f32 %v4514_v34, %v1415_v17  ;;  %v5538_v41 = vpop.f32.mrb[163].mxu1  ;;  %v1420_v54 = vld [vmem:[#allocation2 + $0x530] sm:$0xff]  ;;  %v13154_v2 = vpop.f32.mrb[164].mxu0 }
 0x2a0   : > { %6592 = vst.msk [vmem:[#allocation2 + $0x510] sm:$0xff] %vm226_vm3, %v6080_v13  ;;  %v7617_v36 = vadd.f32 %v16770_v42, %v7098_v30  ;;  %v7354_v37 = vld [vmem:[#allocation2 + $0xce0] sm:$0xff]  ;;  %6848 = vst.msk [vmem:[#allocation2 + $0xd10] sm:$0xff] %vm226_vm3, %v6336_v23  ;;  %v8131_v43 = vmax.f32 %v7619_v16, 0.0  ;;  %v6335_v49 = vadd.f32 %v5538_v41, %v1671_v27  ;;  %v1676_v59 = vld [vmem:[#allocation2 + $0xd30] sm:$0xff]  ;;  %v6084_v7 = vadd.f32 %v13154_v2, %v1420_v54  ;;  %v13410_v8 = vpop.f32.mrb[164].mxu1 }
 0x2a1   : > { %10945 = vst.msk [vmem:[%s15302_s18 + $0x66c] sm:$0xf] %vm10533_vm4, %v12624_v18  ;;  %10687 = vst.msk [vmem:[%s15302_s18 + $0x264] sm:$0xf] %vm10533_vm4, %v12366_v21  ;;  %v7101_v38 = vld [vmem:[#allocation2 + $0x4f8] sm:$0xff]  ;;  %v7873_v44 = vadd.f32 %v16770_v42, %v7354_v37  ;;  %v8387_v19 = vmax.f32 %v7875_v35, 0.0  ;;  %v6340_v14 = vadd.f32 %v13410_v8, %v1676_v59 }
 0x2a2   : > { %6590 = vst.msk [vmem:[#allocation2 + $0x500] sm:$0xff] %vm226_vm3, %v6078_v24  ;;  %v7620_v45 = vadd.f32 %v16770_v42, %v7101_v38  ;;  %v7357_v46 = vld [vmem:[#allocation2 + $0xcf8] sm:$0xff]  ;;  %v7099_v48 = vld [vmem:[#allocation2 + $0x4e8] sm:$0xff]  ;;  %6846 = vst.msk [vmem:[#allocation2 + $0xd00] sm:$0xff] %vm226_vm3, %v6334_v31  ;;  %v8129_v50 = vmax.f32 %v7617_v36, 0.0  ;;  %v12371_v55 = vpack.c.bf16 %v8131_v43, %v8131_v43  ;;  %v4527_v9 = vpop.f32.mrb[165].mxu0 }
 0x2a3   : > { %10943 = vst.msk [vmem:[%s15302_s18 + $0x664] sm:$0xf] %vm10533_vm4, %v12622_v28  ;;  %v7876_v51 = vadd.f32 %v16770_v42, %v7357_v46  ;;  %v7618_v52 = vadd.f32 %v16770_v42, %v7099_v48  ;;  %v7355_v53 = vld [vmem:[#allocation2 + $0xce8] sm:$0xff]  ;;  %v8385_v56 = vmax.f32 %v7873_v44, 0.0  ;;  %v1418_v60 = vld [vmem:[#allocation2 + $0x520] sm:$0xff]  ;;  %v12627_v61 = vpack.c.bf16 %v8387_v19, %v8387_v19  ;;  %v1421_v20 = vld [vmem:[#allocation2 + $0x538] sm:$0xff] }
 0x2a4   : > { %6593 = vst.msk [vmem:[#allocation2 + $0x518] sm:$0xff] %vm226_vm3, %v6081_v32  ;;  %6849 = vst.msk [vmem:[#allocation2 + $0xd18] sm:$0xff] %vm226_vm3, %v6337_v39  ;;  %v8132_v57 = vmax.f32 %v7620_v45, 0.0  ;;  %v7874_v58 = vadd.f32 %v16770_v42, %v7355_v53  ;;  %v12369_v62 = vpack.c.bf16 %v8129_v50, %v8129_v50  ;;  %v1674_v3 = vld [vmem:[#allocation2 + $0xd20] sm:$0xff]  ;;  %v1677_v10 = vld [vmem:[#allocation2 + $0xd38] sm:$0xff]  ;;  %v6082_v15 = vadd.f32 %v4527_v9, %v1418_v60  ;;  %v5551_v29 = vpop.f32.mrb[165].mxu1 }
 0x2a5   : > { %6591 = vst.msk [vmem:[#allocation2 + $0x508] sm:$0xff] %vm226_vm3, %v6079_v40  ;;  %6847 = vst.msk [vmem:[#allocation2 + $0xd08] sm:$0xff] %vm226_vm3, %v6335_v49  ;;  %v8388_v63 = vmax.f32 %v7876_v51, 0.0  ;;  %v8130_v1 = vmax.f32 %v7618_v52, 0.0  ;;  %v12625_v4 = vpack.c.bf16 %v8385_v56, %v8385_v56  ;;  %v1419_v11 = vld [vmem:[#allocation2 + $0x528] sm:$0xff]  ;;  %v13155_v17 = vpop.f32.mrb[166].mxu0  ;;  %v6338_v25 = vadd.f32 %v5551_v29, %v1674_v3 }
 0x2a6   : > { %10692 = vst.msk [vmem:[%s15302_s18 + $0x278] sm:$0xf] %vm10533_vm4, %v12371_v55  ;;  %v12372_v5 = vpack.c.bf16 %v8132_v57, %v8132_v57  ;;  %v8386_v6 = vmax.f32 %v7874_v58, 0.0  ;;  %10948 = vst.msk [vmem:[%s15302_s18 + $0x678] sm:$0xf] %vm10533_vm4, %v12627_v61  ;;  %v1675_v18 = vld [vmem:[#allocation2 + $0xd28] sm:$0xff]  ;;  %v6085_v26 = vadd.f32 %v13155_v17, %v1421_v20 }
 0x2a7   : > { %10690 = vst.msk [vmem:[%s15302_s18 + $0x270] sm:$0xf] %vm10533_vm4, %v12369_v62  ;;  %v12628_v47 = vpack.c.bf16 %v8388_v63, %v8388_v63  ;;  %v12370_v12 = vpack.c.bf16 %v8130_v1, %v8130_v1  ;;  %v7104_v13 = vld [vmem:[#allocation2 + $0x510] sm:$0xff]  ;;  %10946 = vst.msk [vmem:[%s15302_s18 + $0x670] sm:$0xf] %vm10533_vm4, %v12625_v4  ;;  %v13411_v27 = vpop.f32.mrb[166].mxu1 }
 0x2a8   : > { %10693 = vst.msk [vmem:[%s15302_s18 + $0x27c] sm:$0xf] %vm10533_vm4, %v12372_v5  ;;  %v12626_v21 = vpack.c.bf16 %v8386_v6, %v8386_v6  ;;  %v7623_v22 = vadd.f32 %v16770_v42, %v7104_v13  ;;  %v7360_v23 = vld [vmem:[#allocation2 + $0xd10] sm:$0xff]  ;;  %v4530_v28 = vpop.f32.mrb[167].mxu0  ;;  %v6341_v32 = vadd.f32 %v13411_v27, %v1677_v10  ;;  %v5554_v34 = vpop.f32.mrb[167].mxu1  ;;  %v1422_v53 = vld [vmem:[#allocation2 + $0x540] sm:$0xff] }
 0x2a9   : > { %v7102_v24 = vld [vmem:[#allocation2 + $0x500] sm:$0xff]  ;;  %6596 = vst.msk [vmem:[#allocation2 + $0x530] sm:$0xff] %vm226_vm3, %v6084_v7  ;;  %v7879_v16 = vadd.f32 %v16770_v42, %v7360_v23  ;;  %6852 = vst.msk [vmem:[#allocation2 + $0xd30] sm:$0xff] %vm226_vm3, %v6340_v14  ;;  %v6083_v33 = vadd.f32 %v4530_v28, %v1419_v11  ;;  %v6339_v40 = vadd.f32 %v5554_v34, %v1675_v18  ;;  %v1424_v48 = vld [vmem:[#allocation2 + $0x550] sm:$0xff]  ;;  %v13158_v58 = vpop.f32.mrb[168].mxu0  ;;  %v13414_v2 = vpop.f32.mrb[168].mxu1 }
 0x2aa   : > { %10949 = vst.msk [vmem:[%s15302_s18 + $0x67c] sm:$0xf] %vm10533_vm4, %v12628_v47  ;;  %10691 = vst.msk [vmem:[%s15302_s18 + $0x274] sm:$0xf] %vm10533_vm4, %v12370_v12  ;;  %v7621_v0 = vadd.f32 %v16770_v42, %v7102_v24  ;;  %v7358_v30 = vld [vmem:[#allocation2 + $0xd00] sm:$0xff]  ;;  %v8135_v35 = vmax.f32 %v7623_v22, 0.0  ;;  %v6088_v1 = vadd.f32 %v13158_v58, %v1424_v48 }
 0x2ab   : > { %v7105_v31 = vld [vmem:[#allocation2 + $0x518] sm:$0xff]  ;;  %6594 = vst.msk [vmem:[#allocation2 + $0x520] sm:$0xff] %vm226_vm3, %v6082_v15  ;;  %v7877_v36 = vadd.f32 %v16770_v42, %v7358_v30  ;;  %6850 = vst.msk [vmem:[#allocation2 + $0xd20] sm:$0xff] %vm226_vm3, %v6338_v25  ;;  %v8391_v41 = vmax.f32 %v7879_v16, 0.0  ;;  %v1680_v52 = vld [vmem:[#allocation2 + $0xd50] sm:$0xff]  ;;  %v4543_v3 = vpop.f32.mrb[169].mxu0 }
 0x2ac   : > { %10947 = vst.msk [vmem:[%s15302_s18 + $0x674] sm:$0xf] %vm10533_vm4, %v12626_v21  ;;  %v7624_v37 = vadd.f32 %v16770_v42, %v7105_v31  ;;  %v7361_v38 = vld [vmem:[#allocation2 + $0xd18] sm:$0xff]  ;;  %v7103_v39 = vld [vmem:[#allocation2 + $0x508] sm:$0xff]  ;;  %v8133_v43 = vmax.f32 %v7621_v0, 0.0  ;;  %v12375_v49 = vpack.c.bf16 %v8135_v35, %v8135_v35  ;;  %v1678_v59 = vld [vmem:[#allocation2 + $0xd40] sm:$0xff]  ;;  %v6344_v8 = vadd.f32 %v13414_v2, %v1680_v52 }
 0x2ad   : > { %6597 = vst.msk [vmem:[#allocation2 + $0x538] sm:$0xff] %vm226_vm3, %v6085_v26  ;;  %v7880_v44 = vadd.f32 %v16770_v42, %v7361_v38  ;;  %v7622_v45 = vadd.f32 %v16770_v42, %v7103_v39  ;;  %v7359_v46 = vld [vmem:[#allocation2 + $0xd08] sm:$0xff]  ;;  %6853 = vst.msk [vmem:[#allocation2 + $0xd38] sm:$0xff] %vm226_vm3, %v6341_v32  ;;  %v8389_v19 = vmax.f32 %v7877_v36, 0.0  ;;  %v12631_v54 = vpack.c.bf16 %v8391_v41, %v8391_v41  ;;  %v1425_v60 = vld [vmem:[#allocation2 + $0x558] sm:$0xff]  ;;  %v5567_v10 = vpop.f32.mrb[169].mxu1 }
 0x2ae   : > { %6595 = vst.msk [vmem:[#allocation2 + $0x528] sm:$0xff] %vm226_vm3, %v6083_v33  ;;  %v8136_v50 = vmax.f32 %v7624_v37, 0.0  ;;  %v7878_v51 = vadd.f32 %v16770_v42, %v7359_v46  ;;  %6851 = vst.msk [vmem:[#allocation2 + $0xd28] sm:$0xff] %vm226_vm3, %v6339_v40  ;;  %v12373_v55 = vpack.c.bf16 %v8133_v43, %v8133_v43  ;;  %v1681_v20 = vld [vmem:[#allocation2 + $0xd58] sm:$0xff]  ;;  %v1423_v4 = vld [vmem:[#allocation2 + $0x548] sm:$0xff]  ;;  %v6086_v9 = vadd.f32 %v4543_v3, %v1422_v53  ;;  %v13159_v11 = vpop.f32.mrb[170].mxu0 }
 0x2af   : > { %v8392_v56 = vmax.f32 %v7880_v44, 0.0  ;;  %v8134_v57 = vmax.f32 %v7622_v45, 0.0  ;;  %10696 = vst.msk [vmem:[%s15302_s18 + $0x288] sm:$0xf] %vm10533_vm4, %v12375_v49  ;;  %v12629_v61 = vpack.c.bf16 %v8389_v19, %v8389_v19  ;;  %10952 = vst.msk [vmem:[%s15302_s18 + $0x688] sm:$0xf] %vm10533_vm4, %v12631_v54  ;;  %v6342_v29 = vadd.f32 %v5567_v10, %v1678_v59 }
 0x2b0   : > { %v12376_v62 = vpack.c.bf16 %v8136_v50, %v8136_v50  ;;  %v8390_v63 = vmax.f32 %v7878_v51, 0.0  ;;  %10694 = vst.msk [vmem:[%s15302_s18 + $0x280] sm:$0xf] %vm10533_vm4, %v12373_v55  ;;  %v7108_v7 = vld [vmem:[#allocation2 + $0x530] sm:$0xff]  ;;  %v1679_v47 = vld [vmem:[#allocation2 + $0xd48] sm:$0xff]  ;;  %v6089_v17 = vadd.f32 %v13159_v11, %v1425_v60  ;;  %v13415_v18 = vpop.f32.mrb[170].mxu1 }
 0x2b1   : > { %v12632_v5 = vpack.c.bf16 %v8392_v56, %v8392_v56  ;;  %v12374_v6 = vpack.c.bf16 %v8134_v57, %v8134_v57  ;;  %10950 = vst.msk [vmem:[%s15302_s18 + $0x680] sm:$0xf] %vm10533_vm4, %v12629_v61  ;;  %v7627_v13 = vadd.f32 %v16770_v42, %v7108_v7  ;;  %v7364_v14 = vld [vmem:[#allocation2 + $0xd30] sm:$0xff]  ;;  %v4546_v21 = vpop.f32.mrb[171].mxu0  ;;  %v6345_v26 = vadd.f32 %v13415_v18, %v1681_v20  ;;  %v5570_v28 = vpop.f32.mrb[171].mxu1  ;;  %v1426_v46 = vld [vmem:[#allocation2 + $0x560] sm:$0xff] }
 0x2b2   : > { %10697 = vst.msk [vmem:[%s15302_s18 + $0x28c] sm:$0xf] %vm10533_vm4, %v12376_v62  ;;  %v12630_v12 = vpack.c.bf16 %v8390_v63, %v8390_v63  ;;  %v7106_v15 = vld [vmem:[#allocation2 + $0x520] sm:$0xff]  ;;  %v7883_v22 = vadd.f32 %v16770_v42, %v7364_v14  ;;  %v6087_v27 = vadd.f32 %v4546_v21, %v1423_v4  ;;  %v6343_v33 = vadd.f32 %v5570_v28, %v1679_v47  ;;  %v1428_v39 = vld [vmem:[#allocation2 + $0x570] sm:$0xff]  ;;  %v13162_v51 = vpop.f32.mrb[172].mxu0  ;;  %v1429_v53 = vld [vmem:[#allocation2 + $0x578] sm:$0xff] }
 0x2b3   : > { %6600 = vst.msk [vmem:[#allocation2 + $0x550] sm:$0xff] %vm226_vm3, %v6088_v1  ;;  %v7625_v23 = vadd.f32 %v16770_v42, %v7106_v15  ;;  %v7362_v24 = vld [vmem:[#allocation2 + $0xd20] sm:$0xff]  ;;  %6856 = vst.msk [vmem:[#allocation2 + $0xd50] sm:$0xff] %vm226_vm3, %v6344_v8  ;;  %v8139_v16 = vmax.f32 %v7627_v13, 0.0  ;;  %v1684_v45 = vld [vmem:[#allocation2 + $0xd70] sm:$0xff]  ;;  %v6092_v57 = vadd.f32 %v13162_v51, %v1428_v39  ;;  %v13418_v58 = vpop.f32.mrb[172].mxu1 }
 0x2b4   : > { %10953 = vst.msk [vmem:[%s15302_s18 + $0x68c] sm:$0xf] %vm10533_vm4, %v12632_v5  ;;  %10695 = vst.msk [vmem:[%s15302_s18 + $0x284] sm:$0xf] %vm10533_vm4, %v12374_v6  ;;  %v7109_v25 = vld [vmem:[#allocation2 + $0x538] sm:$0xff]  ;;  %v7881_v0 = vadd.f32 %v16770_v42, %v7362_v24  ;;  %v8395_v34 = vmax.f32 %v7883_v22, 0.0  ;;  %v6348_v2 = vadd.f32 %v13418_v58, %v1684_v45 }
 0x2b5   : > { %6598 = vst.msk [vmem:[#allocation2 + $0x540] sm:$0xff] %vm226_vm3, %v6086_v9  ;;  %v7628_v30 = vadd.f32 %v16770_v42, %v7109_v25  ;;  %v7365_v31 = vld [vmem:[#allocation2 + $0xd38] sm:$0xff]  ;;  %v7107_v32 = vld [vmem:[#allocation2 + $0x528] sm:$0xff]  ;;  %6854 = vst.msk [vmem:[#allocation2 + $0xd40] sm:$0xff] %vm226_vm3, %v6342_v29  ;;  %v8137_v35 = vmax.f32 %v7625_v23, 0.0  ;;  %v12379_v40 = vpack.c.bf16 %v8139_v16, %v8139_v16  ;;  %v4559_v59 = vpop.f32.mrb[173].mxu0 }
 0x2b6   : > { %10951 = vst.msk [vmem:[%s15302_s18 + $0x684] sm:$0xf] %vm10533_vm4, %v12630_v12  ;;  %v7884_v36 = vadd.f32 %v16770_v42, %v7365_v31  ;;  %v7626_v37 = vadd.f32 %v16770_v42, %v7107_v32  ;;  %v7363_v38 = vld [vmem:[#allocation2 + $0xd28] sm:$0xff]  ;;  %v8393_v41 = vmax.f32 %v7881_v0, 0.0  ;;  %v12635_v48 = vpack.c.bf16 %v8395_v34, %v8395_v34  ;;  %v1682_v52 = vld [vmem:[#allocation2 + $0xd60] sm:$0xff]  ;;  %v1685_v60 = vld [vmem:[#allocation2 + $0xd78] sm:$0xff] }
 0x2b7   : > { %6601 = vst.msk [vmem:[#allocation2 + $0x558] sm:$0xff] %vm226_vm3, %v6089_v17  ;;  %6857 = vst.msk [vmem:[#allocation2 + $0xd58] sm:$0xff] %vm226_vm3, %v6345_v26  ;;  %v8140_v43 = vmax.f32 %v7628_v30, 0.0  ;;  %v7882_v44 = vadd.f32 %v16770_v42, %v7363_v38  ;;  %v12377_v49 = vpack.c.bf16 %v8137_v35, %v8137_v35  ;;  %v1427_v61 = vld [vmem:[#allocation2 + $0x568] sm:$0xff]  ;;  %v6090_v3 = vadd.f32 %v4559_v59, %v1426_v46  ;;  %v5583_v20 = vpop.f32.mrb[173].mxu1  ;;  %v13163_v4 = vpop.f32.mrb[174].mxu0 }
 0x2b8   : > { %6599 = vst.msk [vmem:[#allocation2 + $0x548] sm:$0xff] %vm226_vm3, %v6087_v27  ;;  %6855 = vst.msk [vmem:[#allocation2 + $0xd48] sm:$0xff] %vm226_vm3, %v6343_v33  ;;  %v8396_v19 = vmax.f32 %v7884_v36, 0.0  ;;  %v8138_v50 = vmax.f32 %v7626_v37, 0.0  ;;  %v12633_v54 = vpack.c.bf16 %v8393_v41, %v8393_v41  ;;  %v1683_v5 = vld [vmem:[#allocation2 + $0xd68] sm:$0xff]  ;;  %v6346_v10 = vadd.f32 %v5583_v20, %v1682_v52  ;;  %v13419_v47 = vpop.f32.mrb[174].mxu1 }
 0x2b9   : > { %10700 = vst.msk [vmem:[%s15302_s18 + $0x298] sm:$0xf] %vm10533_vm4, %v12379_v40  ;;  %v12380_v55 = vpack.c.bf16 %v8140_v43, %v8140_v43  ;;  %v8394_v56 = vmax.f32 %v7882_v44, 0.0  ;;  %10956 = vst.msk [vmem:[%s15302_s18 + $0x698] sm:$0xf] %vm10533_vm4, %v12635_v48  ;;  %v6093_v11 = vadd.f32 %v13163_v4, %v1429_v53  ;;  %v4562_v12 = vpop.f32.mrb[175].mxu0  ;;  %v6349_v17 = vadd.f32 %v13419_v47, %v1685_v60 }
 0x2ba   : > { %10698 = vst.msk [vmem:[%s15302_s18 + $0x290] sm:$0xf] %vm10533_vm4, %v12377_v49  ;;  %v12636_v62 = vpack.c.bf16 %v8396_v19, %v8396_v19  ;;  %v12378_v63 = vpack.c.bf16 %v8138_v50, %v8138_v50  ;;  %v7112_v1 = vld [vmem:[#allocation2 + $0x550] sm:$0xff]  ;;  %10954 = vst.msk [vmem:[%s15302_s18 + $0x690] sm:$0xf] %vm10533_vm4, %v12633_v54  ;;  %v6091_v18 = vadd.f32 %v4562_v12, %v1427_v61  ;;  %v5586_v21 = vpop.f32.mrb[175].mxu1 }
 0x2bb   : > { %10701 = vst.msk [vmem:[%s15302_s18 + $0x29c] sm:$0xf] %vm10533_vm4, %v12380_v55  ;;  %v12634_v6 = vpack.c.bf16 %v8394_v56, %v8394_v56  ;;  %v7631_v7 = vadd.f32 %v16770_v42, %v7112_v1  ;;  %v7368_v8 = vld [vmem:[#allocation2 + $0xd50] sm:$0xff]  ;;  %v6347_v27 = vadd.f32 %v5586_v21, %v1683_v5  ;;  %v1430_v38 = vld [vmem:[#allocation2 + $0x580] sm:$0xff]  ;;  %v13166_v44 = vpop.f32.mrb[176].mxu0  ;;  %v1433_v46 = vld [vmem:[#allocation2 + $0x598] sm:$0xff] }
 0x2bc   : > { %v7110_v9 = vld [vmem:[#allocation2 + $0x540] sm:$0xff]  ;;  %6604 = vst.msk [vmem:[#allocation2 + $0x570] sm:$0xff] %vm226_vm3, %v6092_v57  ;;  %v7887_v13 = vadd.f32 %v16770_v42, %v7368_v8  ;;  %6860 = vst.msk [vmem:[#allocation2 + $0xd70] sm:$0xff] %vm226_vm3, %v6348_v2  ;;  %v1432_v32 = vld [vmem:[#allocation2 + $0x590] sm:$0xff]  ;;  %v13422_v51 = vpop.f32.mrb[176].mxu1  ;;  %v4575_v52 = vpop.f32.mrb[177].mxu0 }
 0x2bd   : > { %10957 = vst.msk [vmem:[%s15302_s18 + $0x69c] sm:$0xf] %vm10533_vm4, %v12636_v62  ;;  %10699 = vst.msk [vmem:[%s15302_s18 + $0x294] sm:$0xf] %vm10533_vm4, %v12378_v63  ;;  %v7629_v14 = vadd.f32 %v16770_v42, %v7110_v9  ;;  %v7366_v15 = vld [vmem:[#allocation2 + $0xd40] sm:$0xff]  ;;  %v8143_v22 = vmax.f32 %v7631_v7, 0.0  ;;  %v6096_v50 = vadd.f32 %v13166_v44, %v1432_v32  ;;  %v6094_v59 = vadd.f32 %v4575_v52, %v1430_v38 }
 0x2be   : > { %v7113_v29 = vld [vmem:[#allocation2 + $0x558] sm:$0xff]  ;;  %6602 = vst.msk [vmem:[#allocation2 + $0x560] sm:$0xff] %vm226_vm3, %v6090_v3  ;;  %v7885_v23 = vadd.f32 %v16770_v42, %v7366_v15  ;;  %6858 = vst.msk [vmem:[#allocation2 + $0xd60] sm:$0xff] %vm226_vm3, %v6346_v10  ;;  %v8399_v28 = vmax.f32 %v7887_v13, 0.0  ;;  %v1688_v37 = vld [vmem:[#allocation2 + $0xd90] sm:$0xff]  ;;  %v5599_v60 = vpop.f32.mrb[177].mxu1 }
 0x2bf   : > { %10955 = vst.msk [vmem:[%s15302_s18 + $0x694] sm:$0xf] %vm10533_vm4, %v12634_v6  ;;  %v7632_v24 = vadd.f32 %v16770_v42, %v7113_v29  ;;  %v7369_v25 = vld [vmem:[#allocation2 + $0xd58] sm:$0xff]  ;;  %v7111_v26 = vld [vmem:[#allocation2 + $0x548] sm:$0xff]  ;;  %v8141_v16 = vmax.f32 %v7629_v14, 0.0  ;;  %v12383_v33 = vpack.c.bf16 %v8143_v22, %v8143_v22  ;;  %v1686_v45 = vld [vmem:[#allocation2 + $0xd80] sm:$0xff]  ;;  %v6352_v58 = vadd.f32 %v13422_v51, %v1688_v37 }
 0x2c0   : > { %6605 = vst.msk [vmem:[#allocation2 + $0x578] sm:$0xff] %vm226_vm3, %v6093_v11  ;;  %v7888_v0 = vadd.f32 %v16770_v42, %v7369_v25  ;;  %v7630_v30 = vadd.f32 %v16770_v42, %v7111_v26  ;;  %v7367_v31 = vld [vmem:[#allocation2 + $0xd48] sm:$0xff]  ;;  %6861 = vst.msk [vmem:[#allocation2 + $0xd78] sm:$0xff] %vm226_vm3, %v6349_v17  ;;  %v8397_v34 = vmax.f32 %v7885_v23, 0.0  ;;  %v12639_v39 = vpack.c.bf16 %v8399_v28, %v8399_v28  ;;  %v1689_v53 = vld [vmem:[#allocation2 + $0xd98] sm:$0xff]  ;;  %v13167_v61 = vpop.f32.mrb[178].mxu0 }
 0x2c1   : > { %6603 = vst.msk [vmem:[#allocation2 + $0x568] sm:$0xff] %vm226_vm3, %v6091_v18  ;;  %v8144_v35 = vmax.f32 %v7632_v24, 0.0  ;;  %v7886_v36 = vadd.f32 %v16770_v42, %v7367_v31  ;;  %6859 = vst.msk [vmem:[#allocation2 + $0xd68] sm:$0xff] %vm226_vm3, %v6347_v27  ;;  %v12381_v40 = vpack.c.bf16 %v8141_v16, %v8141_v16  ;;  %v1431_v54 = vld [vmem:[#allocation2 + $0x588] sm:$0xff]  ;;  %v6350_v20 = vadd.f32 %v5599_v60, %v1686_v45  ;;  %v13423_v5 = vpop.f32.mrb[178].mxu1  ;;  %v4578_v6 = vpop.f32.mrb[179].mxu0 }
 0x2c2   : > { %v8400_v41 = vmax.f32 %v7888_v0, 0.0  ;;  %v8142_v43 = vmax.f32 %v7630_v30, 0.0  ;;  %10704 = vst.msk [vmem:[%s15302_s18 + $0x2a8] sm:$0xf] %vm10533_vm4, %v12383_v33  ;;  %v12637_v48 = vpack.c.bf16 %v8397_v34, %v8397_v34  ;;  %10960 = vst.msk [vmem:[%s15302_s18 + $0x6a8] sm:$0xf] %vm10533_vm4, %v12639_v39  ;;  %v6097_v4 = vadd.f32 %v13167_v61, %v1433_v46 }
 0x2c3   : > { %v12384_v49 = vpack.c.bf16 %v8144_v35, %v8144_v35  ;;  %v8398_v19 = vmax.f32 %v7886_v36, 0.0  ;;  %10702 = vst.msk [vmem:[%s15302_s18 + $0x2a0] sm:$0xf] %vm10533_vm4, %v12381_v40  ;;  %v7116_v57 = vld [vmem:[#allocation2 + $0x570] sm:$0xff]  ;;  %v1687_v62 = vld [vmem:[#allocation2 + $0xd88] sm:$0xff]  ;;  %v6353_v11 = vadd.f32 %v13423_v5, %v1689_v53  ;;  %v6095_v47 = vadd.f32 %v4578_v6, %v1431_v54  ;;  %v5602_v12 = vpop.f32.mrb[179].mxu1 }
 0x2c4   : > { %v12640_v55 = vpack.c.bf16 %v8400_v41, %v8400_v41  ;;  %v12382_v56 = vpack.c.bf16 %v8142_v43, %v8142_v43  ;;  %10958 = vst.msk [vmem:[%s15302_s18 + $0x6a0] sm:$0xf] %vm10533_vm4, %v12637_v48  ;;  %v7635_v1 = vadd.f32 %v16770_v42, %v7116_v57  ;;  %v7372_v2 = vld [vmem:[#allocation2 + $0xd70] sm:$0xff]  ;;  %v6351_v18 = vadd.f32 %v5602_v12, %v1687_v62  ;;  %v1434_v31 = vld [vmem:[#allocation2 + $0x5a0] sm:$0xff]  ;;  %v13170_v36 = vpop.f32.mrb[180].mxu0  ;;  %v1437_v38 = vld [vmem:[#allocation2 + $0x5b8] sm:$0xff] }
 0x2c5   : > { %10705 = vst.msk [vmem:[%s15302_s18 + $0x2ac] sm:$0xf] %vm10533_vm4, %v12384_v49  ;;  %v12638_v63 = vpack.c.bf16 %v8398_v19, %v8398_v19  ;;  %v7114_v3 = vld [vmem:[#allocation2 + $0x560] sm:$0xff]  ;;  %v7891_v7 = vadd.f32 %v16770_v42, %v7372_v2  ;;  %v1436_v26 = vld [vmem:[#allocation2 + $0x5b0] sm:$0xff]  ;;  %v13426_v44 = vpop.f32.mrb[180].mxu1  ;;  %v4591_v45 = vpop.f32.mrb[181].mxu0 }
 0x2c6   : > { %6608 = vst.msk [vmem:[#allocation2 + $0x590] sm:$0xff] %vm226_vm3, %v6096_v50  ;;  %v7633_v8 = vadd.f32 %v16770_v42, %v7114_v3  ;;  %v7370_v9 = vld [vmem:[#allocation2 + $0xd60] sm:$0xff]  ;;  %6864 = vst.msk [vmem:[#allocation2 + $0xd90] sm:$0xff] %vm226_vm3, %v6352_v58  ;;  %v8147_v13 = vmax.f32 %v7635_v1, 0.0  ;;  %v1692_v30 = vld [vmem:[#allocation2 + $0xdb0] sm:$0xff]  ;;  %v6100_v43 = vadd.f32 %v13170_v36, %v1436_v26  ;;  %v6098_v52 = vadd.f32 %v4591_v45, %v1434_v31  ;;  %v5615_v53 = vpop.f32.mrb[181].mxu1 }
 0x2c7   : > { %10961 = vst.msk [vmem:[%s15302_s18 + $0x6ac] sm:$0xf] %vm10533_vm4, %v12640_v55  ;;  %10703 = vst.msk [vmem:[%s15302_s18 + $0x2a4] sm:$0xf] %vm10533_vm4, %v12382_v56  ;;  %v7117_v10 = vld [vmem:[#allocation2 + $0x578] sm:$0xff]  ;;  %v7889_v14 = vadd.f32 %v16770_v42, %v7370_v9  ;;  %v8403_v21 = vmax.f32 %v7891_v7, 0.0  ;;  %v6356_v51 = vadd.f32 %v13426_v44, %v1692_v30 }
 0x2c8   : > { %6606 = vst.msk [vmem:[#allocation2 + $0x580] sm:$0xff] %vm226_vm3, %v6094_v59  ;;  %v7636_v15 = vadd.f32 %v16770_v42, %v7117_v10  ;;  %v7373_v29 = vld [vmem:[#allocation2 + $0xd78] sm:$0xff]  ;;  %v7115_v17 = vld [vmem:[#allocation2 + $0x568] sm:$0xff]  ;;  %6862 = vst.msk [vmem:[#allocation2 + $0xd80] sm:$0xff] %vm226_vm3, %v6350_v20  ;;  %v8145_v22 = vmax.f32 %v7633_v8, 0.0  ;;  %v12387_v27 = vpack.c.bf16 %v8147_v13, %v8147_v13  ;;  %v13171_v54 = vpop.f32.mrb[182].mxu0 }
 0x2c9   : > { %10959 = vst.msk [vmem:[%s15302_s18 + $0x6a4] sm:$0xf] %vm10533_vm4, %v12638_v63  ;;  %v7892_v23 = vadd.f32 %v16770_v42, %v7373_v29  ;;  %v7634_v24 = vadd.f32 %v16770_v42, %v7115_v17  ;;  %v7371_v25 = vld [vmem:[#allocation2 + $0xd68] sm:$0xff]  ;;  %v8401_v28 = vmax.f32 %v7889_v14, 0.0  ;;  %v12643_v32 = vpack.c.bf16 %v8403_v21, %v8403_v21  ;;  %v1690_v37 = vld [vmem:[#allocation2 + $0xda0] sm:$0xff]  ;;  %v1693_v46 = vld [vmem:[#allocation2 + $0xdb8] sm:$0xff] }
 0x2ca   : > { %6609 = vst.msk [vmem:[#allocation2 + $0x598] sm:$0xff] %vm226_vm3, %v6097_v4  ;;  %6865 = vst.msk [vmem:[#allocation2 + $0xd98] sm:$0xff] %vm226_vm3, %v6353_v11  ;;  %v8148_v16 = vmax.f32 %v7636_v15, 0.0  ;;  %v7890_v0 = vadd.f32 %v16770_v42, %v7371_v25  ;;  %v12385_v33 = vpack.c.bf16 %v8145_v22, %v8145_v22  ;;  %v1435_v48 = vld [vmem:[#allocation2 + $0x5a8] sm:$0xff]  ;;  %v6354_v60 = vadd.f32 %v5615_v53, %v1690_v37  ;;  %v13427_v62 = vpop.f32.mrb[182].mxu1  ;;  %v4594_v63 = vpop.f32.mrb[183].mxu0 }
 0x2cb   : > { %6607 = vst.msk [vmem:[#allocation2 + $0x588] sm:$0xff] %vm226_vm3, %v6095_v47  ;;  %6863 = vst.msk [vmem:[#allocation2 + $0xd88] sm:$0xff] %vm226_vm3, %v6351_v18  ;;  %v8404_v34 = vmax.f32 %v7892_v23, 0.0  ;;  %v8146_v35 = vmax.f32 %v7634_v24, 0.0  ;;  %v12641_v39 = vpack.c.bf16 %v8401_v28, %v8401_v28  ;;  %v1691_v55 = vld [vmem:[#allocation2 + $0xda8] sm:$0xff]  ;;  %v6101_v61 = vadd.f32 %v13171_v54, %v1437_v38  ;;  %v5618_v6 = vpop.f32.mrb[183].mxu1 }
 0x2cc   : > { %10708 = vst.msk [vmem:[%s15302_s18 + $0x2b8] sm:$0xf] %vm10533_vm4, %v12387_v27  ;;  %v12388_v40 = vpack.c.bf16 %v8148_v16, %v8148_v16  ;;  %v8402_v41 = vmax.f32 %v7890_v0, 0.0  ;;  %10964 = vst.msk [vmem:[%s15302_s18 + $0x6b8] sm:$0xf] %vm10533_vm4, %v12643_v32  ;;  %v6357_v4 = vadd.f32 %v13427_v62, %v1693_v46  ;;  %v6099_v5 = vadd.f32 %v4594_v63, %v1435_v48  ;;  %v1440_v17 = vld [vmem:[#allocation2 + $0x5d0] sm:$0xff] }
 0x2cd   : > { %10706 = vst.msk [vmem:[%s15302_s18 + $0x2b0] sm:$0xf] %vm10533_vm4, %v12385_v33  ;;  %v12644_v49 = vpack.c.bf16 %v8404_v34, %v8404_v34  ;;  %v12386_v19 = vpack.c.bf16 %v8146_v35, %v8146_v35  ;;  %v7120_v50 = vld [vmem:[#allocation2 + $0x590] sm:$0xff]  ;;  %10962 = vst.msk [vmem:[%s15302_s18 + $0x6b0] sm:$0xf] %vm10533_vm4, %v12641_v39  ;;  %v6355_v47 = vadd.f32 %v5618_v6, %v1691_v55  ;;  %v1438_v25 = vld [vmem:[#allocation2 + $0x5c0] sm:$0xff] }
 0x2ce   : > { %10709 = vst.msk [vmem:[%s15302_s18 + $0x2bc] sm:$0xf] %vm10533_vm4, %v12388_v40  ;;  %v12642_v56 = vpack.c.bf16 %v8402_v41, %v8402_v41  ;;  %v7639_v57 = vadd.f32 %v16770_v42, %v7120_v50  ;;  %v7376_v58 = vld [vmem:[#allocation2 + $0xd90] sm:$0xff]  ;;  %v17005_v1 = vld [vmem:[%s17708_s2] ss:$0 sm:$0xff]  ;;  %v13174_v0 = vpop.f32.mrb[184].mxu0 }
 0x2cf   : > { %v7118_v59 = vld [vmem:[#allocation2 + $0x580] sm:$0xff]  ;;  %6612 = vst.msk [vmem:[#allocation2 + $0x5b0] sm:$0xff] %vm226_vm3, %v6100_v43  ;;  %v7895_v42 = vadd.f32 %v17005_v1, %v7376_v58  ;;  %6868 = vst.msk [vmem:[#allocation2 + $0xdb0] sm:$0xff] %vm226_vm3, %v6356_v51  ;;  %v1696_v24 = vld [vmem:[#allocation2 + $0xdd0] sm:$0xff]  ;;  %v6104_v35 = vadd.f32 %v13174_v0, %v1440_v17  ;;  %v13430_v36 = vpop.f32.mrb[184].mxu1  ;;  %v4607_v37 = vpop.f32.mrb[185].mxu0 }
 0x2d0   : > { %10965 = vst.msk [vmem:[%s15302_s18 + $0x6bc] sm:$0xf] %vm10533_vm4, %v12644_v49  ;;  %10707 = vst.msk [vmem:[%s15302_s18 + $0x2b4] sm:$0xf] %vm10533_vm4, %v12386_v19  ;;  %v7637_v2 = vadd.f32 %v17005_v1, %v7118_v59  ;;  %v7374_v3 = vld [vmem:[#allocation2 + $0xd80] sm:$0xff]  ;;  %v8151_v7 = vmax.f32 %v7639_v57, 0.0  ;;  %v6360_v44 = vadd.f32 %v13430_v36, %v1696_v24  ;;  %v6102_v45 = vadd.f32 %v4607_v37, %v1438_v25 }
 0x2d1   : > { %v7121_v20 = vld [vmem:[#allocation2 + $0x598] sm:$0xff]  ;;  %6610 = vst.msk [vmem:[#allocation2 + $0x5a0] sm:$0xff] %vm226_vm3, %v6098_v52  ;;  %v7893_v8 = vadd.f32 %v17005_v1, %v7374_v3  ;;  %6866 = vst.msk [vmem:[#allocation2 + $0xda0] sm:$0xff] %vm226_vm3, %v6354_v60  ;;  %v8407_v12 = vmax.f32 %v7895_v42, 0.0  ;;  %v1694_v30 = vld [vmem:[#allocation2 + $0xdc0] sm:$0xff]  ;;  %v5631_v46 = vpop.f32.mrb[185].mxu1 }
 0x2d2   : > { %10963 = vst.msk [vmem:[%s15302_s18 + $0x6b4] sm:$0xf] %vm10533_vm4, %v12642_v56  ;;  %v7640_v9 = vadd.f32 %v17005_v1, %v7121_v20  ;;  %v7377_v10 = vld [vmem:[#allocation2 + $0xd98] sm:$0xff]  ;;  %v7119_v11 = vld [vmem:[#allocation2 + $0x588] sm:$0xff]  ;;  %v8149_v13 = vmax.f32 %v7637_v2, 0.0  ;;  %v12391_v18 = vpack.c.bf16 %v8151_v7, %v8151_v7  ;;  %v13175_v48 = vpop.f32.mrb[186].mxu0  ;;  %v6358_v53 = vadd.f32 %v5631_v46, %v1694_v30 }
 0x2d3   : > { %6613 = vst.msk [vmem:[#allocation2 + $0x5b8] sm:$0xff] %vm226_vm3, %v6101_v61  ;;  %v7896_v14 = vadd.f32 %v17005_v1, %v7377_v10  ;;  %v7638_v15 = vadd.f32 %v17005_v1, %v7119_v11  ;;  %v7375_v29 = vld [vmem:[#allocation2 + $0xd88] sm:$0xff]  ;;  %6869 = vst.msk [vmem:[#allocation2 + $0xdb8] sm:$0xff] %vm226_vm3, %v6357_v4  ;;  %v8405_v21 = vmax.f32 %v7893_v8, 0.0  ;;  %v12647_v26 = vpack.c.bf16 %v8407_v12, %v8407_v12  ;;  %v1441_v31 = vld [vmem:[#allocation2 + $0x5d8] sm:$0xff]  ;;  %v13431_v55 = vpop.f32.mrb[186].mxu1 }
 0x2d4   : > { %6611 = vst.msk [vmem:[#allocation2 + $0x5a8] sm:$0xff] %vm226_vm3, %v6099_v5  ;;  %v8152_v22 = vmax.f32 %v7640_v9, 0.0  ;;  %v7894_v23 = vadd.f32 %v17005_v1, %v7375_v29  ;;  %6867 = vst.msk [vmem:[#allocation2 + $0xda8] sm:$0xff] %vm226_vm3, %v6355_v47  ;;  %v12389_v27 = vpack.c.bf16 %v8149_v13, %v8149_v13  ;;  %v1697_v38 = vld [vmem:[#allocation2 + $0xdd8] sm:$0xff]  ;;  %v1439_v39 = vld [vmem:[#allocation2 + $0x5c8] sm:$0xff]  ;;  %v6105_v54 = vadd.f32 %v13175_v48, %v1441_v31  ;;  %v4610_v56 = vpop.f32.mrb[187].mxu0 }
 0x2d5   : > { %v8408_v28 = vmax.f32 %v7896_v14, 0.0  ;;  %v8150_v16 = vmax.f32 %v7638_v15, 0.0  ;;  %10712 = vst.msk [vmem:[%s15302_s18 + $0x2c8] sm:$0xf] %vm10533_vm4, %v12391_v18  ;;  %v12645_v32 = vpack.c.bf16 %v8405_v21, %v8405_v21  ;;  %10968 = vst.msk [vmem:[%s15302_s18 + $0x6c8] sm:$0xf] %vm10533_vm4, %v12647_v26  ;;  %v6361_v61 = vadd.f32 %v13431_v55, %v1697_v38 }
 0x2d6   : > { %v12392_v33 = vpack.c.bf16 %v8152_v22, %v8152_v22  ;;  %v8406_v34 = vmax.f32 %v7894_v23, 0.0  ;;  %10710 = vst.msk [vmem:[%s15302_s18 + $0x2c0] sm:$0xf] %vm10533_vm4, %v12389_v27  ;;  %v7124_v43 = vld [vmem:[#allocation2 + $0x5b0] sm:$0xff]  ;;  %v1695_v49 = vld [vmem:[#allocation2 + $0xdc8] sm:$0xff]  ;;  %v6103_v62 = vadd.f32 %v4610_v56, %v1439_v39  ;;  %v5634_v63 = vpop.f32.mrb[187].mxu1 }
 0x2d7   : > { %v12648_v40 = vpack.c.bf16 %v8408_v28, %v8408_v28  ;;  %v12390_v41 = vpack.c.bf16 %v8150_v16, %v8150_v16  ;;  %10966 = vst.msk [vmem:[%s15302_s18 + $0x6c0] sm:$0xf] %vm10533_vm4, %v12645_v32  ;;  %v7643_v50 = vadd.f32 %v17005_v1, %v7124_v43  ;;  %v7380_v51 = vld [vmem:[#allocation2 + $0xdb0] sm:$0xff]  ;;  %v6359_v5 = vadd.f32 %v5634_v63, %v1695_v49  ;;  %v1442_v29 = vld [vmem:[#allocation2 + $0x5e0] sm:$0xff]  ;;  %v13178_v23 = vpop.f32.mrb[188].mxu0  ;;  %v1445_v25 = vld [vmem:[#allocation2 + $0x5f8] sm:$0xff] }
 0x2d8   : > { %10713 = vst.msk [vmem:[%s15302_s18 + $0x2cc] sm:$0xf] %vm10533_vm4, %v12392_v33  ;;  %v12646_v19 = vpack.c.bf16 %v8406_v34, %v8406_v34  ;;  %v7122_v52 = vld [vmem:[#allocation2 + $0x5a0] sm:$0xff]  ;;  %v7899_v57 = vadd.f32 %v17005_v1, %v7380_v51  ;;  %v1444_v11 = vld [vmem:[#allocation2 + $0x5f0] sm:$0xff]  ;;  %v13434_v0 = vpop.f32.mrb[188].mxu1  ;;  %v4623_v30 = vpop.f32.mrb[189].mxu0 }
 0x2d9   : > { %6616 = vst.msk [vmem:[#allocation2 + $0x5d0] sm:$0xff] %vm226_vm3, %v6104_v35  ;;  %v7641_v58 = vadd.f32 %v17005_v1, %v7122_v52  ;;  %v7378_v59 = vld [vmem:[#allocation2 + $0xda0] sm:$0xff]  ;;  %6872 = vst.msk [vmem:[#allocation2 + $0xdd0] sm:$0xff] %vm226_vm3, %v6360_v44  ;;  %v8155_v42 = vmax.f32 %v7643_v50, 0.0  ;;  %v1700_v15 = vld [vmem:[#allocation2 + $0xdf0] sm:$0xff]  ;;  %v6108_v16 = vadd.f32 %v13178_v23, %v1444_v11  ;;  %v6106_v37 = vadd.f32 %v4623_v30, %v1442_v29  ;;  %v5647_v38 = vpop.f32.mrb[189].mxu1 }
 0x2da   : > { %10969 = vst.msk [vmem:[%s15302_s18 + $0x6cc] sm:$0xf] %vm10533_vm4, %v12648_v40  ;;  %10711 = vst.msk [vmem:[%s15302_s18 + $0x2c4] sm:$0xf] %vm10533_vm4, %v12390_v41  ;;  %v7125_v60 = vld [vmem:[#allocation2 + $0x5b8] sm:$0xff]  ;;  %v7897_v2 = vadd.f32 %v17005_v1, %v7378_v59  ;;  %v8411_v6 = vmax.f32 %v7899_v57, 0.0  ;;  %v6364_v36 = vadd.f32 %v13434_v0, %v1700_v15 }
 0x2db   : > { %6614 = vst.msk [vmem:[#allocation2 + $0x5c0] sm:$0xff] %vm226_vm3, %v6102_v45  ;;  %v7644_v3 = vadd.f32 %v17005_v1, %v7125_v60  ;;  %v7381_v20 = vld [vmem:[#allocation2 + $0xdb8] sm:$0xff]  ;;  %v7123_v4 = vld [vmem:[#allocation2 + $0x5a8] sm:$0xff]  ;;  %6870 = vst.msk [vmem:[#allocation2 + $0xdc0] sm:$0xff] %vm226_vm3, %v6358_v53  ;;  %v8153_v7 = vmax.f32 %v7641_v58, 0.0  ;;  %v12395_v47 = vpack.c.bf16 %v8155_v42, %v8155_v42  ;;  %v13179_v39 = vpop.f32.mrb[190].mxu0 }
 0x2dc   : > { %10967 = vst.msk [vmem:[%s15302_s18 + $0x6c4] sm:$0xf] %vm10533_vm4, %v12646_v19  ;;  %v7900_v8 = vadd.f32 %v17005_v1, %v7381_v20  ;;  %v7642_v9 = vadd.f32 %v17005_v1, %v7123_v4  ;;  %v7379_v10 = vld [vmem:[#allocation2 + $0xda8] sm:$0xff]  ;;  %v8409_v12 = vmax.f32 %v7897_v2, 0.0  ;;  %v12651_v17 = vpack.c.bf16 %v8411_v6, %v8411_v6  ;;  %v1698_v24 = vld [vmem:[#allocation2 + $0xde0] sm:$0xff]  ;;  %v1701_v31 = vld [vmem:[#allocation2 + $0xdf8] sm:$0xff] }
 0x2dd   : > { %6617 = vst.msk [vmem:[#allocation2 + $0x5d8] sm:$0xff] %vm226_vm3, %v6105_v54  ;;  %6873 = vst.msk [vmem:[#allocation2 + $0xdd8] sm:$0xff] %vm226_vm3, %v6361_v61  ;;  %v8156_v13 = vmax.f32 %v7644_v3, 0.0  ;;  %v7898_v14 = vadd.f32 %v17005_v1, %v7379_v10  ;;  %v12393_v18 = vpack.c.bf16 %v8153_v7, %v8153_v7  ;;  %v1443_v32 = vld [vmem:[#allocation2 + $0x5e8] sm:$0xff]  ;;  %v6362_v46 = vadd.f32 %v5647_v38, %v1698_v24  ;;  %v13435_v49 = vpop.f32.mrb[190].mxu1  ;;  %v4626_v19 = vpop.f32.mrb[191].mxu0 }
 0x2de   : > { %6615 = vst.msk [vmem:[#allocation2 + $0x5c8] sm:$0xff] %vm226_vm3, %v6103_v62  ;;  %6871 = vst.msk [vmem:[#allocation2 + $0xdc8] sm:$0xff] %vm226_vm3, %v6359_v5  ;;  %v8412_v21 = vmax.f32 %v7900_v8, 0.0  ;;  %v8154_v22 = vmax.f32 %v7642_v9, 0.0  ;;  %v12649_v26 = vpack.c.bf16 %v8409_v12, %v8409_v12  ;;  %v1699_v40 = vld [vmem:[#allocation2 + $0xde8] sm:$0xff]  ;;  %v6109_v48 = vadd.f32 %v13179_v39, %v1445_v25  ;;  %v5650_v56 = vpop.f32.mrb[191].mxu1 }
 0x2df   : > { %10716 = vst.msk [vmem:[%s15302_s18 + $0x2d8] sm:$0xf] %vm10533_vm4, %v12395_v47  ;;  %v12396_v27 = vpack.c.bf16 %v8156_v13, %v8156_v13  ;;  %v8410_v28 = vmax.f32 %v7898_v14, 0.0  ;;  %10972 = vst.msk [vmem:[%s15302_s18 + $0x6d8] sm:$0xf] %vm10533_vm4, %v12651_v17  ;;  %v6365_v54 = vadd.f32 %v13435_v49, %v1701_v31  ;;  %v6107_v55 = vadd.f32 %v4626_v19, %v1443_v32  ;;  %v1448_v4 = vld [vmem:[#allocation2 + $0x610] sm:$0xff] }
 0x2e0   : > { %10714 = vst.msk [vmem:[%s15302_s18 + $0x2d0] sm:$0xf] %vm10533_vm4, %v12393_v18  ;;  %v12652_v33 = vpack.c.bf16 %v8412_v21, %v8412_v21  ;;  %v12394_v34 = vpack.c.bf16 %v8154_v22, %v8154_v22  ;;  %v7128_v35 = vld [vmem:[#allocation2 + $0x5d0] sm:$0xff]  ;;  %10970 = vst.msk [vmem:[%s15302_s18 + $0x6d0] sm:$0xf] %vm10533_vm4, %v12649_v26  ;;  %v6363_v62 = vadd.f32 %v5650_v56, %v1699_v40  ;;  %v1446_v10 = vld [vmem:[#allocation2 + $0x600] sm:$0xff] }
 0x2e1   : > { %10717 = vst.msk [vmem:[%s15302_s18 + $0x2dc] sm:$0xf] %vm10533_vm4, %v12396_v27  ;;  %v12650_v41 = vpack.c.bf16 %v8410_v28, %v8410_v28  ;;  %v7647_v43 = vadd.f32 %v17005_v1, %v7128_v35  ;;  %v7384_v44 = vld [vmem:[#allocation2 + $0xdd0] sm:$0xff]  ;;  %v13182_v14 = vpop.f32.mrb[192].mxu0  ;;  %v1702_v15 = vld [vmem:[#allocation2 + $0xe00] sm:$0xff]  ;;  %v1449_v29 = vld [vmem:[#allocation2 + $0x618] sm:$0xff] }
 0x2e2   : > { %v7126_v45 = vld [vmem:[#allocation2 + $0x5c0] sm:$0xff]  ;;  %6620 = vst.msk [vmem:[#allocation2 + $0x5f0] sm:$0xff] %vm226_vm3, %v6108_v16  ;;  %v7903_v50 = vadd.f32 %v17005_v1, %v7384_v44  ;;  %6876 = vst.msk [vmem:[#allocation2 + $0xdf0] sm:$0xff] %vm226_vm3, %v6364_v36  ;;  %v1704_v9 = vld [vmem:[#allocation2 + $0xe10] sm:$0xff]  ;;  %v6112_v22 = vadd.f32 %v13182_v14, %v1448_v4  ;;  %v13438_v23 = vpop.f32.mrb[192].mxu1  ;;  %v4639_v24 = vpop.f32.mrb[193].mxu0 }
 0x2e3   : > { %10973 = vst.msk [vmem:[%s15302_s18 + $0x6dc] sm:$0xf] %vm10533_vm4, %v12652_v33  ;;  %10715 = vst.msk [vmem:[%s15302_s18 + $0x2d4] sm:$0xf] %vm10533_vm4, %v12394_v34  ;;  %v7645_v51 = vadd.f32 %v17005_v1, %v7126_v45  ;;  %v7382_v52 = vld [vmem:[#allocation2 + $0xdc0] sm:$0xff]  ;;  %v8159_v57 = vmax.f32 %v7647_v43, 0.0  ;;  %v6368_v0 = vadd.f32 %v13438_v23, %v1704_v9  ;;  %v6110_v30 = vadd.f32 %v4639_v24, %v1446_v10 }
 0x2e4   : > { %v7129_v53 = vld [vmem:[#allocation2 + $0x5d8] sm:$0xff]  ;;  %6618 = vst.msk [vmem:[#allocation2 + $0x5e0] sm:$0xff] %vm226_vm3, %v6106_v37  ;;  %v7901_v58 = vadd.f32 %v17005_v1, %v7382_v52  ;;  %6874 = vst.msk [vmem:[#allocation2 + $0xde0] sm:$0xff] %vm226_vm3, %v6362_v46  ;;  %v8415_v63 = vmax.f32 %v7903_v50, 0.0  ;;  %v1447_v26 = vld [vmem:[#allocation2 + $0x608] sm:$0xff]  ;;  %v5663_v31 = vpop.f32.mrb[193].mxu1 }
 0x2e5   : > { %10971 = vst.msk [vmem:[%s15302_s18 + $0x6d4] sm:$0xf] %vm10533_vm4, %v12650_v41  ;;  %v7648_v59 = vadd.f32 %v17005_v1, %v7129_v53  ;;  %v7385_v60 = vld [vmem:[#allocation2 + $0xdd8] sm:$0xff]  ;;  %v7127_v61 = vld [vmem:[#allocation2 + $0x5c8] sm:$0xff]  ;;  %v8157_v42 = vmax.f32 %v7645_v51, 0.0  ;;  %v12399_v5 = vpack.c.bf16 %v8159_v57, %v8159_v57  ;;  %v13183_v32 = vpop.f32.mrb[194].mxu0  ;;  %v6366_v38 = vadd.f32 %v5663_v31, %v1702_v15 }
 0x2e6   : > { %6621 = vst.msk [vmem:[#allocation2 + $0x5f8] sm:$0xff] %vm226_vm3, %v6109_v48  ;;  %v7904_v2 = vadd.f32 %v17005_v1, %v7385_v60  ;;  %v7646_v3 = vadd.f32 %v17005_v1, %v7127_v61  ;;  %v7383_v20 = vld [vmem:[#allocation2 + $0xdc8] sm:$0xff]  ;;  %6877 = vst.msk [vmem:[#allocation2 + $0xdf8] sm:$0xff] %vm226_vm3, %v6365_v54  ;;  %v8413_v6 = vmax.f32 %v7901_v58, 0.0  ;;  %v12655_v11 = vpack.c.bf16 %v8415_v63, %v8415_v63  ;;  %v1705_v25 = vld [vmem:[#allocation2 + $0xe18] sm:$0xff]  ;;  %v13439_v40 = vpop.f32.mrb[194].mxu1 }
 0x2e7   : > { %6619 = vst.msk [vmem:[#allocation2 + $0x5e8] sm:$0xff] %vm226_vm3, %v6107_v55  ;;  %v8160_v7 = vmax.f32 %v7648_v59, 0.0  ;;  %v7902_v8 = vadd.f32 %v17005_v1, %v7383_v20  ;;  %6875 = vst.msk [vmem:[#allocation2 + $0xde8] sm:$0xff] %vm226_vm3, %v6363_v62  ;;  %v12397_v47 = vpack.c.bf16 %v8157_v42, %v8157_v42  ;;  %v1703_v33 = vld [vmem:[#allocation2 + $0xe08] sm:$0xff]  ;;  %v6113_v39 = vadd.f32 %v13183_v32, %v1449_v29  ;;  %v4642_v41 = vpop.f32.mrb[195].mxu0  ;;  %v5666_v19 = vpop.f32.mrb[195].mxu1 }
 0x2e8   : > { %v8416_v12 = vmax.f32 %v7904_v2, 0.0  ;;  %v8158_v13 = vmax.f32 %v7646_v3, 0.0  ;;  %10720 = vst.msk [vmem:[%s15302_s18 + $0x2e8] sm:$0xf] %vm10533_vm4, %v12399_v5  ;;  %v12653_v17 = vpack.c.bf16 %v8413_v6, %v8413_v6  ;;  %10976 = vst.msk [vmem:[%s15302_s18 + $0x6e8] sm:$0xf] %vm10533_vm4, %v12655_v11  ;;  %v6369_v48 = vadd.f32 %v13439_v40, %v1705_v25 }
 0x2e9   : > { %v12400_v18 = vpack.c.bf16 %v8160_v7, %v8160_v7  ;;  %v8414_v21 = vmax.f32 %v7902_v8, 0.0  ;;  %10718 = vst.msk [vmem:[%s15302_s18 + $0x2e0] sm:$0xf] %vm10533_vm4, %v12397_v47  ;;  %v7132_v16 = vld [vmem:[#allocation2 + $0x5f0] sm:$0xff]  ;;  %v6111_v49 = vadd.f32 %v4642_v41, %v1447_v26  ;;  %v6367_v55 = vadd.f32 %v5666_v19, %v1703_v33  ;;  %v1450_v20 = vld [vmem:[#allocation2 + $0x620] sm:$0xff]  ;;  %v13186_v8 = vpop.f32.mrb[196].mxu0 }
 0x2ea   : > { %v12656_v27 = vpack.c.bf16 %v8416_v12, %v8416_v12  ;;  %v12398_v28 = vpack.c.bf16 %v8158_v13, %v8158_v13  ;;  %10974 = vst.msk [vmem:[%s15302_s18 + $0x6e0] sm:$0xf] %vm10533_vm4, %v12653_v17  ;;  %v7651_v35 = vadd.f32 %v17005_v1, %v7132_v16  ;;  %v7388_v36 = vld [vmem:[#allocation2 + $0xdf0] sm:$0xff]  ;;  %v1706_v9 = vld [vmem:[#allocation2 + $0xe20] sm:$0xff]  ;;  %v1453_v10 = vld [vmem:[#allocation2 + $0x638] sm:$0xff]  ;;  %v13442_v14 = vpop.f32.mrb[196].mxu1 }
 0x2eb   : > { %10721 = vst.msk [vmem:[%s15302_s18 + $0x2ec] sm:$0xf] %vm10533_vm4, %v12400_v18  ;;  %v12654_v34 = vpack.c.bf16 %v8414_v21, %v8414_v21  ;;  %v7130_v37 = vld [vmem:[#allocation2 + $0x5e0] sm:$0xff]  ;;  %v7907_v43 = vadd.f32 %v17005_v1, %v7388_v36  ;;  %v1452_v61 = vld [vmem:[#allocation2 + $0x630] sm:$0xff]  ;;  %v4655_v15 = vpop.f32.mrb[197].mxu0  ;;  %v1709_v29 = vld [vmem:[#allocation2 + $0xe38] sm:$0xff] }
 0x2ec   : > { %6624 = vst.msk [vmem:[#allocation2 + $0x610] sm:$0xff] %vm226_vm3, %v6112_v22  ;;  %v7649_v44 = vadd.f32 %v17005_v1, %v7130_v37  ;;  %v7386_v45 = vld [vmem:[#allocation2 + $0xde0] sm:$0xff]  ;;  %6880 = vst.msk [vmem:[#allocation2 + $0xe10] sm:$0xff] %vm226_vm3, %v6368_v0  ;;  %v8163_v50 = vmax.f32 %v7651_v35, 0.0  ;;  %v1708_v3 = vld [vmem:[#allocation2 + $0xe30] sm:$0xff]  ;;  %v6116_v13 = vadd.f32 %v13186_v8, %v1452_v61  ;;  %v6114_v24 = vadd.f32 %v4655_v15, %v1450_v20  ;;  %v5679_v25 = vpop.f32.mrb[197].mxu1 }
 0x2ed   : > { %10977 = vst.msk [vmem:[%s15302_s18 + $0x6ec] sm:$0xf] %vm10533_vm4, %v12656_v27  ;;  %10719 = vst.msk [vmem:[%s15302_s18 + $0x2e4] sm:$0xf] %vm10533_vm4, %v12398_v28  ;;  %v7133_v46 = vld [vmem:[#allocation2 + $0x5f8] sm:$0xff]  ;;  %v7905_v51 = vadd.f32 %v17005_v1, %v7386_v45  ;;  %v8419_v56 = vmax.f32 %v7907_v43, 0.0  ;;  %v6372_v23 = vadd.f32 %v13442_v14, %v1708_v3  ;;  %v6370_v31 = vadd.f32 %v5679_v25, %v1706_v9 }
 0x2ee   : > { %6622 = vst.msk [vmem:[#allocation2 + $0x600] sm:$0xff] %vm226_vm3, %v6110_v30  ;;  %v7652_v52 = vadd.f32 %v17005_v1, %v7133_v46  ;;  %v7389_v53 = vld [vmem:[#allocation2 + $0xdf8] sm:$0xff]  ;;  %v7131_v54 = vld [vmem:[#allocation2 + $0x5e8] sm:$0xff]  ;;  %6878 = vst.msk [vmem:[#allocation2 + $0xe00] sm:$0xff] %vm226_vm3, %v6366_v38  ;;  %v8161_v57 = vmax.f32 %v7649_v44, 0.0  ;;  %v12403_v62 = vpack.c.bf16 %v8163_v50, %v8163_v50  ;;  %v13187_v26 = vpop.f32.mrb[198].mxu0 }
 0x2ef   : > { %10975 = vst.msk [vmem:[%s15302_s18 + $0x6e4] sm:$0xf] %vm10533_vm4, %v12654_v34  ;;  %v7908_v58 = vadd.f32 %v17005_v1, %v7389_v53  ;;  %v7650_v59 = vadd.f32 %v17005_v1, %v7131_v54  ;;  %v7387_v60 = vld [vmem:[#allocation2 + $0xde8] sm:$0xff]  ;;  %v8417_v63 = vmax.f32 %v7905_v51, 0.0  ;;  %v12659_v4 = vpack.c.bf16 %v8419_v56, %v8419_v56  ;;  %v13443_v33 = vpop.f32.mrb[198].mxu1  ;;  %v4658_v34 = vpop.f32.mrb[199].mxu0 }
 0x2f0   : > { %6625 = vst.msk [vmem:[#allocation2 + $0x618] sm:$0xff] %vm226_vm3, %v6113_v39  ;;  %6881 = vst.msk [vmem:[#allocation2 + $0xe18] sm:$0xff] %vm226_vm3, %v6369_v48  ;;  %v8164_v42 = vmax.f32 %v7652_v52, 0.0  ;;  %v7906_v2 = vadd.f32 %v17005_v1, %v7387_v60  ;;  %v12401_v5 = vpack.c.bf16 %v8161_v57, %v8161_v57  ;;  %v1451_v17 = vld [vmem:[#allocation2 + $0x628] sm:$0xff]  ;;  %v6117_v32 = vadd.f32 %v13187_v26, %v1453_v10  ;;  %v5682_v41 = vpop.f32.mrb[199].mxu1  ;;  %v1456_v54 = vld [vmem:[#allocation2 + $0x650] sm:$0xff] }
 0x2f1   : > { %6623 = vst.msk [vmem:[#allocation2 + $0x608] sm:$0xff] %vm226_vm3, %v6111_v49  ;;  %6879 = vst.msk [vmem:[#allocation2 + $0xe08] sm:$0xff] %vm226_vm3, %v6367_v55  ;;  %v8420_v6 = vmax.f32 %v7908_v58, 0.0  ;;  %v8162_v7 = vmax.f32 %v7650_v59, 0.0  ;;  %v12657_v11 = vpack.c.bf16 %v8417_v63, %v8417_v63  ;;  %v1707_v27 = vld [vmem:[#allocation2 + $0xe28] sm:$0xff]  ;;  %v6373_v39 = vadd.f32 %v13443_v33, %v1709_v29  ;;  %v1712_v59 = vld [vmem:[#allocation2 + $0xe50] sm:$0xff] }
 0x2f2   : > { %10724 = vst.msk [vmem:[%s15302_s18 + $0x2f8] sm:$0xf] %vm10533_vm4, %v12403_v62  ;;  %v12404_v47 = vpack.c.bf16 %v8164_v42, %v8164_v42  ;;  %v8418_v12 = vmax.f32 %v7906_v2, 0.0  ;;  %10980 = vst.msk [vmem:[%s15302_s18 + $0x6f8] sm:$0xf] %vm10533_vm4, %v12659_v4  ;;  %v6115_v40 = vadd.f32 %v4658_v34, %v1451_v17  ;;  %v6371_v49 = vadd.f32 %v5682_v41, %v1707_v27  ;;  %v1454_v60 = vld [vmem:[#allocation2 + $0x640] sm:$0xff] }
 0x2f3   : > { %10722 = vst.msk [vmem:[%s15302_s18 + $0x2f0] sm:$0xf] %vm10533_vm4, %v12401_v5  ;;  %v12660_v18 = vpack.c.bf16 %v8420_v6, %v8420_v6  ;;  %v12402_v21 = vpack.c.bf16 %v8162_v7, %v8162_v7  ;;  %v7136_v22 = vld [vmem:[#allocation2 + $0x610] sm:$0xff]  ;;  %10978 = vst.msk [vmem:[%s15302_s18 + $0x6f0] sm:$0xf] %vm10533_vm4, %v12657_v11  ;;  %v13190_v2 = vpop.f32.mrb[200].mxu0 }
 0x2f4   : > { %10725 = vst.msk [vmem:[%s15302_s18 + $0x2fc] sm:$0xf] %vm10533_vm4, %v12404_v47  ;;  %v12658_v28 = vpack.c.bf16 %v8418_v12, %v8418_v12  ;;  %v7655_v16 = vadd.f32 %v17005_v1, %v7136_v22  ;;  %v7392_v0 = vld [vmem:[#allocation2 + $0xe10] sm:$0xff]  ;;  %v1710_v3 = vld [vmem:[#allocation2 + $0xe40] sm:$0xff]  ;;  %v1457_v20 = vld [vmem:[#allocation2 + $0x658] sm:$0xff]  ;;  %v6120_v7 = vadd.f32 %v13190_v2, %v1456_v54  ;;  %v13446_v8 = vpop.f32.mrb[200].mxu1 }
 0x2f5   : > { %v7134_v30 = vld [vmem:[#allocation2 + $0x600] sm:$0xff]  ;;  %6628 = vst.msk [vmem:[#allocation2 + $0x630] sm:$0xff] %vm226_vm3, %v6116_v13  ;;  %v7911_v35 = vadd.f32 %v17005_v1, %v7392_v0  ;;  %6884 = vst.msk [vmem:[#allocation2 + $0xe30] sm:$0xff] %vm226_vm3, %v6372_v23  ;;  %v4671_v9 = vpop.f32.mrb[201].mxu0  ;;  %v1713_v10 = vld [vmem:[#allocation2 + $0xe58] sm:$0xff]  ;;  %v6376_v14 = vadd.f32 %v13446_v8, %v1712_v59  ;;  %v5695_v29 = vpop.f32.mrb[201].mxu1 }
 0x2f6   : > { %10981 = vst.msk [vmem:[%s15302_s18 + $0x6fc] sm:$0xf] %vm10533_vm4, %v12660_v18  ;;  %10723 = vst.msk [vmem:[%s15302_s18 + $0x2f4] sm:$0xf] %vm10533_vm4, %v12402_v21  ;;  %v7653_v36 = vadd.f32 %v17005_v1, %v7134_v30  ;;  %v7390_v37 = vld [vmem:[#allocation2 + $0xe00] sm:$0xff]  ;;  %v8167_v43 = vmax.f32 %v7655_v16, 0.0  ;;  %v6118_v15 = vadd.f32 %v4671_v9, %v1454_v60  ;;  %v6374_v25 = vadd.f32 %v5695_v29, %v1710_v3 }
 0x2f7   : > { %v7137_v38 = vld [vmem:[#allocation2 + $0x618] sm:$0xff]  ;;  %6626 = vst.msk [vmem:[#allocation2 + $0x620] sm:$0xff] %vm226_vm3, %v6114_v24  ;;  %v7909_v44 = vadd.f32 %v17005_v1, %v7390_v37  ;;  %6882 = vst.msk [vmem:[#allocation2 + $0xe20] sm:$0xff] %vm226_vm3, %v6370_v31  ;;  %v8423_v19 = vmax.f32 %v7911_v35, 0.0  ;;  %v1455_v11 = vld [vmem:[#allocation2 + $0x648] sm:$0xff]  ;;  %v13191_v17 = vpop.f32.mrb[202].mxu0 }
 0x2f8   : > { %10979 = vst.msk [vmem:[%s15302_s18 + $0x6f4] sm:$0xf] %vm10533_vm4, %v12658_v28  ;;  %v7656_v45 = vadd.f32 %v17005_v1, %v7137_v38  ;;  %v7393_v46 = vld [vmem:[#allocation2 + $0xe18] sm:$0xff]  ;;  %v7135_v48 = vld [vmem:[#allocation2 + $0x608] sm:$0xff]  ;;  %v8165_v50 = vmax.f32 %v7653_v36, 0.0  ;;  %v12407_v55 = vpack.c.bf16 %v8167_v43, %v8167_v43  ;;  %v6121_v26 = vadd.f32 %v13191_v17, %v1457_v20  ;;  %v13447_v27 = vpop.f32.mrb[202].mxu1 }
 0x2f9   : > { %6629 = vst.msk [vmem:[#allocation2 + $0x638] sm:$0xff] %vm226_vm3, %v6117_v32  ;;  %v7912_v51 = vadd.f32 %v17005_v1, %v7393_v46  ;;  %v7654_v52 = vadd.f32 %v17005_v1, %v7135_v48  ;;  %v7391_v53 = vld [vmem:[#allocation2 + $0xe08] sm:$0xff]  ;;  %6885 = vst.msk [vmem:[#allocation2 + $0xe38] sm:$0xff] %vm226_vm3, %v6373_v39  ;;  %v8421_v56 = vmax.f32 %v7909_v44, 0.0  ;;  %v12663_v61 = vpack.c.bf16 %v8423_v19, %v8423_v19  ;;  %v4674_v28 = vpop.f32.mrb[203].mxu0  ;;  %v5698_v34 = vpop.f32.mrb[203].mxu1 }
 0x2fa   : > { %6627 = vst.msk [vmem:[#allocation2 + $0x628] sm:$0xff] %vm226_vm3, %v6115_v40  ;;  %v8168_v57 = vmax.f32 %v7656_v45, 0.0  ;;  %v7910_v58 = vadd.f32 %v17005_v1, %v7391_v53  ;;  %6883 = vst.msk [vmem:[#allocation2 + $0xe28] sm:$0xff] %vm226_vm3, %v6371_v49  ;;  %v12405_v62 = vpack.c.bf16 %v8165_v50, %v8165_v50  ;;  %v1711_v18 = vld [vmem:[#allocation2 + $0xe48] sm:$0xff]  ;;  %v6377_v32 = vadd.f32 %v13447_v27, %v1713_v10  ;;  %v1460_v48 = vld [vmem:[#allocation2 + $0x670] sm:$0xff]  ;;  %v13450_v2 = vpop.f32.mrb[204].mxu1 }
 0x2fb   : > { %v8424_v63 = vmax.f32 %v7912_v51, 0.0  ;;  %v8166_v42 = vmax.f32 %v7654_v52, 0.0  ;;  %10728 = vst.msk [vmem:[%s15302_s18 + $0x308] sm:$0xf] %vm10533_vm4, %v12407_v55  ;;  %v12661_v4 = vpack.c.bf16 %v8421_v56, %v8421_v56  ;;  %10984 = vst.msk [vmem:[%s15302_s18 + $0x708] sm:$0xf] %vm10533_vm4, %v12663_v61  ;;  %v6119_v33 = vadd.f32 %v4674_v28, %v1455_v11 }
 0x2fc   : > { %v12408_v5 = vpack.c.bf16 %v8168_v57, %v8168_v57  ;;  %v8422_v6 = vmax.f32 %v7910_v58, 0.0  ;;  %10726 = vst.msk [vmem:[%s15302_s18 + $0x300] sm:$0xf] %vm10533_vm4, %v12405_v62  ;;  %v7140_v13 = vld [vmem:[#allocation2 + $0x630] sm:$0xff]  ;;  %v6375_v40 = vadd.f32 %v5698_v34, %v1711_v18  ;;  %v1458_v53 = vld [vmem:[#allocation2 + $0x660] sm:$0xff]  ;;  %v13194_v58 = vpop.f32.mrb[204].mxu0 }
 0x2fd   : > { %v12664_v47 = vpack.c.bf16 %v8424_v63, %v8424_v63  ;;  %v12406_v12 = vpack.c.bf16 %v8166_v42, %v8166_v42  ;;  %10982 = vst.msk [vmem:[%s15302_s18 + $0x700] sm:$0xf] %vm10533_vm4, %v12661_v4  ;;  %v7659_v22 = vadd.f32 %v17005_v1, %v7140_v13  ;;  %v7396_v23 = vld [vmem:[#allocation2 + $0xe30] sm:$0xff]  ;;  %v1714_v59 = vld [vmem:[#allocation2 + $0xe60] sm:$0xff]  ;;  %v1461_v60 = vld [vmem:[#allocation2 + $0x678] sm:$0xff]  ;;  %v6124_v42 = vadd.f32 %v13194_v58, %v1460_v48  ;;  %v4687_v3 = vpop.f32.mrb[205].mxu0 }
 0x2fe   : > { %10729 = vst.msk [vmem:[%s15302_s18 + $0x30c] sm:$0xf] %vm10533_vm4, %v12408_v5  ;;  %v12662_v21 = vpack.c.bf16 %v8422_v6, %v8422_v6  ;;  %v7138_v24 = vld [vmem:[#allocation2 + $0x620] sm:$0xff]  ;;  %v7915_v16 = vadd.f32 %v17005_v1, %v7396_v23  ;;  %v1716_v52 = vld [vmem:[#allocation2 + $0xe70] sm:$0xff]  ;;  %v1717_v20 = vld [vmem:[#allocation2 + $0xe78] sm:$0xff]  ;;  %v6122_v9 = vadd.f32 %v4687_v3, %v1458_v53  ;;  %v5711_v10 = vpop.f32.mrb[205].mxu1 }
 0x2ff   : > { %6632 = vst.msk [vmem:[#allocation2 + $0x650] sm:$0xff] %vm226_vm3, %v6120_v7  ;;  %v7657_v0 = vadd.f32 %v17005_v1, %v7138_v24  ;;  %v7394_v30 = vld [vmem:[#allocation2 + $0xe20] sm:$0xff]  ;;  %6888 = vst.msk [vmem:[#allocation2 + $0xe50] sm:$0xff] %vm226_vm3, %v6376_v14  ;;  %v8171_v35 = vmax.f32 %v7659_v22, 0.0  ;;  %v1459_v4 = vld [vmem:[#allocation2 + $0x668] sm:$0xff]  ;;  %v6380_v8 = vadd.f32 %v13450_v2, %v1716_v52  ;;  %v13195_v11 = vpop.f32.mrb[206].mxu0  ;;  %v6378_v29 = vadd.f32 %v5711_v10, %v1714_v59 }
 0x300   : > { %10985 = vst.msk [vmem:[%s15302_s18 + $0x70c] sm:$0xf] %vm10533_vm4, %v12664_v47  ;;  %10727 = vst.msk [vmem:[%s15302_s18 + $0x304] sm:$0xf] %vm10533_vm4, %v12406_v12  ;;  %v7141_v31 = vld [vmem:[#allocation2 + $0x638] sm:$0xff]  ;;  %v7913_v36 = vadd.f32 %v17005_v1, %v7394_v30  ;;  %v8427_v41 = vmax.f32 %v7915_v16, 0.0  ;;  %v6125_v17 = vadd.f32 %v13195_v11, %v1461_v60 }
 0x301   : > { %6630 = vst.msk [vmem:[#allocation2 + $0x640] sm:$0xff] %vm226_vm3, %v6118_v15  ;;  %v7660_v37 = vadd.f32 %v17005_v1, %v7141_v31  ;;  %v7397_v38 = vld [vmem:[#allocation2 + $0xe38] sm:$0xff]  ;;  %v7139_v39 = vld [vmem:[#allocation2 + $0x628] sm:$0xff]  ;;  %6886 = vst.msk [vmem:[#allocation2 + $0xe40] sm:$0xff] %vm226_vm3, %v6374_v25  ;;  %v8169_v43 = vmax.f32 %v7657_v0, 0.0  ;;  %v12411_v49 = vpack.c.bf16 %v8171_v35, %v8171_v35  ;;  %v13451_v18 = vpop.f32.mrb[206].mxu1 }
 0x302   : > { %10983 = vst.msk [vmem:[%s15302_s18 + $0x704] sm:$0xf] %vm10533_vm4, %v12662_v21  ;;  %v7916_v44 = vadd.f32 %v17005_v1, %v7397_v38  ;;  %v7658_v45 = vadd.f32 %v17005_v1, %v7139_v39  ;;  %v7395_v46 = vld [vmem:[#allocation2 + $0xe28] sm:$0xff]  ;;  %v8425_v19 = vmax.f32 %v7913_v36, 0.0  ;;  %v12667_v54 = vpack.c.bf16 %v8427_v41, %v8427_v41  ;;  %v4690_v21 = vpop.f32.mrb[207].mxu0  ;;  %v5714_v28 = vpop.f32.mrb[207].mxu1 }
 0x303   : > { %6633 = vst.msk [vmem:[#allocation2 + $0x658] sm:$0xff] %vm226_vm3, %v6121_v26  ;;  %6889 = vst.msk [vmem:[#allocation2 + $0xe58] sm:$0xff] %vm226_vm3, %v6377_v32  ;;  %v8172_v50 = vmax.f32 %v7660_v37, 0.0  ;;  %v7914_v51 = vadd.f32 %v17005_v1, %v7395_v46  ;;  %v12409_v55 = vpack.c.bf16 %v8169_v43, %v8169_v43  ;;  %v1715_v47 = vld [vmem:[#allocation2 + $0xe68] sm:$0xff]  ;;  %v6381_v26 = vadd.f32 %v13451_v18, %v1717_v20  ;;  %v1464_v39 = vld [vmem:[#allocation2 + $0x690] sm:$0xff]  ;;  %v13454_v58 = vpop.f32.mrb[208].mxu1 }
 0x304   : > { %6631 = vst.msk [vmem:[#allocation2 + $0x648] sm:$0xff] %vm226_vm3, %v6119_v33  ;;  %6887 = vst.msk [vmem:[#allocation2 + $0xe48] sm:$0xff] %vm226_vm3, %v6375_v40  ;;  %v8428_v56 = vmax.f32 %v7916_v44, 0.0  ;;  %v8170_v57 = vmax.f32 %v7658_v45, 0.0  ;;  %v12665_v61 = vpack.c.bf16 %v8425_v19, %v8425_v19  ;;  %v6123_v27 = vadd.f32 %v4690_v21, %v1459_v4  ;;  %v1720_v45 = vld [vmem:[#allocation2 + $0xe90] sm:$0xff]  ;;  %v1462_v46 = vld [vmem:[#allocation2 + $0x680] sm:$0xff] }
 0x305   : > { %10732 = vst.msk [vmem:[%s15302_s18 + $0x318] sm:$0xf] %vm10533_vm4, %v12411_v49  ;;  %v12412_v62 = vpack.c.bf16 %v8172_v50, %v8172_v50  ;;  %v8426_v63 = vmax.f32 %v7914_v51, 0.0  ;;  %10988 = vst.msk [vmem:[%s15302_s18 + $0x718] sm:$0xf] %vm10533_vm4, %v12667_v54  ;;  %v6379_v33 = vadd.f32 %v5714_v28, %v1715_v47  ;;  %v13198_v51 = vpop.f32.mrb[208].mxu0  ;;  %v6384_v2 = vadd.f32 %v13454_v58, %v1720_v45 }
 0x306   : > { %10730 = vst.msk [vmem:[%s15302_s18 + $0x310] sm:$0xf] %vm10533_vm4, %v12409_v55  ;;  %v12668_v5 = vpack.c.bf16 %v8428_v56, %v8428_v56  ;;  %v12410_v6 = vpack.c.bf16 %v8170_v57, %v8170_v57  ;;  %v7144_v7 = vld [vmem:[#allocation2 + $0x650] sm:$0xff]  ;;  %10986 = vst.msk [vmem:[%s15302_s18 + $0x710] sm:$0xf] %vm10533_vm4, %v12665_v61  ;;  %v1718_v52 = vld [vmem:[#allocation2 + $0xe80] sm:$0xff]  ;;  %v6128_v57 = vadd.f32 %v13198_v51, %v1464_v39 }
 0x307   : > { %10733 = vst.msk [vmem:[%s15302_s18 + $0x31c] sm:$0xf] %vm10533_vm4, %v12412_v62  ;;  %v12666_v12 = vpack.c.bf16 %v8426_v63, %v8426_v63  ;;  %v7663_v13 = vadd.f32 %v17005_v1, %v7144_v7  ;;  %v7400_v14 = vld [vmem:[#allocation2 + $0xe50] sm:$0xff]  ;;  %v1465_v53 = vld [vmem:[#allocation2 + $0x698] sm:$0xff]  ;;  %v4703_v59 = vpop.f32.mrb[209].mxu0  ;;  %v1463_v61 = vld [vmem:[#allocation2 + $0x688] sm:$0xff] }
 0x308   : > { %v7142_v15 = vld [vmem:[#allocation2 + $0x640] sm:$0xff]  ;;  %6636 = vst.msk [vmem:[#allocation2 + $0x670] sm:$0xff] %vm226_vm3, %v6124_v42  ;;  %v7919_v22 = vadd.f32 %v17005_v1, %v7400_v14  ;;  %6892 = vst.msk [vmem:[#allocation2 + $0xe70] sm:$0xff] %vm226_vm3, %v6380_v8  ;;  %v1721_v60 = vld [vmem:[#allocation2 + $0xe98] sm:$0xff]  ;;  %v6126_v3 = vadd.f32 %v4703_v59, %v1462_v46  ;;  %v5727_v20 = vpop.f32.mrb[209].mxu1  ;;  %v13199_v4 = vpop.f32.mrb[210].mxu0 }
 0x309   : > { %10989 = vst.msk [vmem:[%s15302_s18 + $0x71c] sm:$0xf] %vm10533_vm4, %v12668_v5  ;;  %10731 = vst.msk [vmem:[%s15302_s18 + $0x314] sm:$0xf] %vm10533_vm4, %v12410_v6  ;;  %v7661_v23 = vadd.f32 %v17005_v1, %v7142_v15  ;;  %v7398_v24 = vld [vmem:[#allocation2 + $0xe40] sm:$0xff]  ;;  %v8175_v16 = vmax.f32 %v7663_v13, 0.0  ;;  %v6382_v10 = vadd.f32 %v5727_v20, %v1718_v52  ;;  %v6129_v11 = vadd.f32 %v13199_v4, %v1465_v53 }
 0x30a   : > { %v7145_v25 = vld [vmem:[#allocation2 + $0x658] sm:$0xff]  ;;  %6634 = vst.msk [vmem:[#allocation2 + $0x660] sm:$0xff] %vm226_vm3, %v6122_v9  ;;  %v7917_v0 = vadd.f32 %v17005_v1, %v7398_v24  ;;  %6890 = vst.msk [vmem:[#allocation2 + $0xe60] sm:$0xff] %vm226_vm3, %v6378_v29  ;;  %v8431_v34 = vmax.f32 %v7919_v22, 0.0  ;;  %v1719_v5 = vld [vmem:[#allocation2 + $0xe88] sm:$0xff]  ;;  %v13455_v47 = vpop.f32.mrb[210].mxu1 }
 0x30b   : > { %10987 = vst.msk [vmem:[%s15302_s18 + $0x714] sm:$0xf] %vm10533_vm4, %v12666_v12  ;;  %v7664_v30 = vadd.f32 %v17005_v1, %v7145_v25  ;;  %v7401_v31 = vld [vmem:[#allocation2 + $0xe58] sm:$0xff]  ;;  %v7143_v32 = vld [vmem:[#allocation2 + $0x648] sm:$0xff]  ;;  %v8173_v35 = vmax.f32 %v7661_v23, 0.0  ;;  %v12415_v40 = vpack.c.bf16 %v8175_v16, %v8175_v16  ;;  %v4706_v12 = vpop.f32.mrb[211].mxu0 }
 0x30c   : > { %6637 = vst.msk [vmem:[#allocation2 + $0x678] sm:$0xff] %vm226_vm3, %v6125_v17  ;;  %v7920_v36 = vadd.f32 %v17005_v1, %v7401_v31  ;;  %v7662_v37 = vadd.f32 %v17005_v1, %v7143_v32  ;;  %v7399_v38 = vld [vmem:[#allocation2 + $0xe48] sm:$0xff]  ;;  %6893 = vst.msk [vmem:[#allocation2 + $0xe78] sm:$0xff] %vm226_vm3, %v6381_v26  ;;  %v8429_v41 = vmax.f32 %v7917_v0, 0.0  ;;  %v12671_v48 = vpack.c.bf16 %v8431_v34, %v8431_v34  ;;  %v5730_v21 = vpop.f32.mrb[211].mxu1  ;;  %v1468_v32 = vld [vmem:[#allocation2 + $0x6b0] sm:$0xff] }
 0x30d   : > { %6635 = vst.msk [vmem:[#allocation2 + $0x668] sm:$0xff] %vm226_vm3, %v6123_v27  ;;  %v8176_v43 = vmax.f32 %v7664_v30, 0.0  ;;  %v7918_v44 = vadd.f32 %v17005_v1, %v7399_v38  ;;  %6891 = vst.msk [vmem:[#allocation2 + $0xe68] sm:$0xff] %vm226_vm3, %v6379_v33  ;;  %v12413_v49 = vpack.c.bf16 %v8173_v35, %v8173_v35  ;;  %v6385_v17 = vadd.f32 %v13455_v47, %v1721_v60  ;;  %v17240_v23 = vld [vmem:[%s17708_s2] ss:$0 sm:$0xff]  ;;  %v1469_v46 = vld [vmem:[#allocation2 + $0x6b8] sm:$0xff] }
 0x30e   : > { %v8432_v19 = vmax.f32 %v7920_v36, 0.0  ;;  %v8174_v50 = vmax.f32 %v7662_v37, 0.0  ;;  %10736 = vst.msk [vmem:[%s15302_s18 + $0x328] sm:$0xf] %vm10533_vm4, %v12415_v40  ;;  %v12669_v54 = vpack.c.bf16 %v8429_v41, %v8429_v41  ;;  %10992 = vst.msk [vmem:[%s15302_s18 + $0x728] sm:$0xf] %vm10533_vm4, %v12671_v48  ;;  %v6127_v18 = vadd.f32 %v4706_v12, %v1463_v61 }
 0x30f   : > { %v12416_v55 = vpack.c.bf16 %v8176_v43, %v8176_v43  ;;  %v8430_v56 = vmax.f32 %v7918_v44, 0.0  ;;  %10734 = vst.msk [vmem:[%s15302_s18 + $0x320] sm:$0xf] %vm10533_vm4, %v12413_v49  ;;  %v7148_v42 = vld [vmem:[#allocation2 + $0x670] sm:$0xff]  ;;  %v6383_v27 = vadd.f32 %v5730_v21, %v1719_v5  ;;  %v1466_v38 = vld [vmem:[#allocation2 + $0x6a0] sm:$0xff]  ;;  %v13202_v44 = vpop.f32.mrb[212].mxu0 }
 0x310   : > { %v12672_v62 = vpack.c.bf16 %v8432_v19, %v8432_v19  ;;  %v12414_v63 = vpack.c.bf16 %v8174_v50, %v8174_v50  ;;  %10990 = vst.msk [vmem:[%s15302_s18 + $0x720] sm:$0xf] %vm10533_vm4, %v12669_v54  ;;  %v7667_v7 = vadd.f32 %v17005_v1, %v7148_v42  ;;  %v7404_v8 = vld [vmem:[#allocation2 + $0xe70] sm:$0xff]  ;;  %v1722_v45 = vld [vmem:[#allocation2 + $0xea0] sm:$0xff]  ;;  %v6132_v50 = vadd.f32 %v13202_v44, %v1468_v32  ;;  %v13458_v51 = vpop.f32.mrb[212].mxu1  ;;  %v4719_v52 = vpop.f32.mrb[213].mxu0 }
 0x311   : > { %10737 = vst.msk [vmem:[%s15302_s18 + $0x32c] sm:$0xf] %vm10533_vm4, %v12416_v55  ;;  %v12670_v6 = vpack.c.bf16 %v8430_v56, %v8430_v56  ;;  %v7146_v9 = vld [vmem:[#allocation2 + $0x660] sm:$0xff]  ;;  %v7923_v13 = vadd.f32 %v17005_v1, %v7404_v8  ;;  %v1724_v37 = vld [vmem:[#allocation2 + $0xeb0] sm:$0xff]  ;;  %v1725_v53 = vld [vmem:[#allocation2 + $0xeb8] sm:$0xff]  ;;  %v6130_v59 = vadd.f32 %v4719_v52, %v1466_v38  ;;  %v5743_v60 = vpop.f32.mrb[213].mxu1 }
 0x312   : > { %6640 = vst.msk [vmem:[#allocation2 + $0x690] sm:$0xff] %vm226_vm3, %v6128_v57  ;;  %v7665_v14 = vadd.f32 %v17005_v1, %v7146_v9  ;;  %v7402_v15 = vld [vmem:[#allocation2 + $0xe60] sm:$0xff]  ;;  %6896 = vst.msk [vmem:[#allocation2 + $0xe90] sm:$0xff] %vm226_vm3, %v6384_v2  ;;  %v8179_v22 = vmax.f32 %v7667_v7, 0.0  ;;  %v1467_v54 = vld [vmem:[#allocation2 + $0x6a8] sm:$0xff]  ;;  %v6388_v58 = vadd.f32 %v13458_v51, %v1724_v37  ;;  %v13203_v61 = vpop.f32.mrb[214].mxu0  ;;  %v6386_v20 = vadd.f32 %v5743_v60, %v1722_v45 }
 0x313   : > { %10993 = vst.msk [vmem:[%s15302_s18 + $0x72c] sm:$0xf] %vm10533_vm4, %v12672_v62  ;;  %10735 = vst.msk [vmem:[%s15302_s18 + $0x324] sm:$0xf] %vm10533_vm4, %v12414_v63  ;;  %v7149_v29 = vld [vmem:[#allocation2 + $0x678] sm:$0xff]  ;;  %v7921_v24 = vadd.f32 %v17240_v23, %v7402_v15  ;;  %v8435_v28 = vmax.f32 %v7923_v13, 0.0  ;;  %v6133_v4 = vadd.f32 %v13203_v61, %v1469_v46 }
 0x314   : > { %6638 = vst.msk [vmem:[#allocation2 + $0x680] sm:$0xff] %vm226_vm3, %v6126_v3  ;;  %v7668_v1 = vadd.f32 %v17240_v23, %v7149_v29  ;;  %v7405_v25 = vld [vmem:[#allocation2 + $0xe78] sm:$0xff]  ;;  %v7147_v26 = vld [vmem:[#allocation2 + $0x668] sm:$0xff]  ;;  %6894 = vst.msk [vmem:[#allocation2 + $0xe80] sm:$0xff] %vm226_vm3, %v6382_v10  ;;  %v8177_v16 = vmax.f32 %v7665_v14, 0.0  ;;  %v12419_v33 = vpack.c.bf16 %v8179_v22, %v8179_v22  ;;  %v13459_v5 = vpop.f32.mrb[214].mxu1 }
 0x315   : > { %10991 = vst.msk [vmem:[%s15302_s18 + $0x724] sm:$0xf] %vm10533_vm4, %v12670_v6  ;;  %v7924_v0 = vadd.f32 %v17240_v23, %v7405_v25  ;;  %v7666_v30 = vadd.f32 %v17240_v23, %v7147_v26  ;;  %v7403_v31 = vld [vmem:[#allocation2 + $0xe68] sm:$0xff]  ;;  %v8433_v34 = vmax.f32 %v7921_v24, 0.0  ;;  %v12675_v39 = vpack.c.bf16 %v8435_v28, %v8435_v28  ;;  %v4722_v6 = vpop.f32.mrb[215].mxu0  ;;  %v5746_v12 = vpop.f32.mrb[215].mxu1 }
 0x316   : > { %6641 = vst.msk [vmem:[#allocation2 + $0x698] sm:$0xff] %vm226_vm3, %v6129_v11  ;;  %6897 = vst.msk [vmem:[#allocation2 + $0xe98] sm:$0xff] %vm226_vm3, %v6385_v17  ;;  %v8180_v35 = vmax.f32 %v7668_v1, 0.0  ;;  %v7922_v36 = vadd.f32 %v17240_v23, %v7403_v31  ;;  %v12417_v40 = vpack.c.bf16 %v8177_v16, %v8177_v16  ;;  %v1723_v62 = vld [vmem:[#allocation2 + $0xea8] sm:$0xff]  ;;  %v6389_v11 = vadd.f32 %v13459_v5, %v1725_v53  ;;  %v1472_v26 = vld [vmem:[#allocation2 + $0x6d0] sm:$0xff]  ;;  %v13462_v44 = vpop.f32.mrb[216].mxu1 }
 0x317   : > { %6639 = vst.msk [vmem:[#allocation2 + $0x688] sm:$0xff] %vm226_vm3, %v6127_v18  ;;  %6895 = vst.msk [vmem:[#allocation2 + $0xe88] sm:$0xff] %vm226_vm3, %v6383_v27  ;;  %v8436_v41 = vmax.f32 %v7924_v0, 0.0  ;;  %v8178_v43 = vmax.f32 %v7666_v30, 0.0  ;;  %v12673_v48 = vpack.c.bf16 %v8433_v34, %v8433_v34  ;;  %v6131_v47 = vadd.f32 %v4722_v6, %v1467_v54  ;;  %v1728_v30 = vld [vmem:[#allocation2 + $0xed0] sm:$0xff]  ;;  %v1470_v31 = vld [vmem:[#allocation2 + $0x6c0] sm:$0xff] }
 0x318   : > { %10740 = vst.msk [vmem:[%s15302_s18 + $0x338] sm:$0xf] %vm10533_vm4, %v12419_v33  ;;  %v12420_v49 = vpack.c.bf16 %v8180_v35, %v8180_v35  ;;  %v8434_v19 = vmax.f32 %v7922_v36, 0.0  ;;  %10996 = vst.msk [vmem:[%s15302_s18 + $0x738] sm:$0xf] %vm10533_vm4, %v12675_v39  ;;  %v6387_v18 = vadd.f32 %v5746_v12, %v1723_v62  ;;  %v13206_v36 = vpop.f32.mrb[216].mxu0  ;;  %v6392_v51 = vadd.f32 %v13462_v44, %v1728_v30 }
 0x319   : > { %10738 = vst.msk [vmem:[%s15302_s18 + $0x330] sm:$0xf] %vm10533_vm4, %v12417_v40  ;;  %v12676_v55 = vpack.c.bf16 %v8436_v41, %v8436_v41  ;;  %v12418_v56 = vpack.c.bf16 %v8178_v43, %v8178_v43  ;;  %v7152_v57 = vld [vmem:[#allocation2 + $0x690] sm:$0xff]  ;;  %10994 = vst.msk [vmem:[%s15302_s18 + $0x730] sm:$0xf] %vm10533_vm4, %v12673_v48  ;;  %v1726_v37 = vld [vmem:[#allocation2 + $0xec0] sm:$0xff]  ;;  %v6136_v43 = vadd.f32 %v13206_v36, %v1472_v26 }
 0x31a   : > { %10741 = vst.msk [vmem:[%s15302_s18 + $0x33c] sm:$0xf] %vm10533_vm4, %v12420_v49  ;;  %v12674_v63 = vpack.c.bf16 %v8434_v19, %v8434_v19  ;;  %v7671_v42 = vadd.f32 %v17240_v23, %v7152_v57  ;;  %v7408_v2 = vld [vmem:[#allocation2 + $0xe90] sm:$0xff]  ;;  %v1473_v38 = vld [vmem:[#allocation2 + $0x6d8] sm:$0xff]  ;;  %v4735_v45 = vpop.f32.mrb[217].mxu0  ;;  %v1471_v48 = vld [vmem:[#allocation2 + $0x6c8] sm:$0xff] }
 0x31b   : > { %v7150_v3 = vld [vmem:[#allocation2 + $0x680] sm:$0xff]  ;;  %6644 = vst.msk [vmem:[#allocation2 + $0x6b0] sm:$0xff] %vm226_vm3, %v6132_v50  ;;  %v7927_v7 = vadd.f32 %v17240_v23, %v7408_v2  ;;  %6900 = vst.msk [vmem:[#allocation2 + $0xeb0] sm:$0xff] %vm226_vm3, %v6388_v58  ;;  %v1729_v46 = vld [vmem:[#allocation2 + $0xed8] sm:$0xff]  ;;  %v6134_v52 = vadd.f32 %v4735_v45, %v1470_v31  ;;  %v5759_v53 = vpop.f32.mrb[217].mxu1  ;;  %v13207_v54 = vpop.f32.mrb[218].mxu0 }
 0x31c   : > { %10997 = vst.msk [vmem:[%s15302_s18 + $0x73c] sm:$0xf] %vm10533_vm4, %v12676_v55  ;;  %10739 = vst.msk [vmem:[%s15302_s18 + $0x334] sm:$0xf] %vm10533_vm4, %v12418_v56  ;;  %v7669_v8 = vadd.f32 %v17240_v23, %v7150_v3  ;;  %v7406_v9 = vld [vmem:[#allocation2 + $0xe80] sm:$0xff]  ;;  %v8183_v13 = vmax.f32 %v7671_v42, 0.0  ;;  %v6390_v60 = vadd.f32 %v5759_v53, %v1726_v37  ;;  %v6137_v61 = vadd.f32 %v13207_v54, %v1473_v38 }
 0x31d   : > { %v7153_v10 = vld [vmem:[#allocation2 + $0x698] sm:$0xff]  ;;  %6642 = vst.msk [vmem:[#allocation2 + $0x6a0] sm:$0xff] %vm226_vm3, %v6130_v59  ;;  %v7925_v14 = vadd.f32 %v17240_v23, %v7406_v9  ;;  %6898 = vst.msk [vmem:[#allocation2 + $0xea0] sm:$0xff] %vm226_vm3, %v6386_v20  ;;  %v8439_v21 = vmax.f32 %v7927_v7, 0.0  ;;  %v1727_v55 = vld [vmem:[#allocation2 + $0xec8] sm:$0xff]  ;;  %v13463_v62 = vpop.f32.mrb[218].mxu1 }
 0x31e   : > { %10995 = vst.msk [vmem:[%s15302_s18 + $0x734] sm:$0xf] %vm10533_vm4, %v12674_v63  ;;  %v7672_v15 = vadd.f32 %v17240_v23, %v7153_v10  ;;  %v7409_v29 = vld [vmem:[#allocation2 + $0xe98] sm:$0xff]  ;;  %v7151_v17 = vld [vmem:[#allocation2 + $0x688] sm:$0xff]  ;;  %v8181_v22 = vmax.f32 %v7669_v8, 0.0  ;;  %v12423_v27 = vpack.c.bf16 %v8183_v13, %v8183_v13  ;;  %v4738_v63 = vpop.f32.mrb[219].mxu0 }
 0x31f   : > { %6645 = vst.msk [vmem:[#allocation2 + $0x6b8] sm:$0xff] %vm226_vm3, %v6133_v4  ;;  %v7928_v24 = vadd.f32 %v17240_v23, %v7409_v29  ;;  %v7670_v1 = vadd.f32 %v17240_v23, %v7151_v17  ;;  %v7407_v25 = vld [vmem:[#allocation2 + $0xe88] sm:$0xff]  ;;  %6901 = vst.msk [vmem:[#allocation2 + $0xeb8] sm:$0xff] %vm226_vm3, %v6389_v11  ;;  %v8437_v28 = vmax.f32 %v7925_v14, 0.0  ;;  %v12679_v32 = vpack.c.bf16 %v8439_v21, %v8439_v21  ;;  %v5762_v6 = vpop.f32.mrb[219].mxu1  ;;  %v1476_v17 = vld [vmem:[#allocation2 + $0x6f0] sm:$0xff] }
 0x320   : > { %6643 = vst.msk [vmem:[#allocation2 + $0x6a8] sm:$0xff] %vm226_vm3, %v6131_v47  ;;  %v8184_v16 = vmax.f32 %v7672_v15, 0.0  ;;  %v7926_v0 = vadd.f32 %v17240_v23, %v7407_v25  ;;  %6899 = vst.msk [vmem:[#allocation2 + $0xea8] sm:$0xff] %vm226_vm3, %v6387_v18  ;;  %v12421_v33 = vpack.c.bf16 %v8181_v22, %v8181_v22  ;;  %v6393_v4 = vadd.f32 %v13463_v62, %v1729_v46  ;;  %v1474_v25 = vld [vmem:[#allocation2 + $0x6e0] sm:$0xff]  ;;  %v1477_v31 = vld [vmem:[#allocation2 + $0x6f8] sm:$0xff]  ;;  %v13466_v36 = vpop.f32.mrb[220].mxu1 }
 0x321   : > { %v8440_v34 = vmax.f32 %v7928_v24, 0.0  ;;  %v8182_v35 = vmax.f32 %v7670_v1, 0.0  ;;  %10744 = vst.msk [vmem:[%s15302_s18 + $0x348] sm:$0xf] %vm10533_vm4, %v12423_v27  ;;  %v12677_v39 = vpack.c.bf16 %v8437_v28, %v8437_v28  ;;  %11000 = vst.msk [vmem:[%s15302_s18 + $0x748] sm:$0xf] %vm10533_vm4, %v12679_v32  ;;  %v6135_v5 = vadd.f32 %v4738_v63, %v1471_v48 }
 0x322   : > { %v12424_v40 = vpack.c.bf16 %v8184_v16, %v8184_v16  ;;  %v8438_v41 = vmax.f32 %v7926_v0, 0.0  ;;  %10742 = vst.msk [vmem:[%s15302_s18 + $0x340] sm:$0xf] %vm10533_vm4, %v12421_v33  ;;  %v7156_v50 = vld [vmem:[#allocation2 + $0x6b0] sm:$0xff]  ;;  %v6391_v47 = vadd.f32 %v5762_v6, %v1727_v55  ;;  %v13210_v0 = vpop.f32.mrb[220].mxu0  ;;  %v1730_v30 = vld [vmem:[#allocation2 + $0xee0] sm:$0xff] }
 0x323   : > { %v12680_v49 = vpack.c.bf16 %v8440_v34, %v8440_v34  ;;  %v12422_v19 = vpack.c.bf16 %v8182_v35, %v8182_v35  ;;  %10998 = vst.msk [vmem:[%s15302_s18 + $0x740] sm:$0xf] %vm10533_vm4, %v12677_v39  ;;  %v7675_v57 = vadd.f32 %v17240_v23, %v7156_v50  ;;  %v7412_v58 = vld [vmem:[#allocation2 + $0xeb0] sm:$0xff]  ;;  %v6140_v35 = vadd.f32 %v13210_v0, %v1476_v17  ;;  %v4751_v37 = vpop.f32.mrb[221].mxu0  ;;  %v1733_v38 = vld [vmem:[#allocation2 + $0xef8] sm:$0xff]  ;;  %v1475_v39 = vld [vmem:[#allocation2 + $0x6e8] sm:$0xff] }
 0x324   : > { %10745 = vst.msk [vmem:[%s15302_s18 + $0x34c] sm:$0xf] %vm10533_vm4, %v12424_v40  ;;  %v12678_v56 = vpack.c.bf16 %v8438_v41, %v8438_v41  ;;  %v7154_v59 = vld [vmem:[#allocation2 + $0x6a0] sm:$0xff]  ;;  %v7931_v42 = vadd.f32 %v17240_v23, %v7412_v58  ;;  %v1732_v1 = vld [vmem:[#allocation2 + $0xef0] sm:$0xff]  ;;  %v6138_v45 = vadd.f32 %v4751_v37, %v1474_v25  ;;  %v5775_v46 = vpop.f32.mrb[221].mxu1  ;;  %v13211_v48 = vpop.f32.mrb[222].mxu0 }
 0x325   : > { %6648 = vst.msk [vmem:[#allocation2 + $0x6d0] sm:$0xff] %vm226_vm3, %v6136_v43  ;;  %v7673_v2 = vadd.f32 %v17240_v23, %v7154_v59  ;;  %v7410_v3 = vld [vmem:[#allocation2 + $0xea0] sm:$0xff]  ;;  %6904 = vst.msk [vmem:[#allocation2 + $0xed0] sm:$0xff] %vm226_vm3, %v6392_v51  ;;  %v8187_v7 = vmax.f32 %v7675_v57, 0.0  ;;  %v6396_v44 = vadd.f32 %v13466_v36, %v1732_v1  ;;  %v6394_v53 = vadd.f32 %v5775_v46, %v1730_v30  ;;  %v13467_v55 = vpop.f32.mrb[222].mxu1  ;;  %v1481_v25 = vld [vmem:[#allocation2 + $0x718] sm:$0xff] }
 0x326   : > { %11001 = vst.msk [vmem:[%s15302_s18 + $0x74c] sm:$0xf] %vm10533_vm4, %v12680_v49  ;;  %10743 = vst.msk [vmem:[%s15302_s18 + $0x344] sm:$0xf] %vm10533_vm4, %v12422_v19  ;;  %v7157_v20 = vld [vmem:[#allocation2 + $0x6b8] sm:$0xff]  ;;  %v7929_v8 = vadd.f32 %v17240_v23, %v7410_v3  ;;  %v8443_v12 = vmax.f32 %v7931_v42, 0.0  ;;  %v6141_v54 = vadd.f32 %v13211_v48, %v1477_v31 }
 0x327   : > { %6646 = vst.msk [vmem:[#allocation2 + $0x6c0] sm:$0xff] %vm226_vm3, %v6134_v52  ;;  %v7676_v9 = vadd.f32 %v17240_v23, %v7157_v20  ;;  %v7413_v10 = vld [vmem:[#allocation2 + $0xeb8] sm:$0xff]  ;;  %v7155_v11 = vld [vmem:[#allocation2 + $0x6a8] sm:$0xff]  ;;  %6902 = vst.msk [vmem:[#allocation2 + $0xec0] sm:$0xff] %vm226_vm3, %v6390_v60  ;;  %v8185_v13 = vmax.f32 %v7673_v2, 0.0  ;;  %v12427_v18 = vpack.c.bf16 %v8187_v7, %v8187_v7  ;;  %v5778_v63 = vpop.f32.mrb[223].mxu1 }
 0x328   : > { %10999 = vst.msk [vmem:[%s15302_s18 + $0x744] sm:$0xf] %vm10533_vm4, %v12678_v56  ;;  %v7932_v14 = vadd.f32 %v17240_v23, %v7413_v10  ;;  %v7674_v15 = vadd.f32 %v17240_v23, %v7155_v11  ;;  %v7411_v29 = vld [vmem:[#allocation2 + $0xea8] sm:$0xff]  ;;  %v8441_v21 = vmax.f32 %v7929_v8, 0.0  ;;  %v12683_v26 = vpack.c.bf16 %v8443_v12, %v8443_v12  ;;  %v4754_v56 = vpop.f32.mrb[223].mxu0  ;;  %v1480_v11 = vld [vmem:[#allocation2 + $0x710] sm:$0xff] }
 0x329   : > { %6649 = vst.msk [vmem:[#allocation2 + $0x6d8] sm:$0xff] %vm226_vm3, %v6137_v61  ;;  %6905 = vst.msk [vmem:[#allocation2 + $0xed8] sm:$0xff] %vm226_vm3, %v6393_v4  ;;  %v8188_v22 = vmax.f32 %v7676_v9, 0.0  ;;  %v7930_v24 = vadd.f32 %v17240_v23, %v7411_v29  ;;  %v12425_v27 = vpack.c.bf16 %v8185_v13, %v8185_v13  ;;  %v1731_v49 = vld [vmem:[#allocation2 + $0xee8] sm:$0xff]  ;;  %v6397_v61 = vadd.f32 %v13467_v55, %v1733_v38  ;;  %v1478_v29 = vld [vmem:[#allocation2 + $0x700] sm:$0xff]  ;;  %v13470_v0 = vpop.f32.mrb[224].mxu1 }
 0x32a   : > { %6647 = vst.msk [vmem:[#allocation2 + $0x6c8] sm:$0xff] %vm226_vm3, %v6135_v5  ;;  %6903 = vst.msk [vmem:[#allocation2 + $0xec8] sm:$0xff] %vm226_vm3, %v6391_v47  ;;  %v8444_v28 = vmax.f32 %v7932_v14, 0.0  ;;  %v8186_v16 = vmax.f32 %v7674_v15, 0.0  ;;  %v12681_v32 = vpack.c.bf16 %v8441_v21, %v8441_v21  ;;  %v6139_v62 = vadd.f32 %v4754_v56, %v1475_v39  ;;  %v1736_v15 = vld [vmem:[#allocation2 + $0xf10] sm:$0xff]  ;;  %v1734_v1 = vld [vmem:[#allocation2 + $0xf00] sm:$0xff] }
 0x32b   : > { %10748 = vst.msk [vmem:[%s15302_s18 + $0x358] sm:$0xf] %vm10533_vm4, %v12427_v18  ;;  %v12428_v33 = vpack.c.bf16 %v8188_v22, %v8188_v22  ;;  %v8442_v34 = vmax.f32 %v7930_v24, 0.0  ;;  %11004 = vst.msk [vmem:[%s15302_s18 + $0x758] sm:$0xf] %vm10533_vm4, %v12683_v26  ;;  %v6395_v5 = vadd.f32 %v5778_v63, %v1731_v49  ;;  %v13214_v24 = vpop.f32.mrb[224].mxu0  ;;  %v6400_v36 = vadd.f32 %v13470_v0, %v1736_v15 }
 0x32c   : > { %10746 = vst.msk [vmem:[%s15302_s18 + $0x350] sm:$0xf] %vm10533_vm4, %v12425_v27  ;;  %v12684_v40 = vpack.c.bf16 %v8444_v28, %v8444_v28  ;;  %v12426_v41 = vpack.c.bf16 %v8186_v16, %v8186_v16  ;;  %v7160_v43 = vld [vmem:[#allocation2 + $0x6d0] sm:$0xff]  ;;  %11002 = vst.msk [vmem:[%s15302_s18 + $0x750] sm:$0xf] %vm10533_vm4, %v12681_v32  ;;  %v6144_v16 = vadd.f32 %v13214_v24, %v1480_v11  ;;  %v4767_v30 = vpop.f32.mrb[225].mxu0 }
 0x32d   : > { %10749 = vst.msk [vmem:[%s15302_s18 + $0x35c] sm:$0xf] %vm10533_vm4, %v12428_v33  ;;  %v12682_v19 = vpack.c.bf16 %v8442_v34, %v8442_v34  ;;  %v7679_v50 = vadd.f32 %v17240_v23, %v7160_v43  ;;  %v7416_v51 = vld [vmem:[#allocation2 + $0xed0] sm:$0xff]  ;;  %v1737_v31 = vld [vmem:[#allocation2 + $0xf18] sm:$0xff]  ;;  %v1479_v32 = vld [vmem:[#allocation2 + $0x708] sm:$0xff]  ;;  %v6142_v37 = vadd.f32 %v4767_v30, %v1478_v29  ;;  %v5791_v38 = vpop.f32.mrb[225].mxu1 }
 0x32e   : > { %v7158_v52 = vld [vmem:[#allocation2 + $0x6c0] sm:$0xff]  ;;  %6652 = vst.msk [vmem:[#allocation2 + $0x6f0] sm:$0xff] %vm226_vm3, %v6140_v35  ;;  %v7935_v57 = vadd.f32 %v17240_v23, %v7416_v51  ;;  %6908 = vst.msk [vmem:[#allocation2 + $0xef0] sm:$0xff] %vm226_vm3, %v6396_v44  ;;  %v13215_v39 = vpop.f32.mrb[226].mxu0  ;;  %v6398_v46 = vadd.f32 %v5791_v38, %v1734_v1  ;;  %v13471_v49 = vpop.f32.mrb[226].mxu1  ;;  %v1485_v29 = vld [vmem:[#allocation2 + $0x738] sm:$0xff] }
 0x32f   : > { %11005 = vst.msk [vmem:[%s15302_s18 + $0x75c] sm:$0xf] %vm10533_vm4, %v12684_v40  ;;  %10747 = vst.msk [vmem:[%s15302_s18 + $0x354] sm:$0xf] %vm10533_vm4, %v12426_v41  ;;  %v7677_v58 = vadd.f32 %v17240_v23, %v7158_v52  ;;  %v7414_v59 = vld [vmem:[#allocation2 + $0xec0] sm:$0xff]  ;;  %v8191_v42 = vmax.f32 %v7679_v50, 0.0  ;;  %v6145_v48 = vadd.f32 %v13215_v39, %v1481_v25 }
 0x330   : > { %v7161_v60 = vld [vmem:[#allocation2 + $0x6d8] sm:$0xff]  ;;  %6650 = vst.msk [vmem:[#allocation2 + $0x6e0] sm:$0xff] %vm226_vm3, %v6138_v45  ;;  %v7933_v2 = vadd.f32 %v17240_v23, %v7414_v59  ;;  %6906 = vst.msk [vmem:[#allocation2 + $0xee0] sm:$0xff] %vm226_vm3, %v6394_v53  ;;  %v8447_v6 = vmax.f32 %v7935_v57, 0.0  ;;  %v1735_v40 = vld [vmem:[#allocation2 + $0xf08] sm:$0xff]  ;;  %v5794_v56 = vpop.f32.mrb[227].mxu1 }
 0x331   : > { %11003 = vst.msk [vmem:[%s15302_s18 + $0x754] sm:$0xf] %vm10533_vm4, %v12682_v19  ;;  %v7680_v3 = vadd.f32 %v17240_v23, %v7161_v60  ;;  %v7417_v20 = vld [vmem:[#allocation2 + $0xed8] sm:$0xff]  ;;  %v7159_v4 = vld [vmem:[#allocation2 + $0x6c8] sm:$0xff]  ;;  %v8189_v7 = vmax.f32 %v7677_v58, 0.0  ;;  %v12431_v47 = vpack.c.bf16 %v8191_v42, %v8191_v42  ;;  %v4770_v19 = vpop.f32.mrb[227].mxu0 }
 0x332   : > { %6653 = vst.msk [vmem:[#allocation2 + $0x6f8] sm:$0xff] %vm226_vm3, %v6141_v54  ;;  %v7936_v8 = vadd.f32 %v17240_v23, %v7417_v20  ;;  %v7678_v9 = vadd.f32 %v17240_v23, %v7159_v4  ;;  %v7415_v10 = vld [vmem:[#allocation2 + $0xec8] sm:$0xff]  ;;  %6909 = vst.msk [vmem:[#allocation2 + $0xef8] sm:$0xff] %vm226_vm3, %v6397_v61  ;;  %v8445_v12 = vmax.f32 %v7933_v2, 0.0  ;;  %v12687_v17 = vpack.c.bf16 %v8447_v6, %v8447_v6  ;;  %v1484_v4 = vld [vmem:[#allocation2 + $0x730] sm:$0xff]  ;;  %v13474_v24 = vpop.f32.mrb[228].mxu1 }
 0x333   : > { %6651 = vst.msk [vmem:[#allocation2 + $0x6e8] sm:$0xff] %vm226_vm3, %v6139_v62  ;;  %v8192_v13 = vmax.f32 %v7680_v3, 0.0  ;;  %v7934_v14 = vadd.f32 %v17240_v23, %v7415_v10  ;;  %6907 = vst.msk [vmem:[#allocation2 + $0xee8] sm:$0xff] %vm226_vm3, %v6395_v5  ;;  %v12429_v18 = vpack.c.bf16 %v8189_v7, %v8189_v7  ;;  %v6401_v54 = vadd.f32 %v13471_v49, %v1737_v31  ;;  %v1482_v10 = vld [vmem:[#allocation2 + $0x720] sm:$0xff]  ;;  %v1741_v25 = vld [vmem:[#allocation2 + $0xf38] sm:$0xff]  ;;  %v5807_v31 = vpop.f32.mrb[229].mxu1 }
 0x334   : > { %v8448_v21 = vmax.f32 %v7936_v8, 0.0  ;;  %v8190_v22 = vmax.f32 %v7678_v9, 0.0  ;;  %10752 = vst.msk [vmem:[%s15302_s18 + $0x368] sm:$0xf] %vm10533_vm4, %v12431_v47  ;;  %v12685_v26 = vpack.c.bf16 %v8445_v12, %v8445_v12  ;;  %11008 = vst.msk [vmem:[%s15302_s18 + $0x768] sm:$0xf] %vm10533_vm4, %v12687_v17  ;;  %v6143_v55 = vadd.f32 %v4770_v19, %v1479_v32 }
 0x335   : > { %v12432_v27 = vpack.c.bf16 %v8192_v13, %v8192_v13  ;;  %v8446_v28 = vmax.f32 %v7934_v14, 0.0  ;;  %10750 = vst.msk [vmem:[%s15302_s18 + $0x360] sm:$0xf] %vm10533_vm4, %v12429_v18  ;;  %v7164_v35 = vld [vmem:[#allocation2 + $0x6f0] sm:$0xff]  ;;  %v6399_v62 = vadd.f32 %v5794_v56, %v1735_v40  ;;  %v13218_v14 = vpop.f32.mrb[228].mxu0  ;;  %v1738_v15 = vld [vmem:[#allocation2 + $0xf20] sm:$0xff] }
 0x336   : > { %v12688_v33 = vpack.c.bf16 %v8448_v21, %v8448_v21  ;;  %v12430_v34 = vpack.c.bf16 %v8190_v22, %v8190_v22  ;;  %11006 = vst.msk [vmem:[%s15302_s18 + $0x760] sm:$0xf] %vm10533_vm4, %v12685_v26  ;;  %v7683_v43 = vadd.f32 %v17240_v23, %v7164_v35  ;;  %v7420_v44 = vld [vmem:[#allocation2 + $0xef0] sm:$0xff]  ;;  %v6148_v22 = vadd.f32 %v13218_v14, %v1484_v4  ;;  %v4783_v1 = vpop.f32.mrb[229].mxu0  ;;  %v1483_v26 = vld [vmem:[#allocation2 + $0x728] sm:$0xff]  ;;  %v13475_v40 = vpop.f32.mrb[230].mxu1 }
 0x337   : > { %10753 = vst.msk [vmem:[%s15302_s18 + $0x36c] sm:$0xf] %vm10533_vm4, %v12432_v27  ;;  %v12686_v41 = vpack.c.bf16 %v8446_v28, %v8446_v28  ;;  %v7162_v45 = vld [vmem:[#allocation2 + $0x6e0] sm:$0xff]  ;;  %v7939_v50 = vadd.f32 %v17240_v23, %v7420_v44  ;;  %v1740_v9 = vld [vmem:[#allocation2 + $0xf30] sm:$0xff]  ;;  %v6146_v30 = vadd.f32 %v4783_v1, %v1482_v10  ;;  %v13219_v32 = vpop.f32.mrb[230].mxu0  ;;  %v6402_v38 = vadd.f32 %v5807_v31, %v1738_v15  ;;  %v5810_v19 = vpop.f32.mrb[231].mxu1 }
 0x338   : > { %6656 = vst.msk [vmem:[#allocation2 + $0x710] sm:$0xff] %vm226_vm3, %v6144_v16  ;;  %v7681_v51 = vadd.f32 %v17240_v23, %v7162_v45  ;;  %v7418_v52 = vld [vmem:[#allocation2 + $0xee0] sm:$0xff]  ;;  %6912 = vst.msk [vmem:[#allocation2 + $0xf10] sm:$0xff] %vm226_vm3, %v6400_v36  ;;  %v8195_v57 = vmax.f32 %v7683_v43, 0.0  ;;  %v6404_v0 = vadd.f32 %v13474_v24, %v1740_v9  ;;  %v6149_v39 = vadd.f32 %v13219_v32, %v1485_v29  ;;  %v1489_v10 = vld [vmem:[#allocation2 + $0x758] sm:$0xff]  ;;  %v13478_v14 = vpop.f32.mrb[232].mxu1 }
 0x339   : > { %11009 = vst.msk [vmem:[%s15302_s18 + $0x76c] sm:$0xf] %vm10533_vm4, %v12688_v33  ;;  %10751 = vst.msk [vmem:[%s15302_s18 + $0x364] sm:$0xf] %vm10533_vm4, %v12430_v34  ;;  %v7165_v53 = vld [vmem:[#allocation2 + $0x6f8] sm:$0xff]  ;;  %v7937_v58 = vadd.f32 %v17240_v23, %v7418_v52  ;;  %v8451_v63 = vmax.f32 %v7939_v50, 0.0 }
 0x33a   : > { %6654 = vst.msk [vmem:[#allocation2 + $0x700] sm:$0xff] %vm226_vm3, %v6142_v37  ;;  %v7684_v59 = vadd.f32 %v17240_v23, %v7165_v53  ;;  %v7421_v60 = vld [vmem:[#allocation2 + $0xef8] sm:$0xff]  ;;  %v7163_v61 = vld [vmem:[#allocation2 + $0x6e8] sm:$0xff]  ;;  %6910 = vst.msk [vmem:[#allocation2 + $0xf00] sm:$0xff] %vm226_vm3, %v6398_v46  ;;  %v8193_v42 = vmax.f32 %v7681_v51, 0.0  ;;  %v12435_v5 = vpack.c.bf16 %v8195_v57, %v8195_v57  ;;  %s13840_s7 = scalar_lea.vmem %s13839_s6, 65536 }
 0x33b   : > { %11007 = vst.msk [vmem:[%s15302_s18 + $0x764] sm:$0xf] %vm10533_vm4, %v12686_v41  ;;  %v7940_v2 = vadd.f32 %v17240_v23, %v7421_v60  ;;  %v7682_v3 = vadd.f32 %v17240_v23, %v7163_v61  ;;  %v7419_v20 = vld [vmem:[#allocation2 + $0xee8] sm:$0xff]  ;;  %v8449_v6 = vmax.f32 %v7937_v58, 0.0  ;;  %v12691_v11 = vpack.c.bf16 %v8451_v63, %v8451_v63  ;;  %v4786_v41 = vpop.f32.mrb[231].mxu0  ;;  %v1488_v61 = vld [vmem:[#allocation2 + $0x750] sm:$0xff]  ;;  %p13842_p2 = scmp.lt.s32.totalorder %s13840_s7, %s13834_s4 }
 0x33c   : > { %6657 = vst.msk [vmem:[#allocation2 + $0x718] sm:$0xff] %vm226_vm3, %v6145_v48  ;;  %6913 = vst.msk [vmem:[#allocation2 + $0xf18] sm:$0xff] %vm226_vm3, %v6401_v54  ;;  %v8196_v7 = vmax.f32 %v7684_v59, 0.0  ;;  %v7938_v8 = vadd.f32 %v17240_v23, %v7419_v20  ;;  %v12433_v47 = vpack.c.bf16 %v8193_v42, %v8193_v42  ;;  %v1739_v33 = vld [vmem:[#allocation2 + $0xf28] sm:$0xff]  ;;  %v6405_v48 = vadd.f32 %v13475_v40, %v1741_v25  ;;  %v1486_v20 = vld [vmem:[#allocation2 + $0x740] sm:$0xff]  ;;  %v5823_v25 = vpop.f32.mrb[233].mxu1 }
 0x33d   : > { %6655 = vst.msk [vmem:[#allocation2 + $0x708] sm:$0xff] %vm226_vm3, %v6143_v55  ;;  %6911 = vst.msk [vmem:[#allocation2 + $0xf08] sm:$0xff] %vm226_vm3, %v6399_v62  ;;  %v8452_v12 = vmax.f32 %v7940_v2, 0.0  ;;  %v8194_v13 = vmax.f32 %v7682_v3, 0.0  ;;  %v12689_v17 = vpack.c.bf16 %v8449_v6, %v8449_v6  ;;  %v6147_v49 = vadd.f32 %v4786_v41, %v1483_v26  ;;  %v1744_v3 = vld [vmem:[#allocation2 + $0xf50] sm:$0xff]  ;;  %v1742_v9 = vld [vmem:[#allocation2 + $0xf40] sm:$0xff]  ;;  %p13843_p3 = por %p13842_p2, %p13841_p1 }
 0x33e   : > { %10756 = vst.msk [vmem:[%s15302_s18 + $0x378] sm:$0xf] %vm10533_vm4, %v12435_v5  ;;  %v12436_v18 = vpack.c.bf16 %v8196_v7, %v8196_v7  ;;  %v8450_v21 = vmax.f32 %v7938_v8, 0.0  ;;  %11012 = vst.msk [vmem:[%s15302_s18 + $0x778] sm:$0xf] %vm10533_vm4, %v12691_v11  ;;  %v6403_v55 = vadd.f32 %v5810_v19, %v1739_v33  ;;  %v13222_v8 = vpop.f32.mrb[232].mxu0  ;;  %v6408_v24 = vadd.f32 %v13478_v14, %v1744_v3 }
 0x33f   : > { %10754 = vst.msk [vmem:[%s15302_s18 + $0x370] sm:$0xf] %vm10533_vm4, %v12433_v47  ;;  %v12692_v27 = vpack.c.bf16 %v8452_v12, %v8452_v12  ;;  %v12434_v28 = vpack.c.bf16 %v8194_v13, %v8194_v13  ;;  %v7168_v16 = vld [vmem:[#allocation2 + $0x710] sm:$0xff]  ;;  %11010 = vst.msk [vmem:[%s15302_s18 + $0x770] sm:$0xf] %vm10533_vm4, %v12689_v17  ;;  %v6152_v13 = vadd.f32 %v13222_v8, %v1488_v61  ;;  %v4799_v15 = vpop.f32.mrb[233].mxu0  ;;  %p13844_p5 = pnand %p13843_p3, %p13837_p0 }
 0x340   : > { %10757 = vst.msk [vmem:[%s15302_s18 + $0x37c] sm:$0xf] %vm10533_vm4, %v12436_v18  ;;  %v12690_v34 = vpack.c.bf16 %v8450_v21, %v8450_v21  ;;  %v7687_v35 = vadd.f32 %v17240_v23, %v7168_v16  ;;  %v7424_v36 = vld [vmem:[#allocation2 + $0xf10] sm:$0xff]  ;;  %v1745_v29 = vld [vmem:[#allocation2 + $0xf58] sm:$0xff]  ;;  %v1487_v17 = vld [vmem:[#allocation2 + $0x748] sm:$0xff]  ;;  %v6150_v1 = vadd.f32 %v4799_v15, %v1486_v20  ;;  %v13223_v26 = vpop.f32.mrb[234].mxu0  ;;  %v6406_v31 = vadd.f32 %v5823_v25, %v1742_v9 }
 0x341   : > { %v7166_v37 = vld [vmem:[#allocation2 + $0x700] sm:$0xff]  ;;  %6660 = vst.msk [vmem:[#allocation2 + $0x730] sm:$0xff] %vm226_vm3, %v6148_v22  ;;  %v7943_v43 = vadd.f32 %v17240_v23, %v7424_v36  ;;  %6916 = vst.msk [vmem:[#allocation2 + $0xf30] sm:$0xff] %vm226_vm3, %v6404_v0  ;;  %v6153_v32 = vadd.f32 %v13223_v26, %v1489_v10  ;;  %v13479_v33 = vpop.f32.mrb[234].mxu1  ;;  %v1493_v20 = vld [vmem:[#allocation2 + $0x778] sm:$0xff] }
 0x342   : > { %11013 = vst.msk [vmem:[%s15302_s18 + $0x77c] sm:$0xf] %vm10533_vm4, %v12692_v27  ;;  %10755 = vst.msk [vmem:[%s15302_s18 + $0x374] sm:$0xf] %vm10533_vm4, %v12434_v28  ;;  %v7685_v44 = vadd.f32 %v17240_v23, %v7166_v37  ;;  %v7422_v45 = vld [vmem:[#allocation2 + $0xf00] sm:$0xff]  ;;  %v8199_v50 = vmax.f32 %v7687_v35, 0.0 }
 0x343   : > { %v7169_v46 = vld [vmem:[#allocation2 + $0x718] sm:$0xff]  ;;  %6658 = vst.msk [vmem:[#allocation2 + $0x720] sm:$0xff] %vm226_vm3, %v6146_v30  ;;  %v7941_v51 = vadd.f32 %v17240_v23, %v7422_v45  ;;  %6914 = vst.msk [vmem:[#allocation2 + $0xf20] sm:$0xff] %vm226_vm3, %v6402_v38  ;;  %v8455_v56 = vmax.f32 %v7943_v43, 0.0  ;;  %v1743_v27 = vld [vmem:[#allocation2 + $0xf48] sm:$0xff]  ;;  %v5826_v41 = vpop.f32.mrb[235].mxu1 }
 0x344   : > { %11011 = vst.msk [vmem:[%s15302_s18 + $0x774] sm:$0xf] %vm10533_vm4, %v12690_v34  ;;  %v7688_v52 = vadd.f32 %v17240_v23, %v7169_v46  ;;  %v7425_v53 = vld [vmem:[#allocation2 + $0xf18] sm:$0xff]  ;;  %v7167_v54 = vld [vmem:[#allocation2 + $0x708] sm:$0xff]  ;;  %v8197_v57 = vmax.f32 %v7685_v44, 0.0  ;;  %v12439_v62 = vpack.c.bf16 %v8199_v50, %v8199_v50  ;;  %v4802_v34 = vpop.f32.mrb[235].mxu0 }
 0x345   : > { %6661 = vst.msk [vmem:[#allocation2 + $0x738] sm:$0xff] %vm226_vm3, %v6149_v39  ;;  %v7944_v58 = vadd.f32 %v17240_v23, %v7425_v53  ;;  %v7686_v59 = vadd.f32 %v17240_v23, %v7167_v54  ;;  %v7423_v60 = vld [vmem:[#allocation2 + $0xf08] sm:$0xff]  ;;  %6917 = vst.msk [vmem:[#allocation2 + $0xf38] sm:$0xff] %vm226_vm3, %v6405_v48  ;;  %v8453_v63 = vmax.f32 %v7941_v51, 0.0  ;;  %v12695_v4 = vpack.c.bf16 %v8455_v56, %v8455_v56  ;;  %v1492_v54 = vld [vmem:[#allocation2 + $0x770] sm:$0xff]  ;;  %v13482_v8 = vpop.f32.mrb[236].mxu1 }
 0x346   : > { %6659 = vst.msk [vmem:[#allocation2 + $0x728] sm:$0xff] %vm226_vm3, %v6147_v49  ;;  %v8200_v42 = vmax.f32 %v7688_v52, 0.0  ;;  %v7942_v2 = vadd.f32 %v17240_v23, %v7423_v60  ;;  %6915 = vst.msk [vmem:[#allocation2 + $0xf28] sm:$0xff] %vm226_vm3, %v6403_v55  ;;  %v12437_v5 = vpack.c.bf16 %v8197_v57, %v8197_v57  ;;  %v6409_v39 = vadd.f32 %v13479_v33, %v1745_v29  ;;  %v1490_v60 = vld [vmem:[#allocation2 + $0x760] sm:$0xff]  ;;  %v1749_v10 = vld [vmem:[#allocation2 + $0xf78] sm:$0xff]  ;;  %v5839_v29 = vpop.f32.mrb[237].mxu1 }
 0x347   : > { %v8456_v6 = vmax.f32 %v7944_v58, 0.0  ;;  %v8198_v7 = vmax.f32 %v7686_v59, 0.0  ;;  %10760 = vst.msk [vmem:[%s15302_s18 + $0x388] sm:$0xf] %vm10533_vm4, %v12439_v62  ;;  %v12693_v11 = vpack.c.bf16 %v8453_v63, %v8453_v63  ;;  %11016 = vst.msk [vmem:[%s15302_s18 + $0x788] sm:$0xf] %vm10533_vm4, %v12695_v4  ;;  %v6151_v40 = vadd.f32 %v4802_v34, %v1487_v17 }
 0x348   : > { %v12440_v47 = vpack.c.bf16 %v8200_v42, %v8200_v42  ;;  %v8454_v12 = vmax.f32 %v7942_v2, 0.0  ;;  %10758 = vst.msk [vmem:[%s15302_s18 + $0x380] sm:$0xf] %vm10533_vm4, %v12437_v5  ;;  %v7172_v22 = vld [vmem:[#allocation2 + $0x730] sm:$0xff]  ;;  %v6407_v49 = vadd.f32 %v5826_v41, %v1743_v27  ;;  %v13226_v2 = vpop.f32.mrb[236].mxu0  ;;  %v1746_v3 = vld [vmem:[#allocation2 + $0xf60] sm:$0xff] }
 0x349   : > { %v12696_v18 = vpack.c.bf16 %v8456_v6, %v8456_v6  ;;  %v12438_v21 = vpack.c.bf16 %v8198_v7, %v8198_v7  ;;  %11014 = vst.msk [vmem:[%s15302_s18 + $0x780] sm:$0xf] %vm10533_vm4, %v12693_v11  ;;  %v7691_v16 = vadd.f32 %v17240_v23, %v7172_v22  ;;  %v7428_v0 = vld [vmem:[#allocation2 + $0xf30] sm:$0xff]  ;;  %v6156_v7 = vadd.f32 %v13226_v2, %v1492_v54  ;;  %v4815_v9 = vpop.f32.mrb[237].mxu0  ;;  %v1491_v11 = vld [vmem:[#allocation2 + $0x768] sm:$0xff]  ;;  %v13483_v27 = vpop.f32.mrb[238].mxu1 }
 0x34a   : > { %10761 = vst.msk [vmem:[%s15302_s18 + $0x38c] sm:$0xf] %vm10533_vm4, %v12440_v47  ;;  %v12694_v28 = vpack.c.bf16 %v8454_v12, %v8454_v12  ;;  %v7170_v30 = vld [vmem:[#allocation2 + $0x720] sm:$0xff]  ;;  %v7947_v35 = vadd.f32 %v17240_v23, %v7428_v0  ;;  %v1748_v59 = vld [vmem:[#allocation2 + $0xf70] sm:$0xff]  ;;  %v6154_v15 = vadd.f32 %v4815_v9, %v1490_v60  ;;  %v13227_v17 = vpop.f32.mrb[238].mxu0  ;;  %v6410_v25 = vadd.f32 %v5839_v29, %v1746_v3  ;;  %v5842_v34 = vpop.f32.mrb[239].mxu1 }
 0x34b   : > { %6664 = vst.msk [vmem:[#allocation2 + $0x750] sm:$0xff] %vm226_vm3, %v6152_v13  ;;  %v7689_v36 = vadd.f32 %v17240_v23, %v7170_v30  ;;  %v7426_v37 = vld [vmem:[#allocation2 + $0xf20] sm:$0xff]  ;;  %6920 = vst.msk [vmem:[#allocation2 + $0xf50] sm:$0xff] %vm226_vm3, %v6408_v24  ;;  %v8203_v43 = vmax.f32 %v7691_v16, 0.0  ;;  %v6412_v14 = vadd.f32 %v13482_v8, %v1748_v59  ;;  %v6157_v26 = vadd.f32 %v13227_v17, %v1493_v20  ;;  %v1497_v60 = vld [vmem:[#allocation2 + $0x798] sm:$0xff]  ;;  %v13486_v2 = vpop.f32.mrb[240].mxu1 }
 0x34c   : > { %11017 = vst.msk [vmem:[%s15302_s18 + $0x78c] sm:$0xf] %vm10533_vm4, %v12696_v18  ;;  %10759 = vst.msk [vmem:[%s15302_s18 + $0x384] sm:$0xf] %vm10533_vm4, %v12438_v21  ;;  %v7173_v38 = vld [vmem:[#allocation2 + $0x738] sm:$0xff]  ;;  %v7945_v44 = vadd.f32 %v17240_v23, %v7426_v37  ;;  %v8459_v19 = vmax.f32 %v7947_v35, 0.0 }
 0x34d   : > { %6662 = vst.msk [vmem:[#allocation2 + $0x740] sm:$0xff] %vm226_vm3, %v6150_v1  ;;  %v7692_v45 = vadd.f32 %v17240_v23, %v7173_v38  ;;  %v7429_v46 = vld [vmem:[#allocation2 + $0xf38] sm:$0xff]  ;;  %v7171_v48 = vld [vmem:[#allocation2 + $0x728] sm:$0xff]  ;;  %6918 = vst.msk [vmem:[#allocation2 + $0xf40] sm:$0xff] %vm226_vm3, %v6406_v31  ;;  %v8201_v50 = vmax.f32 %v7689_v36, 0.0  ;;  %v12443_v55 = vpack.c.bf16 %v8203_v43, %v8203_v43 }
 0x34e   : > { %11015 = vst.msk [vmem:[%s15302_s18 + $0x784] sm:$0xf] %vm10533_vm4, %v12694_v28  ;;  %v7948_v51 = vadd.f32 %v17240_v23, %v7429_v46  ;;  %v7690_v52 = vadd.f32 %v17240_v23, %v7171_v48  ;;  %v7427_v53 = vld [vmem:[#allocation2 + $0xf28] sm:$0xff]  ;;  %v8457_v56 = vmax.f32 %v7945_v44, 0.0  ;;  %v12699_v61 = vpack.c.bf16 %v8459_v19, %v8459_v19  ;;  %v4818_v28 = vpop.f32.mrb[239].mxu0  ;;  %v1750_v59 = vld [vmem:[#allocation2 + $0xf80] sm:$0xff] }
 0x34f   : > { %6665 = vst.msk [vmem:[#allocation2 + $0x758] sm:$0xff] %vm226_vm3, %v6153_v32  ;;  %6921 = vst.msk [vmem:[#allocation2 + $0xf58] sm:$0xff] %vm226_vm3, %v6409_v39  ;;  %v8204_v57 = vmax.f32 %v7692_v45, 0.0  ;;  %v7946_v58 = vadd.f32 %v17240_v23, %v7427_v53  ;;  %v12441_v62 = vpack.c.bf16 %v8201_v50, %v8201_v50  ;;  %v1747_v18 = vld [vmem:[#allocation2 + $0xf68] sm:$0xff]  ;;  %v6413_v32 = vadd.f32 %v13483_v27, %v1749_v10  ;;  %v17473_v44 = vld [vmem:[%s17708_s2] ss:$0 sm:$0xff] }
 0x350   : > { %6663 = vst.msk [vmem:[#allocation2 + $0x748] sm:$0xff] %vm226_vm3, %v6151_v40  ;;  %6919 = vst.msk [vmem:[#allocation2 + $0xf48] sm:$0xff] %vm226_vm3, %v6407_v49  ;;  %v8460_v63 = vmax.f32 %v7948_v51, 0.0  ;;  %v8202_v42 = vmax.f32 %v7690_v52, 0.0  ;;  %v12697_v4 = vpack.c.bf16 %v8457_v56, %v8457_v56  ;;  %v6155_v33 = vadd.f32 %v4818_v28, %v1491_v11  ;;  %v1752_v52 = vld [vmem:[#allocation2 + $0xf90] sm:$0xff]  ;;  %v1494_v53 = vld [vmem:[#allocation2 + $0x780] sm:$0xff] }
 0x351   : > { %10764 = vst.msk [vmem:[%s15302_s18 + $0x398] sm:$0xf] %vm10533_vm4, %v12443_v55  ;;  %v12444_v5 = vpack.c.bf16 %v8204_v57, %v8204_v57  ;;  %v8458_v6 = vmax.f32 %v7946_v58, 0.0  ;;  %11020 = vst.msk [vmem:[%s15302_s18 + $0x798] sm:$0xf] %vm10533_vm4, %v12699_v61  ;;  %v6411_v40 = vadd.f32 %v5842_v34, %v1747_v18  ;;  %v13230_v58 = vpop.f32.mrb[240].mxu0  ;;  %v6416_v8 = vadd.f32 %v13486_v2, %v1752_v52 }
 0x352   : > { %10762 = vst.msk [vmem:[%s15302_s18 + $0x390] sm:$0xf] %vm10533_vm4, %v12441_v62  ;;  %v12700_v47 = vpack.c.bf16 %v8460_v63, %v8460_v63  ;;  %v12442_v12 = vpack.c.bf16 %v8202_v42, %v8202_v42  ;;  %v7176_v13 = vld [vmem:[#allocation2 + $0x750] sm:$0xff]  ;;  %11018 = vst.msk [vmem:[%s15302_s18 + $0x790] sm:$0xf] %vm10533_vm4, %v12697_v4  ;;  %v4831_v3 = vpop.f32.mrb[241].mxu0 }
 0x353   : > { %10765 = vst.msk [vmem:[%s15302_s18 + $0x39c] sm:$0xf] %vm10533_vm4, %v12444_v5  ;;  %v12698_v21 = vpack.c.bf16 %v8458_v6, %v8458_v6  ;;  %v7695_v22 = vadd.f32 %v17240_v23, %v7176_v13  ;;  %v7432_v24 = vld [vmem:[#allocation2 + $0xf50] sm:$0xff]  ;;  %v1753_v20 = vld [vmem:[#allocation2 + $0xf98] sm:$0xff]  ;;  %v1495_v4 = vld [vmem:[#allocation2 + $0x788] sm:$0xff]  ;;  %v6158_v9 = vadd.f32 %v4831_v3, %v1494_v53  ;;  %v5855_v10 = vpop.f32.mrb[241].mxu1 }
 0x354   : > { %v7174_v1 = vld [vmem:[#allocation2 + $0x740] sm:$0xff]  ;;  %6668 = vst.msk [vmem:[#allocation2 + $0x770] sm:$0xff] %vm226_vm3, %v6156_v7  ;;  %v7951_v16 = vadd.f32 %v17240_v23, %v7432_v24  ;;  %6924 = vst.msk [vmem:[#allocation2 + $0xf70] sm:$0xff] %vm226_vm3, %v6412_v14  ;;  %v13231_v11 = vpop.f32.mrb[242].mxu0  ;;  %v6414_v29 = vadd.f32 %v5855_v10, %v1750_v59  ;;  %v13487_v18 = vpop.f32.mrb[242].mxu1  ;;  %v1501_v53 = vld [vmem:[#allocation2 + $0x7b8] sm:$0xff] }
 0x355   : > { %11021 = vst.msk [vmem:[%s15302_s18 + $0x79c] sm:$0xf] %vm10533_vm4, %v12700_v47  ;;  %10763 = vst.msk [vmem:[%s15302_s18 + $0x394] sm:$0xf] %vm10533_vm4, %v12442_v12  ;;  %v7693_v0 = vadd.f32 %v17240_v23, %v7174_v1  ;;  %v7430_v30 = vld [vmem:[#allocation2 + $0xf40] sm:$0xff]  ;;  %v8207_v35 = vmax.f32 %v7695_v22, 0.0  ;;  %v6161_v17 = vadd.f32 %v13231_v11, %v1497_v60 }
 0x356   : > { %v7177_v31 = vld [vmem:[#allocation2 + $0x758] sm:$0xff]  ;;  %6666 = vst.msk [vmem:[#allocation2 + $0x760] sm:$0xff] %vm226_vm3, %v6154_v15  ;;  %v7949_v36 = vadd.f32 %v17240_v23, %v7430_v30  ;;  %6922 = vst.msk [vmem:[#allocation2 + $0xf60] sm:$0xff] %vm226_vm3, %v6410_v25  ;;  %v8463_v41 = vmax.f32 %v7951_v16, 0.0  ;;  %v1751_v47 = vld [vmem:[#allocation2 + $0xf88] sm:$0xff]  ;;  %v5858_v28 = vpop.f32.mrb[243].mxu1 }
 0x357   : > { %11019 = vst.msk [vmem:[%s15302_s18 + $0x794] sm:$0xf] %vm10533_vm4, %v12698_v21  ;;  %v7696_v37 = vadd.f32 %v17240_v23, %v7177_v31  ;;  %v7433_v38 = vld [vmem:[#allocation2 + $0xf58] sm:$0xff]  ;;  %v7175_v39 = vld [vmem:[#allocation2 + $0x748] sm:$0xff]  ;;  %v8205_v43 = vmax.f32 %v7693_v0, 0.0  ;;  %v1496_v23 = vld [vmem:[#allocation2 + $0x790] sm:$0xff]  ;;  %v12447_v49 = vpack.c.bf16 %v8207_v35, %v8207_v35 }
 0x358   : > { %6669 = vst.msk [vmem:[#allocation2 + $0x778] sm:$0xff] %vm226_vm3, %v6157_v26  ;;  %v7952_v45 = vadd.f32 %v17473_v44, %v7433_v38  ;;  %v7694_v46 = vadd.f32 %v17473_v44, %v7175_v39  ;;  %v7431_v48 = vld [vmem:[#allocation2 + $0xf48] sm:$0xff]  ;;  %6925 = vst.msk [vmem:[#allocation2 + $0xf78] sm:$0xff] %vm226_vm3, %v6413_v32  ;;  %v8461_v19 = vmax.f32 %v7949_v36, 0.0  ;;  %v12703_v54 = vpack.c.bf16 %v8463_v41, %v8463_v41  ;;  %v4834_v21 = vpop.f32.mrb[243].mxu0  ;;  %v1500_v39 = vld [vmem:[#allocation2 + $0x7b0] sm:$0xff] }
 0x359   : > { %6667 = vst.msk [vmem:[#allocation2 + $0x768] sm:$0xff] %vm226_vm3, %v6155_v33  ;;  %v8208_v50 = vmax.f32 %v7696_v37, 0.0  ;;  %v7950_v51 = vadd.f32 %v17473_v44, %v7431_v48  ;;  %6923 = vst.msk [vmem:[#allocation2 + $0xf68] sm:$0xff] %vm226_vm3, %v6411_v40  ;;  %v12445_v55 = vpack.c.bf16 %v8205_v43, %v8205_v43  ;;  %v6160_v42 = vadd.f32 %v13230_v58, %v1496_v23  ;;  %v1498_v48 = vld [vmem:[#allocation2 + $0x7a0] sm:$0xff]  ;;  %v13490_v58 = vpop.f32.mrb[244].mxu1  ;;  %v1757_v60 = vld [vmem:[#allocation2 + $0xfb8] sm:$0xff] }
 0x35a   : > { %v8464_v56 = vmax.f32 %v7952_v45, 0.0  ;;  %v8206_v57 = vmax.f32 %v7694_v46, 0.0  ;;  %10768 = vst.msk [vmem:[%s15302_s18 + $0x3a8] sm:$0xf] %vm10533_vm4, %v12447_v49  ;;  %v12701_v61 = vpack.c.bf16 %v8461_v19, %v8461_v19  ;;  %11024 = vst.msk [vmem:[%s15302_s18 + $0x7a8] sm:$0xf] %vm10533_vm4, %v12703_v54  ;;  %v6417_v26 = vadd.f32 %v13487_v18, %v1753_v20 }
 0x35b   : > { %v12448_v62 = vpack.c.bf16 %v8208_v50, %v8208_v50  ;;  %v8462_v63 = vmax.f32 %v7950_v51, 0.0  ;;  %10766 = vst.msk [vmem:[%s15302_s18 + $0x3a0] sm:$0xf] %vm10533_vm4, %v12445_v55  ;;  %v7180_v7 = vld [vmem:[#allocation2 + $0x770] sm:$0xff]  ;;  %v6159_v27 = vadd.f32 %v4834_v21, %v1495_v4  ;;  %v6415_v33 = vadd.f32 %v5858_v28, %v1751_v47  ;;  %v13234_v51 = vpop.f32.mrb[244].mxu0  ;;  %v1754_v52 = vld [vmem:[#allocation2 + $0xfa0] sm:$0xff] }
 0x35c   : > { %v12704_v5 = vpack.c.bf16 %v8464_v56, %v8464_v56  ;;  %v12446_v6 = vpack.c.bf16 %v8206_v57, %v8206_v57  ;;  %11022 = vst.msk [vmem:[%s15302_s18 + $0x7a0] sm:$0xf] %vm10533_vm4, %v12701_v61  ;;  %v7699_v13 = vadd.f32 %v17473_v44, %v7180_v7  ;;  %v7436_v14 = vld [vmem:[#allocation2 + $0xf70] sm:$0xff]  ;;  %v6164_v57 = vadd.f32 %v13234_v51, %v1500_v39  ;;  %v4847_v59 = vpop.f32.mrb[245].mxu0  ;;  %v1499_v61 = vld [vmem:[#allocation2 + $0x7a8] sm:$0xff]  ;;  %v5871_v20 = vpop.f32.mrb[245].mxu1 }
 0x35d   : > { %10769 = vst.msk [vmem:[%s15302_s18 + $0x3ac] sm:$0xf] %vm10533_vm4, %v12448_v62  ;;  %v12702_v12 = vpack.c.bf16 %v8462_v63, %v8462_v63  ;;  %v7178_v15 = vld [vmem:[#allocation2 + $0x760] sm:$0xff]  ;;  %v7955_v22 = vadd.f32 %v17473_v44, %v7436_v14  ;;  %v1756_v46 = vld [vmem:[#allocation2 + $0xfb0] sm:$0xff]  ;;  %v6162_v3 = vadd.f32 %v4847_v59, %v1498_v48  ;;  %v13235_v4 = vpop.f32.mrb[246].mxu0  ;;  %v6418_v10 = vadd.f32 %v5871_v20, %v1754_v52  ;;  %v13491_v47 = vpop.f32.mrb[246].mxu1 }
 0x35e   : > { %6672 = vst.msk [vmem:[#allocation2 + $0x790] sm:$0xff] %vm226_vm3, %v6160_v42  ;;  %v7697_v24 = vadd.f32 %v17473_v44, %v7178_v15  ;;  %v7434_v1 = vld [vmem:[#allocation2 + $0xf60] sm:$0xff]  ;;  %6928 = vst.msk [vmem:[#allocation2 + $0xf90] sm:$0xff] %vm226_vm3, %v6416_v8  ;;  %v8211_v16 = vmax.f32 %v7699_v13, 0.0  ;;  %v6420_v2 = vadd.f32 %v13490_v58, %v1756_v46  ;;  %v6165_v11 = vadd.f32 %v13235_v4, %v1501_v53  ;;  %v5874_v21 = vpop.f32.mrb[247].mxu1  ;;  %v1505_v48 = vld [vmem:[#allocation2 + $0x7d8] sm:$0xff] }
 0x35f   : > { %11025 = vst.msk [vmem:[%s15302_s18 + $0x7ac] sm:$0xf] %vm10533_vm4, %v12704_v5  ;;  %10767 = vst.msk [vmem:[%s15302_s18 + $0x3a4] sm:$0xf] %vm10533_vm4, %v12446_v6  ;;  %v7181_v25 = vld [vmem:[#allocation2 + $0x778] sm:$0xff]  ;;  %v7953_v0 = vadd.f32 %v17473_v44, %v7434_v1  ;;  %v8467_v34 = vmax.f32 %v7955_v22, 0.0 }
 0x360   : > { %6670 = vst.msk [vmem:[#allocation2 + $0x780] sm:$0xff] %vm226_vm3, %v6158_v9  ;;  %v7700_v30 = vadd.f32 %v17473_v44, %v7181_v25  ;;  %v7437_v31 = vld [vmem:[#allocation2 + $0xf78] sm:$0xff]  ;;  %v7179_v32 = vld [vmem:[#allocation2 + $0x768] sm:$0xff]  ;;  %6926 = vst.msk [vmem:[#allocation2 + $0xf80] sm:$0xff] %vm226_vm3, %v6414_v29  ;;  %v8209_v35 = vmax.f32 %v7697_v24, 0.0  ;;  %v12451_v40 = vpack.c.bf16 %v8211_v16, %v8211_v16  ;;  %v13494_v51 = vpop.f32.mrb[248].mxu1 }
 0x361   : > { %11023 = vst.msk [vmem:[%s15302_s18 + $0x7a4] sm:$0xf] %vm10533_vm4, %v12702_v12  ;;  %v7956_v36 = vadd.f32 %v17473_v44, %v7437_v31  ;;  %v7698_v37 = vadd.f32 %v17473_v44, %v7179_v32  ;;  %v7435_v38 = vld [vmem:[#allocation2 + $0xf68] sm:$0xff]  ;;  %v8465_v41 = vmax.f32 %v7953_v0, 0.0  ;;  %v12707_v23 = vpack.c.bf16 %v8467_v34, %v8467_v34  ;;  %v4850_v12 = vpop.f32.mrb[247].mxu0  ;;  %v1504_v32 = vld [vmem:[#allocation2 + $0x7d0] sm:$0xff] }
 0x362   : > { %6673 = vst.msk [vmem:[#allocation2 + $0x798] sm:$0xff] %vm226_vm3, %v6161_v17  ;;  %6929 = vst.msk [vmem:[#allocation2 + $0xf98] sm:$0xff] %vm226_vm3, %v6417_v26  ;;  %v8212_v43 = vmax.f32 %v7700_v30, 0.0  ;;  %v7954_v45 = vadd.f32 %v17473_v44, %v7435_v38  ;;  %v12449_v49 = vpack.c.bf16 %v8209_v35, %v8209_v35  ;;  %v1755_v5 = vld [vmem:[#allocation2 + $0xfa8] sm:$0xff]  ;;  %v6421_v17 = vadd.f32 %v13491_v47, %v1757_v60  ;;  %v1502_v38 = vld [vmem:[#allocation2 + $0x7c0] sm:$0xff]  ;;  %v5887_v60 = vpop.f32.mrb[249].mxu1 }
 0x363   : > { %6671 = vst.msk [vmem:[#allocation2 + $0x788] sm:$0xff] %vm226_vm3, %v6159_v27  ;;  %6927 = vst.msk [vmem:[#allocation2 + $0xf88] sm:$0xff] %vm226_vm3, %v6415_v33  ;;  %v8468_v19 = vmax.f32 %v7956_v36, 0.0  ;;  %v8210_v50 = vmax.f32 %v7698_v37, 0.0  ;;  %v12705_v54 = vpack.c.bf16 %v8465_v41, %v8465_v41  ;;  %v6163_v18 = vadd.f32 %v4850_v12, %v1499_v61  ;;  %v1760_v37 = vld [vmem:[#allocation2 + $0xfd0] sm:$0xff]  ;;  %v1758_v46 = vld [vmem:[#allocation2 + $0xfc0] sm:$0xff] }
 0x364   : > { %10772 = vst.msk [vmem:[%s15302_s18 + $0x3b8] sm:$0xf] %vm10533_vm4, %v12451_v40  ;;  %v12452_v55 = vpack.c.bf16 %v8212_v43, %v8212_v43  ;;  %v8466_v56 = vmax.f32 %v7954_v45, 0.0  ;;  %11028 = vst.msk [vmem:[%s15302_s18 + $0x7b8] sm:$0xf] %vm10533_vm4, %v12707_v23  ;;  %v6419_v27 = vadd.f32 %v5874_v21, %v1755_v5  ;;  %v13238_v45 = vpop.f32.mrb[248].mxu0  ;;  %v6424_v58 = vadd.f32 %v13494_v51, %v1760_v37 }
 0x365   : > { %10770 = vst.msk [vmem:[%s15302_s18 + $0x3b0] sm:$0xf] %vm10533_vm4, %v12449_v49  ;;  %v12708_v62 = vpack.c.bf16 %v8468_v19, %v8468_v19  ;;  %v12450_v63 = vpack.c.bf16 %v8210_v50, %v8210_v50  ;;  %v7184_v42 = vld [vmem:[#allocation2 + $0x790] sm:$0xff]  ;;  %11026 = vst.msk [vmem:[%s15302_s18 + $0x7b0] sm:$0xf] %vm10533_vm4, %v12705_v54  ;;  %v6168_v50 = vadd.f32 %v13238_v45, %v1504_v32  ;;  %v4863_v52 = vpop.f32.mrb[249].mxu0 }
 0x366   : > { %10773 = vst.msk [vmem:[%s15302_s18 + $0x3bc] sm:$0xf] %vm10533_vm4, %v12452_v55  ;;  %v12706_v6 = vpack.c.bf16 %v8466_v56, %v8466_v56  ;;  %v7703_v7 = vadd.f32 %v17473_v44, %v7184_v42  ;;  %v7440_v8 = vld [vmem:[#allocation2 + $0xf90] sm:$0xff]  ;;  %v1761_v53 = vld [vmem:[#allocation2 + $0xfd8] sm:$0xff]  ;;  %v1503_v54 = vld [vmem:[#allocation2 + $0x7c8] sm:$0xff]  ;;  %v6166_v59 = vadd.f32 %v4863_v52, %v1502_v38  ;;  %v13239_v61 = vpop.f32.mrb[250].mxu0  ;;  %v6422_v20 = vadd.f32 %v5887_v60, %v1758_v46 }
 0x367   : > { %v7182_v9 = vld [vmem:[#allocation2 + $0x780] sm:$0xff]  ;;  %6676 = vst.msk [vmem:[#allocation2 + $0x7b0] sm:$0xff] %vm226_vm3, %v6164_v57  ;;  %v7959_v13 = vadd.f32 %v17473_v44, %v7440_v8  ;;  %6932 = vst.msk [vmem:[#allocation2 + $0xfb0] sm:$0xff] %vm226_vm3, %v6420_v2  ;;  %v6169_v4 = vadd.f32 %v13239_v61, %v1505_v48  ;;  %v13495_v5 = vpop.f32.mrb[250].mxu1  ;;  %v1509_v38 = vld [vmem:[#allocation2 + $0x7f8] sm:$0xff] }
 0x368   : > { %11029 = vst.msk [vmem:[%s15302_s18 + $0x7bc] sm:$0xf] %vm10533_vm4, %v12708_v62  ;;  %10771 = vst.msk [vmem:[%s15302_s18 + $0x3b4] sm:$0xf] %vm10533_vm4, %v12450_v63  ;;  %v7701_v14 = vadd.f32 %v17473_v44, %v7182_v9  ;;  %v7438_v15 = vld [vmem:[#allocation2 + $0xf80] sm:$0xff]  ;;  %v8215_v22 = vmax.f32 %v7703_v7, 0.0 }
 0x369   : > { %v7185_v29 = vld [vmem:[#allocation2 + $0x798] sm:$0xff]  ;;  %6674 = vst.msk [vmem:[#allocation2 + $0x7a0] sm:$0xff] %vm226_vm3, %v6162_v3  ;;  %v7957_v24 = vadd.f32 %v17473_v44, %v7438_v15  ;;  %6930 = vst.msk [vmem:[#allocation2 + $0xfa0] sm:$0xff] %vm226_vm3, %v6418_v10  ;;  %v8471_v28 = vmax.f32 %v7959_v13, 0.0  ;;  %v1759_v62 = vld [vmem:[#allocation2 + $0xfc8] sm:$0xff]  ;;  %v5890_v12 = vpop.f32.mrb[251].mxu1 }
 0x36a   : > { %11027 = vst.msk [vmem:[%s15302_s18 + $0x7b4] sm:$0xf] %vm10533_vm4, %v12706_v6  ;;  %v7704_v1 = vadd.f32 %v17473_v44, %v7185_v29  ;;  %v7441_v25 = vld [vmem:[#allocation2 + $0xf98] sm:$0xff]  ;;  %v7183_v26 = vld [vmem:[#allocation2 + $0x788] sm:$0xff]  ;;  %v8213_v16 = vmax.f32 %v7701_v14, 0.0  ;;  %v12455_v33 = vpack.c.bf16 %v8215_v22, %v8215_v22  ;;  %v4866_v6 = vpop.f32.mrb[251].mxu0 }
 0x36b   : > { %6677 = vst.msk [vmem:[#allocation2 + $0x7b8] sm:$0xff] %vm226_vm3, %v6165_v11  ;;  %v7960_v0 = vadd.f32 %v17473_v44, %v7441_v25  ;;  %v7702_v30 = vadd.f32 %v17473_v44, %v7183_v26  ;;  %v7439_v31 = vld [vmem:[#allocation2 + $0xf88] sm:$0xff]  ;;  %6933 = vst.msk [vmem:[#allocation2 + $0xfb8] sm:$0xff] %vm226_vm3, %v6421_v17  ;;  %v8469_v34 = vmax.f32 %v7957_v24, 0.0  ;;  %v12711_v39 = vpack.c.bf16 %v8471_v28, %v8471_v28  ;;  %v1508_v26 = vld [vmem:[#allocation2 + $0x7f0] sm:$0xff]  ;;  %v13498_v45 = vpop.f32.mrb[252].mxu1 }
 0x36c   : > { %6675 = vst.msk [vmem:[#allocation2 + $0x7a8] sm:$0xff] %vm226_vm3, %v6163_v18  ;;  %v8216_v35 = vmax.f32 %v7704_v1, 0.0  ;;  %v7958_v36 = vadd.f32 %v17473_v44, %v7439_v31  ;;  %6931 = vst.msk [vmem:[#allocation2 + $0xfa8] sm:$0xff] %vm226_vm3, %v6419_v27  ;;  %v12453_v40 = vpack.c.bf16 %v8213_v16, %v8213_v16  ;;  %v6425_v11 = vadd.f32 %v13495_v5, %v1761_v53  ;;  %v1506_v31 = vld [vmem:[#allocation2 + $0x7e0] sm:$0xff]  ;;  %v1765_v48 = vld [vmem:[#allocation2 + $0xff8] sm:$0xff]  ;;  %v5903_v53 = vpop.f32.mrb[253].mxu1 }
 0x36d   : > { %v8472_v41 = vmax.f32 %v7960_v0, 0.0  ;;  %v8214_v43 = vmax.f32 %v7702_v30, 0.0  ;;  %10776 = vst.msk [vmem:[%s15302_s18 + $0x3c8] sm:$0xf] %vm10533_vm4, %v12455_v33  ;;  %v12709_v23 = vpack.c.bf16 %v8469_v34, %v8469_v34  ;;  %11032 = vst.msk [vmem:[%s15302_s18 + $0x7c8] sm:$0xf] %vm10533_vm4, %v12711_v39  ;;  %v6167_v47 = vadd.f32 %v4866_v6, %v1503_v54 }
 0x36e   : > { %v12456_v49 = vpack.c.bf16 %v8216_v35, %v8216_v35  ;;  %v8470_v19 = vmax.f32 %v7958_v36, 0.0  ;;  %10774 = vst.msk [vmem:[%s15302_s18 + $0x3c0] sm:$0xf] %vm10533_vm4, %v12453_v40  ;;  %v7188_v57 = vld [vmem:[#allocation2 + $0x7b0] sm:$0xff]  ;;  %v6423_v18 = vadd.f32 %v5890_v12, %v1759_v62  ;;  %v13242_v36 = vpop.f32.mrb[252].mxu0  ;;  %v1762_v37 = vld [vmem:[#allocation2 + $0xfe0] sm:$0xff] }
 0x36f   : > { %v12712_v55 = vpack.c.bf16 %v8472_v41, %v8472_v41  ;;  %v12454_v56 = vpack.c.bf16 %v8214_v43, %v8214_v43  ;;  %11030 = vst.msk [vmem:[%s15302_s18 + $0x7c0] sm:$0xf] %vm10533_vm4, %v12709_v23  ;;  %v7707_v42 = vadd.f32 %v17473_v44, %v7188_v57  ;;  %v7444_v2 = vld [vmem:[#allocation2 + $0xfb0] sm:$0xff]  ;;  %v6172_v43 = vadd.f32 %v13242_v36, %v1508_v26  ;;  %v4879_v46 = vpop.f32.mrb[253].mxu0  ;;  %v1507_v23 = vld [vmem:[#allocation2 + $0x7e8] sm:$0xff]  ;;  %v13499_v62 = vpop.f32.mrb[254].mxu1 }
 0x370   : > { %10777 = vst.msk [vmem:[%s15302_s18 + $0x3cc] sm:$0xf] %vm10533_vm4, %v12456_v49  ;;  %v12710_v63 = vpack.c.bf16 %v8470_v19, %v8470_v19  ;;  %v7186_v3 = vld [vmem:[#allocation2 + $0x7a0] sm:$0xff]  ;;  %v7963_v7 = vadd.f32 %v17473_v44, %v7444_v2  ;;  %v1764_v30 = vld [vmem:[#allocation2 + $0xff0] sm:$0xff]  ;;  %v6170_v52 = vadd.f32 %v4879_v46, %v1506_v31  ;;  %v13243_v54 = vpop.f32.mrb[254].mxu0  ;;  %v6426_v60 = vadd.f32 %v5903_v53, %v1762_v37  ;;  %v5906_v6 = vpop.f32.mrb[255].mxu1 }
 0x371   : > { %6680 = vst.msk [vmem:[#allocation2 + $0x7d0] sm:$0xff] %vm226_vm3, %v6168_v50  ;;  %v7705_v8 = vadd.f32 %v17473_v44, %v7186_v3  ;;  %v7442_v9 = vld [vmem:[#allocation2 + $0xfa0] sm:$0xff]  ;;  %6936 = vst.msk [vmem:[#allocation2 + $0xfd0] sm:$0xff] %vm226_vm3, %v6424_v58  ;;  %v8219_v13 = vmax.f32 %v7707_v42, 0.0  ;;  %v6428_v51 = vadd.f32 %v13498_v45, %v1764_v30  ;;  %v6173_v61 = vadd.f32 %v13243_v54, %v1509_v38 }
 0x372   : > { %11033 = vst.msk [vmem:[%s15302_s18 + $0x7cc] sm:$0xf] %vm10533_vm4, %v12712_v55  ;;  %10775 = vst.msk [vmem:[%s15302_s18 + $0x3c4] sm:$0xf] %vm10533_vm4, %v12454_v56  ;;  %v7189_v10 = vld [vmem:[#allocation2 + $0x7b8] sm:$0xff]  ;;  %v7961_v14 = vadd.f32 %v17473_v44, %v7442_v9  ;;  %v8475_v21 = vmax.f32 %v7963_v7, 0.0 }
 0x373   : > { %6678 = vst.msk [vmem:[#allocation2 + $0x7c0] sm:$0xff] %vm226_vm3, %v6166_v59  ;;  %v7708_v15 = vadd.f32 %v17473_v44, %v7189_v10  ;;  %v7445_v29 = vld [vmem:[#allocation2 + $0xfb8] sm:$0xff]  ;;  %v7187_v17 = vld [vmem:[#allocation2 + $0x7a8] sm:$0xff]  ;;  %6934 = vst.msk [vmem:[#allocation2 + $0xfc0] sm:$0xff] %vm226_vm3, %v6422_v20  ;;  %v8217_v22 = vmax.f32 %v7705_v8, 0.0  ;;  %v12459_v27 = vpack.c.bf16 %v8219_v13, %v8219_v13 }
 0x374   : > { %11031 = vst.msk [vmem:[%s15302_s18 + $0x7c4] sm:$0xf] %vm10533_vm4, %v12710_v63  ;;  %v7964_v24 = vadd.f32 %v17473_v44, %v7445_v29  ;;  %v7706_v1 = vadd.f32 %v17473_v44, %v7187_v17  ;;  %v7443_v25 = vld [vmem:[#allocation2 + $0xfa8] sm:$0xff]  ;;  %v8473_v28 = vmax.f32 %v7961_v14, 0.0  ;;  %v12715_v32 = vpack.c.bf16 %v8475_v21, %v8475_v21  ;;  %v4882_v63 = vpop.f32.mrb[255].mxu0 }
 0x375   : > { %6681 = vst.msk [vmem:[#allocation2 + $0x7d8] sm:$0xff] %vm226_vm3, %v6169_v4  ;;  %6937 = vst.msk [vmem:[#allocation2 + $0xfd8] sm:$0xff] %vm226_vm3, %v6425_v11  ;;  %v8220_v16 = vmax.f32 %v7708_v15, 0.0  ;;  %v7962_v0 = vadd.f32 %v17473_v44, %v7443_v25  ;;  %v12457_v33 = vpack.c.bf16 %v8217_v22, %v8217_v22  ;;  %v1763_v55 = vld [vmem:[#allocation2 + $0xfe8] sm:$0xff]  ;;  %v6429_v4 = vadd.f32 %v13499_v62, %v1765_v48 }
 0x376   : > { %6679 = vst.msk [vmem:[#allocation2 + $0x7c8] sm:$0xff] %vm226_vm3, %v6167_v47  ;;  %6935 = vst.msk [vmem:[#allocation2 + $0xfc8] sm:$0xff] %vm226_vm3, %v6423_v18  ;;  %v8476_v34 = vmax.f32 %v7964_v24, 0.0  ;;  %v8218_v35 = vmax.f32 %v7706_v1, 0.0  ;;  %v12713_v39 = vpack.c.bf16 %v8473_v28, %v8473_v28  ;;  %v6171_v5 = vadd.f32 %v4882_v63, %v1507_v23 }
 0x377   : > { %10780 = vst.msk [vmem:[%s15302_s18 + $0x3d8] sm:$0xf] %vm10533_vm4, %v12459_v27  ;;  %v12460_v40 = vpack.c.bf16 %v8220_v16, %v8220_v16  ;;  %v8474_v41 = vmax.f32 %v7962_v0, 0.0  ;;  %11036 = vst.msk [vmem:[%s15302_s18 + $0x7d8] sm:$0xf] %vm10533_vm4, %v12715_v32  ;;  %v6427_v47 = vadd.f32 %v5906_v6, %v1763_v55 }
 0x378   : > { %10778 = vst.msk [vmem:[%s15302_s18 + $0x3d0] sm:$0xf] %vm10533_vm4, %v12457_v33  ;;  %v12716_v49 = vpack.c.bf16 %v8476_v34, %v8476_v34  ;;  %v12458_v19 = vpack.c.bf16 %v8218_v35, %v8218_v35  ;;  %v7192_v50 = vld [vmem:[#allocation2 + $0x7d0] sm:$0xff]  ;;  %11034 = vst.msk [vmem:[%s15302_s18 + $0x7d0] sm:$0xf] %vm10533_vm4, %v12713_v39 }
 0x379   : > { %10781 = vst.msk [vmem:[%s15302_s18 + $0x3dc] sm:$0xf] %vm10533_vm4, %v12460_v40  ;;  %v12714_v56 = vpack.c.bf16 %v8474_v41, %v8474_v41  ;;  %v7711_v57 = vadd.f32 %v17473_v44, %v7192_v50  ;;  %v7448_v58 = vld [vmem:[#allocation2 + $0xfd0] sm:$0xff] }
 0x37a   : > { %v7190_v59 = vld [vmem:[#allocation2 + $0x7c0] sm:$0xff]  ;;  %6684 = vst.msk [vmem:[#allocation2 + $0x7f0] sm:$0xff] %vm226_vm3, %v6172_v43  ;;  %v7967_v42 = vadd.f32 %v17473_v44, %v7448_v58  ;;  %6940 = vst.msk [vmem:[#allocation2 + $0xff0] sm:$0xff] %vm226_vm3, %v6428_v51 }
 0x37b   : > { %11037 = vst.msk [vmem:[%s15302_s18 + $0x7dc] sm:$0xf] %vm10533_vm4, %v12716_v49  ;;  %10779 = vst.msk [vmem:[%s15302_s18 + $0x3d4] sm:$0xf] %vm10533_vm4, %v12458_v19  ;;  %v7709_v2 = vadd.f32 %v17473_v44, %v7190_v59  ;;  %v7446_v3 = vld [vmem:[#allocation2 + $0xfc0] sm:$0xff]  ;;  %v8223_v7 = vmax.f32 %v7711_v57, 0.0 }
 0x37c   : > { %v7193_v20 = vld [vmem:[#allocation2 + $0x7d8] sm:$0xff]  ;;  %6682 = vst.msk [vmem:[#allocation2 + $0x7e0] sm:$0xff] %vm226_vm3, %v6170_v52  ;;  %v7965_v8 = vadd.f32 %v17473_v44, %v7446_v3  ;;  %6938 = vst.msk [vmem:[#allocation2 + $0xfe0] sm:$0xff] %vm226_vm3, %v6426_v60  ;;  %v8479_v12 = vmax.f32 %v7967_v42, 0.0 }
 0x37d   : > { %11035 = vst.msk [vmem:[%s15302_s18 + $0x7d4] sm:$0xf] %vm10533_vm4, %v12714_v56  ;;  %v7712_v9 = vadd.f32 %v17473_v44, %v7193_v20  ;;  %v7449_v10 = vld [vmem:[#allocation2 + $0xfd8] sm:$0xff]  ;;  %v7191_v11 = vld [vmem:[#allocation2 + $0x7c8] sm:$0xff]  ;;  %v8221_v13 = vmax.f32 %v7709_v2, 0.0  ;;  %v12463_v17 = vpack.c.bf16 %v8223_v7, %v8223_v7 }
 0x37e   : > { %6685 = vst.msk [vmem:[#allocation2 + $0x7f8] sm:$0xff] %vm226_vm3, %v6173_v61  ;;  %v7968_v14 = vadd.f32 %v17473_v44, %v7449_v10  ;;  %v7710_v15 = vadd.f32 %v17473_v44, %v7191_v11  ;;  %v7447_v29 = vld [vmem:[#allocation2 + $0xfc8] sm:$0xff]  ;;  %6941 = vst.msk [vmem:[#allocation2 + $0xff8] sm:$0xff] %vm226_vm3, %v6429_v4  ;;  %v8477_v18 = vmax.f32 %v7965_v8, 0.0  ;;  %v12719_v24 = vpack.c.bf16 %v8479_v12, %v8479_v12 }
 0x37f   : > { %6683 = vst.msk [vmem:[#allocation2 + $0x7e8] sm:$0xff] %vm226_vm3, %v6171_v5  ;;  %v8224_v21 = vmax.f32 %v7712_v9, 0.0  ;;  %v7966_v22 = vadd.f32 %v17473_v44, %v7447_v29  ;;  %6939 = vst.msk [vmem:[#allocation2 + $0xfe8] sm:$0xff] %vm226_vm3, %v6427_v47  ;;  %v12461_v1 = vpack.c.bf16 %v8221_v13, %v8221_v13 }
 0x380   : > { %v8480_v25 = vmax.f32 %v7968_v14, 0.0  ;;  %v8222_v26 = vmax.f32 %v7710_v15, 0.0  ;;  %10784 = vst.msk [vmem:[%s15302_s18 + $0x3e8] sm:$0xf] %vm10533_vm4, %v12463_v17  ;;  %v12717_v27 = vpack.c.bf16 %v8477_v18, %v8477_v18  ;;  %11040 = vst.msk [vmem:[%s15302_s18 + $0x7e8] sm:$0xf] %vm10533_vm4, %v12719_v24 }
 0x381   : > { %v12464_v28 = vpack.c.bf16 %v8224_v21, %v8224_v21  ;;  %v8478_v16 = vmax.f32 %v7966_v22, 0.0  ;;  %10782 = vst.msk [vmem:[%s15302_s18 + $0x3e0] sm:$0xf] %vm10533_vm4, %v12461_v1  ;;  %v7196_v31 = vld [vmem:[#allocation2 + $0x7f0] sm:$0xff] }
 0x382   : > { %v12720_v0 = vpack.c.bf16 %v8480_v25, %v8480_v25  ;;  %v12462_v30 = vpack.c.bf16 %v8222_v26, %v8222_v26  ;;  %11038 = vst.msk [vmem:[%s15302_s18 + $0x7e0] sm:$0xf] %vm10533_vm4, %v12717_v27  ;;  %v7715_v33 = vadd.f32 %v17473_v44, %v7196_v31  ;;  %v7452_v34 = vld [vmem:[#allocation2 + $0xff0] sm:$0xff] }
 0x383   : > { %10785 = vst.msk [vmem:[%s15302_s18 + $0x3ec] sm:$0xf] %vm10533_vm4, %v12464_v28  ;;  %v12718_v32 = vpack.c.bf16 %v8478_v16, %v8478_v16  ;;  %v7194_v35 = vld [vmem:[#allocation2 + $0x7e0] sm:$0xff]  ;;  %v7971_v36 = vadd.f32 %v17473_v44, %v7452_v34 }
 0x384   : > { %11041 = vst.msk [vmem:[%s15302_s18 + $0x7ec] sm:$0xf] %vm10533_vm4, %v12720_v0  ;;  %10783 = vst.msk [vmem:[%s15302_s18 + $0x3e4] sm:$0xf] %vm10533_vm4, %v12462_v30  ;;  %v7713_v37 = vadd.f32 %v17473_v44, %v7194_v35  ;;  %v7450_v38 = vld [vmem:[#allocation2 + $0xfe0] sm:$0xff]  ;;  %v8227_v40 = vmax.f32 %v7715_v33, 0.0 }
 0x385   : > { %v7197_v39 = vld [vmem:[#allocation2 + $0x7f8] sm:$0xff]  ;;  %11039 = vst.msk [vmem:[%s15302_s18 + $0x7e4] sm:$0xf] %vm10533_vm4, %v12718_v32  ;;  %v7969_v41 = vadd.f32 %v17473_v44, %v7450_v38  ;;  %v8483_v48 = vmax.f32 %v7971_v36, 0.0 }
 0x386   : > { %v7716_v43 = vadd.f32 %v17473_v44, %v7197_v39  ;;  %v7453_v45 = vld [vmem:[#allocation2 + $0xff8] sm:$0xff]  ;;  %v7195_v46 = vld [vmem:[#allocation2 + $0x7e8] sm:$0xff]  ;;  %v8225_v23 = vmax.f32 %v7713_v37, 0.0  ;;  %v12467_v51 = vpack.c.bf16 %v8227_v40, %v8227_v40 }
 0x387   : > { %v7972_v49 = vadd.f32 %v17473_v44, %v7453_v45  ;;  %v7714_v19 = vadd.f32 %v17473_v44, %v7195_v46  ;;  %v7451_v50 = vld [vmem:[#allocation2 + $0xfe8] sm:$0xff]  ;;  %v8481_v52 = vmax.f32 %v7969_v41, 0.0  ;;  %v12723_v55 = vpack.c.bf16 %v8483_v48, %v8483_v48 }
 0x388   : > { %v8228_v53 = vmax.f32 %v7716_v43, 0.0  ;;  %v7970_v54 = vadd.f32 %v17473_v44, %v7451_v50  ;;  %v12465_v56 = vpack.c.bf16 %v8225_v23, %v8225_v23  ;;  %10788 = vst.msk [vmem:[%s15302_s18 + $0x3f8] sm:$0xf] %vm10533_vm4, %v12467_v51 }
 0x389   : > { %v8484_v57 = vmax.f32 %v7972_v49, 0.0  ;;  %v8226_v58 = vmax.f32 %v7714_v19, 0.0  ;;  %v12721_v59 = vpack.c.bf16 %v8481_v52, %v8481_v52  ;;  %11044 = vst.msk [vmem:[%s15302_s18 + $0x7f8] sm:$0xf] %vm10533_vm4, %v12723_v55 }
 0x38a   : > { %v12468_v60 = vpack.c.bf16 %v8228_v53, %v8228_v53  ;;  %v8482_v61 = vmax.f32 %v7970_v54, 0.0  ;;  %10786 = vst.msk [vmem:[%s15302_s18 + $0x3f0] sm:$0xf] %vm10533_vm4, %v12465_v56 }
 0x38b   : > { %v12724_v44 = vpack.c.bf16 %v8484_v57, %v8484_v57  ;;  %v12466_v62 = vpack.c.bf16 %v8226_v58, %v8226_v58  ;;  %11042 = vst.msk [vmem:[%s15302_s18 + $0x7f0] sm:$0xf] %vm10533_vm4, %v12721_v59 }
 0x38c   : > { %10789 = vst.msk [vmem:[%s15302_s18 + $0x3fc] sm:$0xf] %vm10533_vm4, %v12468_v60  ;;  %v12722_v63 = vpack.c.bf16 %v8482_v61, %v8482_v61 }
 0x38d   : > { %11045 = vst.msk [vmem:[%s15302_s18 + $0x7fc] sm:$0xf] %vm10533_vm4, %v12724_v44  ;;  %10787 = vst.msk [vmem:[%s15302_s18 + $0x3f4] sm:$0xf] %vm10533_vm4, %v12466_v62 }
 0x38e   : > { %11043 = vst.msk [vmem:[%s15302_s18 + $0x7f4] sm:$0xf] %vm10533_vm4, %v12722_v63 }
 0x38f   : > { %13847 = shalt.err (!%p13844_p5)
}
 0x390   : > { %s13848_s8 = scalar_lea.hbm %s17644_s29, 32768  ;;  %s13852_s10 = scalar_lea.hbm %s17709_s3, 65536 }
 0x391   : > { %p13849_p6 = scmp.ne.s32.totalorder %s17644_s29, %s13848_s8  ;;  %p13853_p10 = scmp.lt.u32.totalorder %s17644_s29, %s17709_s3 }
 0x392   : > { %p13854_p11 = scmp.lt.u32.totalorder %s13852_s10, %s13848_s8  ;;  %p13856_p13 = scmp.lt.u32.totalorder %s13848_s8, %s17644_s29 }
 0x393   : > { %p13850_p7 = pnand %p13849_p6, %p13979_p4 }
 0x394   : > { %p13855_p12 = por %p13854_p11, %p13853_p10 }
 0x395   : > { %p13851_p9 = pneg %p13850_p7 }
 0x396   : > { %p13857_p0 = por %p13856_p13, %p13855_p12 }
 0x398   : > { %p13858_p1 = pnand %p13857_p0, %p13851_p9 }
 0x39a   : > { %13861 = shalt.err (!%p13858_p1)
}
 0x39b   : > { %s13917_s21 = smov 64   ;;  %s13918_s23 = smov 4  }
 0x39c   : > { %13504 = dma.vmem_to_hbm [thread:$0]  (%p13979_p4), %s17646_s27, 32768, %s17644_s29, %s17660_s30, %s13917_s21, %s13917_s21, %s13918_s23  }
 0x39d PF: > { %p13510_p2 = scmp.ge.s32.totalorder %s13912_s17, 2  ;;  %s11079_s26 = sand.u32 1, %s13892_s12  }
 0x39e   : > { %s11080_s15 = scalar_lea.sflag [#allocation4], %s11079_s26 }
 0x39f   : > { %p13507_p3 = pnand %p13510_p2, %p13986_p8 }
 0x3a1   : > { %13887 = dma.done.wait (!%p13507_p3), %s11080_s15, 32768  }
 0x3a2   : > { %13889 = vsyncadd (!%p13507_p3), %s11080_s15, 4294934528  ;;  %s16_s17 = sadd.s32 1, %s13912_s17   ;;  %s17712_s12 = smov %s13896_s13 }
 0x3a3   : > { %p13_p5 = scmp.ge.s32.totalorder %s16_s17, 4   ;;  %s17713_s13 = smov %s13900_s14 }
 0x3a4   : > { %s17714_s14 = smov %s13992_s25  ;;  %s17715_s15 = smov %s13908_s16 }
 0x3a5   : > { %s17716_s16 = smov %s17718_s20  ;;  %15 = sbr.rel (!%p13_p5) target bundleno = 4 (0x4), region = 74 }
 0x3ac   :  { %11085 = vsyncpa [#allocation4], 1 }
 0x3ad   :  { %11087 = vsyncpa [#allocation4 + $0x1], 1 }

</bundles_post_ra>
